<compile_context>
chip_gen: v5e
topology: v5e:2x2
jax: 0.10.0
libtpu: 0.0.40
codegen_flags: <defaults>
</compile_context>

<pallas_src>
import jax
import jax.numpy as jnp
from jax.experimental import pallas as pl
from jax.experimental.pallas import tpu as pltpu


def _cdiv(a, b):
    return -(-a // b)


def _round_up(a, b):
    return _cdiv(a, b) * b


def _make_mixing_kernel(n_groups, in_points, eff_in_dim, out_points, eff_out_dim,
                        m_rows):
    G, Pi, Ci, Po, Co = n_groups, in_points, eff_in_dim, out_points, eff_out_dim

    def kernel(q_ref, x_ref, w_ref, b_ref, o_ref):
        # q_ref: (1, Kq, TQ)      bf16  query block, query axis on lanes
        # x_ref: (1, G*Pi*Ci, TQ) bf16  sampled features, query axis on lanes
        # w_ref: (total, Kq)      bf16  generator weights (VMEM-resident)
        # b_ref: (total, 1)       f32   generator bias
        # o_ref: (1, TQ, G*Po*Co)       output block, query-major (lane-dense)
        tq = q_ref.shape[-1]

        # Fused parameter generator (one small MXU GEMM, K=Kq).  NOTE: bf16
        # weights/queries with f32 accumulation -- documented numeric choice.
        params = jnp.dot(w_ref[...], q_ref[0],
                         preferred_element_type=jnp.float32)            # [total, TQ]
        params = params + b_ref[...]                                     # lane broadcast

        out_rows = []
        for g in range(G):
            # Per-group operand slabs: static, sublane-aligned slices.  They sit
            # in VMEM and stream through the (plentiful) vld slots.
            x_g = x_ref[0, g * Pi * Ci:(g + 1) * Pi * Ci, :].astype(jnp.float32)
            x_g = x_g.reshape(Pi, Ci, tq)                                 # [Pi,Ci,TQ]
            m_g = params[g * Ci * Co:(g + 1) * Ci * Co, :].reshape(Ci, Co, tq)
            s_g = params[m_rows + g * Po * Pi:
                         m_rows + (g + 1) * Po * Pi, :].reshape(Po, Pi, tq)

            # Fused step1+step2 with vreg-resident accumulators:
            #   mix_p[d,q]   = sum_c x_g[p,c,q] * m_g[c,d,q]     ([Co,TQ], <=4 vregs)
            #   out_o[d,q]  += s_g[o,p,q] * mix_p[d,q]           ([Co,TQ] each)
            # mix_p is consumed immediately; no [G,Pi,Co,TQ] slab is materialized.
            out_acc = [None] * Po
            for p in range(Pi):
                mix_p = x_g[p, 0:1, :] * m_g[0]
                for c in range(1, Ci):
                    mix_p = mix_p + x_g[p, c:c + 1, :] * m_g[c]
                for o in range(Po):
                    contrib = s_g[o, p:p + 1, :] * mix_p
                    out_acc[o] = contrib if out_acc[o] is None else out_acc[o] + contrib
            out_rows.extend(out_acc)

        # [f_out, TQ] -> [TQ, f_out] on the (otherwise idle) XLU so the HBM output
        # is already query-major and the wrapper needs no XLA transpose pass.
        out_all = jnp.concatenate(out_rows, axis=0)                       # [f_out, TQ]
        o_ref[0] = out_all.T.astype(o_ref.dtype)                          # [TQ, f_out]

    return kernel


def adaptive_mixing_fused(x, query, gen_w, gen_b, *, out_points, eff_out_dim,
                          tq_max=512):
    """x:[B,Q,G,P_in,C_in]  query:[B,Q,query_dim]  gen_w:[query_dim,total]  gen_b:[total]."""
    B, Q, G, Pi, Ci = x.shape
    Kq = query.shape[-1]
    Po, Co = out_points, eff_out_dim
    f_in = G * Pi * Ci
    f_out = G * Po * Co
    m_rows = G * Ci * Co
    total = gen_w.shape[-1]
    assert total == m_rows + G * Po * Pi
    # In-kernel slices/reshapes assume sublane(8)-aligned per-group row counts.
    assert (m_rows % 8 == 0 and (Ci * Co) % 8 == 0 and (Po * Pi) % 8 == 0
            and (Pi * Ci) % 8 == 0), "per-group row counts must be multiples of 8"

    out_dtype = x.dtype
    n = B * Q

    # Query tile: lane-dense (multiple of 128), capped at tq_max; target >=2
    # (up to 4) grid blocks whenever there is enough work so the "parallel" axis
    # can use both v7x TensorCores and the pipeline overlaps DMA with compute.
    nb_target = max(_cdiv(n, tq_max), min(4, _cdiv(n, 128)), 1)
    tq = _round_up(_cdiv(n, nb_target), 128)
    nb = _cdiv(n, tq)
    n_pad = nb * tq

    # bf16 for the HBM-dominant tensors (x, query): halves kernel DMA and
    # XLA-transpose bytes (matters most at v5e's HBM roofline).  Accumulation is
    # f32 in-kernel; the output keeps the caller's dtype.
    x2 = x.reshape(n, f_in).astype(jnp.bfloat16)
    q2 = query.reshape(n, Kq).astype(jnp.bfloat16)
    if n_pad != n:
        # Padded queries produce garbage-but-discarded rows (sliced off below).
        x2 = jnp.pad(x2, ((0, n_pad - n), (0, 0)))
        q2 = jnp.pad(q2, ((0, n_pad - n), (0, 0)))

    # Lane-dense, query-minor input slabs (query axis on lanes inside the kernel).
    # TODO(synk): the x transpose here is an XLA pass; it could also move in-kernel
    # if the upstream producer cannot emit query-minor layout directly.
    x_t = x2.reshape(nb, tq, f_in).transpose(0, 2, 1)      # [nb, f_in, TQ] bf16
    q_t = q2.reshape(nb, tq, Kq).transpose(0, 2, 1)        # [nb, Kq,  TQ] bf16
    w_t = gen_w.T.astype(jnp.bfloat16)                     # [total, Kq]
    b_c = gen_b.astype(jnp.float32).reshape(total, 1)      # [total, 1]

    kernel = _make_mixing_kernel(G, Pi, Ci, Po, Co, m_rows)

    out_t = pl.pallas_call(
        kernel,
        out_shape=jax.ShapeDtypeStruct((nb, tq, f_out), out_dtype),
        grid_spec=pltpu.PrefetchScalarGridSpec(
            num_scalar_prefetch=0,
            grid=(nb,),
            in_specs=[
                pl.BlockSpec((1, Kq, tq), lambda i: (i, 0, 0)),
                pl.BlockSpec((1, f_in, tq), lambda i: (i, 0, 0)),
                # Generator weights/bias: constant block index -> VMEM resident.
                pl.BlockSpec((total, Kq), lambda i: (0, 0)),
                pl.BlockSpec((total, 1), lambda i: (0, 0)),
            ],
            out_specs=pl.BlockSpec((1, tq, f_out), lambda i: (i, 0, 0)),
        ),
        compiler_params=pltpu.CompilerParams(
            dimension_semantics=("parallel",),
            vmem_limit_bytes=32 * 1024 * 1024,
        ),
    )(q_t, x_t, w_t, b_c)

    # Output is already query-major: reshape + drop padding, no XLA transpose.
    out = out_t.reshape(n_pad, f_out)[:n]
    return out.reshape(B, Q, G, Po, Co)


class SRShadowForFlops:
    # TODO(synk): the PyTorch forward() literally returns None (module exists only
    # for FLOPs accounting); we implement the adaptive-mixing compute described by
    # __user_flops_handle__, with a deterministic stand-in parameter generator.

    def __init__(self, in_dim, in_points, n_groups, query_dim=None, out_dim=None,
                 out_points=None, **kwargs):
        out_dim = out_dim if out_dim is not None else in_dim
        out_points = out_points if out_points is not None else in_points
        query_dim = query_dim if query_dim is not None else in_dim
        self.query_dim = query_dim
        self.in_dim = in_dim
        self.in_points = in_points
        self.n_groups = n_groups
        self.out_dim = out_dim
        self.out_points = out_points
        self.eff_in_dim = in_dim // n_groups
        self.eff_out_dim = out_dim // n_groups

        total = n_groups * (self.eff_in_dim * self.eff_out_dim
                            + in_points * self.out_points)
        k1, k2 = jax.random.split(jax.random.PRNGKey(0))
        self.gen_w = jax.random.normal(k1, (query_dim, total), jnp.float32) * 0.02
        self.gen_b = jax.random.normal(k2, (total,), jnp.float32) * 0.02

    def __call__(self, x, query):
        B, Q, G, P_in, C_in = x.shape
        assert G == self.n_groups and P_in == self.in_points and C_in == self.eff_in_dim
        assert query.shape == (B, Q, self.query_dim)
        return adaptive_mixing_fused(
            x, query, self.gen_w, self.gen_b,
            out_points=self.out_points, eff_out_dim=self.eff_out_dim)


def _reference(mod, x, query):
    """Plain-JAX reference of the fused generator + adaptive mixing.

    Mirrors the kernel's documented numeric choices: bf16 generator inputs and
    bf16 x, with f32 accumulation.
    """
    B, Q = query.shape[:2]
    G, Pi, Ci = mod.n_groups, mod.in_points, mod.eff_in_dim
    Po, Co = mod.out_points, mod.eff_out_dim
    w = mod.gen_w.astype(jnp.bfloat16)
    qb = query.astype(jnp.bfloat16)
    params = jnp.dot(qb, w, preferred_element_type=jnp.float32) + mod.gen_b
    m_rows = G * Ci * Co
    M = params[..., :m_rows].reshape(B, Q, G, Ci, Co)
    S = params[..., m_rows:].reshape(B, Q, G, Po, Pi)
    xf = x.astype(jnp.bfloat16).astype(jnp.float32)
    mixed = (xf[..., :, :, None] * M[..., None, :, :]).sum(-2)   # [B,Q,G,Pi,Co]
    out = (S[..., :, :, None] * mixed[..., None, :, :]).sum(-2)  # [B,Q,G,Po,Co]
    return out.astype(x.dtype)


if __name__ == "__main__":
    # small shapes: in_dim=32, n_groups=4 -> eff_in_dim=8; in_points=8; query_dim=32
    B, Q = 2, 8
    in_dim, in_points, n_groups, query_dim = 32, 8, 4, 32
    eff_in_dim = in_dim // n_groups

    mod = SRShadowForFlops(in_dim=in_dim, in_points=in_points,
                           n_groups=n_groups, query_dim=query_dim)

    kx, kq = jax.random.split(jax.random.PRNGKey(0), 2)
    x = jax.random.normal(kx, (B, Q, n_groups, in_points, eff_in_dim), jnp.float32)
    query = jax.random.normal(kq, (B, Q, query_dim), jnp.float32)

    out = jax.block_until_ready(mod(x, query))
    ref = _reference(mod, x, query)

    assert out.shape == (B, Q, n_groups, mod.out_points, mod.eff_out_dim)
    assert out.dtype == x.dtype
    assert jnp.allclose(out, ref, atol=5e-3, rtol=5e-3), \
        float(jnp.max(jnp.abs(out - ref)))
    print("KERNEL_OK")
</pallas_src>

<mosaic_0001>
module attributes {stable_mosaic.version = 11 : i64} {
  func.func @kernel(%arg0: i32, %arg1: memref<1x32x128xbf16, #tpu.memory_space<vmem>>, %arg2: memref<1x256x128xbf16, #tpu.memory_space<vmem>>, %arg3: memref<512x32xbf16, #tpu.memory_space<vmem>>, %arg4: memref<512x1xf32, #tpu.memory_space<vmem>>, %arg5: memref<1x128x256xf32, #tpu.memory_space<vmem>>) attributes {dimension_semantics = [#tpu.dimension_semantics<parallel>], iteration_bounds = array<i64: 1>, scalar_prefetch = 0 : i64, scratch_operands = 0 : i64, tpu.core_type = #tpu.core_type<tc>, window_params = [{transform_indices = @transform_0, window_bounds = array<i64: 1, 32, 128>}, {transform_indices = @transform_1, window_bounds = array<i64: 1, 256, 128>}, {pipeline_mode = #tpu.pipeline_mode<synchronous>, transform_indices = @transform_2, window_bounds = array<i64: 512, 32>}, {pipeline_mode = #tpu.pipeline_mode<synchronous>, transform_indices = @transform_3, window_bounds = array<i64: 512, 1>}, {transform_indices = @transform_4, window_bounds = array<i64: 1, 128, 256>}]} {
    %c0 = arith.constant 0 : index
    %c0_0 = arith.constant 0 : index
    %0 = vector.load %arg3[%c0, %c0_0] : memref<512x32xbf16, #tpu.memory_space<vmem>>, vector<512x32xbf16>
    %c0_1 = arith.constant 0 : index
    %c0_2 = arith.constant 0 : index
    %c0_3 = arith.constant 0 : index
    %1 = vector.load %arg1[%c0_1, %c0_2, %c0_3] : memref<1x32x128xbf16, #tpu.memory_space<vmem>>, vector<1x32x128xbf16>
    %2 = vector.shape_cast %1 : vector<1x32x128xbf16> to vector<32x128xbf16>
    %cst = arith.constant dense<0.000000e+00> : vector<512x128xf32>
    %3 = tpu.matmul %0, %2, %cst {dimension_numbers = #tpu.dot_dimension_numbers<[1], [0], [0], [1], [0, 0, 1, 1], [], []>} : vector<512x32xbf16>, vector<32x128xbf16>, vector<512x128xf32> -> vector<512x128xf32>
    %c0_4 = arith.constant 0 : index
    %c0_5 = arith.constant 0 : index
    %4 = vector.load %arg4[%c0_4, %c0_5] : memref<512x1xf32, #tpu.memory_space<vmem>>, vector<512x1xf32>
    %5 = vector.broadcast %4 : vector<512x1xf32> to vector<512x128xf32>
    %6 = arith.addf %3, %5 : vector<512x128xf32>
    %c0_6 = arith.constant 0 : index
    %c0_7 = arith.constant 0 : index
    %c0_8 = arith.constant 0 : index
    %7 = vector.load %arg2[%c0_6, %c0_7, %c0_8] : memref<1x256x128xbf16, #tpu.memory_space<vmem>>, vector<1x64x128xbf16>
    %8 = vector.shape_cast %7 : vector<1x64x128xbf16> to vector<64x128xbf16>
    %9 = arith.extf %8 : vector<64x128xbf16> to vector<64x128xf32>
    %10 = vector.shape_cast %9 : vector<64x128xf32> to vector<8x8x128xf32>
    %11 = vector.extract_strided_slice %6 {offsets = [0, 0], sizes = [64, 128], strides = [1, 1]} : vector<512x128xf32> to vector<64x128xf32>
    %12 = vector.shape_cast %11 : vector<64x128xf32> to vector<8x8x128xf32>
    %13 = vector.extract_strided_slice %6 {offsets = [256, 0], sizes = [64, 128], strides = [1, 1]} : vector<512x128xf32> to vector<64x128xf32>
    %14 = vector.shape_cast %13 : vector<64x128xf32> to vector<8x8x128xf32>
    %15 = vector.extract_strided_slice %10 {offsets = [0, 0, 0], sizes = [1, 1, 128], strides = [1, 1, 1]} : vector<8x8x128xf32> to vector<1x1x128xf32>
    %16 = vector.shape_cast %15 : vector<1x1x128xf32> to vector<1x128xf32>
    %17 = vector.extract_strided_slice %12 {offsets = [0, 0, 0], sizes = [1, 8, 128], strides = [1, 1, 1]} : vector<8x8x128xf32> to vector<1x8x128xf32>
    %18 = vector.shape_cast %17 : vector<1x8x128xf32> to vector<8x128xf32>
    %19 = vector.broadcast %16 : vector<1x128xf32> to vector<8x128xf32>
    %20 = arith.mulf %19, %18 : vector<8x128xf32>
    %21 = vector.extract_strided_slice %10 {offsets = [0, 1, 0], sizes = [1, 1, 128], strides = [1, 1, 1]} : vector<8x8x128xf32> to vector<1x1x128xf32>
    %22 = vector.shape_cast %21 : vector<1x1x128xf32> to vector<1x128xf32>
    %23 = vector.extract_strided_slice %12 {offsets = [1, 0, 0], sizes = [1, 8, 128], strides = [1, 1, 1]} : vector<8x8x128xf32> to vector<1x8x128xf32>
    %24 = vector.shape_cast %23 : vector<1x8x128xf32> to vector<8x128xf32>
    %25 = vector.broadcast %22 : vector<1x128xf32> to vector<8x128xf32>
    %26 = arith.mulf %25, %24 : vector<8x128xf32>
    %27 = arith.addf %20, %26 : vector<8x128xf32>
    %28 = vector.extract_strided_slice %10 {offsets = [0, 2, 0], sizes = [1, 1, 128], strides = [1, 1, 1]} : vector<8x8x128xf32> to vector<1x1x128xf32>
    %29 = vector.shape_cast %28 : vector<1x1x128xf32> to vector<1x128xf32>
    %30 = vector.extract_strided_slice %12 {offsets = [2, 0, 0], sizes = [1, 8, 128], strides = [1, 1, 1]} : vector<8x8x128xf32> to vector<1x8x128xf32>
    %31 = vector.shape_cast %30 : vector<1x8x128xf32> to vector<8x128xf32>
    %32 = vector.broadcast %29 : vector<1x128xf32> to vector<8x128xf32>
    %33 = arith.mulf %32, %31 : vector<8x128xf32>
    %34 = arith.addf %27, %33 : vector<8x128xf32>
    %35 = vector.extract_strided_slice %10 {offsets = [0, 3, 0], sizes = [1, 1, 128], strides = [1, 1, 1]} : vector<8x8x128xf32> to vector<1x1x128xf32>
    %36 = vector.shape_cast %35 : vector<1x1x128xf32> to vector<1x128xf32>
    %37 = vector.extract_strided_slice %12 {offsets = [3, 0, 0], sizes = [1, 8, 128], strides = [1, 1, 1]} : vector<8x8x128xf32> to vector<1x8x128xf32>
    %38 = vector.shape_cast %37 : vector<1x8x128xf32> to vector<8x128xf32>
    %39 = vector.broadcast %36 : vector<1x128xf32> to vector<8x128xf32>
    %40 = arith.mulf %39, %38 : vector<8x128xf32>
    %41 = arith.addf %34, %40 : vector<8x128xf32>
    %42 = vector.extract_strided_slice %10 {offsets = [0, 4, 0], sizes = [1, 1, 128], strides = [1, 1, 1]} : vector<8x8x128xf32> to vector<1x1x128xf32>
    %43 = vector.shape_cast %42 : vector<1x1x128xf32> to vector<1x128xf32>
    %44 = vector.extract_strided_slice %12 {offsets = [4, 0, 0], sizes = [1, 8, 128], strides = [1, 1, 1]} : vector<8x8x128xf32> to vector<1x8x128xf32>
    %45 = vector.shape_cast %44 : vector<1x8x128xf32> to vector<8x128xf32>
    %46 = vector.broadcast %43 : vector<1x128xf32> to vector<8x128xf32>
    %47 = arith.mulf %46, %45 : vector<8x128xf32>
    %48 = arith.addf %41, %47 : vector<8x128xf32>
    %49 = vector.extract_strided_slice %10 {offsets = [0, 5, 0], sizes = [1, 1, 128], strides = [1, 1, 1]} : vector<8x8x128xf32> to vector<1x1x128xf32>
    %50 = vector.shape_cast %49 : vector<1x1x128xf32> to vector<1x128xf32>
    %51 = vector.extract_strided_slice %12 {offsets = [5, 0, 0], sizes = [1, 8, 128], strides = [1, 1, 1]} : vector<8x8x128xf32> to vector<1x8x128xf32>
    %52 = vector.shape_cast %51 : vector<1x8x128xf32> to vector<8x128xf32>
    %53 = vector.broadcast %50 : vector<1x128xf32> to vector<8x128xf32>
    %54 = arith.mulf %53, %52 : vector<8x128xf32>
    %55 = arith.addf %48, %54 : vector<8x128xf32>
    %56 = vector.extract_strided_slice %10 {offsets = [0, 6, 0], sizes = [1, 1, 128], strides = [1, 1, 1]} : vector<8x8x128xf32> to vector<1x1x128xf32>
    %57 = vector.shape_cast %56 : vector<1x1x128xf32> to vector<1x128xf32>
    %58 = vector.extract_strided_slice %12 {offsets = [6, 0, 0], sizes = [1, 8, 128], strides = [1, 1, 1]} : vector<8x8x128xf32> to vector<1x8x128xf32>
    %59 = vector.shape_cast %58 : vector<1x8x128xf32> to vector<8x128xf32>
    %60 = vector.broadcast %57 : vector<1x128xf32> to vector<8x128xf32>
    %61 = arith.mulf %60, %59 : vector<8x128xf32>
    %62 = arith.addf %55, %61 : vector<8x128xf32>
    %63 = vector.extract_strided_slice %10 {offsets = [0, 7, 0], sizes = [1, 1, 128], strides = [1, 1, 1]} : vector<8x8x128xf32> to vector<1x1x128xf32>
    %64 = vector.shape_cast %63 : vector<1x1x128xf32> to vector<1x128xf32>
    %65 = vector.extract_strided_slice %12 {offsets = [7, 0, 0], sizes = [1, 8, 128], strides = [1, 1, 1]} : vector<8x8x128xf32> to vector<1x8x128xf32>
    %66 = vector.shape_cast %65 : vector<1x8x128xf32> to vector<8x128xf32>
    %67 = vector.broadcast %64 : vector<1x128xf32> to vector<8x128xf32>
    %68 = arith.mulf %67, %66 : vector<8x128xf32>
    %69 = arith.addf %62, %68 : vector<8x128xf32>
    %70 = vector.extract_strided_slice %14 {offsets = [0, 0, 0], sizes = [1, 1, 128], strides = [1, 1, 1]} : vector<8x8x128xf32> to vector<1x1x128xf32>
    %71 = vector.shape_cast %70 : vector<1x1x128xf32> to vector<1x128xf32>
    %72 = vector.broadcast %71 : vector<1x128xf32> to vector<8x128xf32>
    %73 = arith.mulf %72, %69 : vector<8x128xf32>
    %74 = vector.extract_strided_slice %14 {offsets = [1, 0, 0], sizes = [1, 1, 128], strides = [1, 1, 1]} : vector<8x8x128xf32> to vector<1x1x128xf32>
    %75 = vector.shape_cast %74 : vector<1x1x128xf32> to vector<1x128xf32>
    %76 = vector.broadcast %75 : vector<1x128xf32> to vector<8x128xf32>
    %77 = arith.mulf %76, %69 : vector<8x128xf32>
    %78 = vector.extract_strided_slice %14 {offsets = [2, 0, 0], sizes = [1, 1, 128], strides = [1, 1, 1]} : vector<8x8x128xf32> to vector<1x1x128xf32>
    %79 = vector.shape_cast %78 : vector<1x1x128xf32> to vector<1x128xf32>
    %80 = vector.broadcast %79 : vector<1x128xf32> to vector<8x128xf32>
    %81 = arith.mulf %80, %69 : vector<8x128xf32>
    %82 = vector.extract_strided_slice %14 {offsets = [3, 0, 0], sizes = [1, 1, 128], strides = [1, 1, 1]} : vector<8x8x128xf32> to vector<1x1x128xf32>
    %83 = vector.shape_cast %82 : vector<1x1x128xf32> to vector<1x128xf32>
    %84 = vector.broadcast %83 : vector<1x128xf32> to vector<8x128xf32>
    %85 = arith.mulf %84, %69 : vector<8x128xf32>
    %86 = vector.extract_strided_slice %14 {offsets = [4, 0, 0], sizes = [1, 1, 128], strides = [1, 1, 1]} : vector<8x8x128xf32> to vector<1x1x128xf32>
    %87 = vector.shape_cast %86 : vector<1x1x128xf32> to vector<1x128xf32>
    %88 = vector.broadcast %87 : vector<1x128xf32> to vector<8x128xf32>
    %89 = arith.mulf %88, %69 : vector<8x128xf32>
    %90 = vector.extract_strided_slice %14 {offsets = [5, 0, 0], sizes = [1, 1, 128], strides = [1, 1, 1]} : vector<8x8x128xf32> to vector<1x1x128xf32>
    %91 = vector.shape_cast %90 : vector<1x1x128xf32> to vector<1x128xf32>
    %92 = vector.broadcast %91 : vector<1x128xf32> to vector<8x128xf32>
    %93 = arith.mulf %92, %69 : vector<8x128xf32>
    %94 = vector.extract_strided_slice %14 {offsets = [6, 0, 0], sizes = [1, 1, 128], strides = [1, 1, 1]} : vector<8x8x128xf32> to vector<1x1x128xf32>
    %95 = vector.shape_cast %94 : vector<1x1x128xf32> to vector<1x128xf32>
    %96 = vector.broadcast %95 : vector<1x128xf32> to vector<8x128xf32>
    %97 = arith.mulf %96, %69 : vector<8x128xf32>
    %98 = vector.extract_strided_slice %14 {offsets = [7, 0, 0], sizes = [1, 1, 128], strides = [1, 1, 1]} : vector<8x8x128xf32> to vector<1x1x128xf32>
    %99 = vector.shape_cast %98 : vector<1x1x128xf32> to vector<1x128xf32>
    %100 = vector.broadcast %99 : vector<1x128xf32> to vector<8x128xf32>
    %101 = arith.mulf %100, %69 : vector<8x128xf32>
    %102 = vector.extract_strided_slice %10 {offsets = [1, 0, 0], sizes = [1, 1, 128], strides = [1, 1, 1]} : vector<8x8x128xf32> to vector<1x1x128xf32>
    %103 = vector.shape_cast %102 : vector<1x1x128xf32> to vector<1x128xf32>
    %104 = vector.extract_strided_slice %12 {offsets = [0, 0, 0], sizes = [1, 8, 128], strides = [1, 1, 1]} : vector<8x8x128xf32> to vector<1x8x128xf32>
    %105 = vector.shape_cast %104 : vector<1x8x128xf32> to vector<8x128xf32>
    %106 = vector.broadcast %103 : vector<1x128xf32> to vector<8x128xf32>
    %107 = arith.mulf %106, %105 : vector<8x128xf32>
    %108 = vector.extract_strided_slice %10 {offsets = [1, 1, 0], sizes = [1, 1, 128], strides = [1, 1, 1]} : vector<8x8x128xf32> to vector<1x1x128xf32>
    %109 = vector.shape_cast %108 : vector<1x1x128xf32> to vector<1x128xf32>
    %110 = vector.extract_strided_slice %12 {offsets = [1, 0, 0], sizes = [1, 8, 128], strides = [1, 1, 1]} : vector<8x8x128xf32> to vector<1x8x128xf32>
    %111 = vector.shape_cast %110 : vector<1x8x128xf32> to vector<8x128xf32>
    %112 = vector.broadcast %109 : vector<1x128xf32> to vector<8x128xf32>
    %113 = arith.mulf %112, %111 : vector<8x128xf32>
    %114 = arith.addf %107, %113 : vector<8x128xf32>
    %115 = vector.extract_strided_slice %10 {offsets = [1, 2, 0], sizes = [1, 1, 128], strides = [1, 1, 1]} : vector<8x8x128xf32> to vector<1x1x128xf32>
    %116 = vector.shape_cast %115 : vector<1x1x128xf32> to vector<1x128xf32>
    %117 = vector.extract_strided_slice %12 {offsets = [2, 0, 0], sizes = [1, 8, 128], strides = [1, 1, 1]} : vector<8x8x128xf32> to vector<1x8x128xf32>
    %118 = vector.shape_cast %117 : vector<1x8x128xf32> to vector<8x128xf32>
    %119 = vector.broadcast %116 : vector<1x128xf32> to vector<8x128xf32>
    %120 = arith.mulf %119, %118 : vector<8x128xf32>
    %121 = arith.addf %114, %120 : vector<8x128xf32>
    %122 = vector.extract_strided_slice %10 {offsets = [1, 3, 0], sizes = [1, 1, 128], strides = [1, 1, 1]} : vector<8x8x128xf32> to vector<1x1x128xf32>
    %123 = vector.shape_cast %122 : vector<1x1x128xf32> to vector<1x128xf32>
    %124 = vector.extract_strided_slice %12 {offsets = [3, 0, 0], sizes = [1, 8, 128], strides = [1, 1, 1]} : vector<8x8x128xf32> to vector<1x8x128xf32>
    %125 = vector.shape_cast %124 : vector<1x8x128xf32> to vector<8x128xf32>
    %126 = vector.broadcast %123 : vector<1x128xf32> to vector<8x128xf32>
    %127 = arith.mulf %126, %125 : vector<8x128xf32>
    %128 = arith.addf %121, %127 : vector<8x128xf32>
    %129 = vector.extract_strided_slice %10 {offsets = [1, 4, 0], sizes = [1, 1, 128], strides = [1, 1, 1]} : vector<8x8x128xf32> to vector<1x1x128xf32>
    %130 = vector.shape_cast %129 : vector<1x1x128xf32> to vector<1x128xf32>
    %131 = vector.extract_strided_slice %12 {offsets = [4, 0, 0], sizes = [1, 8, 128], strides = [1, 1, 1]} : vector<8x8x128xf32> to vector<1x8x128xf32>
    %132 = vector.shape_cast %131 : vector<1x8x128xf32> to vector<8x128xf32>
    %133 = vector.broadcast %130 : vector<1x128xf32> to vector<8x128xf32>
    %134 = arith.mulf %133, %132 : vector<8x128xf32>
    %135 = arith.addf %128, %134 : vector<8x128xf32>
    %136 = vector.extract_strided_slice %10 {offsets = [1, 5, 0], sizes = [1, 1, 128], strides = [1, 1, 1]} : vector<8x8x128xf32> to vector<1x1x128xf32>
    %137 = vector.shape_cast %136 : vector<1x1x128xf32> to vector<1x128xf32>
    %138 = vector.extract_strided_slice %12 {offsets = [5, 0, 0], sizes = [1, 8, 128], strides = [1, 1, 1]} : vector<8x8x128xf32> to vector<1x8x128xf32>
    %139 = vector.shape_cast %138 : vector<1x8x128xf32> to vector<8x128xf32>
    %140 = vector.broadcast %137 : vector<1x128xf32> to vector<8x128xf32>
    %141 = arith.mulf %140, %139 : vector<8x128xf32>
    %142 = arith.addf %135, %141 : vector<8x128xf32>
    %143 = vector.extract_strided_slice %10 {offsets = [1, 6, 0], sizes = [1, 1, 128], strides = [1, 1, 1]} : vector<8x8x128xf32> to vector<1x1x128xf32>
    %144 = vector.shape_cast %143 : vector<1x1x128xf32> to vector<1x128xf32>
    %145 = vector.extract_strided_slice %12 {offsets = [6, 0, 0], sizes = [1, 8, 128], strides = [1, 1, 1]} : vector<8x8x128xf32> to vector<1x8x128xf32>
    %146 = vector.shape_cast %145 : vector<1x8x128xf32> to vector<8x128xf32>
    %147 = vector.broadcast %144 : vector<1x128xf32> to vector<8x128xf32>
    %148 = arith.mulf %147, %146 : vector<8x128xf32>
    %149 = arith.addf %142, %148 : vector<8x128xf32>
    %150 = vector.extract_strided_slice %10 {offsets = [1, 7, 0], sizes = [1, 1, 128], strides = [1, 1, 1]} : vector<8x8x128xf32> to vector<1x1x128xf32>
    %151 = vector.shape_cast %150 : vector<1x1x128xf32> to vector<1x128xf32>
    %152 = vector.extract_strided_slice %12 {offsets = [7, 0, 0], sizes = [1, 8, 128], strides = [1, 1, 1]} : vector<8x8x128xf32> to vector<1x8x128xf32>
    %153 = vector.shape_cast %152 : vector<1x8x128xf32> to vector<8x128xf32>
    %154 = vector.broadcast %151 : vector<1x128xf32> to vector<8x128xf32>
    %155 = arith.mulf %154, %153 : vector<8x128xf32>
    %156 = arith.addf %149, %155 : vector<8x128xf32>
    %157 = vector.extract_strided_slice %14 {offsets = [0, 1, 0], sizes = [1, 1, 128], strides = [1, 1, 1]} : vector<8x8x128xf32> to vector<1x1x128xf32>
    %158 = vector.shape_cast %157 : vector<1x1x128xf32> to vector<1x128xf32>
    %159 = vector.broadcast %158 : vector<1x128xf32> to vector<8x128xf32>
    %160 = arith.mulf %159, %156 : vector<8x128xf32>
    %161 = arith.addf %73, %160 : vector<8x128xf32>
    %162 = vector.extract_strided_slice %14 {offsets = [1, 1, 0], sizes = [1, 1, 128], strides = [1, 1, 1]} : vector<8x8x128xf32> to vector<1x1x128xf32>
    %163 = vector.shape_cast %162 : vector<1x1x128xf32> to vector<1x128xf32>
    %164 = vector.broadcast %163 : vector<1x128xf32> to vector<8x128xf32>
    %165 = arith.mulf %164, %156 : vector<8x128xf32>
    %166 = arith.addf %77, %165 : vector<8x128xf32>
    %167 = vector.extract_strided_slice %14 {offsets = [2, 1, 0], sizes = [1, 1, 128], strides = [1, 1, 1]} : vector<8x8x128xf32> to vector<1x1x128xf32>
    %168 = vector.shape_cast %167 : vector<1x1x128xf32> to vector<1x128xf32>
    %169 = vector.broadcast %168 : vector<1x128xf32> to vector<8x128xf32>
    %170 = arith.mulf %169, %156 : vector<8x128xf32>
    %171 = arith.addf %81, %170 : vector<8x128xf32>
    %172 = vector.extract_strided_slice %14 {offsets = [3, 1, 0], sizes = [1, 1, 128], strides = [1, 1, 1]} : vector<8x8x128xf32> to vector<1x1x128xf32>
    %173 = vector.shape_cast %172 : vector<1x1x128xf32> to vector<1x128xf32>
    %174 = vector.broadcast %173 : vector<1x128xf32> to vector<8x128xf32>
    %175 = arith.mulf %174, %156 : vector<8x128xf32>
    %176 = arith.addf %85, %175 : vector<8x128xf32>
    %177 = vector.extract_strided_slice %14 {offsets = [4, 1, 0], sizes = [1, 1, 128], strides = [1, 1, 1]} : vector<8x8x128xf32> to vector<1x1x128xf32>
    %178 = vector.shape_cast %177 : vector<1x1x128xf32> to vector<1x128xf32>
    %179 = vector.broadcast %178 : vector<1x128xf32> to vector<8x128xf32>
    %180 = arith.mulf %179, %156 : vector<8x128xf32>
    %181 = arith.addf %89, %180 : vector<8x128xf32>
    %182 = vector.extract_strided_slice %14 {offsets = [5, 1, 0], sizes = [1, 1, 128], strides = [1, 1, 1]} : vector<8x8x128xf32> to vector<1x1x128xf32>
    %183 = vector.shape_cast %182 : vector<1x1x128xf32> to vector<1x128xf32>
    %184 = vector.broadcast %183 : vector<1x128xf32> to vector<8x128xf32>
    %185 = arith.mulf %184, %156 : vector<8x128xf32>
    %186 = arith.addf %93, %185 : vector<8x128xf32>
    %187 = vector.extract_strided_slice %14 {offsets = [6, 1, 0], sizes = [1, 1, 128], strides = [1, 1, 1]} : vector<8x8x128xf32> to vector<1x1x128xf32>
    %188 = vector.shape_cast %187 : vector<1x1x128xf32> to vector<1x128xf32>
    %189 = vector.broadcast %188 : vector<1x128xf32> to vector<8x128xf32>
    %190 = arith.mulf %189, %156 : vector<8x128xf32>
    %191 = arith.addf %97, %190 : vector<8x128xf32>
    %192 = vector.extract_strided_slice %14 {offsets = [7, 1, 0], sizes = [1, 1, 128], strides = [1, 1, 1]} : vector<8x8x128xf32> to vector<1x1x128xf32>
    %193 = vector.shape_cast %192 : vector<1x1x128xf32> to vector<1x128xf32>
    %194 = vector.broadcast %193 : vector<1x128xf32> to vector<8x128xf32>
    %195 = arith.mulf %194, %156 : vector<8x128xf32>
    %196 = arith.addf %101, %195 : vector<8x128xf32>
    %197 = vector.extract_strided_slice %10 {offsets = [2, 0, 0], sizes = [1, 1, 128], strides = [1, 1, 1]} : vector<8x8x128xf32> to vector<1x1x128xf32>
    %198 = vector.shape_cast %197 : vector<1x1x128xf32> to vector<1x128xf32>
    %199 = vector.extract_strided_slice %12 {offsets = [0, 0, 0], sizes = [1, 8, 128], strides = [1, 1, 1]} : vector<8x8x128xf32> to vector<1x8x128xf32>
    %200 = vector.shape_cast %199 : vector<1x8x128xf32> to vector<8x128xf32>
    %201 = vector.broadcast %198 : vector<1x128xf32> to vector<8x128xf32>
    %202 = arith.mulf %201, %200 : vector<8x128xf32>
    %203 = vector.extract_strided_slice %10 {offsets = [2, 1, 0], sizes = [1, 1, 128], strides = [1, 1, 1]} : vector<8x8x128xf32> to vector<1x1x128xf32>
    %204 = vector.shape_cast %203 : vector<1x1x128xf32> to vector<1x128xf32>
    %205 = vector.extract_strided_slice %12 {offsets = [1, 0, 0], sizes = [1, 8, 128], strides = [1, 1, 1]} : vector<8x8x128xf32> to vector<1x8x128xf32>
    %206 = vector.shape_cast %205 : vector<1x8x128xf32> to vector<8x128xf32>
    %207 = vector.broadcast %204 : vector<1x128xf32> to vector<8x128xf32>
    %208 = arith.mulf %207, %206 : vector<8x128xf32>
    %209 = arith.addf %202, %208 : vector<8x128xf32>
    %210 = vector.extract_strided_slice %10 {offsets = [2, 2, 0], sizes = [1, 1, 128], strides = [1, 1, 1]} : vector<8x8x128xf32> to vector<1x1x128xf32>
    %211 = vector.shape_cast %210 : vector<1x1x128xf32> to vector<1x128xf32>
    %212 = vector.extract_strided_slice %12 {offsets = [2, 0, 0], sizes = [1, 8, 128], strides = [1, 1, 1]} : vector<8x8x128xf32> to vector<1x8x128xf32>
    %213 = vector.shape_cast %212 : vector<1x8x128xf32> to vector<8x128xf32>
    %214 = vector.broadcast %211 : vector<1x128xf32> to vector<8x128xf32>
    %215 = arith.mulf %214, %213 : vector<8x128xf32>
    %216 = arith.addf %209, %215 : vector<8x128xf32>
    %217 = vector.extract_strided_slice %10 {offsets = [2, 3, 0], sizes = [1, 1, 128], strides = [1, 1, 1]} : vector<8x8x128xf32> to vector<1x1x128xf32>
    %218 = vector.shape_cast %217 : vector<1x1x128xf32> to vector<1x128xf32>
    %219 = vector.extract_strided_slice %12 {offsets = [3, 0, 0], sizes = [1, 8, 128], strides = [1, 1, 1]} : vector<8x8x128xf32> to vector<1x8x128xf32>
    %220 = vector.shape_cast %219 : vector<1x8x128xf32> to vector<8x128xf32>
    %221 = vector.broadcast %218 : vector<1x128xf32> to vector<8x128xf32>
    %222 = arith.mulf %221, %220 : vector<8x128xf32>
    %223 = arith.addf %216, %222 : vector<8x128xf32>
    %224 = vector.extract_strided_slice %10 {offsets = [2, 4, 0], sizes = [1, 1, 128], strides = [1, 1, 1]} : vector<8x8x128xf32> to vector<1x1x128xf32>
    %225 = vector.shape_cast %224 : vector<1x1x128xf32> to vector<1x128xf32>
    %226 = vector.extract_strided_slice %12 {offsets = [4, 0, 0], sizes = [1, 8, 128], strides = [1, 1, 1]} : vector<8x8x128xf32> to vector<1x8x128xf32>
    %227 = vector.shape_cast %226 : vector<1x8x128xf32> to vector<8x128xf32>
    %228 = vector.broadcast %225 : vector<1x128xf32> to vector<8x128xf32>
    %229 = arith.mulf %228, %227 : vector<8x128xf32>
    %230 = arith.addf %223, %229 : vector<8x128xf32>
    %231 = vector.extract_strided_slice %10 {offsets = [2, 5, 0], sizes = [1, 1, 128], strides = [1, 1, 1]} : vector<8x8x128xf32> to vector<1x1x128xf32>
    %232 = vector.shape_cast %231 : vector<1x1x128xf32> to vector<1x128xf32>
    %233 = vector.extract_strided_slice %12 {offsets = [5, 0, 0], sizes = [1, 8, 128], strides = [1, 1, 1]} : vector<8x8x128xf32> to vector<1x8x128xf32>
    %234 = vector.shape_cast %233 : vector<1x8x128xf32> to vector<8x128xf32>
    %235 = vector.broadcast %232 : vector<1x128xf32> to vector<8x128xf32>
    %236 = arith.mulf %235, %234 : vector<8x128xf32>
    %237 = arith.addf %230, %236 : vector<8x128xf32>
    %238 = vector.extract_strided_slice %10 {offsets = [2, 6, 0], sizes = [1, 1, 128], strides = [1, 1, 1]} : vector<8x8x128xf32> to vector<1x1x128xf32>
    %239 = vector.shape_cast %238 : vector<1x1x128xf32> to vector<1x128xf32>
    %240 = vector.extract_strided_slice %12 {offsets = [6, 0, 0], sizes = [1, 8, 128], strides = [1, 1, 1]} : vector<8x8x128xf32> to vector<1x8x128xf32>
    %241 = vector.shape_cast %240 : vector<1x8x128xf32> to vector<8x128xf32>
    %242 = vector.broadcast %239 : vector<1x128xf32> to vector<8x128xf32>
    %243 = arith.mulf %242, %241 : vector<8x128xf32>
    %244 = arith.addf %237, %243 : vector<8x128xf32>
    %245 = vector.extract_strided_slice %10 {offsets = [2, 7, 0], sizes = [1, 1, 128], strides = [1, 1, 1]} : vector<8x8x128xf32> to vector<1x1x128xf32>
    %246 = vector.shape_cast %245 : vector<1x1x128xf32> to vector<1x128xf32>
    %247 = vector.extract_strided_slice %12 {offsets = [7, 0, 0], sizes = [1, 8, 128], strides = [1, 1, 1]} : vector<8x8x128xf32> to vector<1x8x128xf32>
    %248 = vector.shape_cast %247 : vector<1x8x128xf32> to vector<8x128xf32>
    %249 = vector.broadcast %246 : vector<1x128xf32> to vector<8x128xf32>
    %250 = arith.mulf %249, %248 : vector<8x128xf32>
    %251 = arith.addf %244, %250 : vector<8x128xf32>
    %252 = vector.extract_strided_slice %14 {offsets = [0, 2, 0], sizes = [1, 1, 128], strides = [1, 1, 1]} : vector<8x8x128xf32> to vector<1x1x128xf32>
    %253 = vector.shape_cast %252 : vector<1x1x128xf32> to vector<1x128xf32>
    %254 = vector.broadcast %253 : vector<1x128xf32> to vector<8x128xf32>
    %255 = arith.mulf %254, %251 : vector<8x128xf32>
    %256 = arith.addf %161, %255 : vector<8x128xf32>
    %257 = vector.extract_strided_slice %14 {offsets = [1, 2, 0], sizes = [1, 1, 128], strides = [1, 1, 1]} : vector<8x8x128xf32> to vector<1x1x128xf32>
    %258 = vector.shape_cast %257 : vector<1x1x128xf32> to vector<1x128xf32>
    %259 = vector.broadcast %258 : vector<1x128xf32> to vector<8x128xf32>
    %260 = arith.mulf %259, %251 : vector<8x128xf32>
    %261 = arith.addf %166, %260 : vector<8x128xf32>
    %262 = vector.extract_strided_slice %14 {offsets = [2, 2, 0], sizes = [1, 1, 128], strides = [1, 1, 1]} : vector<8x8x128xf32> to vector<1x1x128xf32>
    %263 = vector.shape_cast %262 : vector<1x1x128xf32> to vector<1x128xf32>
    %264 = vector.broadcast %263 : vector<1x128xf32> to vector<8x128xf32>
    %265 = arith.mulf %264, %251 : vector<8x128xf32>
    %266 = arith.addf %171, %265 : vector<8x128xf32>
    %267 = vector.extract_strided_slice %14 {offsets = [3, 2, 0], sizes = [1, 1, 128], strides = [1, 1, 1]} : vector<8x8x128xf32> to vector<1x1x128xf32>
    %268 = vector.shape_cast %267 : vector<1x1x128xf32> to vector<1x128xf32>
    %269 = vector.broadcast %268 : vector<1x128xf32> to vector<8x128xf32>
    %270 = arith.mulf %269, %251 : vector<8x128xf32>
    %271 = arith.addf %176, %270 : vector<8x128xf32>
    %272 = vector.extract_strided_slice %14 {offsets = [4, 2, 0], sizes = [1, 1, 128], strides = [1, 1, 1]} : vector<8x8x128xf32> to vector<1x1x128xf32>
    %273 = vector.shape_cast %272 : vector<1x1x128xf32> to vector<1x128xf32>
    %274 = vector.broadcast %273 : vector<1x128xf32> to vector<8x128xf32>
    %275 = arith.mulf %274, %251 : vector<8x128xf32>
    %276 = arith.addf %181, %275 : vector<8x128xf32>
    %277 = vector.extract_strided_slice %14 {offsets = [5, 2, 0], sizes = [1, 1, 128], strides = [1, 1, 1]} : vector<8x8x128xf32> to vector<1x1x128xf32>
    %278 = vector.shape_cast %277 : vector<1x1x128xf32> to vector<1x128xf32>
    %279 = vector.broadcast %278 : vector<1x128xf32> to vector<8x128xf32>
    %280 = arith.mulf %279, %251 : vector<8x128xf32>
    %281 = arith.addf %186, %280 : vector<8x128xf32>
    %282 = vector.extract_strided_slice %14 {offsets = [6, 2, 0], sizes = [1, 1, 128], strides = [1, 1, 1]} : vector<8x8x128xf32> to vector<1x1x128xf32>
    %283 = vector.shape_cast %282 : vector<1x1x128xf32> to vector<1x128xf32>
    %284 = vector.broadcast %283 : vector<1x128xf32> to vector<8x128xf32>
    %285 = arith.mulf %284, %251 : vector<8x128xf32>
    %286 = arith.addf %191, %285 : vector<8x128xf32>
    %287 = vector.extract_strided_slice %14 {offsets = [7, 2, 0], sizes = [1, 1, 128], strides = [1, 1, 1]} : vector<8x8x128xf32> to vector<1x1x128xf32>
    %288 = vector.shape_cast %287 : vector<1x1x128xf32> to vector<1x128xf32>
    %289 = vector.broadcast %288 : vector<1x128xf32> to vector<8x128xf32>
    %290 = arith.mulf %289, %251 : vector<8x128xf32>
    %291 = arith.addf %196, %290 : vector<8x128xf32>
    %292 = vector.extract_strided_slice %10 {offsets = [3, 0, 0], sizes = [1, 1, 128], strides = [1, 1, 1]} : vector<8x8x128xf32> to vector<1x1x128xf32>
    %293 = vector.shape_cast %292 : vector<1x1x128xf32> to vector<1x128xf32>
    %294 = vector.extract_strided_slice %12 {offsets = [0, 0, 0], sizes = [1, 8, 128], strides = [1, 1, 1]} : vector<8x8x128xf32> to vector<1x8x128xf32>
    %295 = vector.shape_cast %294 : vector<1x8x128xf32> to vector<8x128xf32>
    %296 = vector.broadcast %293 : vector<1x128xf32> to vector<8x128xf32>
    %297 = arith.mulf %296, %295 : vector<8x128xf32>
    %298 = vector.extract_strided_slice %10 {offsets = [3, 1, 0], sizes = [1, 1, 128], strides = [1, 1, 1]} : vector<8x8x128xf32> to vector<1x1x128xf32>
    %299 = vector.shape_cast %298 : vector<1x1x128xf32> to vector<1x128xf32>
    %300 = vector.extract_strided_slice %12 {offsets = [1, 0, 0], sizes = [1, 8, 128], strides = [1, 1, 1]} : vector<8x8x128xf32> to vector<1x8x128xf32>
    %301 = vector.shape_cast %300 : vector<1x8x128xf32> to vector<8x128xf32>
    %302 = vector.broadcast %299 : vector<1x128xf32> to vector<8x128xf32>
    %303 = arith.mulf %302, %301 : vector<8x128xf32>
    %304 = arith.addf %297, %303 : vector<8x128xf32>
    %305 = vector.extract_strided_slice %10 {offsets = [3, 2, 0], sizes = [1, 1, 128], strides = [1, 1, 1]} : vector<8x8x128xf32> to vector<1x1x128xf32>
    %306 = vector.shape_cast %305 : vector<1x1x128xf32> to vector<1x128xf32>
    %307 = vector.extract_strided_slice %12 {offsets = [2, 0, 0], sizes = [1, 8, 128], strides = [1, 1, 1]} : vector<8x8x128xf32> to vector<1x8x128xf32>
    %308 = vector.shape_cast %307 : vector<1x8x128xf32> to vector<8x128xf32>
    %309 = vector.broadcast %306 : vector<1x128xf32> to vector<8x128xf32>
    %310 = arith.mulf %309, %308 : vector<8x128xf32>
    %311 = arith.addf %304, %310 : vector<8x128xf32>
    %312 = vector.extract_strided_slice %10 {offsets = [3, 3, 0], sizes = [1, 1, 128], strides = [1, 1, 1]} : vector<8x8x128xf32> to vector<1x1x128xf32>
    %313 = vector.shape_cast %312 : vector<1x1x128xf32> to vector<1x128xf32>
    %314 = vector.extract_strided_slice %12 {offsets = [3, 0, 0], sizes = [1, 8, 128], strides = [1, 1, 1]} : vector<8x8x128xf32> to vector<1x8x128xf32>
    %315 = vector.shape_cast %314 : vector<1x8x128xf32> to vector<8x128xf32>
    %316 = vector.broadcast %313 : vector<1x128xf32> to vector<8x128xf32>
    %317 = arith.mulf %316, %315 : vector<8x128xf32>
    %318 = arith.addf %311, %317 : vector<8x128xf32>
    %319 = vector.extract_strided_slice %10 {offsets = [3, 4, 0], sizes = [1, 1, 128], strides = [1, 1, 1]} : vector<8x8x128xf32> to vector<1x1x128xf32>
    %320 = vector.shape_cast %319 : vector<1x1x128xf32> to vector<1x128xf32>
    %321 = vector.extract_strided_slice %12 {offsets = [4, 0, 0], sizes = [1, 8, 128], strides = [1, 1, 1]} : vector<8x8x128xf32> to vector<1x8x128xf32>
    %322 = vector.shape_cast %321 : vector<1x8x128xf32> to vector<8x128xf32>
    %323 = vector.broadcast %320 : vector<1x128xf32> to vector<8x128xf32>
    %324 = arith.mulf %323, %322 : vector<8x128xf32>
    %325 = arith.addf %318, %324 : vector<8x128xf32>
    %326 = vector.extract_strided_slice %10 {offsets = [3, 5, 0], sizes = [1, 1, 128], strides = [1, 1, 1]} : vector<8x8x128xf32> to vector<1x1x128xf32>
    %327 = vector.shape_cast %326 : vector<1x1x128xf32> to vector<1x128xf32>
    %328 = vector.extract_strided_slice %12 {offsets = [5, 0, 0], sizes = [1, 8, 128], strides = [1, 1, 1]} : vector<8x8x128xf32> to vector<1x8x128xf32>
    %329 = vector.shape_cast %328 : vector<1x8x128xf32> to vector<8x128xf32>
    %330 = vector.broadcast %327 : vector<1x128xf32> to vector<8x128xf32>
    %331 = arith.mulf %330, %329 : vector<8x128xf32>
    %332 = arith.addf %325, %331 : vector<8x128xf32>
    %333 = vector.extract_strided_slice %10 {offsets = [3, 6, 0], sizes = [1, 1, 128], strides = [1, 1, 1]} : vector<8x8x128xf32> to vector<1x1x128xf32>
    %334 = vector.shape_cast %333 : vector<1x1x128xf32> to vector<1x128xf32>
    %335 = vector.extract_strided_slice %12 {offsets = [6, 0, 0], sizes = [1, 8, 128], strides = [1, 1, 1]} : vector<8x8x128xf32> to vector<1x8x128xf32>
    %336 = vector.shape_cast %335 : vector<1x8x128xf32> to vector<8x128xf32>
    %337 = vector.broadcast %334 : vector<1x128xf32> to vector<8x128xf32>
    %338 = arith.mulf %337, %336 : vector<8x128xf32>
    %339 = arith.addf %332, %338 : vector<8x128xf32>
    %340 = vector.extract_strided_slice %10 {offsets = [3, 7, 0], sizes = [1, 1, 128], strides = [1, 1, 1]} : vector<8x8x128xf32> to vector<1x1x128xf32>
    %341 = vector.shape_cast %340 : vector<1x1x128xf32> to vector<1x128xf32>
    %342 = vector.extract_strided_slice %12 {offsets = [7, 0, 0], sizes = [1, 8, 128], strides = [1, 1, 1]} : vector<8x8x128xf32> to vector<1x8x128xf32>
    %343 = vector.shape_cast %342 : vector<1x8x128xf32> to vector<8x128xf32>
    %344 = vector.broadcast %341 : vector<1x128xf32> to vector<8x128xf32>
    %345 = arith.mulf %344, %343 : vector<8x128xf32>
    %346 = arith.addf %339, %345 : vector<8x128xf32>
    %347 = vector.extract_strided_slice %14 {offsets = [0, 3, 0], sizes = [1, 1, 128], strides = [1, 1, 1]} : vector<8x8x128xf32> to vector<1x1x128xf32>
    %348 = vector.shape_cast %347 : vector<1x1x128xf32> to vector<1x128xf32>
    %349 = vector.broadcast %348 : vector<1x128xf32> to vector<8x128xf32>
    %350 = arith.mulf %349, %346 : vector<8x128xf32>
    %351 = arith.addf %256, %350 : vector<8x128xf32>
    %352 = vector.extract_strided_slice %14 {offsets = [1, 3, 0], sizes = [1, 1, 128], strides = [1, 1, 1]} : vector<8x8x128xf32> to vector<1x1x128xf32>
    %353 = vector.shape_cast %352 : vector<1x1x128xf32> to vector<1x128xf32>
    %354 = vector.broadcast %353 : vector<1x128xf32> to vector<8x128xf32>
    %355 = arith.mulf %354, %346 : vector<8x128xf32>
    %356 = arith.addf %261, %355 : vector<8x128xf32>
    %357 = vector.extract_strided_slice %14 {offsets = [2, 3, 0], sizes = [1, 1, 128], strides = [1, 1, 1]} : vector<8x8x128xf32> to vector<1x1x128xf32>
    %358 = vector.shape_cast %357 : vector<1x1x128xf32> to vector<1x128xf32>
    %359 = vector.broadcast %358 : vector<1x128xf32> to vector<8x128xf32>
    %360 = arith.mulf %359, %346 : vector<8x128xf32>
    %361 = arith.addf %266, %360 : vector<8x128xf32>
    %362 = vector.extract_strided_slice %14 {offsets = [3, 3, 0], sizes = [1, 1, 128], strides = [1, 1, 1]} : vector<8x8x128xf32> to vector<1x1x128xf32>
    %363 = vector.shape_cast %362 : vector<1x1x128xf32> to vector<1x128xf32>
    %364 = vector.broadcast %363 : vector<1x128xf32> to vector<8x128xf32>
    %365 = arith.mulf %364, %346 : vector<8x128xf32>
    %366 = arith.addf %271, %365 : vector<8x128xf32>
    %367 = vector.extract_strided_slice %14 {offsets = [4, 3, 0], sizes = [1, 1, 128], strides = [1, 1, 1]} : vector<8x8x128xf32> to vector<1x1x128xf32>
    %368 = vector.shape_cast %367 : vector<1x1x128xf32> to vector<1x128xf32>
    %369 = vector.broadcast %368 : vector<1x128xf32> to vector<8x128xf32>
    %370 = arith.mulf %369, %346 : vector<8x128xf32>
    %371 = arith.addf %276, %370 : vector<8x128xf32>
    %372 = vector.extract_strided_slice %14 {offsets = [5, 3, 0], sizes = [1, 1, 128], strides = [1, 1, 1]} : vector<8x8x128xf32> to vector<1x1x128xf32>
    %373 = vector.shape_cast %372 : vector<1x1x128xf32> to vector<1x128xf32>
    %374 = vector.broadcast %373 : vector<1x128xf32> to vector<8x128xf32>
    %375 = arith.mulf %374, %346 : vector<8x128xf32>
    %376 = arith.addf %281, %375 : vector<8x128xf32>
    %377 = vector.extract_strided_slice %14 {offsets = [6, 3, 0], sizes = [1, 1, 128], strides = [1, 1, 1]} : vector<8x8x128xf32> to vector<1x1x128xf32>
    %378 = vector.shape_cast %377 : vector<1x1x128xf32> to vector<1x128xf32>
    %379 = vector.broadcast %378 : vector<1x128xf32> to vector<8x128xf32>
    %380 = arith.mulf %379, %346 : vector<8x128xf32>
    %381 = arith.addf %286, %380 : vector<8x128xf32>
    %382 = vector.extract_strided_slice %14 {offsets = [7, 3, 0], sizes = [1, 1, 128], strides = [1, 1, 1]} : vector<8x8x128xf32> to vector<1x1x128xf32>
    %383 = vector.shape_cast %382 : vector<1x1x128xf32> to vector<1x128xf32>
    %384 = vector.broadcast %383 : vector<1x128xf32> to vector<8x128xf32>
    %385 = arith.mulf %384, %346 : vector<8x128xf32>
    %386 = arith.addf %291, %385 : vector<8x128xf32>
    %387 = vector.extract_strided_slice %10 {offsets = [4, 0, 0], sizes = [1, 1, 128], strides = [1, 1, 1]} : vector<8x8x128xf32> to vector<1x1x128xf32>
    %388 = vector.shape_cast %387 : vector<1x1x128xf32> to vector<1x128xf32>
    %389 = vector.extract_strided_slice %12 {offsets = [0, 0, 0], sizes = [1, 8, 128], strides = [1, 1, 1]} : vector<8x8x128xf32> to vector<1x8x128xf32>
    %390 = vector.shape_cast %389 : vector<1x8x128xf32> to vector<8x128xf32>
    %391 = vector.broadcast %388 : vector<1x128xf32> to vector<8x128xf32>
    %392 = arith.mulf %391, %390 : vector<8x128xf32>
    %393 = vector.extract_strided_slice %10 {offsets = [4, 1, 0], sizes = [1, 1, 128], strides = [1, 1, 1]} : vector<8x8x128xf32> to vector<1x1x128xf32>
    %394 = vector.shape_cast %393 : vector<1x1x128xf32> to vector<1x128xf32>
    %395 = vector.extract_strided_slice %12 {offsets = [1, 0, 0], sizes = [1, 8, 128], strides = [1, 1, 1]} : vector<8x8x128xf32> to vector<1x8x128xf32>
    %396 = vector.shape_cast %395 : vector<1x8x128xf32> to vector<8x128xf32>
    %397 = vector.broadcast %394 : vector<1x128xf32> to vector<8x128xf32>
    %398 = arith.mulf %397, %396 : vector<8x128xf32>
    %399 = arith.addf %392, %398 : vector<8x128xf32>
    %400 = vector.extract_strided_slice %10 {offsets = [4, 2, 0], sizes = [1, 1, 128], strides = [1, 1, 1]} : vector<8x8x128xf32> to vector<1x1x128xf32>
    %401 = vector.shape_cast %400 : vector<1x1x128xf32> to vector<1x128xf32>
    %402 = vector.extract_strided_slice %12 {offsets = [2, 0, 0], sizes = [1, 8, 128], strides = [1, 1, 1]} : vector<8x8x128xf32> to vector<1x8x128xf32>
    %403 = vector.shape_cast %402 : vector<1x8x128xf32> to vector<8x128xf32>
    %404 = vector.broadcast %401 : vector<1x128xf32> to vector<8x128xf32>
    %405 = arith.mulf %404, %403 : vector<8x128xf32>
    %406 = arith.addf %399, %405 : vector<8x128xf32>
    %407 = vector.extract_strided_slice %10 {offsets = [4, 3, 0], sizes = [1, 1, 128], strides = [1, 1, 1]} : vector<8x8x128xf32> to vector<1x1x128xf32>
    %408 = vector.shape_cast %407 : vector<1x1x128xf32> to vector<1x128xf32>
    %409 = vector.extract_strided_slice %12 {offsets = [3, 0, 0], sizes = [1, 8, 128], strides = [1, 1, 1]} : vector<8x8x128xf32> to vector<1x8x128xf32>
    %410 = vector.shape_cast %409 : vector<1x8x128xf32> to vector<8x128xf32>
    %411 = vector.broadcast %408 : vector<1x128xf32> to vector<8x128xf32>
    %412 = arith.mulf %411, %410 : vector<8x128xf32>
    %413 = arith.addf %406, %412 : vector<8x128xf32>
    %414 = vector.extract_strided_slice %10 {offsets = [4, 4, 0], sizes = [1, 1, 128], strides = [1, 1, 1]} : vector<8x8x128xf32> to vector<1x1x128xf32>
    %415 = vector.shape_cast %414 : vector<1x1x128xf32> to vector<1x128xf32>
    %416 = vector.extract_strided_slice %12 {offsets = [4, 0, 0], sizes = [1, 8, 128], strides = [1, 1, 1]} : vector<8x8x128xf32> to vector<1x8x128xf32>
    %417 = vector.shape_cast %416 : vector<1x8x128xf32> to vector<8x128xf32>
    %418 = vector.broadcast %415 : vector<1x128xf32> to vector<8x128xf32>
    %419 = arith.mulf %418, %417 : vector<8x128xf32>
    %420 = arith.addf %413, %419 : vector<8x128xf32>
    %421 = vector.extract_strided_slice %10 {offsets = [4, 5, 0], sizes = [1, 1, 128], strides = [1, 1, 1]} : vector<8x8x128xf32> to vector<1x1x128xf32>
    %422 = vector.shape_cast %421 : vector<1x1x128xf32> to vector<1x128xf32>
    %423 = vector.extract_strided_slice %12 {offsets = [5, 0, 0], sizes = [1, 8, 128], strides = [1, 1, 1]} : vector<8x8x128xf32> to vector<1x8x128xf32>
    %424 = vector.shape_cast %423 : vector<1x8x128xf32> to vector<8x128xf32>
    %425 = vector.broadcast %422 : vector<1x128xf32> to vector<8x128xf32>
    %426 = arith.mulf %425, %424 : vector<8x128xf32>
    %427 = arith.addf %420, %426 : vector<8x128xf32>
    %428 = vector.extract_strided_slice %10 {offsets = [4, 6, 0], sizes = [1, 1, 128], strides = [1, 1, 1]} : vector<8x8x128xf32> to vector<1x1x128xf32>
    %429 = vector.shape_cast %428 : vector<1x1x128xf32> to vector<1x128xf32>
    %430 = vector.extract_strided_slice %12 {offsets = [6, 0, 0], sizes = [1, 8, 128], strides = [1, 1, 1]} : vector<8x8x128xf32> to vector<1x8x128xf32>
    %431 = vector.shape_cast %430 : vector<1x8x128xf32> to vector<8x128xf32>
    %432 = vector.broadcast %429 : vector<1x128xf32> to vector<8x128xf32>
    %433 = arith.mulf %432, %431 : vector<8x128xf32>
    %434 = arith.addf %427, %433 : vector<8x128xf32>
    %435 = vector.extract_strided_slice %10 {offsets = [4, 7, 0], sizes = [1, 1, 128], strides = [1, 1, 1]} : vector<8x8x128xf32> to vector<1x1x128xf32>
    %436 = vector.shape_cast %435 : vector<1x1x128xf32> to vector<1x128xf32>
    %437 = vector.extract_strided_slice %12 {offsets = [7, 0, 0], sizes = [1, 8, 128], strides = [1, 1, 1]} : vector<8x8x128xf32> to vector<1x8x128xf32>
    %438 = vector.shape_cast %437 : vector<1x8x128xf32> to vector<8x128xf32>
    %439 = vector.broadcast %436 : vector<1x128xf32> to vector<8x128xf32>
    %440 = arith.mulf %439, %438 : vector<8x128xf32>
    %441 = arith.addf %434, %440 : vector<8x128xf32>
    %442 = vector.extract_strided_slice %14 {offsets = [0, 4, 0], sizes = [1, 1, 128], strides = [1, 1, 1]} : vector<8x8x128xf32> to vector<1x1x128xf32>
    %443 = vector.shape_cast %442 : vector<1x1x128xf32> to vector<1x128xf32>
    %444 = vector.broadcast %443 : vector<1x128xf32> to vector<8x128xf32>
    %445 = arith.mulf %444, %441 : vector<8x128xf32>
    %446 = arith.addf %351, %445 : vector<8x128xf32>
    %447 = vector.extract_strided_slice %14 {offsets = [1, 4, 0], sizes = [1, 1, 128], strides = [1, 1, 1]} : vector<8x8x128xf32> to vector<1x1x128xf32>
    %448 = vector.shape_cast %447 : vector<1x1x128xf32> to vector<1x128xf32>
    %449 = vector.broadcast %448 : vector<1x128xf32> to vector<8x128xf32>
    %450 = arith.mulf %449, %441 : vector<8x128xf32>
    %451 = arith.addf %356, %450 : vector<8x128xf32>
    %452 = vector.extract_strided_slice %14 {offsets = [2, 4, 0], sizes = [1, 1, 128], strides = [1, 1, 1]} : vector<8x8x128xf32> to vector<1x1x128xf32>
    %453 = vector.shape_cast %452 : vector<1x1x128xf32> to vector<1x128xf32>
    %454 = vector.broadcast %453 : vector<1x128xf32> to vector<8x128xf32>
    %455 = arith.mulf %454, %441 : vector<8x128xf32>
    %456 = arith.addf %361, %455 : vector<8x128xf32>
    %457 = vector.extract_strided_slice %14 {offsets = [3, 4, 0], sizes = [1, 1, 128], strides = [1, 1, 1]} : vector<8x8x128xf32> to vector<1x1x128xf32>
    %458 = vector.shape_cast %457 : vector<1x1x128xf32> to vector<1x128xf32>
    %459 = vector.broadcast %458 : vector<1x128xf32> to vector<8x128xf32>
    %460 = arith.mulf %459, %441 : vector<8x128xf32>
    %461 = arith.addf %366, %460 : vector<8x128xf32>
    %462 = vector.extract_strided_slice %14 {offsets = [4, 4, 0], sizes = [1, 1, 128], strides = [1, 1, 1]} : vector<8x8x128xf32> to vector<1x1x128xf32>
    %463 = vector.shape_cast %462 : vector<1x1x128xf32> to vector<1x128xf32>
    %464 = vector.broadcast %463 : vector<1x128xf32> to vector<8x128xf32>
    %465 = arith.mulf %464, %441 : vector<8x128xf32>
    %466 = arith.addf %371, %465 : vector<8x128xf32>
    %467 = vector.extract_strided_slice %14 {offsets = [5, 4, 0], sizes = [1, 1, 128], strides = [1, 1, 1]} : vector<8x8x128xf32> to vector<1x1x128xf32>
    %468 = vector.shape_cast %467 : vector<1x1x128xf32> to vector<1x128xf32>
    %469 = vector.broadcast %468 : vector<1x128xf32> to vector<8x128xf32>
    %470 = arith.mulf %469, %441 : vector<8x128xf32>
    %471 = arith.addf %376, %470 : vector<8x128xf32>
    %472 = vector.extract_strided_slice %14 {offsets = [6, 4, 0], sizes = [1, 1, 128], strides = [1, 1, 1]} : vector<8x8x128xf32> to vector<1x1x128xf32>
    %473 = vector.shape_cast %472 : vector<1x1x128xf32> to vector<1x128xf32>
    %474 = vector.broadcast %473 : vector<1x128xf32> to vector<8x128xf32>
    %475 = arith.mulf %474, %441 : vector<8x128xf32>
    %476 = arith.addf %381, %475 : vector<8x128xf32>
    %477 = vector.extract_strided_slice %14 {offsets = [7, 4, 0], sizes = [1, 1, 128], strides = [1, 1, 1]} : vector<8x8x128xf32> to vector<1x1x128xf32>
    %478 = vector.shape_cast %477 : vector<1x1x128xf32> to vector<1x128xf32>
    %479 = vector.broadcast %478 : vector<1x128xf32> to vector<8x128xf32>
    %480 = arith.mulf %479, %441 : vector<8x128xf32>
    %481 = arith.addf %386, %480 : vector<8x128xf32>
    %482 = vector.extract_strided_slice %10 {offsets = [5, 0, 0], sizes = [1, 1, 128], strides = [1, 1, 1]} : vector<8x8x128xf32> to vector<1x1x128xf32>
    %483 = vector.shape_cast %482 : vector<1x1x128xf32> to vector<1x128xf32>
    %484 = vector.extract_strided_slice %12 {offsets = [0, 0, 0], sizes = [1, 8, 128], strides = [1, 1, 1]} : vector<8x8x128xf32> to vector<1x8x128xf32>
    %485 = vector.shape_cast %484 : vector<1x8x128xf32> to vector<8x128xf32>
    %486 = vector.broadcast %483 : vector<1x128xf32> to vector<8x128xf32>
    %487 = arith.mulf %486, %485 : vector<8x128xf32>
    %488 = vector.extract_strided_slice %10 {offsets = [5, 1, 0], sizes = [1, 1, 128], strides = [1, 1, 1]} : vector<8x8x128xf32> to vector<1x1x128xf32>
    %489 = vector.shape_cast %488 : vector<1x1x128xf32> to vector<1x128xf32>
    %490 = vector.extract_strided_slice %12 {offsets = [1, 0, 0], sizes = [1, 8, 128], strides = [1, 1, 1]} : vector<8x8x128xf32> to vector<1x8x128xf32>
    %491 = vector.shape_cast %490 : vector<1x8x128xf32> to vector<8x128xf32>
    %492 = vector.broadcast %489 : vector<1x128xf32> to vector<8x128xf32>
    %493 = arith.mulf %492, %491 : vector<8x128xf32>
    %494 = arith.addf %487, %493 : vector<8x128xf32>
    %495 = vector.extract_strided_slice %10 {offsets = [5, 2, 0], sizes = [1, 1, 128], strides = [1, 1, 1]} : vector<8x8x128xf32> to vector<1x1x128xf32>
    %496 = vector.shape_cast %495 : vector<1x1x128xf32> to vector<1x128xf32>
    %497 = vector.extract_strided_slice %12 {offsets = [2, 0, 0], sizes = [1, 8, 128], strides = [1, 1, 1]} : vector<8x8x128xf32> to vector<1x8x128xf32>
    %498 = vector.shape_cast %497 : vector<1x8x128xf32> to vector<8x128xf32>
    %499 = vector.broadcast %496 : vector<1x128xf32> to vector<8x128xf32>
    %500 = arith.mulf %499, %498 : vector<8x128xf32>
    %501 = arith.addf %494, %500 : vector<8x128xf32>
    %502 = vector.extract_strided_slice %10 {offsets = [5, 3, 0], sizes = [1, 1, 128], strides = [1, 1, 1]} : vector<8x8x128xf32> to vector<1x1x128xf32>
    %503 = vector.shape_cast %502 : vector<1x1x128xf32> to vector<1x128xf32>
    %504 = vector.extract_strided_slice %12 {offsets = [3, 0, 0], sizes = [1, 8, 128], strides = [1, 1, 1]} : vector<8x8x128xf32> to vector<1x8x128xf32>
    %505 = vector.shape_cast %504 : vector<1x8x128xf32> to vector<8x128xf32>
    %506 = vector.broadcast %503 : vector<1x128xf32> to vector<8x128xf32>
    %507 = arith.mulf %506, %505 : vector<8x128xf32>
    %508 = arith.addf %501, %507 : vector<8x128xf32>
    %509 = vector.extract_strided_slice %10 {offsets = [5, 4, 0], sizes = [1, 1, 128], strides = [1, 1, 1]} : vector<8x8x128xf32> to vector<1x1x128xf32>
    %510 = vector.shape_cast %509 : vector<1x1x128xf32> to vector<1x128xf32>
    %511 = vector.extract_strided_slice %12 {offsets = [4, 0, 0], sizes = [1, 8, 128], strides = [1, 1, 1]} : vector<8x8x128xf32> to vector<1x8x128xf32>
    %512 = vector.shape_cast %511 : vector<1x8x128xf32> to vector<8x128xf32>
    %513 = vector.broadcast %510 : vector<1x128xf32> to vector<8x128xf32>
    %514 = arith.mulf %513, %512 : vector<8x128xf32>
    %515 = arith.addf %508, %514 : vector<8x128xf32>
    %516 = vector.extract_strided_slice %10 {offsets = [5, 5, 0], sizes = [1, 1, 128], strides = [1, 1, 1]} : vector<8x8x128xf32> to vector<1x1x128xf32>
    %517 = vector.shape_cast %516 : vector<1x1x128xf32> to vector<1x128xf32>
    %518 = vector.extract_strided_slice %12 {offsets = [5, 0, 0], sizes = [1, 8, 128], strides = [1, 1, 1]} : vector<8x8x128xf32> to vector<1x8x128xf32>
    %519 = vector.shape_cast %518 : vector<1x8x128xf32> to vector<8x128xf32>
    %520 = vector.broadcast %517 : vector<1x128xf32> to vector<8x128xf32>
    %521 = arith.mulf %520, %519 : vector<8x128xf32>
    %522 = arith.addf %515, %521 : vector<8x128xf32>
    %523 = vector.extract_strided_slice %10 {offsets = [5, 6, 0], sizes = [1, 1, 128], strides = [1, 1, 1]} : vector<8x8x128xf32> to vector<1x1x128xf32>
    %524 = vector.shape_cast %523 : vector<1x1x128xf32> to vector<1x128xf32>
    %525 = vector.extract_strided_slice %12 {offsets = [6, 0, 0], sizes = [1, 8, 128], strides = [1, 1, 1]} : vector<8x8x128xf32> to vector<1x8x128xf32>
    %526 = vector.shape_cast %525 : vector<1x8x128xf32> to vector<8x128xf32>
    %527 = vector.broadcast %524 : vector<1x128xf32> to vector<8x128xf32>
    %528 = arith.mulf %527, %526 : vector<8x128xf32>
    %529 = arith.addf %522, %528 : vector<8x128xf32>
    %530 = vector.extract_strided_slice %10 {offsets = [5, 7, 0], sizes = [1, 1, 128], strides = [1, 1, 1]} : vector<8x8x128xf32> to vector<1x1x128xf32>
    %531 = vector.shape_cast %530 : vector<1x1x128xf32> to vector<1x128xf32>
    %532 = vector.extract_strided_slice %12 {offsets = [7, 0, 0], sizes = [1, 8, 128], strides = [1, 1, 1]} : vector<8x8x128xf32> to vector<1x8x128xf32>
    %533 = vector.shape_cast %532 : vector<1x8x128xf32> to vector<8x128xf32>
    %534 = vector.broadcast %531 : vector<1x128xf32> to vector<8x128xf32>
    %535 = arith.mulf %534, %533 : vector<8x128xf32>
    %536 = arith.addf %529, %535 : vector<8x128xf32>
    %537 = vector.extract_strided_slice %14 {offsets = [0, 5, 0], sizes = [1, 1, 128], strides = [1, 1, 1]} : vector<8x8x128xf32> to vector<1x1x128xf32>
    %538 = vector.shape_cast %537 : vector<1x1x128xf32> to vector<1x128xf32>
    %539 = vector.broadcast %538 : vector<1x128xf32> to vector<8x128xf32>
    %540 = arith.mulf %539, %536 : vector<8x128xf32>
    %541 = arith.addf %446, %540 : vector<8x128xf32>
    %542 = vector.extract_strided_slice %14 {offsets = [1, 5, 0], sizes = [1, 1, 128], strides = [1, 1, 1]} : vector<8x8x128xf32> to vector<1x1x128xf32>
    %543 = vector.shape_cast %542 : vector<1x1x128xf32> to vector<1x128xf32>
    %544 = vector.broadcast %543 : vector<1x128xf32> to vector<8x128xf32>
    %545 = arith.mulf %544, %536 : vector<8x128xf32>
    %546 = arith.addf %451, %545 : vector<8x128xf32>
    %547 = vector.extract_strided_slice %14 {offsets = [2, 5, 0], sizes = [1, 1, 128], strides = [1, 1, 1]} : vector<8x8x128xf32> to vector<1x1x128xf32>
    %548 = vector.shape_cast %547 : vector<1x1x128xf32> to vector<1x128xf32>
    %549 = vector.broadcast %548 : vector<1x128xf32> to vector<8x128xf32>
    %550 = arith.mulf %549, %536 : vector<8x128xf32>
    %551 = arith.addf %456, %550 : vector<8x128xf32>
    %552 = vector.extract_strided_slice %14 {offsets = [3, 5, 0], sizes = [1, 1, 128], strides = [1, 1, 1]} : vector<8x8x128xf32> to vector<1x1x128xf32>
    %553 = vector.shape_cast %552 : vector<1x1x128xf32> to vector<1x128xf32>
    %554 = vector.broadcast %553 : vector<1x128xf32> to vector<8x128xf32>
    %555 = arith.mulf %554, %536 : vector<8x128xf32>
    %556 = arith.addf %461, %555 : vector<8x128xf32>
    %557 = vector.extract_strided_slice %14 {offsets = [4, 5, 0], sizes = [1, 1, 128], strides = [1, 1, 1]} : vector<8x8x128xf32> to vector<1x1x128xf32>
    %558 = vector.shape_cast %557 : vector<1x1x128xf32> to vector<1x128xf32>
    %559 = vector.broadcast %558 : vector<1x128xf32> to vector<8x128xf32>
    %560 = arith.mulf %559, %536 : vector<8x128xf32>
    %561 = arith.addf %466, %560 : vector<8x128xf32>
    %562 = vector.extract_strided_slice %14 {offsets = [5, 5, 0], sizes = [1, 1, 128], strides = [1, 1, 1]} : vector<8x8x128xf32> to vector<1x1x128xf32>
    %563 = vector.shape_cast %562 : vector<1x1x128xf32> to vector<1x128xf32>
    %564 = vector.broadcast %563 : vector<1x128xf32> to vector<8x128xf32>
    %565 = arith.mulf %564, %536 : vector<8x128xf32>
    %566 = arith.addf %471, %565 : vector<8x128xf32>
    %567 = vector.extract_strided_slice %14 {offsets = [6, 5, 0], sizes = [1, 1, 128], strides = [1, 1, 1]} : vector<8x8x128xf32> to vector<1x1x128xf32>
    %568 = vector.shape_cast %567 : vector<1x1x128xf32> to vector<1x128xf32>
    %569 = vector.broadcast %568 : vector<1x128xf32> to vector<8x128xf32>
    %570 = arith.mulf %569, %536 : vector<8x128xf32>
    %571 = arith.addf %476, %570 : vector<8x128xf32>
    %572 = vector.extract_strided_slice %14 {offsets = [7, 5, 0], sizes = [1, 1, 128], strides = [1, 1, 1]} : vector<8x8x128xf32> to vector<1x1x128xf32>
    %573 = vector.shape_cast %572 : vector<1x1x128xf32> to vector<1x128xf32>
    %574 = vector.broadcast %573 : vector<1x128xf32> to vector<8x128xf32>
    %575 = arith.mulf %574, %536 : vector<8x128xf32>
    %576 = arith.addf %481, %575 : vector<8x128xf32>
    %577 = vector.extract_strided_slice %10 {offsets = [6, 0, 0], sizes = [1, 1, 128], strides = [1, 1, 1]} : vector<8x8x128xf32> to vector<1x1x128xf32>
    %578 = vector.shape_cast %577 : vector<1x1x128xf32> to vector<1x128xf32>
    %579 = vector.extract_strided_slice %12 {offsets = [0, 0, 0], sizes = [1, 8, 128], strides = [1, 1, 1]} : vector<8x8x128xf32> to vector<1x8x128xf32>
    %580 = vector.shape_cast %579 : vector<1x8x128xf32> to vector<8x128xf32>
    %581 = vector.broadcast %578 : vector<1x128xf32> to vector<8x128xf32>
    %582 = arith.mulf %581, %580 : vector<8x128xf32>
    %583 = vector.extract_strided_slice %10 {offsets = [6, 1, 0], sizes = [1, 1, 128], strides = [1, 1, 1]} : vector<8x8x128xf32> to vector<1x1x128xf32>
    %584 = vector.shape_cast %583 : vector<1x1x128xf32> to vector<1x128xf32>
    %585 = vector.extract_strided_slice %12 {offsets = [1, 0, 0], sizes = [1, 8, 128], strides = [1, 1, 1]} : vector<8x8x128xf32> to vector<1x8x128xf32>
    %586 = vector.shape_cast %585 : vector<1x8x128xf32> to vector<8x128xf32>
    %587 = vector.broadcast %584 : vector<1x128xf32> to vector<8x128xf32>
    %588 = arith.mulf %587, %586 : vector<8x128xf32>
    %589 = arith.addf %582, %588 : vector<8x128xf32>
    %590 = vector.extract_strided_slice %10 {offsets = [6, 2, 0], sizes = [1, 1, 128], strides = [1, 1, 1]} : vector<8x8x128xf32> to vector<1x1x128xf32>
    %591 = vector.shape_cast %590 : vector<1x1x128xf32> to vector<1x128xf32>
    %592 = vector.extract_strided_slice %12 {offsets = [2, 0, 0], sizes = [1, 8, 128], strides = [1, 1, 1]} : vector<8x8x128xf32> to vector<1x8x128xf32>
    %593 = vector.shape_cast %592 : vector<1x8x128xf32> to vector<8x128xf32>
    %594 = vector.broadcast %591 : vector<1x128xf32> to vector<8x128xf32>
    %595 = arith.mulf %594, %593 : vector<8x128xf32>
    %596 = arith.addf %589, %595 : vector<8x128xf32>
    %597 = vector.extract_strided_slice %10 {offsets = [6, 3, 0], sizes = [1, 1, 128], strides = [1, 1, 1]} : vector<8x8x128xf32> to vector<1x1x128xf32>
    %598 = vector.shape_cast %597 : vector<1x1x128xf32> to vector<1x128xf32>
    %599 = vector.extract_strided_slice %12 {offsets = [3, 0, 0], sizes = [1, 8, 128], strides = [1, 1, 1]} : vector<8x8x128xf32> to vector<1x8x128xf32>
    %600 = vector.shape_cast %599 : vector<1x8x128xf32> to vector<8x128xf32>
    %601 = vector.broadcast %598 : vector<1x128xf32> to vector<8x128xf32>
    %602 = arith.mulf %601, %600 : vector<8x128xf32>
    %603 = arith.addf %596, %602 : vector<8x128xf32>
    %604 = vector.extract_strided_slice %10 {offsets = [6, 4, 0], sizes = [1, 1, 128], strides = [1, 1, 1]} : vector<8x8x128xf32> to vector<1x1x128xf32>
    %605 = vector.shape_cast %604 : vector<1x1x128xf32> to vector<1x128xf32>
    %606 = vector.extract_strided_slice %12 {offsets = [4, 0, 0], sizes = [1, 8, 128], strides = [1, 1, 1]} : vector<8x8x128xf32> to vector<1x8x128xf32>
    %607 = vector.shape_cast %606 : vector<1x8x128xf32> to vector<8x128xf32>
    %608 = vector.broadcast %605 : vector<1x128xf32> to vector<8x128xf32>
    %609 = arith.mulf %608, %607 : vector<8x128xf32>
    %610 = arith.addf %603, %609 : vector<8x128xf32>
    %611 = vector.extract_strided_slice %10 {offsets = [6, 5, 0], sizes = [1, 1, 128], strides = [1, 1, 1]} : vector<8x8x128xf32> to vector<1x1x128xf32>
    %612 = vector.shape_cast %611 : vector<1x1x128xf32> to vector<1x128xf32>
    %613 = vector.extract_strided_slice %12 {offsets = [5, 0, 0], sizes = [1, 8, 128], strides = [1, 1, 1]} : vector<8x8x128xf32> to vector<1x8x128xf32>
    %614 = vector.shape_cast %613 : vector<1x8x128xf32> to vector<8x128xf32>
    %615 = vector.broadcast %612 : vector<1x128xf32> to vector<8x128xf32>
    %616 = arith.mulf %615, %614 : vector<8x128xf32>
    %617 = arith.addf %610, %616 : vector<8x128xf32>
    %618 = vector.extract_strided_slice %10 {offsets = [6, 6, 0], sizes = [1, 1, 128], strides = [1, 1, 1]} : vector<8x8x128xf32> to vector<1x1x128xf32>
    %619 = vector.shape_cast %618 : vector<1x1x128xf32> to vector<1x128xf32>
    %620 = vector.extract_strided_slice %12 {offsets = [6, 0, 0], sizes = [1, 8, 128], strides = [1, 1, 1]} : vector<8x8x128xf32> to vector<1x8x128xf32>
    %621 = vector.shape_cast %620 : vector<1x8x128xf32> to vector<8x128xf32>
    %622 = vector.broadcast %619 : vector<1x128xf32> to vector<8x128xf32>
    %623 = arith.mulf %622, %621 : vector<8x128xf32>
    %624 = arith.addf %617, %623 : vector<8x128xf32>
    %625 = vector.extract_strided_slice %10 {offsets = [6, 7, 0], sizes = [1, 1, 128], strides = [1, 1, 1]} : vector<8x8x128xf32> to vector<1x1x128xf32>
    %626 = vector.shape_cast %625 : vector<1x1x128xf32> to vector<1x128xf32>
    %627 = vector.extract_strided_slice %12 {offsets = [7, 0, 0], sizes = [1, 8, 128], strides = [1, 1, 1]} : vector<8x8x128xf32> to vector<1x8x128xf32>
    %628 = vector.shape_cast %627 : vector<1x8x128xf32> to vector<8x128xf32>
    %629 = vector.broadcast %626 : vector<1x128xf32> to vector<8x128xf32>
    %630 = arith.mulf %629, %628 : vector<8x128xf32>
    %631 = arith.addf %624, %630 : vector<8x128xf32>
    %632 = vector.extract_strided_slice %14 {offsets = [0, 6, 0], sizes = [1, 1, 128], strides = [1, 1, 1]} : vector<8x8x128xf32> to vector<1x1x128xf32>
    %633 = vector.shape_cast %632 : vector<1x1x128xf32> to vector<1x128xf32>
    %634 = vector.broadcast %633 : vector<1x128xf32> to vector<8x128xf32>
    %635 = arith.mulf %634, %631 : vector<8x128xf32>
    %636 = arith.addf %541, %635 : vector<8x128xf32>
    %637 = vector.extract_strided_slice %14 {offsets = [1, 6, 0], sizes = [1, 1, 128], strides = [1, 1, 1]} : vector<8x8x128xf32> to vector<1x1x128xf32>
    %638 = vector.shape_cast %637 : vector<1x1x128xf32> to vector<1x128xf32>
    %639 = vector.broadcast %638 : vector<1x128xf32> to vector<8x128xf32>
    %640 = arith.mulf %639, %631 : vector<8x128xf32>
    %641 = arith.addf %546, %640 : vector<8x128xf32>
    %642 = vector.extract_strided_slice %14 {offsets = [2, 6, 0], sizes = [1, 1, 128], strides = [1, 1, 1]} : vector<8x8x128xf32> to vector<1x1x128xf32>
    %643 = vector.shape_cast %642 : vector<1x1x128xf32> to vector<1x128xf32>
    %644 = vector.broadcast %643 : vector<1x128xf32> to vector<8x128xf32>
    %645 = arith.mulf %644, %631 : vector<8x128xf32>
    %646 = arith.addf %551, %645 : vector<8x128xf32>
    %647 = vector.extract_strided_slice %14 {offsets = [3, 6, 0], sizes = [1, 1, 128], strides = [1, 1, 1]} : vector<8x8x128xf32> to vector<1x1x128xf32>
    %648 = vector.shape_cast %647 : vector<1x1x128xf32> to vector<1x128xf32>
    %649 = vector.broadcast %648 : vector<1x128xf32> to vector<8x128xf32>
    %650 = arith.mulf %649, %631 : vector<8x128xf32>
    %651 = arith.addf %556, %650 : vector<8x128xf32>
    %652 = vector.extract_strided_slice %14 {offsets = [4, 6, 0], sizes = [1, 1, 128], strides = [1, 1, 1]} : vector<8x8x128xf32> to vector<1x1x128xf32>
    %653 = vector.shape_cast %652 : vector<1x1x128xf32> to vector<1x128xf32>
    %654 = vector.broadcast %653 : vector<1x128xf32> to vector<8x128xf32>
    %655 = arith.mulf %654, %631 : vector<8x128xf32>
    %656 = arith.addf %561, %655 : vector<8x128xf32>
    %657 = vector.extract_strided_slice %14 {offsets = [5, 6, 0], sizes = [1, 1, 128], strides = [1, 1, 1]} : vector<8x8x128xf32> to vector<1x1x128xf32>
    %658 = vector.shape_cast %657 : vector<1x1x128xf32> to vector<1x128xf32>
    %659 = vector.broadcast %658 : vector<1x128xf32> to vector<8x128xf32>
    %660 = arith.mulf %659, %631 : vector<8x128xf32>
    %661 = arith.addf %566, %660 : vector<8x128xf32>
    %662 = vector.extract_strided_slice %14 {offsets = [6, 6, 0], sizes = [1, 1, 128], strides = [1, 1, 1]} : vector<8x8x128xf32> to vector<1x1x128xf32>
    %663 = vector.shape_cast %662 : vector<1x1x128xf32> to vector<1x128xf32>
    %664 = vector.broadcast %663 : vector<1x128xf32> to vector<8x128xf32>
    %665 = arith.mulf %664, %631 : vector<8x128xf32>
    %666 = arith.addf %571, %665 : vector<8x128xf32>
    %667 = vector.extract_strided_slice %14 {offsets = [7, 6, 0], sizes = [1, 1, 128], strides = [1, 1, 1]} : vector<8x8x128xf32> to vector<1x1x128xf32>
    %668 = vector.shape_cast %667 : vector<1x1x128xf32> to vector<1x128xf32>
    %669 = vector.broadcast %668 : vector<1x128xf32> to vector<8x128xf32>
    %670 = arith.mulf %669, %631 : vector<8x128xf32>
    %671 = arith.addf %576, %670 : vector<8x128xf32>
    %672 = vector.extract_strided_slice %10 {offsets = [7, 0, 0], sizes = [1, 1, 128], strides = [1, 1, 1]} : vector<8x8x128xf32> to vector<1x1x128xf32>
    %673 = vector.shape_cast %672 : vector<1x1x128xf32> to vector<1x128xf32>
    %674 = vector.extract_strided_slice %12 {offsets = [0, 0, 0], sizes = [1, 8, 128], strides = [1, 1, 1]} : vector<8x8x128xf32> to vector<1x8x128xf32>
    %675 = vector.shape_cast %674 : vector<1x8x128xf32> to vector<8x128xf32>
    %676 = vector.broadcast %673 : vector<1x128xf32> to vector<8x128xf32>
    %677 = arith.mulf %676, %675 : vector<8x128xf32>
    %678 = vector.extract_strided_slice %10 {offsets = [7, 1, 0], sizes = [1, 1, 128], strides = [1, 1, 1]} : vector<8x8x128xf32> to vector<1x1x128xf32>
    %679 = vector.shape_cast %678 : vector<1x1x128xf32> to vector<1x128xf32>
    %680 = vector.extract_strided_slice %12 {offsets = [1, 0, 0], sizes = [1, 8, 128], strides = [1, 1, 1]} : vector<8x8x128xf32> to vector<1x8x128xf32>
    %681 = vector.shape_cast %680 : vector<1x8x128xf32> to vector<8x128xf32>
    %682 = vector.broadcast %679 : vector<1x128xf32> to vector<8x128xf32>
    %683 = arith.mulf %682, %681 : vector<8x128xf32>
    %684 = arith.addf %677, %683 : vector<8x128xf32>
    %685 = vector.extract_strided_slice %10 {offsets = [7, 2, 0], sizes = [1, 1, 128], strides = [1, 1, 1]} : vector<8x8x128xf32> to vector<1x1x128xf32>
    %686 = vector.shape_cast %685 : vector<1x1x128xf32> to vector<1x128xf32>
    %687 = vector.extract_strided_slice %12 {offsets = [2, 0, 0], sizes = [1, 8, 128], strides = [1, 1, 1]} : vector<8x8x128xf32> to vector<1x8x128xf32>
    %688 = vector.shape_cast %687 : vector<1x8x128xf32> to vector<8x128xf32>
    %689 = vector.broadcast %686 : vector<1x128xf32> to vector<8x128xf32>
    %690 = arith.mulf %689, %688 : vector<8x128xf32>
    %691 = arith.addf %684, %690 : vector<8x128xf32>
    %692 = vector.extract_strided_slice %10 {offsets = [7, 3, 0], sizes = [1, 1, 128], strides = [1, 1, 1]} : vector<8x8x128xf32> to vector<1x1x128xf32>
    %693 = vector.shape_cast %692 : vector<1x1x128xf32> to vector<1x128xf32>
    %694 = vector.extract_strided_slice %12 {offsets = [3, 0, 0], sizes = [1, 8, 128], strides = [1, 1, 1]} : vector<8x8x128xf32> to vector<1x8x128xf32>
    %695 = vector.shape_cast %694 : vector<1x8x128xf32> to vector<8x128xf32>
    %696 = vector.broadcast %693 : vector<1x128xf32> to vector<8x128xf32>
    %697 = arith.mulf %696, %695 : vector<8x128xf32>
    %698 = arith.addf %691, %697 : vector<8x128xf32>
    %699 = vector.extract_strided_slice %10 {offsets = [7, 4, 0], sizes = [1, 1, 128], strides = [1, 1, 1]} : vector<8x8x128xf32> to vector<1x1x128xf32>
    %700 = vector.shape_cast %699 : vector<1x1x128xf32> to vector<1x128xf32>
    %701 = vector.extract_strided_slice %12 {offsets = [4, 0, 0], sizes = [1, 8, 128], strides = [1, 1, 1]} : vector<8x8x128xf32> to vector<1x8x128xf32>
    %702 = vector.shape_cast %701 : vector<1x8x128xf32> to vector<8x128xf32>
    %703 = vector.broadcast %700 : vector<1x128xf32> to vector<8x128xf32>
    %704 = arith.mulf %703, %702 : vector<8x128xf32>
    %705 = arith.addf %698, %704 : vector<8x128xf32>
    %706 = vector.extract_strided_slice %10 {offsets = [7, 5, 0], sizes = [1, 1, 128], strides = [1, 1, 1]} : vector<8x8x128xf32> to vector<1x1x128xf32>
    %707 = vector.shape_cast %706 : vector<1x1x128xf32> to vector<1x128xf32>
    %708 = vector.extract_strided_slice %12 {offsets = [5, 0, 0], sizes = [1, 8, 128], strides = [1, 1, 1]} : vector<8x8x128xf32> to vector<1x8x128xf32>
    %709 = vector.shape_cast %708 : vector<1x8x128xf32> to vector<8x128xf32>
    %710 = vector.broadcast %707 : vector<1x128xf32> to vector<8x128xf32>
    %711 = arith.mulf %710, %709 : vector<8x128xf32>
    %712 = arith.addf %705, %711 : vector<8x128xf32>
    %713 = vector.extract_strided_slice %10 {offsets = [7, 6, 0], sizes = [1, 1, 128], strides = [1, 1, 1]} : vector<8x8x128xf32> to vector<1x1x128xf32>
    %714 = vector.shape_cast %713 : vector<1x1x128xf32> to vector<1x128xf32>
    %715 = vector.extract_strided_slice %12 {offsets = [6, 0, 0], sizes = [1, 8, 128], strides = [1, 1, 1]} : vector<8x8x128xf32> to vector<1x8x128xf32>
    %716 = vector.shape_cast %715 : vector<1x8x128xf32> to vector<8x128xf32>
    %717 = vector.broadcast %714 : vector<1x128xf32> to vector<8x128xf32>
    %718 = arith.mulf %717, %716 : vector<8x128xf32>
    %719 = arith.addf %712, %718 : vector<8x128xf32>
    %720 = vector.extract_strided_slice %10 {offsets = [7, 7, 0], sizes = [1, 1, 128], strides = [1, 1, 1]} : vector<8x8x128xf32> to vector<1x1x128xf32>
    %721 = vector.shape_cast %720 : vector<1x1x128xf32> to vector<1x128xf32>
    %722 = vector.extract_strided_slice %12 {offsets = [7, 0, 0], sizes = [1, 8, 128], strides = [1, 1, 1]} : vector<8x8x128xf32> to vector<1x8x128xf32>
    %723 = vector.shape_cast %722 : vector<1x8x128xf32> to vector<8x128xf32>
    %724 = vector.broadcast %721 : vector<1x128xf32> to vector<8x128xf32>
    %725 = arith.mulf %724, %723 : vector<8x128xf32>
    %726 = arith.addf %719, %725 : vector<8x128xf32>
    %727 = vector.extract_strided_slice %14 {offsets = [0, 7, 0], sizes = [1, 1, 128], strides = [1, 1, 1]} : vector<8x8x128xf32> to vector<1x1x128xf32>
    %728 = vector.shape_cast %727 : vector<1x1x128xf32> to vector<1x128xf32>
    %729 = vector.broadcast %728 : vector<1x128xf32> to vector<8x128xf32>
    %730 = arith.mulf %729, %726 : vector<8x128xf32>
    %731 = arith.addf %636, %730 : vector<8x128xf32>
    %732 = vector.extract_strided_slice %14 {offsets = [1, 7, 0], sizes = [1, 1, 128], strides = [1, 1, 1]} : vector<8x8x128xf32> to vector<1x1x128xf32>
    %733 = vector.shape_cast %732 : vector<1x1x128xf32> to vector<1x128xf32>
    %734 = vector.broadcast %733 : vector<1x128xf32> to vector<8x128xf32>
    %735 = arith.mulf %734, %726 : vector<8x128xf32>
    %736 = arith.addf %641, %735 : vector<8x128xf32>
    %737 = vector.extract_strided_slice %14 {offsets = [2, 7, 0], sizes = [1, 1, 128], strides = [1, 1, 1]} : vector<8x8x128xf32> to vector<1x1x128xf32>
    %738 = vector.shape_cast %737 : vector<1x1x128xf32> to vector<1x128xf32>
    %739 = vector.broadcast %738 : vector<1x128xf32> to vector<8x128xf32>
    %740 = arith.mulf %739, %726 : vector<8x128xf32>
    %741 = arith.addf %646, %740 : vector<8x128xf32>
    %742 = vector.extract_strided_slice %14 {offsets = [3, 7, 0], sizes = [1, 1, 128], strides = [1, 1, 1]} : vector<8x8x128xf32> to vector<1x1x128xf32>
    %743 = vector.shape_cast %742 : vector<1x1x128xf32> to vector<1x128xf32>
    %744 = vector.broadcast %743 : vector<1x128xf32> to vector<8x128xf32>
    %745 = arith.mulf %744, %726 : vector<8x128xf32>
    %746 = arith.addf %651, %745 : vector<8x128xf32>
    %747 = vector.extract_strided_slice %14 {offsets = [4, 7, 0], sizes = [1, 1, 128], strides = [1, 1, 1]} : vector<8x8x128xf32> to vector<1x1x128xf32>
    %748 = vector.shape_cast %747 : vector<1x1x128xf32> to vector<1x128xf32>
    %749 = vector.broadcast %748 : vector<1x128xf32> to vector<8x128xf32>
    %750 = arith.mulf %749, %726 : vector<8x128xf32>
    %751 = arith.addf %656, %750 : vector<8x128xf32>
    %752 = vector.extract_strided_slice %14 {offsets = [5, 7, 0], sizes = [1, 1, 128], strides = [1, 1, 1]} : vector<8x8x128xf32> to vector<1x1x128xf32>
    %753 = vector.shape_cast %752 : vector<1x1x128xf32> to vector<1x128xf32>
    %754 = vector.broadcast %753 : vector<1x128xf32> to vector<8x128xf32>
    %755 = arith.mulf %754, %726 : vector<8x128xf32>
    %756 = arith.addf %661, %755 : vector<8x128xf32>
    %757 = vector.extract_strided_slice %14 {offsets = [6, 7, 0], sizes = [1, 1, 128], strides = [1, 1, 1]} : vector<8x8x128xf32> to vector<1x1x128xf32>
    %758 = vector.shape_cast %757 : vector<1x1x128xf32> to vector<1x128xf32>
    %759 = vector.broadcast %758 : vector<1x128xf32> to vector<8x128xf32>
    %760 = arith.mulf %759, %726 : vector<8x128xf32>
    %761 = arith.addf %666, %760 : vector<8x128xf32>
    %762 = vector.extract_strided_slice %14 {offsets = [7, 7, 0], sizes = [1, 1, 128], strides = [1, 1, 1]} : vector<8x8x128xf32> to vector<1x1x128xf32>
    %763 = vector.shape_cast %762 : vector<1x1x128xf32> to vector<1x128xf32>
    %764 = vector.broadcast %763 : vector<1x128xf32> to vector<8x128xf32>
    %765 = arith.mulf %764, %726 : vector<8x128xf32>
    %766 = arith.addf %671, %765 : vector<8x128xf32>
    %c0_9 = arith.constant 0 : index
    %c64 = arith.constant 64 : index
    %c0_10 = arith.constant 0 : index
    %767 = vector.load %arg2[%c0_9, %c64, %c0_10] : memref<1x256x128xbf16, #tpu.memory_space<vmem>>, vector<1x64x128xbf16>
    %768 = vector.shape_cast %767 : vector<1x64x128xbf16> to vector<64x128xbf16>
    %769 = arith.extf %768 : vector<64x128xbf16> to vector<64x128xf32>
    %770 = vector.shape_cast %769 : vector<64x128xf32> to vector<8x8x128xf32>
    %771 = vector.extract_strided_slice %6 {offsets = [64, 0], sizes = [64, 128], strides = [1, 1]} : vector<512x128xf32> to vector<64x128xf32>
    %772 = vector.shape_cast %771 : vector<64x128xf32> to vector<8x8x128xf32>
    %773 = vector.extract_strided_slice %6 {offsets = [320, 0], sizes = [64, 128], strides = [1, 1]} : vector<512x128xf32> to vector<64x128xf32>
    %774 = vector.shape_cast %773 : vector<64x128xf32> to vector<8x8x128xf32>
    %775 = vector.extract_strided_slice %770 {offsets = [0, 0, 0], sizes = [1, 1, 128], strides = [1, 1, 1]} : vector<8x8x128xf32> to vector<1x1x128xf32>
    %776 = vector.shape_cast %775 : vector<1x1x128xf32> to vector<1x128xf32>
    %777 = vector.extract_strided_slice %772 {offsets = [0, 0, 0], sizes = [1, 8, 128], strides = [1, 1, 1]} : vector<8x8x128xf32> to vector<1x8x128xf32>
    %778 = vector.shape_cast %777 : vector<1x8x128xf32> to vector<8x128xf32>
    %779 = vector.broadcast %776 : vector<1x128xf32> to vector<8x128xf32>
    %780 = arith.mulf %779, %778 : vector<8x128xf32>
    %781 = vector.extract_strided_slice %770 {offsets = [0, 1, 0], sizes = [1, 1, 128], strides = [1, 1, 1]} : vector<8x8x128xf32> to vector<1x1x128xf32>
    %782 = vector.shape_cast %781 : vector<1x1x128xf32> to vector<1x128xf32>
    %783 = vector.extract_strided_slice %772 {offsets = [1, 0, 0], sizes = [1, 8, 128], strides = [1, 1, 1]} : vector<8x8x128xf32> to vector<1x8x128xf32>
    %784 = vector.shape_cast %783 : vector<1x8x128xf32> to vector<8x128xf32>
    %785 = vector.broadcast %782 : vector<1x128xf32> to vector<8x128xf32>
    %786 = arith.mulf %785, %784 : vector<8x128xf32>
    %787 = arith.addf %780, %786 : vector<8x128xf32>
    %788 = vector.extract_strided_slice %770 {offsets = [0, 2, 0], sizes = [1, 1, 128], strides = [1, 1, 1]} : vector<8x8x128xf32> to vector<1x1x128xf32>
    %789 = vector.shape_cast %788 : vector<1x1x128xf32> to vector<1x128xf32>
    %790 = vector.extract_strided_slice %772 {offsets = [2, 0, 0], sizes = [1, 8, 128], strides = [1, 1, 1]} : vector<8x8x128xf32> to vector<1x8x128xf32>
    %791 = vector.shape_cast %790 : vector<1x8x128xf32> to vector<8x128xf32>
    %792 = vector.broadcast %789 : vector<1x128xf32> to vector<8x128xf32>
    %793 = arith.mulf %792, %791 : vector<8x128xf32>
    %794 = arith.addf %787, %793 : vector<8x128xf32>
    %795 = vector.extract_strided_slice %770 {offsets = [0, 3, 0], sizes = [1, 1, 128], strides = [1, 1, 1]} : vector<8x8x128xf32> to vector<1x1x128xf32>
    %796 = vector.shape_cast %795 : vector<1x1x128xf32> to vector<1x128xf32>
    %797 = vector.extract_strided_slice %772 {offsets = [3, 0, 0], sizes = [1, 8, 128], strides = [1, 1, 1]} : vector<8x8x128xf32> to vector<1x8x128xf32>
    %798 = vector.shape_cast %797 : vector<1x8x128xf32> to vector<8x128xf32>
    %799 = vector.broadcast %796 : vector<1x128xf32> to vector<8x128xf32>
    %800 = arith.mulf %799, %798 : vector<8x128xf32>
    %801 = arith.addf %794, %800 : vector<8x128xf32>
    %802 = vector.extract_strided_slice %770 {offsets = [0, 4, 0], sizes = [1, 1, 128], strides = [1, 1, 1]} : vector<8x8x128xf32> to vector<1x1x128xf32>
    %803 = vector.shape_cast %802 : vector<1x1x128xf32> to vector<1x128xf32>
    %804 = vector.extract_strided_slice %772 {offsets = [4, 0, 0], sizes = [1, 8, 128], strides = [1, 1, 1]} : vector<8x8x128xf32> to vector<1x8x128xf32>
    %805 = vector.shape_cast %804 : vector<1x8x128xf32> to vector<8x128xf32>
    %806 = vector.broadcast %803 : vector<1x128xf32> to vector<8x128xf32>
    %807 = arith.mulf %806, %805 : vector<8x128xf32>
    %808 = arith.addf %801, %807 : vector<8x128xf32>
    %809 = vector.extract_strided_slice %770 {offsets = [0, 5, 0], sizes = [1, 1, 128], strides = [1, 1, 1]} : vector<8x8x128xf32> to vector<1x1x128xf32>
    %810 = vector.shape_cast %809 : vector<1x1x128xf32> to vector<1x128xf32>
    %811 = vector.extract_strided_slice %772 {offsets = [5, 0, 0], sizes = [1, 8, 128], strides = [1, 1, 1]} : vector<8x8x128xf32> to vector<1x8x128xf32>
    %812 = vector.shape_cast %811 : vector<1x8x128xf32> to vector<8x128xf32>
    %813 = vector.broadcast %810 : vector<1x128xf32> to vector<8x128xf32>
    %814 = arith.mulf %813, %812 : vector<8x128xf32>
    %815 = arith.addf %808, %814 : vector<8x128xf32>
    %816 = vector.extract_strided_slice %770 {offsets = [0, 6, 0], sizes = [1, 1, 128], strides = [1, 1, 1]} : vector<8x8x128xf32> to vector<1x1x128xf32>
    %817 = vector.shape_cast %816 : vector<1x1x128xf32> to vector<1x128xf32>
    %818 = vector.extract_strided_slice %772 {offsets = [6, 0, 0], sizes = [1, 8, 128], strides = [1, 1, 1]} : vector<8x8x128xf32> to vector<1x8x128xf32>
    %819 = vector.shape_cast %818 : vector<1x8x128xf32> to vector<8x128xf32>
    %820 = vector.broadcast %817 : vector<1x128xf32> to vector<8x128xf32>
    %821 = arith.mulf %820, %819 : vector<8x128xf32>
    %822 = arith.addf %815, %821 : vector<8x128xf32>
    %823 = vector.extract_strided_slice %770 {offsets = [0, 7, 0], sizes = [1, 1, 128], strides = [1, 1, 1]} : vector<8x8x128xf32> to vector<1x1x128xf32>
    %824 = vector.shape_cast %823 : vector<1x1x128xf32> to vector<1x128xf32>
    %825 = vector.extract_strided_slice %772 {offsets = [7, 0, 0], sizes = [1, 8, 128], strides = [1, 1, 1]} : vector<8x8x128xf32> to vector<1x8x128xf32>
    %826 = vector.shape_cast %825 : vector<1x8x128xf32> to vector<8x128xf32>
    %827 = vector.broadcast %824 : vector<1x128xf32> to vector<8x128xf32>
    %828 = arith.mulf %827, %826 : vector<8x128xf32>
    %829 = arith.addf %822, %828 : vector<8x128xf32>
    %830 = vector.extract_strided_slice %774 {offsets = [0, 0, 0], sizes = [1, 1, 128], strides = [1, 1, 1]} : vector<8x8x128xf32> to vector<1x1x128xf32>
    %831 = vector.shape_cast %830 : vector<1x1x128xf32> to vector<1x128xf32>
    %832 = vector.broadcast %831 : vector<1x128xf32> to vector<8x128xf32>
    %833 = arith.mulf %832, %829 : vector<8x128xf32>
    %834 = vector.extract_strided_slice %774 {offsets = [1, 0, 0], sizes = [1, 1, 128], strides = [1, 1, 1]} : vector<8x8x128xf32> to vector<1x1x128xf32>
    %835 = vector.shape_cast %834 : vector<1x1x128xf32> to vector<1x128xf32>
    %836 = vector.broadcast %835 : vector<1x128xf32> to vector<8x128xf32>
    %837 = arith.mulf %836, %829 : vector<8x128xf32>
    %838 = vector.extract_strided_slice %774 {offsets = [2, 0, 0], sizes = [1, 1, 128], strides = [1, 1, 1]} : vector<8x8x128xf32> to vector<1x1x128xf32>
    %839 = vector.shape_cast %838 : vector<1x1x128xf32> to vector<1x128xf32>
    %840 = vector.broadcast %839 : vector<1x128xf32> to vector<8x128xf32>
    %841 = arith.mulf %840, %829 : vector<8x128xf32>
    %842 = vector.extract_strided_slice %774 {offsets = [3, 0, 0], sizes = [1, 1, 128], strides = [1, 1, 1]} : vector<8x8x128xf32> to vector<1x1x128xf32>
    %843 = vector.shape_cast %842 : vector<1x1x128xf32> to vector<1x128xf32>
    %844 = vector.broadcast %843 : vector<1x128xf32> to vector<8x128xf32>
    %845 = arith.mulf %844, %829 : vector<8x128xf32>
    %846 = vector.extract_strided_slice %774 {offsets = [4, 0, 0], sizes = [1, 1, 128], strides = [1, 1, 1]} : vector<8x8x128xf32> to vector<1x1x128xf32>
    %847 = vector.shape_cast %846 : vector<1x1x128xf32> to vector<1x128xf32>
    %848 = vector.broadcast %847 : vector<1x128xf32> to vector<8x128xf32>
    %849 = arith.mulf %848, %829 : vector<8x128xf32>
    %850 = vector.extract_strided_slice %774 {offsets = [5, 0, 0], sizes = [1, 1, 128], strides = [1, 1, 1]} : vector<8x8x128xf32> to vector<1x1x128xf32>
    %851 = vector.shape_cast %850 : vector<1x1x128xf32> to vector<1x128xf32>
    %852 = vector.broadcast %851 : vector<1x128xf32> to vector<8x128xf32>
    %853 = arith.mulf %852, %829 : vector<8x128xf32>
    %854 = vector.extract_strided_slice %774 {offsets = [6, 0, 0], sizes = [1, 1, 128], strides = [1, 1, 1]} : vector<8x8x128xf32> to vector<1x1x128xf32>
    %855 = vector.shape_cast %854 : vector<1x1x128xf32> to vector<1x128xf32>
    %856 = vector.broadcast %855 : vector<1x128xf32> to vector<8x128xf32>
    %857 = arith.mulf %856, %829 : vector<8x128xf32>
    %858 = vector.extract_strided_slice %774 {offsets = [7, 0, 0], sizes = [1, 1, 128], strides = [1, 1, 1]} : vector<8x8x128xf32> to vector<1x1x128xf32>
    %859 = vector.shape_cast %858 : vector<1x1x128xf32> to vector<1x128xf32>
    %860 = vector.broadcast %859 : vector<1x128xf32> to vector<8x128xf32>
    %861 = arith.mulf %860, %829 : vector<8x128xf32>
    %862 = vector.extract_strided_slice %770 {offsets = [1, 0, 0], sizes = [1, 1, 128], strides = [1, 1, 1]} : vector<8x8x128xf32> to vector<1x1x128xf32>
    %863 = vector.shape_cast %862 : vector<1x1x128xf32> to vector<1x128xf32>
    %864 = vector.extract_strided_slice %772 {offsets = [0, 0, 0], sizes = [1, 8, 128], strides = [1, 1, 1]} : vector<8x8x128xf32> to vector<1x8x128xf32>
    %865 = vector.shape_cast %864 : vector<1x8x128xf32> to vector<8x128xf32>
    %866 = vector.broadcast %863 : vector<1x128xf32> to vector<8x128xf32>
    %867 = arith.mulf %866, %865 : vector<8x128xf32>
    %868 = vector.extract_strided_slice %770 {offsets = [1, 1, 0], sizes = [1, 1, 128], strides = [1, 1, 1]} : vector<8x8x128xf32> to vector<1x1x128xf32>
    %869 = vector.shape_cast %868 : vector<1x1x128xf32> to vector<1x128xf32>
    %870 = vector.extract_strided_slice %772 {offsets = [1, 0, 0], sizes = [1, 8, 128], strides = [1, 1, 1]} : vector<8x8x128xf32> to vector<1x8x128xf32>
    %871 = vector.shape_cast %870 : vector<1x8x128xf32> to vector<8x128xf32>
    %872 = vector.broadcast %869 : vector<1x128xf32> to vector<8x128xf32>
    %873 = arith.mulf %872, %871 : vector<8x128xf32>
    %874 = arith.addf %867, %873 : vector<8x128xf32>
    %875 = vector.extract_strided_slice %770 {offsets = [1, 2, 0], sizes = [1, 1, 128], strides = [1, 1, 1]} : vector<8x8x128xf32> to vector<1x1x128xf32>
    %876 = vector.shape_cast %875 : vector<1x1x128xf32> to vector<1x128xf32>
    %877 = vector.extract_strided_slice %772 {offsets = [2, 0, 0], sizes = [1, 8, 128], strides = [1, 1, 1]} : vector<8x8x128xf32> to vector<1x8x128xf32>
    %878 = vector.shape_cast %877 : vector<1x8x128xf32> to vector<8x128xf32>
    %879 = vector.broadcast %876 : vector<1x128xf32> to vector<8x128xf32>
    %880 = arith.mulf %879, %878 : vector<8x128xf32>
    %881 = arith.addf %874, %880 : vector<8x128xf32>
    %882 = vector.extract_strided_slice %770 {offsets = [1, 3, 0], sizes = [1, 1, 128], strides = [1, 1, 1]} : vector<8x8x128xf32> to vector<1x1x128xf32>
    %883 = vector.shape_cast %882 : vector<1x1x128xf32> to vector<1x128xf32>
    %884 = vector.extract_strided_slice %772 {offsets = [3, 0, 0], sizes = [1, 8, 128], strides = [1, 1, 1]} : vector<8x8x128xf32> to vector<1x8x128xf32>
    %885 = vector.shape_cast %884 : vector<1x8x128xf32> to vector<8x128xf32>
    %886 = vector.broadcast %883 : vector<1x128xf32> to vector<8x128xf32>
    %887 = arith.mulf %886, %885 : vector<8x128xf32>
    %888 = arith.addf %881, %887 : vector<8x128xf32>
    %889 = vector.extract_strided_slice %770 {offsets = [1, 4, 0], sizes = [1, 1, 128], strides = [1, 1, 1]} : vector<8x8x128xf32> to vector<1x1x128xf32>
    %890 = vector.shape_cast %889 : vector<1x1x128xf32> to vector<1x128xf32>
    %891 = vector.extract_strided_slice %772 {offsets = [4, 0, 0], sizes = [1, 8, 128], strides = [1, 1, 1]} : vector<8x8x128xf32> to vector<1x8x128xf32>
    %892 = vector.shape_cast %891 : vector<1x8x128xf32> to vector<8x128xf32>
    %893 = vector.broadcast %890 : vector<1x128xf32> to vector<8x128xf32>
    %894 = arith.mulf %893, %892 : vector<8x128xf32>
    %895 = arith.addf %888, %894 : vector<8x128xf32>
    %896 = vector.extract_strided_slice %770 {offsets = [1, 5, 0], sizes = [1, 1, 128], strides = [1, 1, 1]} : vector<8x8x128xf32> to vector<1x1x128xf32>
    %897 = vector.shape_cast %896 : vector<1x1x128xf32> to vector<1x128xf32>
    %898 = vector.extract_strided_slice %772 {offsets = [5, 0, 0], sizes = [1, 8, 128], strides = [1, 1, 1]} : vector<8x8x128xf32> to vector<1x8x128xf32>
    %899 = vector.shape_cast %898 : vector<1x8x128xf32> to vector<8x128xf32>
    %900 = vector.broadcast %897 : vector<1x128xf32> to vector<8x128xf32>
    %901 = arith.mulf %900, %899 : vector<8x128xf32>
    %902 = arith.addf %895, %901 : vector<8x128xf32>
    %903 = vector.extract_strided_slice %770 {offsets = [1, 6, 0], sizes = [1, 1, 128], strides = [1, 1, 1]} : vector<8x8x128xf32> to vector<1x1x128xf32>
    %904 = vector.shape_cast %903 : vector<1x1x128xf32> to vector<1x128xf32>
    %905 = vector.extract_strided_slice %772 {offsets = [6, 0, 0], sizes = [1, 8, 128], strides = [1, 1, 1]} : vector<8x8x128xf32> to vector<1x8x128xf32>
    %906 = vector.shape_cast %905 : vector<1x8x128xf32> to vector<8x128xf32>
    %907 = vector.broadcast %904 : vector<1x128xf32> to vector<8x128xf32>
    %908 = arith.mulf %907, %906 : vector<8x128xf32>
    %909 = arith.addf %902, %908 : vector<8x128xf32>
    %910 = vector.extract_strided_slice %770 {offsets = [1, 7, 0], sizes = [1, 1, 128], strides = [1, 1, 1]} : vector<8x8x128xf32> to vector<1x1x128xf32>
    %911 = vector.shape_cast %910 : vector<1x1x128xf32> to vector<1x128xf32>
    %912 = vector.extract_strided_slice %772 {offsets = [7, 0, 0], sizes = [1, 8, 128], strides = [1, 1, 1]} : vector<8x8x128xf32> to vector<1x8x128xf32>
    %913 = vector.shape_cast %912 : vector<1x8x128xf32> to vector<8x128xf32>
    %914 = vector.broadcast %911 : vector<1x128xf32> to vector<8x128xf32>
    %915 = arith.mulf %914, %913 : vector<8x128xf32>
    %916 = arith.addf %909, %915 : vector<8x128xf32>
    %917 = vector.extract_strided_slice %774 {offsets = [0, 1, 0], sizes = [1, 1, 128], strides = [1, 1, 1]} : vector<8x8x128xf32> to vector<1x1x128xf32>
    %918 = vector.shape_cast %917 : vector<1x1x128xf32> to vector<1x128xf32>
    %919 = vector.broadcast %918 : vector<1x128xf32> to vector<8x128xf32>
    %920 = arith.mulf %919, %916 : vector<8x128xf32>
    %921 = arith.addf %833, %920 : vector<8x128xf32>
    %922 = vector.extract_strided_slice %774 {offsets = [1, 1, 0], sizes = [1, 1, 128], strides = [1, 1, 1]} : vector<8x8x128xf32> to vector<1x1x128xf32>
    %923 = vector.shape_cast %922 : vector<1x1x128xf32> to vector<1x128xf32>
    %924 = vector.broadcast %923 : vector<1x128xf32> to vector<8x128xf32>
    %925 = arith.mulf %924, %916 : vector<8x128xf32>
    %926 = arith.addf %837, %925 : vector<8x128xf32>
    %927 = vector.extract_strided_slice %774 {offsets = [2, 1, 0], sizes = [1, 1, 128], strides = [1, 1, 1]} : vector<8x8x128xf32> to vector<1x1x128xf32>
    %928 = vector.shape_cast %927 : vector<1x1x128xf32> to vector<1x128xf32>
    %929 = vector.broadcast %928 : vector<1x128xf32> to vector<8x128xf32>
    %930 = arith.mulf %929, %916 : vector<8x128xf32>
    %931 = arith.addf %841, %930 : vector<8x128xf32>
    %932 = vector.extract_strided_slice %774 {offsets = [3, 1, 0], sizes = [1, 1, 128], strides = [1, 1, 1]} : vector<8x8x128xf32> to vector<1x1x128xf32>
    %933 = vector.shape_cast %932 : vector<1x1x128xf32> to vector<1x128xf32>
    %934 = vector.broadcast %933 : vector<1x128xf32> to vector<8x128xf32>
    %935 = arith.mulf %934, %916 : vector<8x128xf32>
    %936 = arith.addf %845, %935 : vector<8x128xf32>
    %937 = vector.extract_strided_slice %774 {offsets = [4, 1, 0], sizes = [1, 1, 128], strides = [1, 1, 1]} : vector<8x8x128xf32> to vector<1x1x128xf32>
    %938 = vector.shape_cast %937 : vector<1x1x128xf32> to vector<1x128xf32>
    %939 = vector.broadcast %938 : vector<1x128xf32> to vector<8x128xf32>
    %940 = arith.mulf %939, %916 : vector<8x128xf32>
    %941 = arith.addf %849, %940 : vector<8x128xf32>
    %942 = vector.extract_strided_slice %774 {offsets = [5, 1, 0], sizes = [1, 1, 128], strides = [1, 1, 1]} : vector<8x8x128xf32> to vector<1x1x128xf32>
    %943 = vector.shape_cast %942 : vector<1x1x128xf32> to vector<1x128xf32>
    %944 = vector.broadcast %943 : vector<1x128xf32> to vector<8x128xf32>
    %945 = arith.mulf %944, %916 : vector<8x128xf32>
    %946 = arith.addf %853, %945 : vector<8x128xf32>
    %947 = vector.extract_strided_slice %774 {offsets = [6, 1, 0], sizes = [1, 1, 128], strides = [1, 1, 1]} : vector<8x8x128xf32> to vector<1x1x128xf32>
    %948 = vector.shape_cast %947 : vector<1x1x128xf32> to vector<1x128xf32>
    %949 = vector.broadcast %948 : vector<1x128xf32> to vector<8x128xf32>
    %950 = arith.mulf %949, %916 : vector<8x128xf32>
    %951 = arith.addf %857, %950 : vector<8x128xf32>
    %952 = vector.extract_strided_slice %774 {offsets = [7, 1, 0], sizes = [1, 1, 128], strides = [1, 1, 1]} : vector<8x8x128xf32> to vector<1x1x128xf32>
    %953 = vector.shape_cast %952 : vector<1x1x128xf32> to vector<1x128xf32>
    %954 = vector.broadcast %953 : vector<1x128xf32> to vector<8x128xf32>
    %955 = arith.mulf %954, %916 : vector<8x128xf32>
    %956 = arith.addf %861, %955 : vector<8x128xf32>
    %957 = vector.extract_strided_slice %770 {offsets = [2, 0, 0], sizes = [1, 1, 128], strides = [1, 1, 1]} : vector<8x8x128xf32> to vector<1x1x128xf32>
    %958 = vector.shape_cast %957 : vector<1x1x128xf32> to vector<1x128xf32>
    %959 = vector.extract_strided_slice %772 {offsets = [0, 0, 0], sizes = [1, 8, 128], strides = [1, 1, 1]} : vector<8x8x128xf32> to vector<1x8x128xf32>
    %960 = vector.shape_cast %959 : vector<1x8x128xf32> to vector<8x128xf32>
    %961 = vector.broadcast %958 : vector<1x128xf32> to vector<8x128xf32>
    %962 = arith.mulf %961, %960 : vector<8x128xf32>
    %963 = vector.extract_strided_slice %770 {offsets = [2, 1, 0], sizes = [1, 1, 128], strides = [1, 1, 1]} : vector<8x8x128xf32> to vector<1x1x128xf32>
    %964 = vector.shape_cast %963 : vector<1x1x128xf32> to vector<1x128xf32>
    %965 = vector.extract_strided_slice %772 {offsets = [1, 0, 0], sizes = [1, 8, 128], strides = [1, 1, 1]} : vector<8x8x128xf32> to vector<1x8x128xf32>
    %966 = vector.shape_cast %965 : vector<1x8x128xf32> to vector<8x128xf32>
    %967 = vector.broadcast %964 : vector<1x128xf32> to vector<8x128xf32>
    %968 = arith.mulf %967, %966 : vector<8x128xf32>
    %969 = arith.addf %962, %968 : vector<8x128xf32>
    %970 = vector.extract_strided_slice %770 {offsets = [2, 2, 0], sizes = [1, 1, 128], strides = [1, 1, 1]} : vector<8x8x128xf32> to vector<1x1x128xf32>
    %971 = vector.shape_cast %970 : vector<1x1x128xf32> to vector<1x128xf32>
    %972 = vector.extract_strided_slice %772 {offsets = [2, 0, 0], sizes = [1, 8, 128], strides = [1, 1, 1]} : vector<8x8x128xf32> to vector<1x8x128xf32>
    %973 = vector.shape_cast %972 : vector<1x8x128xf32> to vector<8x128xf32>
    %974 = vector.broadcast %971 : vector<1x128xf32> to vector<8x128xf32>
    %975 = arith.mulf %974, %973 : vector<8x128xf32>
    %976 = arith.addf %969, %975 : vector<8x128xf32>
    %977 = vector.extract_strided_slice %770 {offsets = [2, 3, 0], sizes = [1, 1, 128], strides = [1, 1, 1]} : vector<8x8x128xf32> to vector<1x1x128xf32>
    %978 = vector.shape_cast %977 : vector<1x1x128xf32> to vector<1x128xf32>
    %979 = vector.extract_strided_slice %772 {offsets = [3, 0, 0], sizes = [1, 8, 128], strides = [1, 1, 1]} : vector<8x8x128xf32> to vector<1x8x128xf32>
    %980 = vector.shape_cast %979 : vector<1x8x128xf32> to vector<8x128xf32>
    %981 = vector.broadcast %978 : vector<1x128xf32> to vector<8x128xf32>
    %982 = arith.mulf %981, %980 : vector<8x128xf32>
    %983 = arith.addf %976, %982 : vector<8x128xf32>
    %984 = vector.extract_strided_slice %770 {offsets = [2, 4, 0], sizes = [1, 1, 128], strides = [1, 1, 1]} : vector<8x8x128xf32> to vector<1x1x128xf32>
    %985 = vector.shape_cast %984 : vector<1x1x128xf32> to vector<1x128xf32>
    %986 = vector.extract_strided_slice %772 {offsets = [4, 0, 0], sizes = [1, 8, 128], strides = [1, 1, 1]} : vector<8x8x128xf32> to vector<1x8x128xf32>
    %987 = vector.shape_cast %986 : vector<1x8x128xf32> to vector<8x128xf32>
    %988 = vector.broadcast %985 : vector<1x128xf32> to vector<8x128xf32>
    %989 = arith.mulf %988, %987 : vector<8x128xf32>
    %990 = arith.addf %983, %989 : vector<8x128xf32>
    %991 = vector.extract_strided_slice %770 {offsets = [2, 5, 0], sizes = [1, 1, 128], strides = [1, 1, 1]} : vector<8x8x128xf32> to vector<1x1x128xf32>
    %992 = vector.shape_cast %991 : vector<1x1x128xf32> to vector<1x128xf32>
    %993 = vector.extract_strided_slice %772 {offsets = [5, 0, 0], sizes = [1, 8, 128], strides = [1, 1, 1]} : vector<8x8x128xf32> to vector<1x8x128xf32>
    %994 = vector.shape_cast %993 : vector<1x8x128xf32> to vector<8x128xf32>
    %995 = vector.broadcast %992 : vector<1x128xf32> to vector<8x128xf32>
    %996 = arith.mulf %995, %994 : vector<8x128xf32>
    %997 = arith.addf %990, %996 : vector<8x128xf32>
    %998 = vector.extract_strided_slice %770 {offsets = [2, 6, 0], sizes = [1, 1, 128], strides = [1, 1, 1]} : vector<8x8x128xf32> to vector<1x1x128xf32>
    %999 = vector.shape_cast %998 : vector<1x1x128xf32> to vector<1x128xf32>
    %1000 = vector.extract_strided_slice %772 {offsets = [6, 0, 0], sizes = [1, 8, 128], strides = [1, 1, 1]} : vector<8x8x128xf32> to vector<1x8x128xf32>
    %1001 = vector.shape_cast %1000 : vector<1x8x128xf32> to vector<8x128xf32>
    %1002 = vector.broadcast %999 : vector<1x128xf32> to vector<8x128xf32>
    %1003 = arith.mulf %1002, %1001 : vector<8x128xf32>
    %1004 = arith.addf %997, %1003 : vector<8x128xf32>
    %1005 = vector.extract_strided_slice %770 {offsets = [2, 7, 0], sizes = [1, 1, 128], strides = [1, 1, 1]} : vector<8x8x128xf32> to vector<1x1x128xf32>
    %1006 = vector.shape_cast %1005 : vector<1x1x128xf32> to vector<1x128xf32>
    %1007 = vector.extract_strided_slice %772 {offsets = [7, 0, 0], sizes = [1, 8, 128], strides = [1, 1, 1]} : vector<8x8x128xf32> to vector<1x8x128xf32>
    %1008 = vector.shape_cast %1007 : vector<1x8x128xf32> to vector<8x128xf32>
    %1009 = vector.broadcast %1006 : vector<1x128xf32> to vector<8x128xf32>
    %1010 = arith.mulf %1009, %1008 : vector<8x128xf32>
    %1011 = arith.addf %1004, %1010 : vector<8x128xf32>
    %1012 = vector.extract_strided_slice %774 {offsets = [0, 2, 0], sizes = [1, 1, 128], strides = [1, 1, 1]} : vector<8x8x128xf32> to vector<1x1x128xf32>
    %1013 = vector.shape_cast %1012 : vector<1x1x128xf32> to vector<1x128xf32>
    %1014 = vector.broadcast %1013 : vector<1x128xf32> to vector<8x128xf32>
    %1015 = arith.mulf %1014, %1011 : vector<8x128xf32>
    %1016 = arith.addf %921, %1015 : vector<8x128xf32>
    %1017 = vector.extract_strided_slice %774 {offsets = [1, 2, 0], sizes = [1, 1, 128], strides = [1, 1, 1]} : vector<8x8x128xf32> to vector<1x1x128xf32>
    %1018 = vector.shape_cast %1017 : vector<1x1x128xf32> to vector<1x128xf32>
    %1019 = vector.broadcast %1018 : vector<1x128xf32> to vector<8x128xf32>
    %1020 = arith.mulf %1019, %1011 : vector<8x128xf32>
    %1021 = arith.addf %926, %1020 : vector<8x128xf32>
    %1022 = vector.extract_strided_slice %774 {offsets = [2, 2, 0], sizes = [1, 1, 128], strides = [1, 1, 1]} : vector<8x8x128xf32> to vector<1x1x128xf32>
    %1023 = vector.shape_cast %1022 : vector<1x1x128xf32> to vector<1x128xf32>
    %1024 = vector.broadcast %1023 : vector<1x128xf32> to vector<8x128xf32>
    %1025 = arith.mulf %1024, %1011 : vector<8x128xf32>
    %1026 = arith.addf %931, %1025 : vector<8x128xf32>
    %1027 = vector.extract_strided_slice %774 {offsets = [3, 2, 0], sizes = [1, 1, 128], strides = [1, 1, 1]} : vector<8x8x128xf32> to vector<1x1x128xf32>
    %1028 = vector.shape_cast %1027 : vector<1x1x128xf32> to vector<1x128xf32>
    %1029 = vector.broadcast %1028 : vector<1x128xf32> to vector<8x128xf32>
    %1030 = arith.mulf %1029, %1011 : vector<8x128xf32>
    %1031 = arith.addf %936, %1030 : vector<8x128xf32>
    %1032 = vector.extract_strided_slice %774 {offsets = [4, 2, 0], sizes = [1, 1, 128], strides = [1, 1, 1]} : vector<8x8x128xf32> to vector<1x1x128xf32>
    %1033 = vector.shape_cast %1032 : vector<1x1x128xf32> to vector<1x128xf32>
    %1034 = vector.broadcast %1033 : vector<1x128xf32> to vector<8x128xf32>
    %1035 = arith.mulf %1034, %1011 : vector<8x128xf32>
    %1036 = arith.addf %941, %1035 : vector<8x128xf32>
    %1037 = vector.extract_strided_slice %774 {offsets = [5, 2, 0], sizes = [1, 1, 128], strides = [1, 1, 1]} : vector<8x8x128xf32> to vector<1x1x128xf32>
    %1038 = vector.shape_cast %1037 : vector<1x1x128xf32> to vector<1x128xf32>
    %1039 = vector.broadcast %1038 : vector<1x128xf32> to vector<8x128xf32>
    %1040 = arith.mulf %1039, %1011 : vector<8x128xf32>
    %1041 = arith.addf %946, %1040 : vector<8x128xf32>
    %1042 = vector.extract_strided_slice %774 {offsets = [6, 2, 0], sizes = [1, 1, 128], strides = [1, 1, 1]} : vector<8x8x128xf32> to vector<1x1x128xf32>
    %1043 = vector.shape_cast %1042 : vector<1x1x128xf32> to vector<1x128xf32>
    %1044 = vector.broadcast %1043 : vector<1x128xf32> to vector<8x128xf32>
    %1045 = arith.mulf %1044, %1011 : vector<8x128xf32>
    %1046 = arith.addf %951, %1045 : vector<8x128xf32>
    %1047 = vector.extract_strided_slice %774 {offsets = [7, 2, 0], sizes = [1, 1, 128], strides = [1, 1, 1]} : vector<8x8x128xf32> to vector<1x1x128xf32>
    %1048 = vector.shape_cast %1047 : vector<1x1x128xf32> to vector<1x128xf32>
    %1049 = vector.broadcast %1048 : vector<1x128xf32> to vector<8x128xf32>
    %1050 = arith.mulf %1049, %1011 : vector<8x128xf32>
    %1051 = arith.addf %956, %1050 : vector<8x128xf32>
    %1052 = vector.extract_strided_slice %770 {offsets = [3, 0, 0], sizes = [1, 1, 128], strides = [1, 1, 1]} : vector<8x8x128xf32> to vector<1x1x128xf32>
    %1053 = vector.shape_cast %1052 : vector<1x1x128xf32> to vector<1x128xf32>
    %1054 = vector.extract_strided_slice %772 {offsets = [0, 0, 0], sizes = [1, 8, 128], strides = [1, 1, 1]} : vector<8x8x128xf32> to vector<1x8x128xf32>
    %1055 = vector.shape_cast %1054 : vector<1x8x128xf32> to vector<8x128xf32>
    %1056 = vector.broadcast %1053 : vector<1x128xf32> to vector<8x128xf32>
    %1057 = arith.mulf %1056, %1055 : vector<8x128xf32>
    %1058 = vector.extract_strided_slice %770 {offsets = [3, 1, 0], sizes = [1, 1, 128], strides = [1, 1, 1]} : vector<8x8x128xf32> to vector<1x1x128xf32>
    %1059 = vector.shape_cast %1058 : vector<1x1x128xf32> to vector<1x128xf32>
    %1060 = vector.extract_strided_slice %772 {offsets = [1, 0, 0], sizes = [1, 8, 128], strides = [1, 1, 1]} : vector<8x8x128xf32> to vector<1x8x128xf32>
    %1061 = vector.shape_cast %1060 : vector<1x8x128xf32> to vector<8x128xf32>
    %1062 = vector.broadcast %1059 : vector<1x128xf32> to vector<8x128xf32>
    %1063 = arith.mulf %1062, %1061 : vector<8x128xf32>
    %1064 = arith.addf %1057, %1063 : vector<8x128xf32>
    %1065 = vector.extract_strided_slice %770 {offsets = [3, 2, 0], sizes = [1, 1, 128], strides = [1, 1, 1]} : vector<8x8x128xf32> to vector<1x1x128xf32>
    %1066 = vector.shape_cast %1065 : vector<1x1x128xf32> to vector<1x128xf32>
    %1067 = vector.extract_strided_slice %772 {offsets = [2, 0, 0], sizes = [1, 8, 128], strides = [1, 1, 1]} : vector<8x8x128xf32> to vector<1x8x128xf32>
    %1068 = vector.shape_cast %1067 : vector<1x8x128xf32> to vector<8x128xf32>
    %1069 = vector.broadcast %1066 : vector<1x128xf32> to vector<8x128xf32>
    %1070 = arith.mulf %1069, %1068 : vector<8x128xf32>
    %1071 = arith.addf %1064, %1070 : vector<8x128xf32>
    %1072 = vector.extract_strided_slice %770 {offsets = [3, 3, 0], sizes = [1, 1, 128], strides = [1, 1, 1]} : vector<8x8x128xf32> to vector<1x1x128xf32>
    %1073 = vector.shape_cast %1072 : vector<1x1x128xf32> to vector<1x128xf32>
    %1074 = vector.extract_strided_slice %772 {offsets = [3, 0, 0], sizes = [1, 8, 128], strides = [1, 1, 1]} : vector<8x8x128xf32> to vector<1x8x128xf32>
    %1075 = vector.shape_cast %1074 : vector<1x8x128xf32> to vector<8x128xf32>
    %1076 = vector.broadcast %1073 : vector<1x128xf32> to vector<8x128xf32>
    %1077 = arith.mulf %1076, %1075 : vector<8x128xf32>
    %1078 = arith.addf %1071, %1077 : vector<8x128xf32>
    %1079 = vector.extract_strided_slice %770 {offsets = [3, 4, 0], sizes = [1, 1, 128], strides = [1, 1, 1]} : vector<8x8x128xf32> to vector<1x1x128xf32>
    %1080 = vector.shape_cast %1079 : vector<1x1x128xf32> to vector<1x128xf32>
    %1081 = vector.extract_strided_slice %772 {offsets = [4, 0, 0], sizes = [1, 8, 128], strides = [1, 1, 1]} : vector<8x8x128xf32> to vector<1x8x128xf32>
    %1082 = vector.shape_cast %1081 : vector<1x8x128xf32> to vector<8x128xf32>
    %1083 = vector.broadcast %1080 : vector<1x128xf32> to vector<8x128xf32>
    %1084 = arith.mulf %1083, %1082 : vector<8x128xf32>
    %1085 = arith.addf %1078, %1084 : vector<8x128xf32>
    %1086 = vector.extract_strided_slice %770 {offsets = [3, 5, 0], sizes = [1, 1, 128], strides = [1, 1, 1]} : vector<8x8x128xf32> to vector<1x1x128xf32>
    %1087 = vector.shape_cast %1086 : vector<1x1x128xf32> to vector<1x128xf32>
    %1088 = vector.extract_strided_slice %772 {offsets = [5, 0, 0], sizes = [1, 8, 128], strides = [1, 1, 1]} : vector<8x8x128xf32> to vector<1x8x128xf32>
    %1089 = vector.shape_cast %1088 : vector<1x8x128xf32> to vector<8x128xf32>
    %1090 = vector.broadcast %1087 : vector<1x128xf32> to vector<8x128xf32>
    %1091 = arith.mulf %1090, %1089 : vector<8x128xf32>
    %1092 = arith.addf %1085, %1091 : vector<8x128xf32>
    %1093 = vector.extract_strided_slice %770 {offsets = [3, 6, 0], sizes = [1, 1, 128], strides = [1, 1, 1]} : vector<8x8x128xf32> to vector<1x1x128xf32>
    %1094 = vector.shape_cast %1093 : vector<1x1x128xf32> to vector<1x128xf32>
    %1095 = vector.extract_strided_slice %772 {offsets = [6, 0, 0], sizes = [1, 8, 128], strides = [1, 1, 1]} : vector<8x8x128xf32> to vector<1x8x128xf32>
    %1096 = vector.shape_cast %1095 : vector<1x8x128xf32> to vector<8x128xf32>
    %1097 = vector.broadcast %1094 : vector<1x128xf32> to vector<8x128xf32>
    %1098 = arith.mulf %1097, %1096 : vector<8x128xf32>
    %1099 = arith.addf %1092, %1098 : vector<8x128xf32>
    %1100 = vector.extract_strided_slice %770 {offsets = [3, 7, 0], sizes = [1, 1, 128], strides = [1, 1, 1]} : vector<8x8x128xf32> to vector<1x1x128xf32>
    %1101 = vector.shape_cast %1100 : vector<1x1x128xf32> to vector<1x128xf32>
    %1102 = vector.extract_strided_slice %772 {offsets = [7, 0, 0], sizes = [1, 8, 128], strides = [1, 1, 1]} : vector<8x8x128xf32> to vector<1x8x128xf32>
    %1103 = vector.shape_cast %1102 : vector<1x8x128xf32> to vector<8x128xf32>
    %1104 = vector.broadcast %1101 : vector<1x128xf32> to vector<8x128xf32>
    %1105 = arith.mulf %1104, %1103 : vector<8x128xf32>
    %1106 = arith.addf %1099, %1105 : vector<8x128xf32>
    %1107 = vector.extract_strided_slice %774 {offsets = [0, 3, 0], sizes = [1, 1, 128], strides = [1, 1, 1]} : vector<8x8x128xf32> to vector<1x1x128xf32>
    %1108 = vector.shape_cast %1107 : vector<1x1x128xf32> to vector<1x128xf32>
    %1109 = vector.broadcast %1108 : vector<1x128xf32> to vector<8x128xf32>
    %1110 = arith.mulf %1109, %1106 : vector<8x128xf32>
    %1111 = arith.addf %1016, %1110 : vector<8x128xf32>
    %1112 = vector.extract_strided_slice %774 {offsets = [1, 3, 0], sizes = [1, 1, 128], strides = [1, 1, 1]} : vector<8x8x128xf32> to vector<1x1x128xf32>
    %1113 = vector.shape_cast %1112 : vector<1x1x128xf32> to vector<1x128xf32>
    %1114 = vector.broadcast %1113 : vector<1x128xf32> to vector<8x128xf32>
    %1115 = arith.mulf %1114, %1106 : vector<8x128xf32>
    %1116 = arith.addf %1021, %1115 : vector<8x128xf32>
    %1117 = vector.extract_strided_slice %774 {offsets = [2, 3, 0], sizes = [1, 1, 128], strides = [1, 1, 1]} : vector<8x8x128xf32> to vector<1x1x128xf32>
    %1118 = vector.shape_cast %1117 : vector<1x1x128xf32> to vector<1x128xf32>
    %1119 = vector.broadcast %1118 : vector<1x128xf32> to vector<8x128xf32>
    %1120 = arith.mulf %1119, %1106 : vector<8x128xf32>
    %1121 = arith.addf %1026, %1120 : vector<8x128xf32>
    %1122 = vector.extract_strided_slice %774 {offsets = [3, 3, 0], sizes = [1, 1, 128], strides = [1, 1, 1]} : vector<8x8x128xf32> to vector<1x1x128xf32>
    %1123 = vector.shape_cast %1122 : vector<1x1x128xf32> to vector<1x128xf32>
    %1124 = vector.broadcast %1123 : vector<1x128xf32> to vector<8x128xf32>
    %1125 = arith.mulf %1124, %1106 : vector<8x128xf32>
    %1126 = arith.addf %1031, %1125 : vector<8x128xf32>
    %1127 = vector.extract_strided_slice %774 {offsets = [4, 3, 0], sizes = [1, 1, 128], strides = [1, 1, 1]} : vector<8x8x128xf32> to vector<1x1x128xf32>
    %1128 = vector.shape_cast %1127 : vector<1x1x128xf32> to vector<1x128xf32>
    %1129 = vector.broadcast %1128 : vector<1x128xf32> to vector<8x128xf32>
    %1130 = arith.mulf %1129, %1106 : vector<8x128xf32>
    %1131 = arith.addf %1036, %1130 : vector<8x128xf32>
    %1132 = vector.extract_strided_slice %774 {offsets = [5, 3, 0], sizes = [1, 1, 128], strides = [1, 1, 1]} : vector<8x8x128xf32> to vector<1x1x128xf32>
    %1133 = vector.shape_cast %1132 : vector<1x1x128xf32> to vector<1x128xf32>
    %1134 = vector.broadcast %1133 : vector<1x128xf32> to vector<8x128xf32>
    %1135 = arith.mulf %1134, %1106 : vector<8x128xf32>
    %1136 = arith.addf %1041, %1135 : vector<8x128xf32>
    %1137 = vector.extract_strided_slice %774 {offsets = [6, 3, 0], sizes = [1, 1, 128], strides = [1, 1, 1]} : vector<8x8x128xf32> to vector<1x1x128xf32>
    %1138 = vector.shape_cast %1137 : vector<1x1x128xf32> to vector<1x128xf32>
    %1139 = vector.broadcast %1138 : vector<1x128xf32> to vector<8x128xf32>
    %1140 = arith.mulf %1139, %1106 : vector<8x128xf32>
    %1141 = arith.addf %1046, %1140 : vector<8x128xf32>
    %1142 = vector.extract_strided_slice %774 {offsets = [7, 3, 0], sizes = [1, 1, 128], strides = [1, 1, 1]} : vector<8x8x128xf32> to vector<1x1x128xf32>
    %1143 = vector.shape_cast %1142 : vector<1x1x128xf32> to vector<1x128xf32>
    %1144 = vector.broadcast %1143 : vector<1x128xf32> to vector<8x128xf32>
    %1145 = arith.mulf %1144, %1106 : vector<8x128xf32>
    %1146 = arith.addf %1051, %1145 : vector<8x128xf32>
    %1147 = vector.extract_strided_slice %770 {offsets = [4, 0, 0], sizes = [1, 1, 128], strides = [1, 1, 1]} : vector<8x8x128xf32> to vector<1x1x128xf32>
    %1148 = vector.shape_cast %1147 : vector<1x1x128xf32> to vector<1x128xf32>
    %1149 = vector.extract_strided_slice %772 {offsets = [0, 0, 0], sizes = [1, 8, 128], strides = [1, 1, 1]} : vector<8x8x128xf32> to vector<1x8x128xf32>
    %1150 = vector.shape_cast %1149 : vector<1x8x128xf32> to vector<8x128xf32>
    %1151 = vector.broadcast %1148 : vector<1x128xf32> to vector<8x128xf32>
    %1152 = arith.mulf %1151, %1150 : vector<8x128xf32>
    %1153 = vector.extract_strided_slice %770 {offsets = [4, 1, 0], sizes = [1, 1, 128], strides = [1, 1, 1]} : vector<8x8x128xf32> to vector<1x1x128xf32>
    %1154 = vector.shape_cast %1153 : vector<1x1x128xf32> to vector<1x128xf32>
    %1155 = vector.extract_strided_slice %772 {offsets = [1, 0, 0], sizes = [1, 8, 128], strides = [1, 1, 1]} : vector<8x8x128xf32> to vector<1x8x128xf32>
    %1156 = vector.shape_cast %1155 : vector<1x8x128xf32> to vector<8x128xf32>
    %1157 = vector.broadcast %1154 : vector<1x128xf32> to vector<8x128xf32>
    %1158 = arith.mulf %1157, %1156 : vector<8x128xf32>
    %1159 = arith.addf %1152, %1158 : vector<8x128xf32>
    %1160 = vector.extract_strided_slice %770 {offsets = [4, 2, 0], sizes = [1, 1, 128], strides = [1, 1, 1]} : vector<8x8x128xf32> to vector<1x1x128xf32>
    %1161 = vector.shape_cast %1160 : vector<1x1x128xf32> to vector<1x128xf32>
    %1162 = vector.extract_strided_slice %772 {offsets = [2, 0, 0], sizes = [1, 8, 128], strides = [1, 1, 1]} : vector<8x8x128xf32> to vector<1x8x128xf32>
    %1163 = vector.shape_cast %1162 : vector<1x8x128xf32> to vector<8x128xf32>
    %1164 = vector.broadcast %1161 : vector<1x128xf32> to vector<8x128xf32>
    %1165 = arith.mulf %1164, %1163 : vector<8x128xf32>
    %1166 = arith.addf %1159, %1165 : vector<8x128xf32>
    %1167 = vector.extract_strided_slice %770 {offsets = [4, 3, 0], sizes = [1, 1, 128], strides = [1, 1, 1]} : vector<8x8x128xf32> to vector<1x1x128xf32>
    %1168 = vector.shape_cast %1167 : vector<1x1x128xf32> to vector<1x128xf32>
    %1169 = vector.extract_strided_slice %772 {offsets = [3, 0, 0], sizes = [1, 8, 128], strides = [1, 1, 1]} : vector<8x8x128xf32> to vector<1x8x128xf32>
    %1170 = vector.shape_cast %1169 : vector<1x8x128xf32> to vector<8x128xf32>
    %1171 = vector.broadcast %1168 : vector<1x128xf32> to vector<8x128xf32>
    %1172 = arith.mulf %1171, %1170 : vector<8x128xf32>
    %1173 = arith.addf %1166, %1172 : vector<8x128xf32>
    %1174 = vector.extract_strided_slice %770 {offsets = [4, 4, 0], sizes = [1, 1, 128], strides = [1, 1, 1]} : vector<8x8x128xf32> to vector<1x1x128xf32>
    %1175 = vector.shape_cast %1174 : vector<1x1x128xf32> to vector<1x128xf32>
    %1176 = vector.extract_strided_slice %772 {offsets = [4, 0, 0], sizes = [1, 8, 128], strides = [1, 1, 1]} : vector<8x8x128xf32> to vector<1x8x128xf32>
    %1177 = vector.shape_cast %1176 : vector<1x8x128xf32> to vector<8x128xf32>
    %1178 = vector.broadcast %1175 : vector<1x128xf32> to vector<8x128xf32>
    %1179 = arith.mulf %1178, %1177 : vector<8x128xf32>
    %1180 = arith.addf %1173, %1179 : vector<8x128xf32>
    %1181 = vector.extract_strided_slice %770 {offsets = [4, 5, 0], sizes = [1, 1, 128], strides = [1, 1, 1]} : vector<8x8x128xf32> to vector<1x1x128xf32>
    %1182 = vector.shape_cast %1181 : vector<1x1x128xf32> to vector<1x128xf32>
    %1183 = vector.extract_strided_slice %772 {offsets = [5, 0, 0], sizes = [1, 8, 128], strides = [1, 1, 1]} : vector<8x8x128xf32> to vector<1x8x128xf32>
    %1184 = vector.shape_cast %1183 : vector<1x8x128xf32> to vector<8x128xf32>
    %1185 = vector.broadcast %1182 : vector<1x128xf32> to vector<8x128xf32>
    %1186 = arith.mulf %1185, %1184 : vector<8x128xf32>
    %1187 = arith.addf %1180, %1186 : vector<8x128xf32>
    %1188 = vector.extract_strided_slice %770 {offsets = [4, 6, 0], sizes = [1, 1, 128], strides = [1, 1, 1]} : vector<8x8x128xf32> to vector<1x1x128xf32>
    %1189 = vector.shape_cast %1188 : vector<1x1x128xf32> to vector<1x128xf32>
    %1190 = vector.extract_strided_slice %772 {offsets = [6, 0, 0], sizes = [1, 8, 128], strides = [1, 1, 1]} : vector<8x8x128xf32> to vector<1x8x128xf32>
    %1191 = vector.shape_cast %1190 : vector<1x8x128xf32> to vector<8x128xf32>
    %1192 = vector.broadcast %1189 : vector<1x128xf32> to vector<8x128xf32>
    %1193 = arith.mulf %1192, %1191 : vector<8x128xf32>
    %1194 = arith.addf %1187, %1193 : vector<8x128xf32>
    %1195 = vector.extract_strided_slice %770 {offsets = [4, 7, 0], sizes = [1, 1, 128], strides = [1, 1, 1]} : vector<8x8x128xf32> to vector<1x1x128xf32>
    %1196 = vector.shape_cast %1195 : vector<1x1x128xf32> to vector<1x128xf32>
    %1197 = vector.extract_strided_slice %772 {offsets = [7, 0, 0], sizes = [1, 8, 128], strides = [1, 1, 1]} : vector<8x8x128xf32> to vector<1x8x128xf32>
    %1198 = vector.shape_cast %1197 : vector<1x8x128xf32> to vector<8x128xf32>
    %1199 = vector.broadcast %1196 : vector<1x128xf32> to vector<8x128xf32>
    %1200 = arith.mulf %1199, %1198 : vector<8x128xf32>
    %1201 = arith.addf %1194, %1200 : vector<8x128xf32>
    %1202 = vector.extract_strided_slice %774 {offsets = [0, 4, 0], sizes = [1, 1, 128], strides = [1, 1, 1]} : vector<8x8x128xf32> to vector<1x1x128xf32>
    %1203 = vector.shape_cast %1202 : vector<1x1x128xf32> to vector<1x128xf32>
    %1204 = vector.broadcast %1203 : vector<1x128xf32> to vector<8x128xf32>
    %1205 = arith.mulf %1204, %1201 : vector<8x128xf32>
    %1206 = arith.addf %1111, %1205 : vector<8x128xf32>
    %1207 = vector.extract_strided_slice %774 {offsets = [1, 4, 0], sizes = [1, 1, 128], strides = [1, 1, 1]} : vector<8x8x128xf32> to vector<1x1x128xf32>
    %1208 = vector.shape_cast %1207 : vector<1x1x128xf32> to vector<1x128xf32>
    %1209 = vector.broadcast %1208 : vector<1x128xf32> to vector<8x128xf32>
    %1210 = arith.mulf %1209, %1201 : vector<8x128xf32>
    %1211 = arith.addf %1116, %1210 : vector<8x128xf32>
    %1212 = vector.extract_strided_slice %774 {offsets = [2, 4, 0], sizes = [1, 1, 128], strides = [1, 1, 1]} : vector<8x8x128xf32> to vector<1x1x128xf32>
    %1213 = vector.shape_cast %1212 : vector<1x1x128xf32> to vector<1x128xf32>
    %1214 = vector.broadcast %1213 : vector<1x128xf32> to vector<8x128xf32>
    %1215 = arith.mulf %1214, %1201 : vector<8x128xf32>
    %1216 = arith.addf %1121, %1215 : vector<8x128xf32>
    %1217 = vector.extract_strided_slice %774 {offsets = [3, 4, 0], sizes = [1, 1, 128], strides = [1, 1, 1]} : vector<8x8x128xf32> to vector<1x1x128xf32>
    %1218 = vector.shape_cast %1217 : vector<1x1x128xf32> to vector<1x128xf32>
    %1219 = vector.broadcast %1218 : vector<1x128xf32> to vector<8x128xf32>
    %1220 = arith.mulf %1219, %1201 : vector<8x128xf32>
    %1221 = arith.addf %1126, %1220 : vector<8x128xf32>
    %1222 = vector.extract_strided_slice %774 {offsets = [4, 4, 0], sizes = [1, 1, 128], strides = [1, 1, 1]} : vector<8x8x128xf32> to vector<1x1x128xf32>
    %1223 = vector.shape_cast %1222 : vector<1x1x128xf32> to vector<1x128xf32>
    %1224 = vector.broadcast %1223 : vector<1x128xf32> to vector<8x128xf32>
    %1225 = arith.mulf %1224, %1201 : vector<8x128xf32>
    %1226 = arith.addf %1131, %1225 : vector<8x128xf32>
    %1227 = vector.extract_strided_slice %774 {offsets = [5, 4, 0], sizes = [1, 1, 128], strides = [1, 1, 1]} : vector<8x8x128xf32> to vector<1x1x128xf32>
    %1228 = vector.shape_cast %1227 : vector<1x1x128xf32> to vector<1x128xf32>
    %1229 = vector.broadcast %1228 : vector<1x128xf32> to vector<8x128xf32>
    %1230 = arith.mulf %1229, %1201 : vector<8x128xf32>
    %1231 = arith.addf %1136, %1230 : vector<8x128xf32>
    %1232 = vector.extract_strided_slice %774 {offsets = [6, 4, 0], sizes = [1, 1, 128], strides = [1, 1, 1]} : vector<8x8x128xf32> to vector<1x1x128xf32>
    %1233 = vector.shape_cast %1232 : vector<1x1x128xf32> to vector<1x128xf32>
    %1234 = vector.broadcast %1233 : vector<1x128xf32> to vector<8x128xf32>
    %1235 = arith.mulf %1234, %1201 : vector<8x128xf32>
    %1236 = arith.addf %1141, %1235 : vector<8x128xf32>
    %1237 = vector.extract_strided_slice %774 {offsets = [7, 4, 0], sizes = [1, 1, 128], strides = [1, 1, 1]} : vector<8x8x128xf32> to vector<1x1x128xf32>
    %1238 = vector.shape_cast %1237 : vector<1x1x128xf32> to vector<1x128xf32>
    %1239 = vector.broadcast %1238 : vector<1x128xf32> to vector<8x128xf32>
    %1240 = arith.mulf %1239, %1201 : vector<8x128xf32>
    %1241 = arith.addf %1146, %1240 : vector<8x128xf32>
    %1242 = vector.extract_strided_slice %770 {offsets = [5, 0, 0], sizes = [1, 1, 128], strides = [1, 1, 1]} : vector<8x8x128xf32> to vector<1x1x128xf32>
    %1243 = vector.shape_cast %1242 : vector<1x1x128xf32> to vector<1x128xf32>
    %1244 = vector.extract_strided_slice %772 {offsets = [0, 0, 0], sizes = [1, 8, 128], strides = [1, 1, 1]} : vector<8x8x128xf32> to vector<1x8x128xf32>
    %1245 = vector.shape_cast %1244 : vector<1x8x128xf32> to vector<8x128xf32>
    %1246 = vector.broadcast %1243 : vector<1x128xf32> to vector<8x128xf32>
    %1247 = arith.mulf %1246, %1245 : vector<8x128xf32>
    %1248 = vector.extract_strided_slice %770 {offsets = [5, 1, 0], sizes = [1, 1, 128], strides = [1, 1, 1]} : vector<8x8x128xf32> to vector<1x1x128xf32>
    %1249 = vector.shape_cast %1248 : vector<1x1x128xf32> to vector<1x128xf32>
    %1250 = vector.extract_strided_slice %772 {offsets = [1, 0, 0], sizes = [1, 8, 128], strides = [1, 1, 1]} : vector<8x8x128xf32> to vector<1x8x128xf32>
    %1251 = vector.shape_cast %1250 : vector<1x8x128xf32> to vector<8x128xf32>
    %1252 = vector.broadcast %1249 : vector<1x128xf32> to vector<8x128xf32>
    %1253 = arith.mulf %1252, %1251 : vector<8x128xf32>
    %1254 = arith.addf %1247, %1253 : vector<8x128xf32>
    %1255 = vector.extract_strided_slice %770 {offsets = [5, 2, 0], sizes = [1, 1, 128], strides = [1, 1, 1]} : vector<8x8x128xf32> to vector<1x1x128xf32>
    %1256 = vector.shape_cast %1255 : vector<1x1x128xf32> to vector<1x128xf32>
    %1257 = vector.extract_strided_slice %772 {offsets = [2, 0, 0], sizes = [1, 8, 128], strides = [1, 1, 1]} : vector<8x8x128xf32> to vector<1x8x128xf32>
    %1258 = vector.shape_cast %1257 : vector<1x8x128xf32> to vector<8x128xf32>
    %1259 = vector.broadcast %1256 : vector<1x128xf32> to vector<8x128xf32>
    %1260 = arith.mulf %1259, %1258 : vector<8x128xf32>
    %1261 = arith.addf %1254, %1260 : vector<8x128xf32>
    %1262 = vector.extract_strided_slice %770 {offsets = [5, 3, 0], sizes = [1, 1, 128], strides = [1, 1, 1]} : vector<8x8x128xf32> to vector<1x1x128xf32>
    %1263 = vector.shape_cast %1262 : vector<1x1x128xf32> to vector<1x128xf32>
    %1264 = vector.extract_strided_slice %772 {offsets = [3, 0, 0], sizes = [1, 8, 128], strides = [1, 1, 1]} : vector<8x8x128xf32> to vector<1x8x128xf32>
    %1265 = vector.shape_cast %1264 : vector<1x8x128xf32> to vector<8x128xf32>
    %1266 = vector.broadcast %1263 : vector<1x128xf32> to vector<8x128xf32>
    %1267 = arith.mulf %1266, %1265 : vector<8x128xf32>
    %1268 = arith.addf %1261, %1267 : vector<8x128xf32>
    %1269 = vector.extract_strided_slice %770 {offsets = [5, 4, 0], sizes = [1, 1, 128], strides = [1, 1, 1]} : vector<8x8x128xf32> to vector<1x1x128xf32>
    %1270 = vector.shape_cast %1269 : vector<1x1x128xf32> to vector<1x128xf32>
    %1271 = vector.extract_strided_slice %772 {offsets = [4, 0, 0], sizes = [1, 8, 128], strides = [1, 1, 1]} : vector<8x8x128xf32> to vector<1x8x128xf32>
    %1272 = vector.shape_cast %1271 : vector<1x8x128xf32> to vector<8x128xf32>
    %1273 = vector.broadcast %1270 : vector<1x128xf32> to vector<8x128xf32>
    %1274 = arith.mulf %1273, %1272 : vector<8x128xf32>
    %1275 = arith.addf %1268, %1274 : vector<8x128xf32>
    %1276 = vector.extract_strided_slice %770 {offsets = [5, 5, 0], sizes = [1, 1, 128], strides = [1, 1, 1]} : vector<8x8x128xf32> to vector<1x1x128xf32>
    %1277 = vector.shape_cast %1276 : vector<1x1x128xf32> to vector<1x128xf32>
    %1278 = vector.extract_strided_slice %772 {offsets = [5, 0, 0], sizes = [1, 8, 128], strides = [1, 1, 1]} : vector<8x8x128xf32> to vector<1x8x128xf32>
    %1279 = vector.shape_cast %1278 : vector<1x8x128xf32> to vector<8x128xf32>
    %1280 = vector.broadcast %1277 : vector<1x128xf32> to vector<8x128xf32>
    %1281 = arith.mulf %1280, %1279 : vector<8x128xf32>
    %1282 = arith.addf %1275, %1281 : vector<8x128xf32>
    %1283 = vector.extract_strided_slice %770 {offsets = [5, 6, 0], sizes = [1, 1, 128], strides = [1, 1, 1]} : vector<8x8x128xf32> to vector<1x1x128xf32>
    %1284 = vector.shape_cast %1283 : vector<1x1x128xf32> to vector<1x128xf32>
    %1285 = vector.extract_strided_slice %772 {offsets = [6, 0, 0], sizes = [1, 8, 128], strides = [1, 1, 1]} : vector<8x8x128xf32> to vector<1x8x128xf32>
    %1286 = vector.shape_cast %1285 : vector<1x8x128xf32> to vector<8x128xf32>
    %1287 = vector.broadcast %1284 : vector<1x128xf32> to vector<8x128xf32>
    %1288 = arith.mulf %1287, %1286 : vector<8x128xf32>
    %1289 = arith.addf %1282, %1288 : vector<8x128xf32>
    %1290 = vector.extract_strided_slice %770 {offsets = [5, 7, 0], sizes = [1, 1, 128], strides = [1, 1, 1]} : vector<8x8x128xf32> to vector<1x1x128xf32>
    %1291 = vector.shape_cast %1290 : vector<1x1x128xf32> to vector<1x128xf32>
    %1292 = vector.extract_strided_slice %772 {offsets = [7, 0, 0], sizes = [1, 8, 128], strides = [1, 1, 1]} : vector<8x8x128xf32> to vector<1x8x128xf32>
    %1293 = vector.shape_cast %1292 : vector<1x8x128xf32> to vector<8x128xf32>
    %1294 = vector.broadcast %1291 : vector<1x128xf32> to vector<8x128xf32>
    %1295 = arith.mulf %1294, %1293 : vector<8x128xf32>
    %1296 = arith.addf %1289, %1295 : vector<8x128xf32>
    %1297 = vector.extract_strided_slice %774 {offsets = [0, 5, 0], sizes = [1, 1, 128], strides = [1, 1, 1]} : vector<8x8x128xf32> to vector<1x1x128xf32>
    %1298 = vector.shape_cast %1297 : vector<1x1x128xf32> to vector<1x128xf32>
    %1299 = vector.broadcast %1298 : vector<1x128xf32> to vector<8x128xf32>
    %1300 = arith.mulf %1299, %1296 : vector<8x128xf32>
    %1301 = arith.addf %1206, %1300 : vector<8x128xf32>
    %1302 = vector.extract_strided_slice %774 {offsets = [1, 5, 0], sizes = [1, 1, 128], strides = [1, 1, 1]} : vector<8x8x128xf32> to vector<1x1x128xf32>
    %1303 = vector.shape_cast %1302 : vector<1x1x128xf32> to vector<1x128xf32>
    %1304 = vector.broadcast %1303 : vector<1x128xf32> to vector<8x128xf32>
    %1305 = arith.mulf %1304, %1296 : vector<8x128xf32>
    %1306 = arith.addf %1211, %1305 : vector<8x128xf32>
    %1307 = vector.extract_strided_slice %774 {offsets = [2, 5, 0], sizes = [1, 1, 128], strides = [1, 1, 1]} : vector<8x8x128xf32> to vector<1x1x128xf32>
    %1308 = vector.shape_cast %1307 : vector<1x1x128xf32> to vector<1x128xf32>
    %1309 = vector.broadcast %1308 : vector<1x128xf32> to vector<8x128xf32>
    %1310 = arith.mulf %1309, %1296 : vector<8x128xf32>
    %1311 = arith.addf %1216, %1310 : vector<8x128xf32>
    %1312 = vector.extract_strided_slice %774 {offsets = [3, 5, 0], sizes = [1, 1, 128], strides = [1, 1, 1]} : vector<8x8x128xf32> to vector<1x1x128xf32>
    %1313 = vector.shape_cast %1312 : vector<1x1x128xf32> to vector<1x128xf32>
    %1314 = vector.broadcast %1313 : vector<1x128xf32> to vector<8x128xf32>
    %1315 = arith.mulf %1314, %1296 : vector<8x128xf32>
    %1316 = arith.addf %1221, %1315 : vector<8x128xf32>
    %1317 = vector.extract_strided_slice %774 {offsets = [4, 5, 0], sizes = [1, 1, 128], strides = [1, 1, 1]} : vector<8x8x128xf32> to vector<1x1x128xf32>
    %1318 = vector.shape_cast %1317 : vector<1x1x128xf32> to vector<1x128xf32>
    %1319 = vector.broadcast %1318 : vector<1x128xf32> to vector<8x128xf32>
    %1320 = arith.mulf %1319, %1296 : vector<8x128xf32>
    %1321 = arith.addf %1226, %1320 : vector<8x128xf32>
    %1322 = vector.extract_strided_slice %774 {offsets = [5, 5, 0], sizes = [1, 1, 128], strides = [1, 1, 1]} : vector<8x8x128xf32> to vector<1x1x128xf32>
    %1323 = vector.shape_cast %1322 : vector<1x1x128xf32> to vector<1x128xf32>
    %1324 = vector.broadcast %1323 : vector<1x128xf32> to vector<8x128xf32>
    %1325 = arith.mulf %1324, %1296 : vector<8x128xf32>
    %1326 = arith.addf %1231, %1325 : vector<8x128xf32>
    %1327 = vector.extract_strided_slice %774 {offsets = [6, 5, 0], sizes = [1, 1, 128], strides = [1, 1, 1]} : vector<8x8x128xf32> to vector<1x1x128xf32>
    %1328 = vector.shape_cast %1327 : vector<1x1x128xf32> to vector<1x128xf32>
    %1329 = vector.broadcast %1328 : vector<1x128xf32> to vector<8x128xf32>
    %1330 = arith.mulf %1329, %1296 : vector<8x128xf32>
    %1331 = arith.addf %1236, %1330 : vector<8x128xf32>
    %1332 = vector.extract_strided_slice %774 {offsets = [7, 5, 0], sizes = [1, 1, 128], strides = [1, 1, 1]} : vector<8x8x128xf32> to vector<1x1x128xf32>
    %1333 = vector.shape_cast %1332 : vector<1x1x128xf32> to vector<1x128xf32>
    %1334 = vector.broadcast %1333 : vector<1x128xf32> to vector<8x128xf32>
    %1335 = arith.mulf %1334, %1296 : vector<8x128xf32>
    %1336 = arith.addf %1241, %1335 : vector<8x128xf32>
    %1337 = vector.extract_strided_slice %770 {offsets = [6, 0, 0], sizes = [1, 1, 128], strides = [1, 1, 1]} : vector<8x8x128xf32> to vector<1x1x128xf32>
    %1338 = vector.shape_cast %1337 : vector<1x1x128xf32> to vector<1x128xf32>
    %1339 = vector.extract_strided_slice %772 {offsets = [0, 0, 0], sizes = [1, 8, 128], strides = [1, 1, 1]} : vector<8x8x128xf32> to vector<1x8x128xf32>
    %1340 = vector.shape_cast %1339 : vector<1x8x128xf32> to vector<8x128xf32>
    %1341 = vector.broadcast %1338 : vector<1x128xf32> to vector<8x128xf32>
    %1342 = arith.mulf %1341, %1340 : vector<8x128xf32>
    %1343 = vector.extract_strided_slice %770 {offsets = [6, 1, 0], sizes = [1, 1, 128], strides = [1, 1, 1]} : vector<8x8x128xf32> to vector<1x1x128xf32>
    %1344 = vector.shape_cast %1343 : vector<1x1x128xf32> to vector<1x128xf32>
    %1345 = vector.extract_strided_slice %772 {offsets = [1, 0, 0], sizes = [1, 8, 128], strides = [1, 1, 1]} : vector<8x8x128xf32> to vector<1x8x128xf32>
    %1346 = vector.shape_cast %1345 : vector<1x8x128xf32> to vector<8x128xf32>
    %1347 = vector.broadcast %1344 : vector<1x128xf32> to vector<8x128xf32>
    %1348 = arith.mulf %1347, %1346 : vector<8x128xf32>
    %1349 = arith.addf %1342, %1348 : vector<8x128xf32>
    %1350 = vector.extract_strided_slice %770 {offsets = [6, 2, 0], sizes = [1, 1, 128], strides = [1, 1, 1]} : vector<8x8x128xf32> to vector<1x1x128xf32>
    %1351 = vector.shape_cast %1350 : vector<1x1x128xf32> to vector<1x128xf32>
    %1352 = vector.extract_strided_slice %772 {offsets = [2, 0, 0], sizes = [1, 8, 128], strides = [1, 1, 1]} : vector<8x8x128xf32> to vector<1x8x128xf32>
    %1353 = vector.shape_cast %1352 : vector<1x8x128xf32> to vector<8x128xf32>
    %1354 = vector.broadcast %1351 : vector<1x128xf32> to vector<8x128xf32>
    %1355 = arith.mulf %1354, %1353 : vector<8x128xf32>
    %1356 = arith.addf %1349, %1355 : vector<8x128xf32>
    %1357 = vector.extract_strided_slice %770 {offsets = [6, 3, 0], sizes = [1, 1, 128], strides = [1, 1, 1]} : vector<8x8x128xf32> to vector<1x1x128xf32>
    %1358 = vector.shape_cast %1357 : vector<1x1x128xf32> to vector<1x128xf32>
    %1359 = vector.extract_strided_slice %772 {offsets = [3, 0, 0], sizes = [1, 8, 128], strides = [1, 1, 1]} : vector<8x8x128xf32> to vector<1x8x128xf32>
    %1360 = vector.shape_cast %1359 : vector<1x8x128xf32> to vector<8x128xf32>
    %1361 = vector.broadcast %1358 : vector<1x128xf32> to vector<8x128xf32>
    %1362 = arith.mulf %1361, %1360 : vector<8x128xf32>
    %1363 = arith.addf %1356, %1362 : vector<8x128xf32>
    %1364 = vector.extract_strided_slice %770 {offsets = [6, 4, 0], sizes = [1, 1, 128], strides = [1, 1, 1]} : vector<8x8x128xf32> to vector<1x1x128xf32>
    %1365 = vector.shape_cast %1364 : vector<1x1x128xf32> to vector<1x128xf32>
    %1366 = vector.extract_strided_slice %772 {offsets = [4, 0, 0], sizes = [1, 8, 128], strides = [1, 1, 1]} : vector<8x8x128xf32> to vector<1x8x128xf32>
    %1367 = vector.shape_cast %1366 : vector<1x8x128xf32> to vector<8x128xf32>
    %1368 = vector.broadcast %1365 : vector<1x128xf32> to vector<8x128xf32>
    %1369 = arith.mulf %1368, %1367 : vector<8x128xf32>
    %1370 = arith.addf %1363, %1369 : vector<8x128xf32>
    %1371 = vector.extract_strided_slice %770 {offsets = [6, 5, 0], sizes = [1, 1, 128], strides = [1, 1, 1]} : vector<8x8x128xf32> to vector<1x1x128xf32>
    %1372 = vector.shape_cast %1371 : vector<1x1x128xf32> to vector<1x128xf32>
    %1373 = vector.extract_strided_slice %772 {offsets = [5, 0, 0], sizes = [1, 8, 128], strides = [1, 1, 1]} : vector<8x8x128xf32> to vector<1x8x128xf32>
    %1374 = vector.shape_cast %1373 : vector<1x8x128xf32> to vector<8x128xf32>
    %1375 = vector.broadcast %1372 : vector<1x128xf32> to vector<8x128xf32>
    %1376 = arith.mulf %1375, %1374 : vector<8x128xf32>
    %1377 = arith.addf %1370, %1376 : vector<8x128xf32>
    %1378 = vector.extract_strided_slice %770 {offsets = [6, 6, 0], sizes = [1, 1, 128], strides = [1, 1, 1]} : vector<8x8x128xf32> to vector<1x1x128xf32>
    %1379 = vector.shape_cast %1378 : vector<1x1x128xf32> to vector<1x128xf32>
    %1380 = vector.extract_strided_slice %772 {offsets = [6, 0, 0], sizes = [1, 8, 128], strides = [1, 1, 1]} : vector<8x8x128xf32> to vector<1x8x128xf32>
    %1381 = vector.shape_cast %1380 : vector<1x8x128xf32> to vector<8x128xf32>
    %1382 = vector.broadcast %1379 : vector<1x128xf32> to vector<8x128xf32>
    %1383 = arith.mulf %1382, %1381 : vector<8x128xf32>
    %1384 = arith.addf %1377, %1383 : vector<8x128xf32>
    %1385 = vector.extract_strided_slice %770 {offsets = [6, 7, 0], sizes = [1, 1, 128], strides = [1, 1, 1]} : vector<8x8x128xf32> to vector<1x1x128xf32>
    %1386 = vector.shape_cast %1385 : vector<1x1x128xf32> to vector<1x128xf32>
    %1387 = vector.extract_strided_slice %772 {offsets = [7, 0, 0], sizes = [1, 8, 128], strides = [1, 1, 1]} : vector<8x8x128xf32> to vector<1x8x128xf32>
    %1388 = vector.shape_cast %1387 : vector<1x8x128xf32> to vector<8x128xf32>
    %1389 = vector.broadcast %1386 : vector<1x128xf32> to vector<8x128xf32>
    %1390 = arith.mulf %1389, %1388 : vector<8x128xf32>
    %1391 = arith.addf %1384, %1390 : vector<8x128xf32>
    %1392 = vector.extract_strided_slice %774 {offsets = [0, 6, 0], sizes = [1, 1, 128], strides = [1, 1, 1]} : vector<8x8x128xf32> to vector<1x1x128xf32>
    %1393 = vector.shape_cast %1392 : vector<1x1x128xf32> to vector<1x128xf32>
    %1394 = vector.broadcast %1393 : vector<1x128xf32> to vector<8x128xf32>
    %1395 = arith.mulf %1394, %1391 : vector<8x128xf32>
    %1396 = arith.addf %1301, %1395 : vector<8x128xf32>
    %1397 = vector.extract_strided_slice %774 {offsets = [1, 6, 0], sizes = [1, 1, 128], strides = [1, 1, 1]} : vector<8x8x128xf32> to vector<1x1x128xf32>
    %1398 = vector.shape_cast %1397 : vector<1x1x128xf32> to vector<1x128xf32>
    %1399 = vector.broadcast %1398 : vector<1x128xf32> to vector<8x128xf32>
    %1400 = arith.mulf %1399, %1391 : vector<8x128xf32>
    %1401 = arith.addf %1306, %1400 : vector<8x128xf32>
    %1402 = vector.extract_strided_slice %774 {offsets = [2, 6, 0], sizes = [1, 1, 128], strides = [1, 1, 1]} : vector<8x8x128xf32> to vector<1x1x128xf32>
    %1403 = vector.shape_cast %1402 : vector<1x1x128xf32> to vector<1x128xf32>
    %1404 = vector.broadcast %1403 : vector<1x128xf32> to vector<8x128xf32>
    %1405 = arith.mulf %1404, %1391 : vector<8x128xf32>
    %1406 = arith.addf %1311, %1405 : vector<8x128xf32>
    %1407 = vector.extract_strided_slice %774 {offsets = [3, 6, 0], sizes = [1, 1, 128], strides = [1, 1, 1]} : vector<8x8x128xf32> to vector<1x1x128xf32>
    %1408 = vector.shape_cast %1407 : vector<1x1x128xf32> to vector<1x128xf32>
    %1409 = vector.broadcast %1408 : vector<1x128xf32> to vector<8x128xf32>
    %1410 = arith.mulf %1409, %1391 : vector<8x128xf32>
    %1411 = arith.addf %1316, %1410 : vector<8x128xf32>
    %1412 = vector.extract_strided_slice %774 {offsets = [4, 6, 0], sizes = [1, 1, 128], strides = [1, 1, 1]} : vector<8x8x128xf32> to vector<1x1x128xf32>
    %1413 = vector.shape_cast %1412 : vector<1x1x128xf32> to vector<1x128xf32>
    %1414 = vector.broadcast %1413 : vector<1x128xf32> to vector<8x128xf32>
    %1415 = arith.mulf %1414, %1391 : vector<8x128xf32>
    %1416 = arith.addf %1321, %1415 : vector<8x128xf32>
    %1417 = vector.extract_strided_slice %774 {offsets = [5, 6, 0], sizes = [1, 1, 128], strides = [1, 1, 1]} : vector<8x8x128xf32> to vector<1x1x128xf32>
    %1418 = vector.shape_cast %1417 : vector<1x1x128xf32> to vector<1x128xf32>
    %1419 = vector.broadcast %1418 : vector<1x128xf32> to vector<8x128xf32>
    %1420 = arith.mulf %1419, %1391 : vector<8x128xf32>
    %1421 = arith.addf %1326, %1420 : vector<8x128xf32>
    %1422 = vector.extract_strided_slice %774 {offsets = [6, 6, 0], sizes = [1, 1, 128], strides = [1, 1, 1]} : vector<8x8x128xf32> to vector<1x1x128xf32>
    %1423 = vector.shape_cast %1422 : vector<1x1x128xf32> to vector<1x128xf32>
    %1424 = vector.broadcast %1423 : vector<1x128xf32> to vector<8x128xf32>
    %1425 = arith.mulf %1424, %1391 : vector<8x128xf32>
    %1426 = arith.addf %1331, %1425 : vector<8x128xf32>
    %1427 = vector.extract_strided_slice %774 {offsets = [7, 6, 0], sizes = [1, 1, 128], strides = [1, 1, 1]} : vector<8x8x128xf32> to vector<1x1x128xf32>
    %1428 = vector.shape_cast %1427 : vector<1x1x128xf32> to vector<1x128xf32>
    %1429 = vector.broadcast %1428 : vector<1x128xf32> to vector<8x128xf32>
    %1430 = arith.mulf %1429, %1391 : vector<8x128xf32>
    %1431 = arith.addf %1336, %1430 : vector<8x128xf32>
    %1432 = vector.extract_strided_slice %770 {offsets = [7, 0, 0], sizes = [1, 1, 128], strides = [1, 1, 1]} : vector<8x8x128xf32> to vector<1x1x128xf32>
    %1433 = vector.shape_cast %1432 : vector<1x1x128xf32> to vector<1x128xf32>
    %1434 = vector.extract_strided_slice %772 {offsets = [0, 0, 0], sizes = [1, 8, 128], strides = [1, 1, 1]} : vector<8x8x128xf32> to vector<1x8x128xf32>
    %1435 = vector.shape_cast %1434 : vector<1x8x128xf32> to vector<8x128xf32>
    %1436 = vector.broadcast %1433 : vector<1x128xf32> to vector<8x128xf32>
    %1437 = arith.mulf %1436, %1435 : vector<8x128xf32>
    %1438 = vector.extract_strided_slice %770 {offsets = [7, 1, 0], sizes = [1, 1, 128], strides = [1, 1, 1]} : vector<8x8x128xf32> to vector<1x1x128xf32>
    %1439 = vector.shape_cast %1438 : vector<1x1x128xf32> to vector<1x128xf32>
    %1440 = vector.extract_strided_slice %772 {offsets = [1, 0, 0], sizes = [1, 8, 128], strides = [1, 1, 1]} : vector<8x8x128xf32> to vector<1x8x128xf32>
    %1441 = vector.shape_cast %1440 : vector<1x8x128xf32> to vector<8x128xf32>
    %1442 = vector.broadcast %1439 : vector<1x128xf32> to vector<8x128xf32>
    %1443 = arith.mulf %1442, %1441 : vector<8x128xf32>
    %1444 = arith.addf %1437, %1443 : vector<8x128xf32>
    %1445 = vector.extract_strided_slice %770 {offsets = [7, 2, 0], sizes = [1, 1, 128], strides = [1, 1, 1]} : vector<8x8x128xf32> to vector<1x1x128xf32>
    %1446 = vector.shape_cast %1445 : vector<1x1x128xf32> to vector<1x128xf32>
    %1447 = vector.extract_strided_slice %772 {offsets = [2, 0, 0], sizes = [1, 8, 128], strides = [1, 1, 1]} : vector<8x8x128xf32> to vector<1x8x128xf32>
    %1448 = vector.shape_cast %1447 : vector<1x8x128xf32> to vector<8x128xf32>
    %1449 = vector.broadcast %1446 : vector<1x128xf32> to vector<8x128xf32>
    %1450 = arith.mulf %1449, %1448 : vector<8x128xf32>
    %1451 = arith.addf %1444, %1450 : vector<8x128xf32>
    %1452 = vector.extract_strided_slice %770 {offsets = [7, 3, 0], sizes = [1, 1, 128], strides = [1, 1, 1]} : vector<8x8x128xf32> to vector<1x1x128xf32>
    %1453 = vector.shape_cast %1452 : vector<1x1x128xf32> to vector<1x128xf32>
    %1454 = vector.extract_strided_slice %772 {offsets = [3, 0, 0], sizes = [1, 8, 128], strides = [1, 1, 1]} : vector<8x8x128xf32> to vector<1x8x128xf32>
    %1455 = vector.shape_cast %1454 : vector<1x8x128xf32> to vector<8x128xf32>
    %1456 = vector.broadcast %1453 : vector<1x128xf32> to vector<8x128xf32>
    %1457 = arith.mulf %1456, %1455 : vector<8x128xf32>
    %1458 = arith.addf %1451, %1457 : vector<8x128xf32>
    %1459 = vector.extract_strided_slice %770 {offsets = [7, 4, 0], sizes = [1, 1, 128], strides = [1, 1, 1]} : vector<8x8x128xf32> to vector<1x1x128xf32>
    %1460 = vector.shape_cast %1459 : vector<1x1x128xf32> to vector<1x128xf32>
    %1461 = vector.extract_strided_slice %772 {offsets = [4, 0, 0], sizes = [1, 8, 128], strides = [1, 1, 1]} : vector<8x8x128xf32> to vector<1x8x128xf32>
    %1462 = vector.shape_cast %1461 : vector<1x8x128xf32> to vector<8x128xf32>
    %1463 = vector.broadcast %1460 : vector<1x128xf32> to vector<8x128xf32>
    %1464 = arith.mulf %1463, %1462 : vector<8x128xf32>
    %1465 = arith.addf %1458, %1464 : vector<8x128xf32>
    %1466 = vector.extract_strided_slice %770 {offsets = [7, 5, 0], sizes = [1, 1, 128], strides = [1, 1, 1]} : vector<8x8x128xf32> to vector<1x1x128xf32>
    %1467 = vector.shape_cast %1466 : vector<1x1x128xf32> to vector<1x128xf32>
    %1468 = vector.extract_strided_slice %772 {offsets = [5, 0, 0], sizes = [1, 8, 128], strides = [1, 1, 1]} : vector<8x8x128xf32> to vector<1x8x128xf32>
    %1469 = vector.shape_cast %1468 : vector<1x8x128xf32> to vector<8x128xf32>
    %1470 = vector.broadcast %1467 : vector<1x128xf32> to vector<8x128xf32>
    %1471 = arith.mulf %1470, %1469 : vector<8x128xf32>
    %1472 = arith.addf %1465, %1471 : vector<8x128xf32>
    %1473 = vector.extract_strided_slice %770 {offsets = [7, 6, 0], sizes = [1, 1, 128], strides = [1, 1, 1]} : vector<8x8x128xf32> to vector<1x1x128xf32>
    %1474 = vector.shape_cast %1473 : vector<1x1x128xf32> to vector<1x128xf32>
    %1475 = vector.extract_strided_slice %772 {offsets = [6, 0, 0], sizes = [1, 8, 128], strides = [1, 1, 1]} : vector<8x8x128xf32> to vector<1x8x128xf32>
    %1476 = vector.shape_cast %1475 : vector<1x8x128xf32> to vector<8x128xf32>
    %1477 = vector.broadcast %1474 : vector<1x128xf32> to vector<8x128xf32>
    %1478 = arith.mulf %1477, %1476 : vector<8x128xf32>
    %1479 = arith.addf %1472, %1478 : vector<8x128xf32>
    %1480 = vector.extract_strided_slice %770 {offsets = [7, 7, 0], sizes = [1, 1, 128], strides = [1, 1, 1]} : vector<8x8x128xf32> to vector<1x1x128xf32>
    %1481 = vector.shape_cast %1480 : vector<1x1x128xf32> to vector<1x128xf32>
    %1482 = vector.extract_strided_slice %772 {offsets = [7, 0, 0], sizes = [1, 8, 128], strides = [1, 1, 1]} : vector<8x8x128xf32> to vector<1x8x128xf32>
    %1483 = vector.shape_cast %1482 : vector<1x8x128xf32> to vector<8x128xf32>
    %1484 = vector.broadcast %1481 : vector<1x128xf32> to vector<8x128xf32>
    %1485 = arith.mulf %1484, %1483 : vector<8x128xf32>
    %1486 = arith.addf %1479, %1485 : vector<8x128xf32>
    %1487 = vector.extract_strided_slice %774 {offsets = [0, 7, 0], sizes = [1, 1, 128], strides = [1, 1, 1]} : vector<8x8x128xf32> to vector<1x1x128xf32>
    %1488 = vector.shape_cast %1487 : vector<1x1x128xf32> to vector<1x128xf32>
    %1489 = vector.broadcast %1488 : vector<1x128xf32> to vector<8x128xf32>
    %1490 = arith.mulf %1489, %1486 : vector<8x128xf32>
    %1491 = arith.addf %1396, %1490 : vector<8x128xf32>
    %1492 = vector.extract_strided_slice %774 {offsets = [1, 7, 0], sizes = [1, 1, 128], strides = [1, 1, 1]} : vector<8x8x128xf32> to vector<1x1x128xf32>
    %1493 = vector.shape_cast %1492 : vector<1x1x128xf32> to vector<1x128xf32>
    %1494 = vector.broadcast %1493 : vector<1x128xf32> to vector<8x128xf32>
    %1495 = arith.mulf %1494, %1486 : vector<8x128xf32>
    %1496 = arith.addf %1401, %1495 : vector<8x128xf32>
    %1497 = vector.extract_strided_slice %774 {offsets = [2, 7, 0], sizes = [1, 1, 128], strides = [1, 1, 1]} : vector<8x8x128xf32> to vector<1x1x128xf32>
    %1498 = vector.shape_cast %1497 : vector<1x1x128xf32> to vector<1x128xf32>
    %1499 = vector.broadcast %1498 : vector<1x128xf32> to vector<8x128xf32>
    %1500 = arith.mulf %1499, %1486 : vector<8x128xf32>
    %1501 = arith.addf %1406, %1500 : vector<8x128xf32>
    %1502 = vector.extract_strided_slice %774 {offsets = [3, 7, 0], sizes = [1, 1, 128], strides = [1, 1, 1]} : vector<8x8x128xf32> to vector<1x1x128xf32>
    %1503 = vector.shape_cast %1502 : vector<1x1x128xf32> to vector<1x128xf32>
    %1504 = vector.broadcast %1503 : vector<1x128xf32> to vector<8x128xf32>
    %1505 = arith.mulf %1504, %1486 : vector<8x128xf32>
    %1506 = arith.addf %1411, %1505 : vector<8x128xf32>
    %1507 = vector.extract_strided_slice %774 {offsets = [4, 7, 0], sizes = [1, 1, 128], strides = [1, 1, 1]} : vector<8x8x128xf32> to vector<1x1x128xf32>
    %1508 = vector.shape_cast %1507 : vector<1x1x128xf32> to vector<1x128xf32>
    %1509 = vector.broadcast %1508 : vector<1x128xf32> to vector<8x128xf32>
    %1510 = arith.mulf %1509, %1486 : vector<8x128xf32>
    %1511 = arith.addf %1416, %1510 : vector<8x128xf32>
    %1512 = vector.extract_strided_slice %774 {offsets = [5, 7, 0], sizes = [1, 1, 128], strides = [1, 1, 1]} : vector<8x8x128xf32> to vector<1x1x128xf32>
    %1513 = vector.shape_cast %1512 : vector<1x1x128xf32> to vector<1x128xf32>
    %1514 = vector.broadcast %1513 : vector<1x128xf32> to vector<8x128xf32>
    %1515 = arith.mulf %1514, %1486 : vector<8x128xf32>
    %1516 = arith.addf %1421, %1515 : vector<8x128xf32>
    %1517 = vector.extract_strided_slice %774 {offsets = [6, 7, 0], sizes = [1, 1, 128], strides = [1, 1, 1]} : vector<8x8x128xf32> to vector<1x1x128xf32>
    %1518 = vector.shape_cast %1517 : vector<1x1x128xf32> to vector<1x128xf32>
    %1519 = vector.broadcast %1518 : vector<1x128xf32> to vector<8x128xf32>
    %1520 = arith.mulf %1519, %1486 : vector<8x128xf32>
    %1521 = arith.addf %1426, %1520 : vector<8x128xf32>
    %1522 = vector.extract_strided_slice %774 {offsets = [7, 7, 0], sizes = [1, 1, 128], strides = [1, 1, 1]} : vector<8x8x128xf32> to vector<1x1x128xf32>
    %1523 = vector.shape_cast %1522 : vector<1x1x128xf32> to vector<1x128xf32>
    %1524 = vector.broadcast %1523 : vector<1x128xf32> to vector<8x128xf32>
    %1525 = arith.mulf %1524, %1486 : vector<8x128xf32>
    %1526 = arith.addf %1431, %1525 : vector<8x128xf32>
    %c0_11 = arith.constant 0 : index
    %c128 = arith.constant 128 : index
    %c0_12 = arith.constant 0 : index
    %1527 = vector.load %arg2[%c0_11, %c128, %c0_12] : memref<1x256x128xbf16, #tpu.memory_space<vmem>>, vector<1x64x128xbf16>
    %1528 = vector.shape_cast %1527 : vector<1x64x128xbf16> to vector<64x128xbf16>
    %1529 = arith.extf %1528 : vector<64x128xbf16> to vector<64x128xf32>
    %1530 = vector.shape_cast %1529 : vector<64x128xf32> to vector<8x8x128xf32>
    %1531 = vector.extract_strided_slice %6 {offsets = [128, 0], sizes = [64, 128], strides = [1, 1]} : vector<512x128xf32> to vector<64x128xf32>
    %1532 = vector.shape_cast %1531 : vector<64x128xf32> to vector<8x8x128xf32>
    %1533 = vector.extract_strided_slice %6 {offsets = [384, 0], sizes = [64, 128], strides = [1, 1]} : vector<512x128xf32> to vector<64x128xf32>
    %1534 = vector.shape_cast %1533 : vector<64x128xf32> to vector<8x8x128xf32>
    %1535 = vector.extract_strided_slice %1530 {offsets = [0, 0, 0], sizes = [1, 1, 128], strides = [1, 1, 1]} : vector<8x8x128xf32> to vector<1x1x128xf32>
    %1536 = vector.shape_cast %1535 : vector<1x1x128xf32> to vector<1x128xf32>
    %1537 = vector.extract_strided_slice %1532 {offsets = [0, 0, 0], sizes = [1, 8, 128], strides = [1, 1, 1]} : vector<8x8x128xf32> to vector<1x8x128xf32>
    %1538 = vector.shape_cast %1537 : vector<1x8x128xf32> to vector<8x128xf32>
    %1539 = vector.broadcast %1536 : vector<1x128xf32> to vector<8x128xf32>
    %1540 = arith.mulf %1539, %1538 : vector<8x128xf32>
    %1541 = vector.extract_strided_slice %1530 {offsets = [0, 1, 0], sizes = [1, 1, 128], strides = [1, 1, 1]} : vector<8x8x128xf32> to vector<1x1x128xf32>
    %1542 = vector.shape_cast %1541 : vector<1x1x128xf32> to vector<1x128xf32>
    %1543 = vector.extract_strided_slice %1532 {offsets = [1, 0, 0], sizes = [1, 8, 128], strides = [1, 1, 1]} : vector<8x8x128xf32> to vector<1x8x128xf32>
    %1544 = vector.shape_cast %1543 : vector<1x8x128xf32> to vector<8x128xf32>
    %1545 = vector.broadcast %1542 : vector<1x128xf32> to vector<8x128xf32>
    %1546 = arith.mulf %1545, %1544 : vector<8x128xf32>
    %1547 = arith.addf %1540, %1546 : vector<8x128xf32>
    %1548 = vector.extract_strided_slice %1530 {offsets = [0, 2, 0], sizes = [1, 1, 128], strides = [1, 1, 1]} : vector<8x8x128xf32> to vector<1x1x128xf32>
    %1549 = vector.shape_cast %1548 : vector<1x1x128xf32> to vector<1x128xf32>
    %1550 = vector.extract_strided_slice %1532 {offsets = [2, 0, 0], sizes = [1, 8, 128], strides = [1, 1, 1]} : vector<8x8x128xf32> to vector<1x8x128xf32>
    %1551 = vector.shape_cast %1550 : vector<1x8x128xf32> to vector<8x128xf32>
    %1552 = vector.broadcast %1549 : vector<1x128xf32> to vector<8x128xf32>
    %1553 = arith.mulf %1552, %1551 : vector<8x128xf32>
    %1554 = arith.addf %1547, %1553 : vector<8x128xf32>
    %1555 = vector.extract_strided_slice %1530 {offsets = [0, 3, 0], sizes = [1, 1, 128], strides = [1, 1, 1]} : vector<8x8x128xf32> to vector<1x1x128xf32>
    %1556 = vector.shape_cast %1555 : vector<1x1x128xf32> to vector<1x128xf32>
    %1557 = vector.extract_strided_slice %1532 {offsets = [3, 0, 0], sizes = [1, 8, 128], strides = [1, 1, 1]} : vector<8x8x128xf32> to vector<1x8x128xf32>
    %1558 = vector.shape_cast %1557 : vector<1x8x128xf32> to vector<8x128xf32>
    %1559 = vector.broadcast %1556 : vector<1x128xf32> to vector<8x128xf32>
    %1560 = arith.mulf %1559, %1558 : vector<8x128xf32>
    %1561 = arith.addf %1554, %1560 : vector<8x128xf32>
    %1562 = vector.extract_strided_slice %1530 {offsets = [0, 4, 0], sizes = [1, 1, 128], strides = [1, 1, 1]} : vector<8x8x128xf32> to vector<1x1x128xf32>
    %1563 = vector.shape_cast %1562 : vector<1x1x128xf32> to vector<1x128xf32>
    %1564 = vector.extract_strided_slice %1532 {offsets = [4, 0, 0], sizes = [1, 8, 128], strides = [1, 1, 1]} : vector<8x8x128xf32> to vector<1x8x128xf32>
    %1565 = vector.shape_cast %1564 : vector<1x8x128xf32> to vector<8x128xf32>
    %1566 = vector.broadcast %1563 : vector<1x128xf32> to vector<8x128xf32>
    %1567 = arith.mulf %1566, %1565 : vector<8x128xf32>
    %1568 = arith.addf %1561, %1567 : vector<8x128xf32>
    %1569 = vector.extract_strided_slice %1530 {offsets = [0, 5, 0], sizes = [1, 1, 128], strides = [1, 1, 1]} : vector<8x8x128xf32> to vector<1x1x128xf32>
    %1570 = vector.shape_cast %1569 : vector<1x1x128xf32> to vector<1x128xf32>
    %1571 = vector.extract_strided_slice %1532 {offsets = [5, 0, 0], sizes = [1, 8, 128], strides = [1, 1, 1]} : vector<8x8x128xf32> to vector<1x8x128xf32>
    %1572 = vector.shape_cast %1571 : vector<1x8x128xf32> to vector<8x128xf32>
    %1573 = vector.broadcast %1570 : vector<1x128xf32> to vector<8x128xf32>
    %1574 = arith.mulf %1573, %1572 : vector<8x128xf32>
    %1575 = arith.addf %1568, %1574 : vector<8x128xf32>
    %1576 = vector.extract_strided_slice %1530 {offsets = [0, 6, 0], sizes = [1, 1, 128], strides = [1, 1, 1]} : vector<8x8x128xf32> to vector<1x1x128xf32>
    %1577 = vector.shape_cast %1576 : vector<1x1x128xf32> to vector<1x128xf32>
    %1578 = vector.extract_strided_slice %1532 {offsets = [6, 0, 0], sizes = [1, 8, 128], strides = [1, 1, 1]} : vector<8x8x128xf32> to vector<1x8x128xf32>
    %1579 = vector.shape_cast %1578 : vector<1x8x128xf32> to vector<8x128xf32>
    %1580 = vector.broadcast %1577 : vector<1x128xf32> to vector<8x128xf32>
    %1581 = arith.mulf %1580, %1579 : vector<8x128xf32>
    %1582 = arith.addf %1575, %1581 : vector<8x128xf32>
    %1583 = vector.extract_strided_slice %1530 {offsets = [0, 7, 0], sizes = [1, 1, 128], strides = [1, 1, 1]} : vector<8x8x128xf32> to vector<1x1x128xf32>
    %1584 = vector.shape_cast %1583 : vector<1x1x128xf32> to vector<1x128xf32>
    %1585 = vector.extract_strided_slice %1532 {offsets = [7, 0, 0], sizes = [1, 8, 128], strides = [1, 1, 1]} : vector<8x8x128xf32> to vector<1x8x128xf32>
    %1586 = vector.shape_cast %1585 : vector<1x8x128xf32> to vector<8x128xf32>
    %1587 = vector.broadcast %1584 : vector<1x128xf32> to vector<8x128xf32>
    %1588 = arith.mulf %1587, %1586 : vector<8x128xf32>
    %1589 = arith.addf %1582, %1588 : vector<8x128xf32>
    %1590 = vector.extract_strided_slice %1534 {offsets = [0, 0, 0], sizes = [1, 1, 128], strides = [1, 1, 1]} : vector<8x8x128xf32> to vector<1x1x128xf32>
    %1591 = vector.shape_cast %1590 : vector<1x1x128xf32> to vector<1x128xf32>
    %1592 = vector.broadcast %1591 : vector<1x128xf32> to vector<8x128xf32>
    %1593 = arith.mulf %1592, %1589 : vector<8x128xf32>
    %1594 = vector.extract_strided_slice %1534 {offsets = [1, 0, 0], sizes = [1, 1, 128], strides = [1, 1, 1]} : vector<8x8x128xf32> to vector<1x1x128xf32>
    %1595 = vector.shape_cast %1594 : vector<1x1x128xf32> to vector<1x128xf32>
    %1596 = vector.broadcast %1595 : vector<1x128xf32> to vector<8x128xf32>
    %1597 = arith.mulf %1596, %1589 : vector<8x128xf32>
    %1598 = vector.extract_strided_slice %1534 {offsets = [2, 0, 0], sizes = [1, 1, 128], strides = [1, 1, 1]} : vector<8x8x128xf32> to vector<1x1x128xf32>
    %1599 = vector.shape_cast %1598 : vector<1x1x128xf32> to vector<1x128xf32>
    %1600 = vector.broadcast %1599 : vector<1x128xf32> to vector<8x128xf32>
    %1601 = arith.mulf %1600, %1589 : vector<8x128xf32>
    %1602 = vector.extract_strided_slice %1534 {offsets = [3, 0, 0], sizes = [1, 1, 128], strides = [1, 1, 1]} : vector<8x8x128xf32> to vector<1x1x128xf32>
    %1603 = vector.shape_cast %1602 : vector<1x1x128xf32> to vector<1x128xf32>
    %1604 = vector.broadcast %1603 : vector<1x128xf32> to vector<8x128xf32>
    %1605 = arith.mulf %1604, %1589 : vector<8x128xf32>
    %1606 = vector.extract_strided_slice %1534 {offsets = [4, 0, 0], sizes = [1, 1, 128], strides = [1, 1, 1]} : vector<8x8x128xf32> to vector<1x1x128xf32>
    %1607 = vector.shape_cast %1606 : vector<1x1x128xf32> to vector<1x128xf32>
    %1608 = vector.broadcast %1607 : vector<1x128xf32> to vector<8x128xf32>
    %1609 = arith.mulf %1608, %1589 : vector<8x128xf32>
    %1610 = vector.extract_strided_slice %1534 {offsets = [5, 0, 0], sizes = [1, 1, 128], strides = [1, 1, 1]} : vector<8x8x128xf32> to vector<1x1x128xf32>
    %1611 = vector.shape_cast %1610 : vector<1x1x128xf32> to vector<1x128xf32>
    %1612 = vector.broadcast %1611 : vector<1x128xf32> to vector<8x128xf32>
    %1613 = arith.mulf %1612, %1589 : vector<8x128xf32>
    %1614 = vector.extract_strided_slice %1534 {offsets = [6, 0, 0], sizes = [1, 1, 128], strides = [1, 1, 1]} : vector<8x8x128xf32> to vector<1x1x128xf32>
    %1615 = vector.shape_cast %1614 : vector<1x1x128xf32> to vector<1x128xf32>
    %1616 = vector.broadcast %1615 : vector<1x128xf32> to vector<8x128xf32>
    %1617 = arith.mulf %1616, %1589 : vector<8x128xf32>
    %1618 = vector.extract_strided_slice %1534 {offsets = [7, 0, 0], sizes = [1, 1, 128], strides = [1, 1, 1]} : vector<8x8x128xf32> to vector<1x1x128xf32>
    %1619 = vector.shape_cast %1618 : vector<1x1x128xf32> to vector<1x128xf32>
    %1620 = vector.broadcast %1619 : vector<1x128xf32> to vector<8x128xf32>
    %1621 = arith.mulf %1620, %1589 : vector<8x128xf32>
    %1622 = vector.extract_strided_slice %1530 {offsets = [1, 0, 0], sizes = [1, 1, 128], strides = [1, 1, 1]} : vector<8x8x128xf32> to vector<1x1x128xf32>
    %1623 = vector.shape_cast %1622 : vector<1x1x128xf32> to vector<1x128xf32>
    %1624 = vector.extract_strided_slice %1532 {offsets = [0, 0, 0], sizes = [1, 8, 128], strides = [1, 1, 1]} : vector<8x8x128xf32> to vector<1x8x128xf32>
    %1625 = vector.shape_cast %1624 : vector<1x8x128xf32> to vector<8x128xf32>
    %1626 = vector.broadcast %1623 : vector<1x128xf32> to vector<8x128xf32>
    %1627 = arith.mulf %1626, %1625 : vector<8x128xf32>
    %1628 = vector.extract_strided_slice %1530 {offsets = [1, 1, 0], sizes = [1, 1, 128], strides = [1, 1, 1]} : vector<8x8x128xf32> to vector<1x1x128xf32>
    %1629 = vector.shape_cast %1628 : vector<1x1x128xf32> to vector<1x128xf32>
    %1630 = vector.extract_strided_slice %1532 {offsets = [1, 0, 0], sizes = [1, 8, 128], strides = [1, 1, 1]} : vector<8x8x128xf32> to vector<1x8x128xf32>
    %1631 = vector.shape_cast %1630 : vector<1x8x128xf32> to vector<8x128xf32>
    %1632 = vector.broadcast %1629 : vector<1x128xf32> to vector<8x128xf32>
    %1633 = arith.mulf %1632, %1631 : vector<8x128xf32>
    %1634 = arith.addf %1627, %1633 : vector<8x128xf32>
    %1635 = vector.extract_strided_slice %1530 {offsets = [1, 2, 0], sizes = [1, 1, 128], strides = [1, 1, 1]} : vector<8x8x128xf32> to vector<1x1x128xf32>
    %1636 = vector.shape_cast %1635 : vector<1x1x128xf32> to vector<1x128xf32>
    %1637 = vector.extract_strided_slice %1532 {offsets = [2, 0, 0], sizes = [1, 8, 128], strides = [1, 1, 1]} : vector<8x8x128xf32> to vector<1x8x128xf32>
    %1638 = vector.shape_cast %1637 : vector<1x8x128xf32> to vector<8x128xf32>
    %1639 = vector.broadcast %1636 : vector<1x128xf32> to vector<8x128xf32>
    %1640 = arith.mulf %1639, %1638 : vector<8x128xf32>
    %1641 = arith.addf %1634, %1640 : vector<8x128xf32>
    %1642 = vector.extract_strided_slice %1530 {offsets = [1, 3, 0], sizes = [1, 1, 128], strides = [1, 1, 1]} : vector<8x8x128xf32> to vector<1x1x128xf32>
    %1643 = vector.shape_cast %1642 : vector<1x1x128xf32> to vector<1x128xf32>
    %1644 = vector.extract_strided_slice %1532 {offsets = [3, 0, 0], sizes = [1, 8, 128], strides = [1, 1, 1]} : vector<8x8x128xf32> to vector<1x8x128xf32>
    %1645 = vector.shape_cast %1644 : vector<1x8x128xf32> to vector<8x128xf32>
    %1646 = vector.broadcast %1643 : vector<1x128xf32> to vector<8x128xf32>
    %1647 = arith.mulf %1646, %1645 : vector<8x128xf32>
    %1648 = arith.addf %1641, %1647 : vector<8x128xf32>
    %1649 = vector.extract_strided_slice %1530 {offsets = [1, 4, 0], sizes = [1, 1, 128], strides = [1, 1, 1]} : vector<8x8x128xf32> to vector<1x1x128xf32>
    %1650 = vector.shape_cast %1649 : vector<1x1x128xf32> to vector<1x128xf32>
    %1651 = vector.extract_strided_slice %1532 {offsets = [4, 0, 0], sizes = [1, 8, 128], strides = [1, 1, 1]} : vector<8x8x128xf32> to vector<1x8x128xf32>
    %1652 = vector.shape_cast %1651 : vector<1x8x128xf32> to vector<8x128xf32>
    %1653 = vector.broadcast %1650 : vector<1x128xf32> to vector<8x128xf32>
    %1654 = arith.mulf %1653, %1652 : vector<8x128xf32>
    %1655 = arith.addf %1648, %1654 : vector<8x128xf32>
    %1656 = vector.extract_strided_slice %1530 {offsets = [1, 5, 0], sizes = [1, 1, 128], strides = [1, 1, 1]} : vector<8x8x128xf32> to vector<1x1x128xf32>
    %1657 = vector.shape_cast %1656 : vector<1x1x128xf32> to vector<1x128xf32>
    %1658 = vector.extract_strided_slice %1532 {offsets = [5, 0, 0], sizes = [1, 8, 128], strides = [1, 1, 1]} : vector<8x8x128xf32> to vector<1x8x128xf32>
    %1659 = vector.shape_cast %1658 : vector<1x8x128xf32> to vector<8x128xf32>
    %1660 = vector.broadcast %1657 : vector<1x128xf32> to vector<8x128xf32>
    %1661 = arith.mulf %1660, %1659 : vector<8x128xf32>
    %1662 = arith.addf %1655, %1661 : vector<8x128xf32>
    %1663 = vector.extract_strided_slice %1530 {offsets = [1, 6, 0], sizes = [1, 1, 128], strides = [1, 1, 1]} : vector<8x8x128xf32> to vector<1x1x128xf32>
    %1664 = vector.shape_cast %1663 : vector<1x1x128xf32> to vector<1x128xf32>
    %1665 = vector.extract_strided_slice %1532 {offsets = [6, 0, 0], sizes = [1, 8, 128], strides = [1, 1, 1]} : vector<8x8x128xf32> to vector<1x8x128xf32>
    %1666 = vector.shape_cast %1665 : vector<1x8x128xf32> to vector<8x128xf32>
    %1667 = vector.broadcast %1664 : vector<1x128xf32> to vector<8x128xf32>
    %1668 = arith.mulf %1667, %1666 : vector<8x128xf32>
    %1669 = arith.addf %1662, %1668 : vector<8x128xf32>
    %1670 = vector.extract_strided_slice %1530 {offsets = [1, 7, 0], sizes = [1, 1, 128], strides = [1, 1, 1]} : vector<8x8x128xf32> to vector<1x1x128xf32>
    %1671 = vector.shape_cast %1670 : vector<1x1x128xf32> to vector<1x128xf32>
    %1672 = vector.extract_strided_slice %1532 {offsets = [7, 0, 0], sizes = [1, 8, 128], strides = [1, 1, 1]} : vector<8x8x128xf32> to vector<1x8x128xf32>
    %1673 = vector.shape_cast %1672 : vector<1x8x128xf32> to vector<8x128xf32>
    %1674 = vector.broadcast %1671 : vector<1x128xf32> to vector<8x128xf32>
    %1675 = arith.mulf %1674, %1673 : vector<8x128xf32>
    %1676 = arith.addf %1669, %1675 : vector<8x128xf32>
    %1677 = vector.extract_strided_slice %1534 {offsets = [0, 1, 0], sizes = [1, 1, 128], strides = [1, 1, 1]} : vector<8x8x128xf32> to vector<1x1x128xf32>
    %1678 = vector.shape_cast %1677 : vector<1x1x128xf32> to vector<1x128xf32>
    %1679 = vector.broadcast %1678 : vector<1x128xf32> to vector<8x128xf32>
    %1680 = arith.mulf %1679, %1676 : vector<8x128xf32>
    %1681 = arith.addf %1593, %1680 : vector<8x128xf32>
    %1682 = vector.extract_strided_slice %1534 {offsets = [1, 1, 0], sizes = [1, 1, 128], strides = [1, 1, 1]} : vector<8x8x128xf32> to vector<1x1x128xf32>
    %1683 = vector.shape_cast %1682 : vector<1x1x128xf32> to vector<1x128xf32>
    %1684 = vector.broadcast %1683 : vector<1x128xf32> to vector<8x128xf32>
    %1685 = arith.mulf %1684, %1676 : vector<8x128xf32>
    %1686 = arith.addf %1597, %1685 : vector<8x128xf32>
    %1687 = vector.extract_strided_slice %1534 {offsets = [2, 1, 0], sizes = [1, 1, 128], strides = [1, 1, 1]} : vector<8x8x128xf32> to vector<1x1x128xf32>
    %1688 = vector.shape_cast %1687 : vector<1x1x128xf32> to vector<1x128xf32>
    %1689 = vector.broadcast %1688 : vector<1x128xf32> to vector<8x128xf32>
    %1690 = arith.mulf %1689, %1676 : vector<8x128xf32>
    %1691 = arith.addf %1601, %1690 : vector<8x128xf32>
    %1692 = vector.extract_strided_slice %1534 {offsets = [3, 1, 0], sizes = [1, 1, 128], strides = [1, 1, 1]} : vector<8x8x128xf32> to vector<1x1x128xf32>
    %1693 = vector.shape_cast %1692 : vector<1x1x128xf32> to vector<1x128xf32>
    %1694 = vector.broadcast %1693 : vector<1x128xf32> to vector<8x128xf32>
    %1695 = arith.mulf %1694, %1676 : vector<8x128xf32>
    %1696 = arith.addf %1605, %1695 : vector<8x128xf32>
    %1697 = vector.extract_strided_slice %1534 {offsets = [4, 1, 0], sizes = [1, 1, 128], strides = [1, 1, 1]} : vector<8x8x128xf32> to vector<1x1x128xf32>
    %1698 = vector.shape_cast %1697 : vector<1x1x128xf32> to vector<1x128xf32>
    %1699 = vector.broadcast %1698 : vector<1x128xf32> to vector<8x128xf32>
    %1700 = arith.mulf %1699, %1676 : vector<8x128xf32>
    %1701 = arith.addf %1609, %1700 : vector<8x128xf32>
    %1702 = vector.extract_strided_slice %1534 {offsets = [5, 1, 0], sizes = [1, 1, 128], strides = [1, 1, 1]} : vector<8x8x128xf32> to vector<1x1x128xf32>
    %1703 = vector.shape_cast %1702 : vector<1x1x128xf32> to vector<1x128xf32>
    %1704 = vector.broadcast %1703 : vector<1x128xf32> to vector<8x128xf32>
    %1705 = arith.mulf %1704, %1676 : vector<8x128xf32>
    %1706 = arith.addf %1613, %1705 : vector<8x128xf32>
    %1707 = vector.extract_strided_slice %1534 {offsets = [6, 1, 0], sizes = [1, 1, 128], strides = [1, 1, 1]} : vector<8x8x128xf32> to vector<1x1x128xf32>
    %1708 = vector.shape_cast %1707 : vector<1x1x128xf32> to vector<1x128xf32>
    %1709 = vector.broadcast %1708 : vector<1x128xf32> to vector<8x128xf32>
    %1710 = arith.mulf %1709, %1676 : vector<8x128xf32>
    %1711 = arith.addf %1617, %1710 : vector<8x128xf32>
    %1712 = vector.extract_strided_slice %1534 {offsets = [7, 1, 0], sizes = [1, 1, 128], strides = [1, 1, 1]} : vector<8x8x128xf32> to vector<1x1x128xf32>
    %1713 = vector.shape_cast %1712 : vector<1x1x128xf32> to vector<1x128xf32>
    %1714 = vector.broadcast %1713 : vector<1x128xf32> to vector<8x128xf32>
    %1715 = arith.mulf %1714, %1676 : vector<8x128xf32>
    %1716 = arith.addf %1621, %1715 : vector<8x128xf32>
    %1717 = vector.extract_strided_slice %1530 {offsets = [2, 0, 0], sizes = [1, 1, 128], strides = [1, 1, 1]} : vector<8x8x128xf32> to vector<1x1x128xf32>
    %1718 = vector.shape_cast %1717 : vector<1x1x128xf32> to vector<1x128xf32>
    %1719 = vector.extract_strided_slice %1532 {offsets = [0, 0, 0], sizes = [1, 8, 128], strides = [1, 1, 1]} : vector<8x8x128xf32> to vector<1x8x128xf32>
    %1720 = vector.shape_cast %1719 : vector<1x8x128xf32> to vector<8x128xf32>
    %1721 = vector.broadcast %1718 : vector<1x128xf32> to vector<8x128xf32>
    %1722 = arith.mulf %1721, %1720 : vector<8x128xf32>
    %1723 = vector.extract_strided_slice %1530 {offsets = [2, 1, 0], sizes = [1, 1, 128], strides = [1, 1, 1]} : vector<8x8x128xf32> to vector<1x1x128xf32>
    %1724 = vector.shape_cast %1723 : vector<1x1x128xf32> to vector<1x128xf32>
    %1725 = vector.extract_strided_slice %1532 {offsets = [1, 0, 0], sizes = [1, 8, 128], strides = [1, 1, 1]} : vector<8x8x128xf32> to vector<1x8x128xf32>
    %1726 = vector.shape_cast %1725 : vector<1x8x128xf32> to vector<8x128xf32>
    %1727 = vector.broadcast %1724 : vector<1x128xf32> to vector<8x128xf32>
    %1728 = arith.mulf %1727, %1726 : vector<8x128xf32>
    %1729 = arith.addf %1722, %1728 : vector<8x128xf32>
    %1730 = vector.extract_strided_slice %1530 {offsets = [2, 2, 0], sizes = [1, 1, 128], strides = [1, 1, 1]} : vector<8x8x128xf32> to vector<1x1x128xf32>
    %1731 = vector.shape_cast %1730 : vector<1x1x128xf32> to vector<1x128xf32>
    %1732 = vector.extract_strided_slice %1532 {offsets = [2, 0, 0], sizes = [1, 8, 128], strides = [1, 1, 1]} : vector<8x8x128xf32> to vector<1x8x128xf32>
    %1733 = vector.shape_cast %1732 : vector<1x8x128xf32> to vector<8x128xf32>
    %1734 = vector.broadcast %1731 : vector<1x128xf32> to vector<8x128xf32>
    %1735 = arith.mulf %1734, %1733 : vector<8x128xf32>
    %1736 = arith.addf %1729, %1735 : vector<8x128xf32>
    %1737 = vector.extract_strided_slice %1530 {offsets = [2, 3, 0], sizes = [1, 1, 128], strides = [1, 1, 1]} : vector<8x8x128xf32> to vector<1x1x128xf32>
    %1738 = vector.shape_cast %1737 : vector<1x1x128xf32> to vector<1x128xf32>
    %1739 = vector.extract_strided_slice %1532 {offsets = [3, 0, 0], sizes = [1, 8, 128], strides = [1, 1, 1]} : vector<8x8x128xf32> to vector<1x8x128xf32>
    %1740 = vector.shape_cast %1739 : vector<1x8x128xf32> to vector<8x128xf32>
    %1741 = vector.broadcast %1738 : vector<1x128xf32> to vector<8x128xf32>
    %1742 = arith.mulf %1741, %1740 : vector<8x128xf32>
    %1743 = arith.addf %1736, %1742 : vector<8x128xf32>
    %1744 = vector.extract_strided_slice %1530 {offsets = [2, 4, 0], sizes = [1, 1, 128], strides = [1, 1, 1]} : vector<8x8x128xf32> to vector<1x1x128xf32>
    %1745 = vector.shape_cast %1744 : vector<1x1x128xf32> to vector<1x128xf32>
    %1746 = vector.extract_strided_slice %1532 {offsets = [4, 0, 0], sizes = [1, 8, 128], strides = [1, 1, 1]} : vector<8x8x128xf32> to vector<1x8x128xf32>
    %1747 = vector.shape_cast %1746 : vector<1x8x128xf32> to vector<8x128xf32>
    %1748 = vector.broadcast %1745 : vector<1x128xf32> to vector<8x128xf32>
    %1749 = arith.mulf %1748, %1747 : vector<8x128xf32>
    %1750 = arith.addf %1743, %1749 : vector<8x128xf32>
    %1751 = vector.extract_strided_slice %1530 {offsets = [2, 5, 0], sizes = [1, 1, 128], strides = [1, 1, 1]} : vector<8x8x128xf32> to vector<1x1x128xf32>
    %1752 = vector.shape_cast %1751 : vector<1x1x128xf32> to vector<1x128xf32>
    %1753 = vector.extract_strided_slice %1532 {offsets = [5, 0, 0], sizes = [1, 8, 128], strides = [1, 1, 1]} : vector<8x8x128xf32> to vector<1x8x128xf32>
    %1754 = vector.shape_cast %1753 : vector<1x8x128xf32> to vector<8x128xf32>
    %1755 = vector.broadcast %1752 : vector<1x128xf32> to vector<8x128xf32>
    %1756 = arith.mulf %1755, %1754 : vector<8x128xf32>
    %1757 = arith.addf %1750, %1756 : vector<8x128xf32>
    %1758 = vector.extract_strided_slice %1530 {offsets = [2, 6, 0], sizes = [1, 1, 128], strides = [1, 1, 1]} : vector<8x8x128xf32> to vector<1x1x128xf32>
    %1759 = vector.shape_cast %1758 : vector<1x1x128xf32> to vector<1x128xf32>
    %1760 = vector.extract_strided_slice %1532 {offsets = [6, 0, 0], sizes = [1, 8, 128], strides = [1, 1, 1]} : vector<8x8x128xf32> to vector<1x8x128xf32>
    %1761 = vector.shape_cast %1760 : vector<1x8x128xf32> to vector<8x128xf32>
    %1762 = vector.broadcast %1759 : vector<1x128xf32> to vector<8x128xf32>
    %1763 = arith.mulf %1762, %1761 : vector<8x128xf32>
    %1764 = arith.addf %1757, %1763 : vector<8x128xf32>
    %1765 = vector.extract_strided_slice %1530 {offsets = [2, 7, 0], sizes = [1, 1, 128], strides = [1, 1, 1]} : vector<8x8x128xf32> to vector<1x1x128xf32>
    %1766 = vector.shape_cast %1765 : vector<1x1x128xf32> to vector<1x128xf32>
    %1767 = vector.extract_strided_slice %1532 {offsets = [7, 0, 0], sizes = [1, 8, 128], strides = [1, 1, 1]} : vector<8x8x128xf32> to vector<1x8x128xf32>
    %1768 = vector.shape_cast %1767 : vector<1x8x128xf32> to vector<8x128xf32>
    %1769 = vector.broadcast %1766 : vector<1x128xf32> to vector<8x128xf32>
    %1770 = arith.mulf %1769, %1768 : vector<8x128xf32>
    %1771 = arith.addf %1764, %1770 : vector<8x128xf32>
    %1772 = vector.extract_strided_slice %1534 {offsets = [0, 2, 0], sizes = [1, 1, 128], strides = [1, 1, 1]} : vector<8x8x128xf32> to vector<1x1x128xf32>
    %1773 = vector.shape_cast %1772 : vector<1x1x128xf32> to vector<1x128xf32>
    %1774 = vector.broadcast %1773 : vector<1x128xf32> to vector<8x128xf32>
    %1775 = arith.mulf %1774, %1771 : vector<8x128xf32>
    %1776 = arith.addf %1681, %1775 : vector<8x128xf32>
    %1777 = vector.extract_strided_slice %1534 {offsets = [1, 2, 0], sizes = [1, 1, 128], strides = [1, 1, 1]} : vector<8x8x128xf32> to vector<1x1x128xf32>
    %1778 = vector.shape_cast %1777 : vector<1x1x128xf32> to vector<1x128xf32>
    %1779 = vector.broadcast %1778 : vector<1x128xf32> to vector<8x128xf32>
    %1780 = arith.mulf %1779, %1771 : vector<8x128xf32>
    %1781 = arith.addf %1686, %1780 : vector<8x128xf32>
    %1782 = vector.extract_strided_slice %1534 {offsets = [2, 2, 0], sizes = [1, 1, 128], strides = [1, 1, 1]} : vector<8x8x128xf32> to vector<1x1x128xf32>
    %1783 = vector.shape_cast %1782 : vector<1x1x128xf32> to vector<1x128xf32>
    %1784 = vector.broadcast %1783 : vector<1x128xf32> to vector<8x128xf32>
    %1785 = arith.mulf %1784, %1771 : vector<8x128xf32>
    %1786 = arith.addf %1691, %1785 : vector<8x128xf32>
    %1787 = vector.extract_strided_slice %1534 {offsets = [3, 2, 0], sizes = [1, 1, 128], strides = [1, 1, 1]} : vector<8x8x128xf32> to vector<1x1x128xf32>
    %1788 = vector.shape_cast %1787 : vector<1x1x128xf32> to vector<1x128xf32>
    %1789 = vector.broadcast %1788 : vector<1x128xf32> to vector<8x128xf32>
    %1790 = arith.mulf %1789, %1771 : vector<8x128xf32>
    %1791 = arith.addf %1696, %1790 : vector<8x128xf32>
    %1792 = vector.extract_strided_slice %1534 {offsets = [4, 2, 0], sizes = [1, 1, 128], strides = [1, 1, 1]} : vector<8x8x128xf32> to vector<1x1x128xf32>
    %1793 = vector.shape_cast %1792 : vector<1x1x128xf32> to vector<1x128xf32>
    %1794 = vector.broadcast %1793 : vector<1x128xf32> to vector<8x128xf32>
    %1795 = arith.mulf %1794, %1771 : vector<8x128xf32>
    %1796 = arith.addf %1701, %1795 : vector<8x128xf32>
    %1797 = vector.extract_strided_slice %1534 {offsets = [5, 2, 0], sizes = [1, 1, 128], strides = [1, 1, 1]} : vector<8x8x128xf32> to vector<1x1x128xf32>
    %1798 = vector.shape_cast %1797 : vector<1x1x128xf32> to vector<1x128xf32>
    %1799 = vector.broadcast %1798 : vector<1x128xf32> to vector<8x128xf32>
    %1800 = arith.mulf %1799, %1771 : vector<8x128xf32>
    %1801 = arith.addf %1706, %1800 : vector<8x128xf32>
    %1802 = vector.extract_strided_slice %1534 {offsets = [6, 2, 0], sizes = [1, 1, 128], strides = [1, 1, 1]} : vector<8x8x128xf32> to vector<1x1x128xf32>
    %1803 = vector.shape_cast %1802 : vector<1x1x128xf32> to vector<1x128xf32>
    %1804 = vector.broadcast %1803 : vector<1x128xf32> to vector<8x128xf32>
    %1805 = arith.mulf %1804, %1771 : vector<8x128xf32>
    %1806 = arith.addf %1711, %1805 : vector<8x128xf32>
    %1807 = vector.extract_strided_slice %1534 {offsets = [7, 2, 0], sizes = [1, 1, 128], strides = [1, 1, 1]} : vector<8x8x128xf32> to vector<1x1x128xf32>
    %1808 = vector.shape_cast %1807 : vector<1x1x128xf32> to vector<1x128xf32>
    %1809 = vector.broadcast %1808 : vector<1x128xf32> to vector<8x128xf32>
    %1810 = arith.mulf %1809, %1771 : vector<8x128xf32>
    %1811 = arith.addf %1716, %1810 : vector<8x128xf32>
    %1812 = vector.extract_strided_slice %1530 {offsets = [3, 0, 0], sizes = [1, 1, 128], strides = [1, 1, 1]} : vector<8x8x128xf32> to vector<1x1x128xf32>
    %1813 = vector.shape_cast %1812 : vector<1x1x128xf32> to vector<1x128xf32>
    %1814 = vector.extract_strided_slice %1532 {offsets = [0, 0, 0], sizes = [1, 8, 128], strides = [1, 1, 1]} : vector<8x8x128xf32> to vector<1x8x128xf32>
    %1815 = vector.shape_cast %1814 : vector<1x8x128xf32> to vector<8x128xf32>
    %1816 = vector.broadcast %1813 : vector<1x128xf32> to vector<8x128xf32>
    %1817 = arith.mulf %1816, %1815 : vector<8x128xf32>
    %1818 = vector.extract_strided_slice %1530 {offsets = [3, 1, 0], sizes = [1, 1, 128], strides = [1, 1, 1]} : vector<8x8x128xf32> to vector<1x1x128xf32>
    %1819 = vector.shape_cast %1818 : vector<1x1x128xf32> to vector<1x128xf32>
    %1820 = vector.extract_strided_slice %1532 {offsets = [1, 0, 0], sizes = [1, 8, 128], strides = [1, 1, 1]} : vector<8x8x128xf32> to vector<1x8x128xf32>
    %1821 = vector.shape_cast %1820 : vector<1x8x128xf32> to vector<8x128xf32>
    %1822 = vector.broadcast %1819 : vector<1x128xf32> to vector<8x128xf32>
    %1823 = arith.mulf %1822, %1821 : vector<8x128xf32>
    %1824 = arith.addf %1817, %1823 : vector<8x128xf32>
    %1825 = vector.extract_strided_slice %1530 {offsets = [3, 2, 0], sizes = [1, 1, 128], strides = [1, 1, 1]} : vector<8x8x128xf32> to vector<1x1x128xf32>
    %1826 = vector.shape_cast %1825 : vector<1x1x128xf32> to vector<1x128xf32>
    %1827 = vector.extract_strided_slice %1532 {offsets = [2, 0, 0], sizes = [1, 8, 128], strides = [1, 1, 1]} : vector<8x8x128xf32> to vector<1x8x128xf32>
    %1828 = vector.shape_cast %1827 : vector<1x8x128xf32> to vector<8x128xf32>
    %1829 = vector.broadcast %1826 : vector<1x128xf32> to vector<8x128xf32>
    %1830 = arith.mulf %1829, %1828 : vector<8x128xf32>
    %1831 = arith.addf %1824, %1830 : vector<8x128xf32>
    %1832 = vector.extract_strided_slice %1530 {offsets = [3, 3, 0], sizes = [1, 1, 128], strides = [1, 1, 1]} : vector<8x8x128xf32> to vector<1x1x128xf32>
    %1833 = vector.shape_cast %1832 : vector<1x1x128xf32> to vector<1x128xf32>
    %1834 = vector.extract_strided_slice %1532 {offsets = [3, 0, 0], sizes = [1, 8, 128], strides = [1, 1, 1]} : vector<8x8x128xf32> to vector<1x8x128xf32>
    %1835 = vector.shape_cast %1834 : vector<1x8x128xf32> to vector<8x128xf32>
    %1836 = vector.broadcast %1833 : vector<1x128xf32> to vector<8x128xf32>
    %1837 = arith.mulf %1836, %1835 : vector<8x128xf32>
    %1838 = arith.addf %1831, %1837 : vector<8x128xf32>
    %1839 = vector.extract_strided_slice %1530 {offsets = [3, 4, 0], sizes = [1, 1, 128], strides = [1, 1, 1]} : vector<8x8x128xf32> to vector<1x1x128xf32>
    %1840 = vector.shape_cast %1839 : vector<1x1x128xf32> to vector<1x128xf32>
    %1841 = vector.extract_strided_slice %1532 {offsets = [4, 0, 0], sizes = [1, 8, 128], strides = [1, 1, 1]} : vector<8x8x128xf32> to vector<1x8x128xf32>
    %1842 = vector.shape_cast %1841 : vector<1x8x128xf32> to vector<8x128xf32>
    %1843 = vector.broadcast %1840 : vector<1x128xf32> to vector<8x128xf32>
    %1844 = arith.mulf %1843, %1842 : vector<8x128xf32>
    %1845 = arith.addf %1838, %1844 : vector<8x128xf32>
    %1846 = vector.extract_strided_slice %1530 {offsets = [3, 5, 0], sizes = [1, 1, 128], strides = [1, 1, 1]} : vector<8x8x128xf32> to vector<1x1x128xf32>
    %1847 = vector.shape_cast %1846 : vector<1x1x128xf32> to vector<1x128xf32>
    %1848 = vector.extract_strided_slice %1532 {offsets = [5, 0, 0], sizes = [1, 8, 128], strides = [1, 1, 1]} : vector<8x8x128xf32> to vector<1x8x128xf32>
    %1849 = vector.shape_cast %1848 : vector<1x8x128xf32> to vector<8x128xf32>
    %1850 = vector.broadcast %1847 : vector<1x128xf32> to vector<8x128xf32>
    %1851 = arith.mulf %1850, %1849 : vector<8x128xf32>
    %1852 = arith.addf %1845, %1851 : vector<8x128xf32>
    %1853 = vector.extract_strided_slice %1530 {offsets = [3, 6, 0], sizes = [1, 1, 128], strides = [1, 1, 1]} : vector<8x8x128xf32> to vector<1x1x128xf32>
    %1854 = vector.shape_cast %1853 : vector<1x1x128xf32> to vector<1x128xf32>
    %1855 = vector.extract_strided_slice %1532 {offsets = [6, 0, 0], sizes = [1, 8, 128], strides = [1, 1, 1]} : vector<8x8x128xf32> to vector<1x8x128xf32>
    %1856 = vector.shape_cast %1855 : vector<1x8x128xf32> to vector<8x128xf32>
    %1857 = vector.broadcast %1854 : vector<1x128xf32> to vector<8x128xf32>
    %1858 = arith.mulf %1857, %1856 : vector<8x128xf32>
    %1859 = arith.addf %1852, %1858 : vector<8x128xf32>
    %1860 = vector.extract_strided_slice %1530 {offsets = [3, 7, 0], sizes = [1, 1, 128], strides = [1, 1, 1]} : vector<8x8x128xf32> to vector<1x1x128xf32>
    %1861 = vector.shape_cast %1860 : vector<1x1x128xf32> to vector<1x128xf32>
    %1862 = vector.extract_strided_slice %1532 {offsets = [7, 0, 0], sizes = [1, 8, 128], strides = [1, 1, 1]} : vector<8x8x128xf32> to vector<1x8x128xf32>
    %1863 = vector.shape_cast %1862 : vector<1x8x128xf32> to vector<8x128xf32>
    %1864 = vector.broadcast %1861 : vector<1x128xf32> to vector<8x128xf32>
    %1865 = arith.mulf %1864, %1863 : vector<8x128xf32>
    %1866 = arith.addf %1859, %1865 : vector<8x128xf32>
    %1867 = vector.extract_strided_slice %1534 {offsets = [0, 3, 0], sizes = [1, 1, 128], strides = [1, 1, 1]} : vector<8x8x128xf32> to vector<1x1x128xf32>
    %1868 = vector.shape_cast %1867 : vector<1x1x128xf32> to vector<1x128xf32>
    %1869 = vector.broadcast %1868 : vector<1x128xf32> to vector<8x128xf32>
    %1870 = arith.mulf %1869, %1866 : vector<8x128xf32>
    %1871 = arith.addf %1776, %1870 : vector<8x128xf32>
    %1872 = vector.extract_strided_slice %1534 {offsets = [1, 3, 0], sizes = [1, 1, 128], strides = [1, 1, 1]} : vector<8x8x128xf32> to vector<1x1x128xf32>
    %1873 = vector.shape_cast %1872 : vector<1x1x128xf32> to vector<1x128xf32>
    %1874 = vector.broadcast %1873 : vector<1x128xf32> to vector<8x128xf32>
    %1875 = arith.mulf %1874, %1866 : vector<8x128xf32>
    %1876 = arith.addf %1781, %1875 : vector<8x128xf32>
    %1877 = vector.extract_strided_slice %1534 {offsets = [2, 3, 0], sizes = [1, 1, 128], strides = [1, 1, 1]} : vector<8x8x128xf32> to vector<1x1x128xf32>
    %1878 = vector.shape_cast %1877 : vector<1x1x128xf32> to vector<1x128xf32>
    %1879 = vector.broadcast %1878 : vector<1x128xf32> to vector<8x128xf32>
    %1880 = arith.mulf %1879, %1866 : vector<8x128xf32>
    %1881 = arith.addf %1786, %1880 : vector<8x128xf32>
    %1882 = vector.extract_strided_slice %1534 {offsets = [3, 3, 0], sizes = [1, 1, 128], strides = [1, 1, 1]} : vector<8x8x128xf32> to vector<1x1x128xf32>
    %1883 = vector.shape_cast %1882 : vector<1x1x128xf32> to vector<1x128xf32>
    %1884 = vector.broadcast %1883 : vector<1x128xf32> to vector<8x128xf32>
    %1885 = arith.mulf %1884, %1866 : vector<8x128xf32>
    %1886 = arith.addf %1791, %1885 : vector<8x128xf32>
    %1887 = vector.extract_strided_slice %1534 {offsets = [4, 3, 0], sizes = [1, 1, 128], strides = [1, 1, 1]} : vector<8x8x128xf32> to vector<1x1x128xf32>
    %1888 = vector.shape_cast %1887 : vector<1x1x128xf32> to vector<1x128xf32>
    %1889 = vector.broadcast %1888 : vector<1x128xf32> to vector<8x128xf32>
    %1890 = arith.mulf %1889, %1866 : vector<8x128xf32>
    %1891 = arith.addf %1796, %1890 : vector<8x128xf32>
    %1892 = vector.extract_strided_slice %1534 {offsets = [5, 3, 0], sizes = [1, 1, 128], strides = [1, 1, 1]} : vector<8x8x128xf32> to vector<1x1x128xf32>
    %1893 = vector.shape_cast %1892 : vector<1x1x128xf32> to vector<1x128xf32>
    %1894 = vector.broadcast %1893 : vector<1x128xf32> to vector<8x128xf32>
    %1895 = arith.mulf %1894, %1866 : vector<8x128xf32>
    %1896 = arith.addf %1801, %1895 : vector<8x128xf32>
    %1897 = vector.extract_strided_slice %1534 {offsets = [6, 3, 0], sizes = [1, 1, 128], strides = [1, 1, 1]} : vector<8x8x128xf32> to vector<1x1x128xf32>
    %1898 = vector.shape_cast %1897 : vector<1x1x128xf32> to vector<1x128xf32>
    %1899 = vector.broadcast %1898 : vector<1x128xf32> to vector<8x128xf32>
    %1900 = arith.mulf %1899, %1866 : vector<8x128xf32>
    %1901 = arith.addf %1806, %1900 : vector<8x128xf32>
    %1902 = vector.extract_strided_slice %1534 {offsets = [7, 3, 0], sizes = [1, 1, 128], strides = [1, 1, 1]} : vector<8x8x128xf32> to vector<1x1x128xf32>
    %1903 = vector.shape_cast %1902 : vector<1x1x128xf32> to vector<1x128xf32>
    %1904 = vector.broadcast %1903 : vector<1x128xf32> to vector<8x128xf32>
    %1905 = arith.mulf %1904, %1866 : vector<8x128xf32>
    %1906 = arith.addf %1811, %1905 : vector<8x128xf32>
    %1907 = vector.extract_strided_slice %1530 {offsets = [4, 0, 0], sizes = [1, 1, 128], strides = [1, 1, 1]} : vector<8x8x128xf32> to vector<1x1x128xf32>
    %1908 = vector.shape_cast %1907 : vector<1x1x128xf32> to vector<1x128xf32>
    %1909 = vector.extract_strided_slice %1532 {offsets = [0, 0, 0], sizes = [1, 8, 128], strides = [1, 1, 1]} : vector<8x8x128xf32> to vector<1x8x128xf32>
    %1910 = vector.shape_cast %1909 : vector<1x8x128xf32> to vector<8x128xf32>
    %1911 = vector.broadcast %1908 : vector<1x128xf32> to vector<8x128xf32>
    %1912 = arith.mulf %1911, %1910 : vector<8x128xf32>
    %1913 = vector.extract_strided_slice %1530 {offsets = [4, 1, 0], sizes = [1, 1, 128], strides = [1, 1, 1]} : vector<8x8x128xf32> to vector<1x1x128xf32>
    %1914 = vector.shape_cast %1913 : vector<1x1x128xf32> to vector<1x128xf32>
    %1915 = vector.extract_strided_slice %1532 {offsets = [1, 0, 0], sizes = [1, 8, 128], strides = [1, 1, 1]} : vector<8x8x128xf32> to vector<1x8x128xf32>
    %1916 = vector.shape_cast %1915 : vector<1x8x128xf32> to vector<8x128xf32>
    %1917 = vector.broadcast %1914 : vector<1x128xf32> to vector<8x128xf32>
    %1918 = arith.mulf %1917, %1916 : vector<8x128xf32>
    %1919 = arith.addf %1912, %1918 : vector<8x128xf32>
    %1920 = vector.extract_strided_slice %1530 {offsets = [4, 2, 0], sizes = [1, 1, 128], strides = [1, 1, 1]} : vector<8x8x128xf32> to vector<1x1x128xf32>
    %1921 = vector.shape_cast %1920 : vector<1x1x128xf32> to vector<1x128xf32>
    %1922 = vector.extract_strided_slice %1532 {offsets = [2, 0, 0], sizes = [1, 8, 128], strides = [1, 1, 1]} : vector<8x8x128xf32> to vector<1x8x128xf32>
    %1923 = vector.shape_cast %1922 : vector<1x8x128xf32> to vector<8x128xf32>
    %1924 = vector.broadcast %1921 : vector<1x128xf32> to vector<8x128xf32>
    %1925 = arith.mulf %1924, %1923 : vector<8x128xf32>
    %1926 = arith.addf %1919, %1925 : vector<8x128xf32>
    %1927 = vector.extract_strided_slice %1530 {offsets = [4, 3, 0], sizes = [1, 1, 128], strides = [1, 1, 1]} : vector<8x8x128xf32> to vector<1x1x128xf32>
    %1928 = vector.shape_cast %1927 : vector<1x1x128xf32> to vector<1x128xf32>
    %1929 = vector.extract_strided_slice %1532 {offsets = [3, 0, 0], sizes = [1, 8, 128], strides = [1, 1, 1]} : vector<8x8x128xf32> to vector<1x8x128xf32>
    %1930 = vector.shape_cast %1929 : vector<1x8x128xf32> to vector<8x128xf32>
    %1931 = vector.broadcast %1928 : vector<1x128xf32> to vector<8x128xf32>
    %1932 = arith.mulf %1931, %1930 : vector<8x128xf32>
    %1933 = arith.addf %1926, %1932 : vector<8x128xf32>
    %1934 = vector.extract_strided_slice %1530 {offsets = [4, 4, 0], sizes = [1, 1, 128], strides = [1, 1, 1]} : vector<8x8x128xf32> to vector<1x1x128xf32>
    %1935 = vector.shape_cast %1934 : vector<1x1x128xf32> to vector<1x128xf32>
    %1936 = vector.extract_strided_slice %1532 {offsets = [4, 0, 0], sizes = [1, 8, 128], strides = [1, 1, 1]} : vector<8x8x128xf32> to vector<1x8x128xf32>
    %1937 = vector.shape_cast %1936 : vector<1x8x128xf32> to vector<8x128xf32>
    %1938 = vector.broadcast %1935 : vector<1x128xf32> to vector<8x128xf32>
    %1939 = arith.mulf %1938, %1937 : vector<8x128xf32>
    %1940 = arith.addf %1933, %1939 : vector<8x128xf32>
    %1941 = vector.extract_strided_slice %1530 {offsets = [4, 5, 0], sizes = [1, 1, 128], strides = [1, 1, 1]} : vector<8x8x128xf32> to vector<1x1x128xf32>
    %1942 = vector.shape_cast %1941 : vector<1x1x128xf32> to vector<1x128xf32>
    %1943 = vector.extract_strided_slice %1532 {offsets = [5, 0, 0], sizes = [1, 8, 128], strides = [1, 1, 1]} : vector<8x8x128xf32> to vector<1x8x128xf32>
    %1944 = vector.shape_cast %1943 : vector<1x8x128xf32> to vector<8x128xf32>
    %1945 = vector.broadcast %1942 : vector<1x128xf32> to vector<8x128xf32>
    %1946 = arith.mulf %1945, %1944 : vector<8x128xf32>
    %1947 = arith.addf %1940, %1946 : vector<8x128xf32>
    %1948 = vector.extract_strided_slice %1530 {offsets = [4, 6, 0], sizes = [1, 1, 128], strides = [1, 1, 1]} : vector<8x8x128xf32> to vector<1x1x128xf32>
    %1949 = vector.shape_cast %1948 : vector<1x1x128xf32> to vector<1x128xf32>
    %1950 = vector.extract_strided_slice %1532 {offsets = [6, 0, 0], sizes = [1, 8, 128], strides = [1, 1, 1]} : vector<8x8x128xf32> to vector<1x8x128xf32>
    %1951 = vector.shape_cast %1950 : vector<1x8x128xf32> to vector<8x128xf32>
    %1952 = vector.broadcast %1949 : vector<1x128xf32> to vector<8x128xf32>
    %1953 = arith.mulf %1952, %1951 : vector<8x128xf32>
    %1954 = arith.addf %1947, %1953 : vector<8x128xf32>
    %1955 = vector.extract_strided_slice %1530 {offsets = [4, 7, 0], sizes = [1, 1, 128], strides = [1, 1, 1]} : vector<8x8x128xf32> to vector<1x1x128xf32>
    %1956 = vector.shape_cast %1955 : vector<1x1x128xf32> to vector<1x128xf32>
    %1957 = vector.extract_strided_slice %1532 {offsets = [7, 0, 0], sizes = [1, 8, 128], strides = [1, 1, 1]} : vector<8x8x128xf32> to vector<1x8x128xf32>
    %1958 = vector.shape_cast %1957 : vector<1x8x128xf32> to vector<8x128xf32>
    %1959 = vector.broadcast %1956 : vector<1x128xf32> to vector<8x128xf32>
    %1960 = arith.mulf %1959, %1958 : vector<8x128xf32>
    %1961 = arith.addf %1954, %1960 : vector<8x128xf32>
    %1962 = vector.extract_strided_slice %1534 {offsets = [0, 4, 0], sizes = [1, 1, 128], strides = [1, 1, 1]} : vector<8x8x128xf32> to vector<1x1x128xf32>
    %1963 = vector.shape_cast %1962 : vector<1x1x128xf32> to vector<1x128xf32>
    %1964 = vector.broadcast %1963 : vector<1x128xf32> to vector<8x128xf32>
    %1965 = arith.mulf %1964, %1961 : vector<8x128xf32>
    %1966 = arith.addf %1871, %1965 : vector<8x128xf32>
    %1967 = vector.extract_strided_slice %1534 {offsets = [1, 4, 0], sizes = [1, 1, 128], strides = [1, 1, 1]} : vector<8x8x128xf32> to vector<1x1x128xf32>
    %1968 = vector.shape_cast %1967 : vector<1x1x128xf32> to vector<1x128xf32>
    %1969 = vector.broadcast %1968 : vector<1x128xf32> to vector<8x128xf32>
    %1970 = arith.mulf %1969, %1961 : vector<8x128xf32>
    %1971 = arith.addf %1876, %1970 : vector<8x128xf32>
    %1972 = vector.extract_strided_slice %1534 {offsets = [2, 4, 0], sizes = [1, 1, 128], strides = [1, 1, 1]} : vector<8x8x128xf32> to vector<1x1x128xf32>
    %1973 = vector.shape_cast %1972 : vector<1x1x128xf32> to vector<1x128xf32>
    %1974 = vector.broadcast %1973 : vector<1x128xf32> to vector<8x128xf32>
    %1975 = arith.mulf %1974, %1961 : vector<8x128xf32>
    %1976 = arith.addf %1881, %1975 : vector<8x128xf32>
    %1977 = vector.extract_strided_slice %1534 {offsets = [3, 4, 0], sizes = [1, 1, 128], strides = [1, 1, 1]} : vector<8x8x128xf32> to vector<1x1x128xf32>
    %1978 = vector.shape_cast %1977 : vector<1x1x128xf32> to vector<1x128xf32>
    %1979 = vector.broadcast %1978 : vector<1x128xf32> to vector<8x128xf32>
    %1980 = arith.mulf %1979, %1961 : vector<8x128xf32>
    %1981 = arith.addf %1886, %1980 : vector<8x128xf32>
    %1982 = vector.extract_strided_slice %1534 {offsets = [4, 4, 0], sizes = [1, 1, 128], strides = [1, 1, 1]} : vector<8x8x128xf32> to vector<1x1x128xf32>
    %1983 = vector.shape_cast %1982 : vector<1x1x128xf32> to vector<1x128xf32>
    %1984 = vector.broadcast %1983 : vector<1x128xf32> to vector<8x128xf32>
    %1985 = arith.mulf %1984, %1961 : vector<8x128xf32>
    %1986 = arith.addf %1891, %1985 : vector<8x128xf32>
    %1987 = vector.extract_strided_slice %1534 {offsets = [5, 4, 0], sizes = [1, 1, 128], strides = [1, 1, 1]} : vector<8x8x128xf32> to vector<1x1x128xf32>
    %1988 = vector.shape_cast %1987 : vector<1x1x128xf32> to vector<1x128xf32>
    %1989 = vector.broadcast %1988 : vector<1x128xf32> to vector<8x128xf32>
    %1990 = arith.mulf %1989, %1961 : vector<8x128xf32>
    %1991 = arith.addf %1896, %1990 : vector<8x128xf32>
    %1992 = vector.extract_strided_slice %1534 {offsets = [6, 4, 0], sizes = [1, 1, 128], strides = [1, 1, 1]} : vector<8x8x128xf32> to vector<1x1x128xf32>
    %1993 = vector.shape_cast %1992 : vector<1x1x128xf32> to vector<1x128xf32>
    %1994 = vector.broadcast %1993 : vector<1x128xf32> to vector<8x128xf32>
    %1995 = arith.mulf %1994, %1961 : vector<8x128xf32>
    %1996 = arith.addf %1901, %1995 : vector<8x128xf32>
    %1997 = vector.extract_strided_slice %1534 {offsets = [7, 4, 0], sizes = [1, 1, 128], strides = [1, 1, 1]} : vector<8x8x128xf32> to vector<1x1x128xf32>
    %1998 = vector.shape_cast %1997 : vector<1x1x128xf32> to vector<1x128xf32>
    %1999 = vector.broadcast %1998 : vector<1x128xf32> to vector<8x128xf32>
    %2000 = arith.mulf %1999, %1961 : vector<8x128xf32>
    %2001 = arith.addf %1906, %2000 : vector<8x128xf32>
    %2002 = vector.extract_strided_slice %1530 {offsets = [5, 0, 0], sizes = [1, 1, 128], strides = [1, 1, 1]} : vector<8x8x128xf32> to vector<1x1x128xf32>
    %2003 = vector.shape_cast %2002 : vector<1x1x128xf32> to vector<1x128xf32>
    %2004 = vector.extract_strided_slice %1532 {offsets = [0, 0, 0], sizes = [1, 8, 128], strides = [1, 1, 1]} : vector<8x8x128xf32> to vector<1x8x128xf32>
    %2005 = vector.shape_cast %2004 : vector<1x8x128xf32> to vector<8x128xf32>
    %2006 = vector.broadcast %2003 : vector<1x128xf32> to vector<8x128xf32>
    %2007 = arith.mulf %2006, %2005 : vector<8x128xf32>
    %2008 = vector.extract_strided_slice %1530 {offsets = [5, 1, 0], sizes = [1, 1, 128], strides = [1, 1, 1]} : vector<8x8x128xf32> to vector<1x1x128xf32>
    %2009 = vector.shape_cast %2008 : vector<1x1x128xf32> to vector<1x128xf32>
    %2010 = vector.extract_strided_slice %1532 {offsets = [1, 0, 0], sizes = [1, 8, 128], strides = [1, 1, 1]} : vector<8x8x128xf32> to vector<1x8x128xf32>
    %2011 = vector.shape_cast %2010 : vector<1x8x128xf32> to vector<8x128xf32>
    %2012 = vector.broadcast %2009 : vector<1x128xf32> to vector<8x128xf32>
    %2013 = arith.mulf %2012, %2011 : vector<8x128xf32>
    %2014 = arith.addf %2007, %2013 : vector<8x128xf32>
    %2015 = vector.extract_strided_slice %1530 {offsets = [5, 2, 0], sizes = [1, 1, 128], strides = [1, 1, 1]} : vector<8x8x128xf32> to vector<1x1x128xf32>
    %2016 = vector.shape_cast %2015 : vector<1x1x128xf32> to vector<1x128xf32>
    %2017 = vector.extract_strided_slice %1532 {offsets = [2, 0, 0], sizes = [1, 8, 128], strides = [1, 1, 1]} : vector<8x8x128xf32> to vector<1x8x128xf32>
    %2018 = vector.shape_cast %2017 : vector<1x8x128xf32> to vector<8x128xf32>
    %2019 = vector.broadcast %2016 : vector<1x128xf32> to vector<8x128xf32>
    %2020 = arith.mulf %2019, %2018 : vector<8x128xf32>
    %2021 = arith.addf %2014, %2020 : vector<8x128xf32>
    %2022 = vector.extract_strided_slice %1530 {offsets = [5, 3, 0], sizes = [1, 1, 128], strides = [1, 1, 1]} : vector<8x8x128xf32> to vector<1x1x128xf32>
    %2023 = vector.shape_cast %2022 : vector<1x1x128xf32> to vector<1x128xf32>
    %2024 = vector.extract_strided_slice %1532 {offsets = [3, 0, 0], sizes = [1, 8, 128], strides = [1, 1, 1]} : vector<8x8x128xf32> to vector<1x8x128xf32>
    %2025 = vector.shape_cast %2024 : vector<1x8x128xf32> to vector<8x128xf32>
    %2026 = vector.broadcast %2023 : vector<1x128xf32> to vector<8x128xf32>
    %2027 = arith.mulf %2026, %2025 : vector<8x128xf32>
    %2028 = arith.addf %2021, %2027 : vector<8x128xf32>
    %2029 = vector.extract_strided_slice %1530 {offsets = [5, 4, 0], sizes = [1, 1, 128], strides = [1, 1, 1]} : vector<8x8x128xf32> to vector<1x1x128xf32>
    %2030 = vector.shape_cast %2029 : vector<1x1x128xf32> to vector<1x128xf32>
    %2031 = vector.extract_strided_slice %1532 {offsets = [4, 0, 0], sizes = [1, 8, 128], strides = [1, 1, 1]} : vector<8x8x128xf32> to vector<1x8x128xf32>
    %2032 = vector.shape_cast %2031 : vector<1x8x128xf32> to vector<8x128xf32>
    %2033 = vector.broadcast %2030 : vector<1x128xf32> to vector<8x128xf32>
    %2034 = arith.mulf %2033, %2032 : vector<8x128xf32>
    %2035 = arith.addf %2028, %2034 : vector<8x128xf32>
    %2036 = vector.extract_strided_slice %1530 {offsets = [5, 5, 0], sizes = [1, 1, 128], strides = [1, 1, 1]} : vector<8x8x128xf32> to vector<1x1x128xf32>
    %2037 = vector.shape_cast %2036 : vector<1x1x128xf32> to vector<1x128xf32>
    %2038 = vector.extract_strided_slice %1532 {offsets = [5, 0, 0], sizes = [1, 8, 128], strides = [1, 1, 1]} : vector<8x8x128xf32> to vector<1x8x128xf32>
    %2039 = vector.shape_cast %2038 : vector<1x8x128xf32> to vector<8x128xf32>
    %2040 = vector.broadcast %2037 : vector<1x128xf32> to vector<8x128xf32>
    %2041 = arith.mulf %2040, %2039 : vector<8x128xf32>
    %2042 = arith.addf %2035, %2041 : vector<8x128xf32>
    %2043 = vector.extract_strided_slice %1530 {offsets = [5, 6, 0], sizes = [1, 1, 128], strides = [1, 1, 1]} : vector<8x8x128xf32> to vector<1x1x128xf32>
    %2044 = vector.shape_cast %2043 : vector<1x1x128xf32> to vector<1x128xf32>
    %2045 = vector.extract_strided_slice %1532 {offsets = [6, 0, 0], sizes = [1, 8, 128], strides = [1, 1, 1]} : vector<8x8x128xf32> to vector<1x8x128xf32>
    %2046 = vector.shape_cast %2045 : vector<1x8x128xf32> to vector<8x128xf32>
    %2047 = vector.broadcast %2044 : vector<1x128xf32> to vector<8x128xf32>
    %2048 = arith.mulf %2047, %2046 : vector<8x128xf32>
    %2049 = arith.addf %2042, %2048 : vector<8x128xf32>
    %2050 = vector.extract_strided_slice %1530 {offsets = [5, 7, 0], sizes = [1, 1, 128], strides = [1, 1, 1]} : vector<8x8x128xf32> to vector<1x1x128xf32>
    %2051 = vector.shape_cast %2050 : vector<1x1x128xf32> to vector<1x128xf32>
    %2052 = vector.extract_strided_slice %1532 {offsets = [7, 0, 0], sizes = [1, 8, 128], strides = [1, 1, 1]} : vector<8x8x128xf32> to vector<1x8x128xf32>
    %2053 = vector.shape_cast %2052 : vector<1x8x128xf32> to vector<8x128xf32>
    %2054 = vector.broadcast %2051 : vector<1x128xf32> to vector<8x128xf32>
    %2055 = arith.mulf %2054, %2053 : vector<8x128xf32>
    %2056 = arith.addf %2049, %2055 : vector<8x128xf32>
    %2057 = vector.extract_strided_slice %1534 {offsets = [0, 5, 0], sizes = [1, 1, 128], strides = [1, 1, 1]} : vector<8x8x128xf32> to vector<1x1x128xf32>
    %2058 = vector.shape_cast %2057 : vector<1x1x128xf32> to vector<1x128xf32>
    %2059 = vector.broadcast %2058 : vector<1x128xf32> to vector<8x128xf32>
    %2060 = arith.mulf %2059, %2056 : vector<8x128xf32>
    %2061 = arith.addf %1966, %2060 : vector<8x128xf32>
    %2062 = vector.extract_strided_slice %1534 {offsets = [1, 5, 0], sizes = [1, 1, 128], strides = [1, 1, 1]} : vector<8x8x128xf32> to vector<1x1x128xf32>
    %2063 = vector.shape_cast %2062 : vector<1x1x128xf32> to vector<1x128xf32>
    %2064 = vector.broadcast %2063 : vector<1x128xf32> to vector<8x128xf32>
    %2065 = arith.mulf %2064, %2056 : vector<8x128xf32>
    %2066 = arith.addf %1971, %2065 : vector<8x128xf32>
    %2067 = vector.extract_strided_slice %1534 {offsets = [2, 5, 0], sizes = [1, 1, 128], strides = [1, 1, 1]} : vector<8x8x128xf32> to vector<1x1x128xf32>
    %2068 = vector.shape_cast %2067 : vector<1x1x128xf32> to vector<1x128xf32>
    %2069 = vector.broadcast %2068 : vector<1x128xf32> to vector<8x128xf32>
    %2070 = arith.mulf %2069, %2056 : vector<8x128xf32>
    %2071 = arith.addf %1976, %2070 : vector<8x128xf32>
    %2072 = vector.extract_strided_slice %1534 {offsets = [3, 5, 0], sizes = [1, 1, 128], strides = [1, 1, 1]} : vector<8x8x128xf32> to vector<1x1x128xf32>
    %2073 = vector.shape_cast %2072 : vector<1x1x128xf32> to vector<1x128xf32>
    %2074 = vector.broadcast %2073 : vector<1x128xf32> to vector<8x128xf32>
    %2075 = arith.mulf %2074, %2056 : vector<8x128xf32>
    %2076 = arith.addf %1981, %2075 : vector<8x128xf32>
    %2077 = vector.extract_strided_slice %1534 {offsets = [4, 5, 0], sizes = [1, 1, 128], strides = [1, 1, 1]} : vector<8x8x128xf32> to vector<1x1x128xf32>
    %2078 = vector.shape_cast %2077 : vector<1x1x128xf32> to vector<1x128xf32>
    %2079 = vector.broadcast %2078 : vector<1x128xf32> to vector<8x128xf32>
    %2080 = arith.mulf %2079, %2056 : vector<8x128xf32>
    %2081 = arith.addf %1986, %2080 : vector<8x128xf32>
    %2082 = vector.extract_strided_slice %1534 {offsets = [5, 5, 0], sizes = [1, 1, 128], strides = [1, 1, 1]} : vector<8x8x128xf32> to vector<1x1x128xf32>
    %2083 = vector.shape_cast %2082 : vector<1x1x128xf32> to vector<1x128xf32>
    %2084 = vector.broadcast %2083 : vector<1x128xf32> to vector<8x128xf32>
    %2085 = arith.mulf %2084, %2056 : vector<8x128xf32>
    %2086 = arith.addf %1991, %2085 : vector<8x128xf32>
    %2087 = vector.extract_strided_slice %1534 {offsets = [6, 5, 0], sizes = [1, 1, 128], strides = [1, 1, 1]} : vector<8x8x128xf32> to vector<1x1x128xf32>
    %2088 = vector.shape_cast %2087 : vector<1x1x128xf32> to vector<1x128xf32>
    %2089 = vector.broadcast %2088 : vector<1x128xf32> to vector<8x128xf32>
    %2090 = arith.mulf %2089, %2056 : vector<8x128xf32>
    %2091 = arith.addf %1996, %2090 : vector<8x128xf32>
    %2092 = vector.extract_strided_slice %1534 {offsets = [7, 5, 0], sizes = [1, 1, 128], strides = [1, 1, 1]} : vector<8x8x128xf32> to vector<1x1x128xf32>
    %2093 = vector.shape_cast %2092 : vector<1x1x128xf32> to vector<1x128xf32>
    %2094 = vector.broadcast %2093 : vector<1x128xf32> to vector<8x128xf32>
    %2095 = arith.mulf %2094, %2056 : vector<8x128xf32>
    %2096 = arith.addf %2001, %2095 : vector<8x128xf32>
    %2097 = vector.extract_strided_slice %1530 {offsets = [6, 0, 0], sizes = [1, 1, 128], strides = [1, 1, 1]} : vector<8x8x128xf32> to vector<1x1x128xf32>
    %2098 = vector.shape_cast %2097 : vector<1x1x128xf32> to vector<1x128xf32>
    %2099 = vector.extract_strided_slice %1532 {offsets = [0, 0, 0], sizes = [1, 8, 128], strides = [1, 1, 1]} : vector<8x8x128xf32> to vector<1x8x128xf32>
    %2100 = vector.shape_cast %2099 : vector<1x8x128xf32> to vector<8x128xf32>
    %2101 = vector.broadcast %2098 : vector<1x128xf32> to vector<8x128xf32>
    %2102 = arith.mulf %2101, %2100 : vector<8x128xf32>
    %2103 = vector.extract_strided_slice %1530 {offsets = [6, 1, 0], sizes = [1, 1, 128], strides = [1, 1, 1]} : vector<8x8x128xf32> to vector<1x1x128xf32>
    %2104 = vector.shape_cast %2103 : vector<1x1x128xf32> to vector<1x128xf32>
    %2105 = vector.extract_strided_slice %1532 {offsets = [1, 0, 0], sizes = [1, 8, 128], strides = [1, 1, 1]} : vector<8x8x128xf32> to vector<1x8x128xf32>
    %2106 = vector.shape_cast %2105 : vector<1x8x128xf32> to vector<8x128xf32>
    %2107 = vector.broadcast %2104 : vector<1x128xf32> to vector<8x128xf32>
    %2108 = arith.mulf %2107, %2106 : vector<8x128xf32>
    %2109 = arith.addf %2102, %2108 : vector<8x128xf32>
    %2110 = vector.extract_strided_slice %1530 {offsets = [6, 2, 0], sizes = [1, 1, 128], strides = [1, 1, 1]} : vector<8x8x128xf32> to vector<1x1x128xf32>
    %2111 = vector.shape_cast %2110 : vector<1x1x128xf32> to vector<1x128xf32>
    %2112 = vector.extract_strided_slice %1532 {offsets = [2, 0, 0], sizes = [1, 8, 128], strides = [1, 1, 1]} : vector<8x8x128xf32> to vector<1x8x128xf32>
    %2113 = vector.shape_cast %2112 : vector<1x8x128xf32> to vector<8x128xf32>
    %2114 = vector.broadcast %2111 : vector<1x128xf32> to vector<8x128xf32>
    %2115 = arith.mulf %2114, %2113 : vector<8x128xf32>
    %2116 = arith.addf %2109, %2115 : vector<8x128xf32>
    %2117 = vector.extract_strided_slice %1530 {offsets = [6, 3, 0], sizes = [1, 1, 128], strides = [1, 1, 1]} : vector<8x8x128xf32> to vector<1x1x128xf32>
    %2118 = vector.shape_cast %2117 : vector<1x1x128xf32> to vector<1x128xf32>
    %2119 = vector.extract_strided_slice %1532 {offsets = [3, 0, 0], sizes = [1, 8, 128], strides = [1, 1, 1]} : vector<8x8x128xf32> to vector<1x8x128xf32>
    %2120 = vector.shape_cast %2119 : vector<1x8x128xf32> to vector<8x128xf32>
    %2121 = vector.broadcast %2118 : vector<1x128xf32> to vector<8x128xf32>
    %2122 = arith.mulf %2121, %2120 : vector<8x128xf32>
    %2123 = arith.addf %2116, %2122 : vector<8x128xf32>
    %2124 = vector.extract_strided_slice %1530 {offsets = [6, 4, 0], sizes = [1, 1, 128], strides = [1, 1, 1]} : vector<8x8x128xf32> to vector<1x1x128xf32>
    %2125 = vector.shape_cast %2124 : vector<1x1x128xf32> to vector<1x128xf32>
    %2126 = vector.extract_strided_slice %1532 {offsets = [4, 0, 0], sizes = [1, 8, 128], strides = [1, 1, 1]} : vector<8x8x128xf32> to vector<1x8x128xf32>
    %2127 = vector.shape_cast %2126 : vector<1x8x128xf32> to vector<8x128xf32>
    %2128 = vector.broadcast %2125 : vector<1x128xf32> to vector<8x128xf32>
    %2129 = arith.mulf %2128, %2127 : vector<8x128xf32>
    %2130 = arith.addf %2123, %2129 : vector<8x128xf32>
    %2131 = vector.extract_strided_slice %1530 {offsets = [6, 5, 0], sizes = [1, 1, 128], strides = [1, 1, 1]} : vector<8x8x128xf32> to vector<1x1x128xf32>
    %2132 = vector.shape_cast %2131 : vector<1x1x128xf32> to vector<1x128xf32>
    %2133 = vector.extract_strided_slice %1532 {offsets = [5, 0, 0], sizes = [1, 8, 128], strides = [1, 1, 1]} : vector<8x8x128xf32> to vector<1x8x128xf32>
    %2134 = vector.shape_cast %2133 : vector<1x8x128xf32> to vector<8x128xf32>
    %2135 = vector.broadcast %2132 : vector<1x128xf32> to vector<8x128xf32>
    %2136 = arith.mulf %2135, %2134 : vector<8x128xf32>
    %2137 = arith.addf %2130, %2136 : vector<8x128xf32>
    %2138 = vector.extract_strided_slice %1530 {offsets = [6, 6, 0], sizes = [1, 1, 128], strides = [1, 1, 1]} : vector<8x8x128xf32> to vector<1x1x128xf32>
    %2139 = vector.shape_cast %2138 : vector<1x1x128xf32> to vector<1x128xf32>
    %2140 = vector.extract_strided_slice %1532 {offsets = [6, 0, 0], sizes = [1, 8, 128], strides = [1, 1, 1]} : vector<8x8x128xf32> to vector<1x8x128xf32>
    %2141 = vector.shape_cast %2140 : vector<1x8x128xf32> to vector<8x128xf32>
    %2142 = vector.broadcast %2139 : vector<1x128xf32> to vector<8x128xf32>
    %2143 = arith.mulf %2142, %2141 : vector<8x128xf32>
    %2144 = arith.addf %2137, %2143 : vector<8x128xf32>
    %2145 = vector.extract_strided_slice %1530 {offsets = [6, 7, 0], sizes = [1, 1, 128], strides = [1, 1, 1]} : vector<8x8x128xf32> to vector<1x1x128xf32>
    %2146 = vector.shape_cast %2145 : vector<1x1x128xf32> to vector<1x128xf32>
    %2147 = vector.extract_strided_slice %1532 {offsets = [7, 0, 0], sizes = [1, 8, 128], strides = [1, 1, 1]} : vector<8x8x128xf32> to vector<1x8x128xf32>
    %2148 = vector.shape_cast %2147 : vector<1x8x128xf32> to vector<8x128xf32>
    %2149 = vector.broadcast %2146 : vector<1x128xf32> to vector<8x128xf32>
    %2150 = arith.mulf %2149, %2148 : vector<8x128xf32>
    %2151 = arith.addf %2144, %2150 : vector<8x128xf32>
    %2152 = vector.extract_strided_slice %1534 {offsets = [0, 6, 0], sizes = [1, 1, 128], strides = [1, 1, 1]} : vector<8x8x128xf32> to vector<1x1x128xf32>
    %2153 = vector.shape_cast %2152 : vector<1x1x128xf32> to vector<1x128xf32>
    %2154 = vector.broadcast %2153 : vector<1x128xf32> to vector<8x128xf32>
    %2155 = arith.mulf %2154, %2151 : vector<8x128xf32>
    %2156 = arith.addf %2061, %2155 : vector<8x128xf32>
    %2157 = vector.extract_strided_slice %1534 {offsets = [1, 6, 0], sizes = [1, 1, 128], strides = [1, 1, 1]} : vector<8x8x128xf32> to vector<1x1x128xf32>
    %2158 = vector.shape_cast %2157 : vector<1x1x128xf32> to vector<1x128xf32>
    %2159 = vector.broadcast %2158 : vector<1x128xf32> to vector<8x128xf32>
    %2160 = arith.mulf %2159, %2151 : vector<8x128xf32>
    %2161 = arith.addf %2066, %2160 : vector<8x128xf32>
    %2162 = vector.extract_strided_slice %1534 {offsets = [2, 6, 0], sizes = [1, 1, 128], strides = [1, 1, 1]} : vector<8x8x128xf32> to vector<1x1x128xf32>
    %2163 = vector.shape_cast %2162 : vector<1x1x128xf32> to vector<1x128xf32>
    %2164 = vector.broadcast %2163 : vector<1x128xf32> to vector<8x128xf32>
    %2165 = arith.mulf %2164, %2151 : vector<8x128xf32>
    %2166 = arith.addf %2071, %2165 : vector<8x128xf32>
    %2167 = vector.extract_strided_slice %1534 {offsets = [3, 6, 0], sizes = [1, 1, 128], strides = [1, 1, 1]} : vector<8x8x128xf32> to vector<1x1x128xf32>
    %2168 = vector.shape_cast %2167 : vector<1x1x128xf32> to vector<1x128xf32>
    %2169 = vector.broadcast %2168 : vector<1x128xf32> to vector<8x128xf32>
    %2170 = arith.mulf %2169, %2151 : vector<8x128xf32>
    %2171 = arith.addf %2076, %2170 : vector<8x128xf32>
    %2172 = vector.extract_strided_slice %1534 {offsets = [4, 6, 0], sizes = [1, 1, 128], strides = [1, 1, 1]} : vector<8x8x128xf32> to vector<1x1x128xf32>
    %2173 = vector.shape_cast %2172 : vector<1x1x128xf32> to vector<1x128xf32>
    %2174 = vector.broadcast %2173 : vector<1x128xf32> to vector<8x128xf32>
    %2175 = arith.mulf %2174, %2151 : vector<8x128xf32>
    %2176 = arith.addf %2081, %2175 : vector<8x128xf32>
    %2177 = vector.extract_strided_slice %1534 {offsets = [5, 6, 0], sizes = [1, 1, 128], strides = [1, 1, 1]} : vector<8x8x128xf32> to vector<1x1x128xf32>
    %2178 = vector.shape_cast %2177 : vector<1x1x128xf32> to vector<1x128xf32>
    %2179 = vector.broadcast %2178 : vector<1x128xf32> to vector<8x128xf32>
    %2180 = arith.mulf %2179, %2151 : vector<8x128xf32>
    %2181 = arith.addf %2086, %2180 : vector<8x128xf32>
    %2182 = vector.extract_strided_slice %1534 {offsets = [6, 6, 0], sizes = [1, 1, 128], strides = [1, 1, 1]} : vector<8x8x128xf32> to vector<1x1x128xf32>
    %2183 = vector.shape_cast %2182 : vector<1x1x128xf32> to vector<1x128xf32>
    %2184 = vector.broadcast %2183 : vector<1x128xf32> to vector<8x128xf32>
    %2185 = arith.mulf %2184, %2151 : vector<8x128xf32>
    %2186 = arith.addf %2091, %2185 : vector<8x128xf32>
    %2187 = vector.extract_strided_slice %1534 {offsets = [7, 6, 0], sizes = [1, 1, 128], strides = [1, 1, 1]} : vector<8x8x128xf32> to vector<1x1x128xf32>
    %2188 = vector.shape_cast %2187 : vector<1x1x128xf32> to vector<1x128xf32>
    %2189 = vector.broadcast %2188 : vector<1x128xf32> to vector<8x128xf32>
    %2190 = arith.mulf %2189, %2151 : vector<8x128xf32>
    %2191 = arith.addf %2096, %2190 : vector<8x128xf32>
    %2192 = vector.extract_strided_slice %1530 {offsets = [7, 0, 0], sizes = [1, 1, 128], strides = [1, 1, 1]} : vector<8x8x128xf32> to vector<1x1x128xf32>
    %2193 = vector.shape_cast %2192 : vector<1x1x128xf32> to vector<1x128xf32>
    %2194 = vector.extract_strided_slice %1532 {offsets = [0, 0, 0], sizes = [1, 8, 128], strides = [1, 1, 1]} : vector<8x8x128xf32> to vector<1x8x128xf32>
    %2195 = vector.shape_cast %2194 : vector<1x8x128xf32> to vector<8x128xf32>
    %2196 = vector.broadcast %2193 : vector<1x128xf32> to vector<8x128xf32>
    %2197 = arith.mulf %2196, %2195 : vector<8x128xf32>
    %2198 = vector.extract_strided_slice %1530 {offsets = [7, 1, 0], sizes = [1, 1, 128], strides = [1, 1, 1]} : vector<8x8x128xf32> to vector<1x1x128xf32>
    %2199 = vector.shape_cast %2198 : vector<1x1x128xf32> to vector<1x128xf32>
    %2200 = vector.extract_strided_slice %1532 {offsets = [1, 0, 0], sizes = [1, 8, 128], strides = [1, 1, 1]} : vector<8x8x128xf32> to vector<1x8x128xf32>
    %2201 = vector.shape_cast %2200 : vector<1x8x128xf32> to vector<8x128xf32>
    %2202 = vector.broadcast %2199 : vector<1x128xf32> to vector<8x128xf32>
    %2203 = arith.mulf %2202, %2201 : vector<8x128xf32>
    %2204 = arith.addf %2197, %2203 : vector<8x128xf32>
    %2205 = vector.extract_strided_slice %1530 {offsets = [7, 2, 0], sizes = [1, 1, 128], strides = [1, 1, 1]} : vector<8x8x128xf32> to vector<1x1x128xf32>
    %2206 = vector.shape_cast %2205 : vector<1x1x128xf32> to vector<1x128xf32>
    %2207 = vector.extract_strided_slice %1532 {offsets = [2, 0, 0], sizes = [1, 8, 128], strides = [1, 1, 1]} : vector<8x8x128xf32> to vector<1x8x128xf32>
    %2208 = vector.shape_cast %2207 : vector<1x8x128xf32> to vector<8x128xf32>
    %2209 = vector.broadcast %2206 : vector<1x128xf32> to vector<8x128xf32>
    %2210 = arith.mulf %2209, %2208 : vector<8x128xf32>
    %2211 = arith.addf %2204, %2210 : vector<8x128xf32>
    %2212 = vector.extract_strided_slice %1530 {offsets = [7, 3, 0], sizes = [1, 1, 128], strides = [1, 1, 1]} : vector<8x8x128xf32> to vector<1x1x128xf32>
    %2213 = vector.shape_cast %2212 : vector<1x1x128xf32> to vector<1x128xf32>
    %2214 = vector.extract_strided_slice %1532 {offsets = [3, 0, 0], sizes = [1, 8, 128], strides = [1, 1, 1]} : vector<8x8x128xf32> to vector<1x8x128xf32>
    %2215 = vector.shape_cast %2214 : vector<1x8x128xf32> to vector<8x128xf32>
    %2216 = vector.broadcast %2213 : vector<1x128xf32> to vector<8x128xf32>
    %2217 = arith.mulf %2216, %2215 : vector<8x128xf32>
    %2218 = arith.addf %2211, %2217 : vector<8x128xf32>
    %2219 = vector.extract_strided_slice %1530 {offsets = [7, 4, 0], sizes = [1, 1, 128], strides = [1, 1, 1]} : vector<8x8x128xf32> to vector<1x1x128xf32>
    %2220 = vector.shape_cast %2219 : vector<1x1x128xf32> to vector<1x128xf32>
    %2221 = vector.extract_strided_slice %1532 {offsets = [4, 0, 0], sizes = [1, 8, 128], strides = [1, 1, 1]} : vector<8x8x128xf32> to vector<1x8x128xf32>
    %2222 = vector.shape_cast %2221 : vector<1x8x128xf32> to vector<8x128xf32>
    %2223 = vector.broadcast %2220 : vector<1x128xf32> to vector<8x128xf32>
    %2224 = arith.mulf %2223, %2222 : vector<8x128xf32>
    %2225 = arith.addf %2218, %2224 : vector<8x128xf32>
    %2226 = vector.extract_strided_slice %1530 {offsets = [7, 5, 0], sizes = [1, 1, 128], strides = [1, 1, 1]} : vector<8x8x128xf32> to vector<1x1x128xf32>
    %2227 = vector.shape_cast %2226 : vector<1x1x128xf32> to vector<1x128xf32>
    %2228 = vector.extract_strided_slice %1532 {offsets = [5, 0, 0], sizes = [1, 8, 128], strides = [1, 1, 1]} : vector<8x8x128xf32> to vector<1x8x128xf32>
    %2229 = vector.shape_cast %2228 : vector<1x8x128xf32> to vector<8x128xf32>
    %2230 = vector.broadcast %2227 : vector<1x128xf32> to vector<8x128xf32>
    %2231 = arith.mulf %2230, %2229 : vector<8x128xf32>
    %2232 = arith.addf %2225, %2231 : vector<8x128xf32>
    %2233 = vector.extract_strided_slice %1530 {offsets = [7, 6, 0], sizes = [1, 1, 128], strides = [1, 1, 1]} : vector<8x8x128xf32> to vector<1x1x128xf32>
    %2234 = vector.shape_cast %2233 : vector<1x1x128xf32> to vector<1x128xf32>
    %2235 = vector.extract_strided_slice %1532 {offsets = [6, 0, 0], sizes = [1, 8, 128], strides = [1, 1, 1]} : vector<8x8x128xf32> to vector<1x8x128xf32>
    %2236 = vector.shape_cast %2235 : vector<1x8x128xf32> to vector<8x128xf32>
    %2237 = vector.broadcast %2234 : vector<1x128xf32> to vector<8x128xf32>
    %2238 = arith.mulf %2237, %2236 : vector<8x128xf32>
    %2239 = arith.addf %2232, %2238 : vector<8x128xf32>
    %2240 = vector.extract_strided_slice %1530 {offsets = [7, 7, 0], sizes = [1, 1, 128], strides = [1, 1, 1]} : vector<8x8x128xf32> to vector<1x1x128xf32>
    %2241 = vector.shape_cast %2240 : vector<1x1x128xf32> to vector<1x128xf32>
    %2242 = vector.extract_strided_slice %1532 {offsets = [7, 0, 0], sizes = [1, 8, 128], strides = [1, 1, 1]} : vector<8x8x128xf32> to vector<1x8x128xf32>
    %2243 = vector.shape_cast %2242 : vector<1x8x128xf32> to vector<8x128xf32>
    %2244 = vector.broadcast %2241 : vector<1x128xf32> to vector<8x128xf32>
    %2245 = arith.mulf %2244, %2243 : vector<8x128xf32>
    %2246 = arith.addf %2239, %2245 : vector<8x128xf32>
    %2247 = vector.extract_strided_slice %1534 {offsets = [0, 7, 0], sizes = [1, 1, 128], strides = [1, 1, 1]} : vector<8x8x128xf32> to vector<1x1x128xf32>
    %2248 = vector.shape_cast %2247 : vector<1x1x128xf32> to vector<1x128xf32>
    %2249 = vector.broadcast %2248 : vector<1x128xf32> to vector<8x128xf32>
    %2250 = arith.mulf %2249, %2246 : vector<8x128xf32>
    %2251 = arith.addf %2156, %2250 : vector<8x128xf32>
    %2252 = vector.extract_strided_slice %1534 {offsets = [1, 7, 0], sizes = [1, 1, 128], strides = [1, 1, 1]} : vector<8x8x128xf32> to vector<1x1x128xf32>
    %2253 = vector.shape_cast %2252 : vector<1x1x128xf32> to vector<1x128xf32>
    %2254 = vector.broadcast %2253 : vector<1x128xf32> to vector<8x128xf32>
    %2255 = arith.mulf %2254, %2246 : vector<8x128xf32>
    %2256 = arith.addf %2161, %2255 : vector<8x128xf32>
    %2257 = vector.extract_strided_slice %1534 {offsets = [2, 7, 0], sizes = [1, 1, 128], strides = [1, 1, 1]} : vector<8x8x128xf32> to vector<1x1x128xf32>
    %2258 = vector.shape_cast %2257 : vector<1x1x128xf32> to vector<1x128xf32>
    %2259 = vector.broadcast %2258 : vector<1x128xf32> to vector<8x128xf32>
    %2260 = arith.mulf %2259, %2246 : vector<8x128xf32>
    %2261 = arith.addf %2166, %2260 : vector<8x128xf32>
    %2262 = vector.extract_strided_slice %1534 {offsets = [3, 7, 0], sizes = [1, 1, 128], strides = [1, 1, 1]} : vector<8x8x128xf32> to vector<1x1x128xf32>
    %2263 = vector.shape_cast %2262 : vector<1x1x128xf32> to vector<1x128xf32>
    %2264 = vector.broadcast %2263 : vector<1x128xf32> to vector<8x128xf32>
    %2265 = arith.mulf %2264, %2246 : vector<8x128xf32>
    %2266 = arith.addf %2171, %2265 : vector<8x128xf32>
    %2267 = vector.extract_strided_slice %1534 {offsets = [4, 7, 0], sizes = [1, 1, 128], strides = [1, 1, 1]} : vector<8x8x128xf32> to vector<1x1x128xf32>
    %2268 = vector.shape_cast %2267 : vector<1x1x128xf32> to vector<1x128xf32>
    %2269 = vector.broadcast %2268 : vector<1x128xf32> to vector<8x128xf32>
    %2270 = arith.mulf %2269, %2246 : vector<8x128xf32>
    %2271 = arith.addf %2176, %2270 : vector<8x128xf32>
    %2272 = vector.extract_strided_slice %1534 {offsets = [5, 7, 0], sizes = [1, 1, 128], strides = [1, 1, 1]} : vector<8x8x128xf32> to vector<1x1x128xf32>
    %2273 = vector.shape_cast %2272 : vector<1x1x128xf32> to vector<1x128xf32>
    %2274 = vector.broadcast %2273 : vector<1x128xf32> to vector<8x128xf32>
    %2275 = arith.mulf %2274, %2246 : vector<8x128xf32>
    %2276 = arith.addf %2181, %2275 : vector<8x128xf32>
    %2277 = vector.extract_strided_slice %1534 {offsets = [6, 7, 0], sizes = [1, 1, 128], strides = [1, 1, 1]} : vector<8x8x128xf32> to vector<1x1x128xf32>
    %2278 = vector.shape_cast %2277 : vector<1x1x128xf32> to vector<1x128xf32>
    %2279 = vector.broadcast %2278 : vector<1x128xf32> to vector<8x128xf32>
    %2280 = arith.mulf %2279, %2246 : vector<8x128xf32>
    %2281 = arith.addf %2186, %2280 : vector<8x128xf32>
    %2282 = vector.extract_strided_slice %1534 {offsets = [7, 7, 0], sizes = [1, 1, 128], strides = [1, 1, 1]} : vector<8x8x128xf32> to vector<1x1x128xf32>
    %2283 = vector.shape_cast %2282 : vector<1x1x128xf32> to vector<1x128xf32>
    %2284 = vector.broadcast %2283 : vector<1x128xf32> to vector<8x128xf32>
    %2285 = arith.mulf %2284, %2246 : vector<8x128xf32>
    %2286 = arith.addf %2191, %2285 : vector<8x128xf32>
    %c0_13 = arith.constant 0 : index
    %c192 = arith.constant 192 : index
    %c0_14 = arith.constant 0 : index
    %2287 = vector.load %arg2[%c0_13, %c192, %c0_14] : memref<1x256x128xbf16, #tpu.memory_space<vmem>>, vector<1x64x128xbf16>
    %2288 = vector.shape_cast %2287 : vector<1x64x128xbf16> to vector<64x128xbf16>
    %2289 = arith.extf %2288 : vector<64x128xbf16> to vector<64x128xf32>
    %2290 = vector.shape_cast %2289 : vector<64x128xf32> to vector<8x8x128xf32>
    %2291 = vector.extract_strided_slice %6 {offsets = [192, 0], sizes = [64, 128], strides = [1, 1]} : vector<512x128xf32> to vector<64x128xf32>
    %2292 = vector.shape_cast %2291 : vector<64x128xf32> to vector<8x8x128xf32>
    %2293 = vector.extract_strided_slice %6 {offsets = [448, 0], sizes = [64, 128], strides = [1, 1]} : vector<512x128xf32> to vector<64x128xf32>
    %2294 = vector.shape_cast %2293 : vector<64x128xf32> to vector<8x8x128xf32>
    %2295 = vector.extract_strided_slice %2290 {offsets = [0, 0, 0], sizes = [1, 1, 128], strides = [1, 1, 1]} : vector<8x8x128xf32> to vector<1x1x128xf32>
    %2296 = vector.shape_cast %2295 : vector<1x1x128xf32> to vector<1x128xf32>
    %2297 = vector.extract_strided_slice %2292 {offsets = [0, 0, 0], sizes = [1, 8, 128], strides = [1, 1, 1]} : vector<8x8x128xf32> to vector<1x8x128xf32>
    %2298 = vector.shape_cast %2297 : vector<1x8x128xf32> to vector<8x128xf32>
    %2299 = vector.broadcast %2296 : vector<1x128xf32> to vector<8x128xf32>
    %2300 = arith.mulf %2299, %2298 : vector<8x128xf32>
    %2301 = vector.extract_strided_slice %2290 {offsets = [0, 1, 0], sizes = [1, 1, 128], strides = [1, 1, 1]} : vector<8x8x128xf32> to vector<1x1x128xf32>
    %2302 = vector.shape_cast %2301 : vector<1x1x128xf32> to vector<1x128xf32>
    %2303 = vector.extract_strided_slice %2292 {offsets = [1, 0, 0], sizes = [1, 8, 128], strides = [1, 1, 1]} : vector<8x8x128xf32> to vector<1x8x128xf32>
    %2304 = vector.shape_cast %2303 : vector<1x8x128xf32> to vector<8x128xf32>
    %2305 = vector.broadcast %2302 : vector<1x128xf32> to vector<8x128xf32>
    %2306 = arith.mulf %2305, %2304 : vector<8x128xf32>
    %2307 = arith.addf %2300, %2306 : vector<8x128xf32>
    %2308 = vector.extract_strided_slice %2290 {offsets = [0, 2, 0], sizes = [1, 1, 128], strides = [1, 1, 1]} : vector<8x8x128xf32> to vector<1x1x128xf32>
    %2309 = vector.shape_cast %2308 : vector<1x1x128xf32> to vector<1x128xf32>
    %2310 = vector.extract_strided_slice %2292 {offsets = [2, 0, 0], sizes = [1, 8, 128], strides = [1, 1, 1]} : vector<8x8x128xf32> to vector<1x8x128xf32>
    %2311 = vector.shape_cast %2310 : vector<1x8x128xf32> to vector<8x128xf32>
    %2312 = vector.broadcast %2309 : vector<1x128xf32> to vector<8x128xf32>
    %2313 = arith.mulf %2312, %2311 : vector<8x128xf32>
    %2314 = arith.addf %2307, %2313 : vector<8x128xf32>
    %2315 = vector.extract_strided_slice %2290 {offsets = [0, 3, 0], sizes = [1, 1, 128], strides = [1, 1, 1]} : vector<8x8x128xf32> to vector<1x1x128xf32>
    %2316 = vector.shape_cast %2315 : vector<1x1x128xf32> to vector<1x128xf32>
    %2317 = vector.extract_strided_slice %2292 {offsets = [3, 0, 0], sizes = [1, 8, 128], strides = [1, 1, 1]} : vector<8x8x128xf32> to vector<1x8x128xf32>
    %2318 = vector.shape_cast %2317 : vector<1x8x128xf32> to vector<8x128xf32>
    %2319 = vector.broadcast %2316 : vector<1x128xf32> to vector<8x128xf32>
    %2320 = arith.mulf %2319, %2318 : vector<8x128xf32>
    %2321 = arith.addf %2314, %2320 : vector<8x128xf32>
    %2322 = vector.extract_strided_slice %2290 {offsets = [0, 4, 0], sizes = [1, 1, 128], strides = [1, 1, 1]} : vector<8x8x128xf32> to vector<1x1x128xf32>
    %2323 = vector.shape_cast %2322 : vector<1x1x128xf32> to vector<1x128xf32>
    %2324 = vector.extract_strided_slice %2292 {offsets = [4, 0, 0], sizes = [1, 8, 128], strides = [1, 1, 1]} : vector<8x8x128xf32> to vector<1x8x128xf32>
    %2325 = vector.shape_cast %2324 : vector<1x8x128xf32> to vector<8x128xf32>
    %2326 = vector.broadcast %2323 : vector<1x128xf32> to vector<8x128xf32>
    %2327 = arith.mulf %2326, %2325 : vector<8x128xf32>
    %2328 = arith.addf %2321, %2327 : vector<8x128xf32>
    %2329 = vector.extract_strided_slice %2290 {offsets = [0, 5, 0], sizes = [1, 1, 128], strides = [1, 1, 1]} : vector<8x8x128xf32> to vector<1x1x128xf32>
    %2330 = vector.shape_cast %2329 : vector<1x1x128xf32> to vector<1x128xf32>
    %2331 = vector.extract_strided_slice %2292 {offsets = [5, 0, 0], sizes = [1, 8, 128], strides = [1, 1, 1]} : vector<8x8x128xf32> to vector<1x8x128xf32>
    %2332 = vector.shape_cast %2331 : vector<1x8x128xf32> to vector<8x128xf32>
    %2333 = vector.broadcast %2330 : vector<1x128xf32> to vector<8x128xf32>
    %2334 = arith.mulf %2333, %2332 : vector<8x128xf32>
    %2335 = arith.addf %2328, %2334 : vector<8x128xf32>
    %2336 = vector.extract_strided_slice %2290 {offsets = [0, 6, 0], sizes = [1, 1, 128], strides = [1, 1, 1]} : vector<8x8x128xf32> to vector<1x1x128xf32>
    %2337 = vector.shape_cast %2336 : vector<1x1x128xf32> to vector<1x128xf32>
    %2338 = vector.extract_strided_slice %2292 {offsets = [6, 0, 0], sizes = [1, 8, 128], strides = [1, 1, 1]} : vector<8x8x128xf32> to vector<1x8x128xf32>
    %2339 = vector.shape_cast %2338 : vector<1x8x128xf32> to vector<8x128xf32>
    %2340 = vector.broadcast %2337 : vector<1x128xf32> to vector<8x128xf32>
    %2341 = arith.mulf %2340, %2339 : vector<8x128xf32>
    %2342 = arith.addf %2335, %2341 : vector<8x128xf32>
    %2343 = vector.extract_strided_slice %2290 {offsets = [0, 7, 0], sizes = [1, 1, 128], strides = [1, 1, 1]} : vector<8x8x128xf32> to vector<1x1x128xf32>
    %2344 = vector.shape_cast %2343 : vector<1x1x128xf32> to vector<1x128xf32>
    %2345 = vector.extract_strided_slice %2292 {offsets = [7, 0, 0], sizes = [1, 8, 128], strides = [1, 1, 1]} : vector<8x8x128xf32> to vector<1x8x128xf32>
    %2346 = vector.shape_cast %2345 : vector<1x8x128xf32> to vector<8x128xf32>
    %2347 = vector.broadcast %2344 : vector<1x128xf32> to vector<8x128xf32>
    %2348 = arith.mulf %2347, %2346 : vector<8x128xf32>
    %2349 = arith.addf %2342, %2348 : vector<8x128xf32>
    %2350 = vector.extract_strided_slice %2294 {offsets = [0, 0, 0], sizes = [1, 1, 128], strides = [1, 1, 1]} : vector<8x8x128xf32> to vector<1x1x128xf32>
    %2351 = vector.shape_cast %2350 : vector<1x1x128xf32> to vector<1x128xf32>
    %2352 = vector.broadcast %2351 : vector<1x128xf32> to vector<8x128xf32>
    %2353 = arith.mulf %2352, %2349 : vector<8x128xf32>
    %2354 = vector.extract_strided_slice %2294 {offsets = [1, 0, 0], sizes = [1, 1, 128], strides = [1, 1, 1]} : vector<8x8x128xf32> to vector<1x1x128xf32>
    %2355 = vector.shape_cast %2354 : vector<1x1x128xf32> to vector<1x128xf32>
    %2356 = vector.broadcast %2355 : vector<1x128xf32> to vector<8x128xf32>
    %2357 = arith.mulf %2356, %2349 : vector<8x128xf32>
    %2358 = vector.extract_strided_slice %2294 {offsets = [2, 0, 0], sizes = [1, 1, 128], strides = [1, 1, 1]} : vector<8x8x128xf32> to vector<1x1x128xf32>
    %2359 = vector.shape_cast %2358 : vector<1x1x128xf32> to vector<1x128xf32>
    %2360 = vector.broadcast %2359 : vector<1x128xf32> to vector<8x128xf32>
    %2361 = arith.mulf %2360, %2349 : vector<8x128xf32>
    %2362 = vector.extract_strided_slice %2294 {offsets = [3, 0, 0], sizes = [1, 1, 128], strides = [1, 1, 1]} : vector<8x8x128xf32> to vector<1x1x128xf32>
    %2363 = vector.shape_cast %2362 : vector<1x1x128xf32> to vector<1x128xf32>
    %2364 = vector.broadcast %2363 : vector<1x128xf32> to vector<8x128xf32>
    %2365 = arith.mulf %2364, %2349 : vector<8x128xf32>
    %2366 = vector.extract_strided_slice %2294 {offsets = [4, 0, 0], sizes = [1, 1, 128], strides = [1, 1, 1]} : vector<8x8x128xf32> to vector<1x1x128xf32>
    %2367 = vector.shape_cast %2366 : vector<1x1x128xf32> to vector<1x128xf32>
    %2368 = vector.broadcast %2367 : vector<1x128xf32> to vector<8x128xf32>
    %2369 = arith.mulf %2368, %2349 : vector<8x128xf32>
    %2370 = vector.extract_strided_slice %2294 {offsets = [5, 0, 0], sizes = [1, 1, 128], strides = [1, 1, 1]} : vector<8x8x128xf32> to vector<1x1x128xf32>
    %2371 = vector.shape_cast %2370 : vector<1x1x128xf32> to vector<1x128xf32>
    %2372 = vector.broadcast %2371 : vector<1x128xf32> to vector<8x128xf32>
    %2373 = arith.mulf %2372, %2349 : vector<8x128xf32>
    %2374 = vector.extract_strided_slice %2294 {offsets = [6, 0, 0], sizes = [1, 1, 128], strides = [1, 1, 1]} : vector<8x8x128xf32> to vector<1x1x128xf32>
    %2375 = vector.shape_cast %2374 : vector<1x1x128xf32> to vector<1x128xf32>
    %2376 = vector.broadcast %2375 : vector<1x128xf32> to vector<8x128xf32>
    %2377 = arith.mulf %2376, %2349 : vector<8x128xf32>
    %2378 = vector.extract_strided_slice %2294 {offsets = [7, 0, 0], sizes = [1, 1, 128], strides = [1, 1, 1]} : vector<8x8x128xf32> to vector<1x1x128xf32>
    %2379 = vector.shape_cast %2378 : vector<1x1x128xf32> to vector<1x128xf32>
    %2380 = vector.broadcast %2379 : vector<1x128xf32> to vector<8x128xf32>
    %2381 = arith.mulf %2380, %2349 : vector<8x128xf32>
    %2382 = vector.extract_strided_slice %2290 {offsets = [1, 0, 0], sizes = [1, 1, 128], strides = [1, 1, 1]} : vector<8x8x128xf32> to vector<1x1x128xf32>
    %2383 = vector.shape_cast %2382 : vector<1x1x128xf32> to vector<1x128xf32>
    %2384 = vector.extract_strided_slice %2292 {offsets = [0, 0, 0], sizes = [1, 8, 128], strides = [1, 1, 1]} : vector<8x8x128xf32> to vector<1x8x128xf32>
    %2385 = vector.shape_cast %2384 : vector<1x8x128xf32> to vector<8x128xf32>
    %2386 = vector.broadcast %2383 : vector<1x128xf32> to vector<8x128xf32>
    %2387 = arith.mulf %2386, %2385 : vector<8x128xf32>
    %2388 = vector.extract_strided_slice %2290 {offsets = [1, 1, 0], sizes = [1, 1, 128], strides = [1, 1, 1]} : vector<8x8x128xf32> to vector<1x1x128xf32>
    %2389 = vector.shape_cast %2388 : vector<1x1x128xf32> to vector<1x128xf32>
    %2390 = vector.extract_strided_slice %2292 {offsets = [1, 0, 0], sizes = [1, 8, 128], strides = [1, 1, 1]} : vector<8x8x128xf32> to vector<1x8x128xf32>
    %2391 = vector.shape_cast %2390 : vector<1x8x128xf32> to vector<8x128xf32>
    %2392 = vector.broadcast %2389 : vector<1x128xf32> to vector<8x128xf32>
    %2393 = arith.mulf %2392, %2391 : vector<8x128xf32>
    %2394 = arith.addf %2387, %2393 : vector<8x128xf32>
    %2395 = vector.extract_strided_slice %2290 {offsets = [1, 2, 0], sizes = [1, 1, 128], strides = [1, 1, 1]} : vector<8x8x128xf32> to vector<1x1x128xf32>
    %2396 = vector.shape_cast %2395 : vector<1x1x128xf32> to vector<1x128xf32>
    %2397 = vector.extract_strided_slice %2292 {offsets = [2, 0, 0], sizes = [1, 8, 128], strides = [1, 1, 1]} : vector<8x8x128xf32> to vector<1x8x128xf32>
    %2398 = vector.shape_cast %2397 : vector<1x8x128xf32> to vector<8x128xf32>
    %2399 = vector.broadcast %2396 : vector<1x128xf32> to vector<8x128xf32>
    %2400 = arith.mulf %2399, %2398 : vector<8x128xf32>
    %2401 = arith.addf %2394, %2400 : vector<8x128xf32>
    %2402 = vector.extract_strided_slice %2290 {offsets = [1, 3, 0], sizes = [1, 1, 128], strides = [1, 1, 1]} : vector<8x8x128xf32> to vector<1x1x128xf32>
    %2403 = vector.shape_cast %2402 : vector<1x1x128xf32> to vector<1x128xf32>
    %2404 = vector.extract_strided_slice %2292 {offsets = [3, 0, 0], sizes = [1, 8, 128], strides = [1, 1, 1]} : vector<8x8x128xf32> to vector<1x8x128xf32>
    %2405 = vector.shape_cast %2404 : vector<1x8x128xf32> to vector<8x128xf32>
    %2406 = vector.broadcast %2403 : vector<1x128xf32> to vector<8x128xf32>
    %2407 = arith.mulf %2406, %2405 : vector<8x128xf32>
    %2408 = arith.addf %2401, %2407 : vector<8x128xf32>
    %2409 = vector.extract_strided_slice %2290 {offsets = [1, 4, 0], sizes = [1, 1, 128], strides = [1, 1, 1]} : vector<8x8x128xf32> to vector<1x1x128xf32>
    %2410 = vector.shape_cast %2409 : vector<1x1x128xf32> to vector<1x128xf32>
    %2411 = vector.extract_strided_slice %2292 {offsets = [4, 0, 0], sizes = [1, 8, 128], strides = [1, 1, 1]} : vector<8x8x128xf32> to vector<1x8x128xf32>
    %2412 = vector.shape_cast %2411 : vector<1x8x128xf32> to vector<8x128xf32>
    %2413 = vector.broadcast %2410 : vector<1x128xf32> to vector<8x128xf32>
    %2414 = arith.mulf %2413, %2412 : vector<8x128xf32>
    %2415 = arith.addf %2408, %2414 : vector<8x128xf32>
    %2416 = vector.extract_strided_slice %2290 {offsets = [1, 5, 0], sizes = [1, 1, 128], strides = [1, 1, 1]} : vector<8x8x128xf32> to vector<1x1x128xf32>
    %2417 = vector.shape_cast %2416 : vector<1x1x128xf32> to vector<1x128xf32>
    %2418 = vector.extract_strided_slice %2292 {offsets = [5, 0, 0], sizes = [1, 8, 128], strides = [1, 1, 1]} : vector<8x8x128xf32> to vector<1x8x128xf32>
    %2419 = vector.shape_cast %2418 : vector<1x8x128xf32> to vector<8x128xf32>
    %2420 = vector.broadcast %2417 : vector<1x128xf32> to vector<8x128xf32>
    %2421 = arith.mulf %2420, %2419 : vector<8x128xf32>
    %2422 = arith.addf %2415, %2421 : vector<8x128xf32>
    %2423 = vector.extract_strided_slice %2290 {offsets = [1, 6, 0], sizes = [1, 1, 128], strides = [1, 1, 1]} : vector<8x8x128xf32> to vector<1x1x128xf32>
    %2424 = vector.shape_cast %2423 : vector<1x1x128xf32> to vector<1x128xf32>
    %2425 = vector.extract_strided_slice %2292 {offsets = [6, 0, 0], sizes = [1, 8, 128], strides = [1, 1, 1]} : vector<8x8x128xf32> to vector<1x8x128xf32>
    %2426 = vector.shape_cast %2425 : vector<1x8x128xf32> to vector<8x128xf32>
    %2427 = vector.broadcast %2424 : vector<1x128xf32> to vector<8x128xf32>
    %2428 = arith.mulf %2427, %2426 : vector<8x128xf32>
    %2429 = arith.addf %2422, %2428 : vector<8x128xf32>
    %2430 = vector.extract_strided_slice %2290 {offsets = [1, 7, 0], sizes = [1, 1, 128], strides = [1, 1, 1]} : vector<8x8x128xf32> to vector<1x1x128xf32>
    %2431 = vector.shape_cast %2430 : vector<1x1x128xf32> to vector<1x128xf32>
    %2432 = vector.extract_strided_slice %2292 {offsets = [7, 0, 0], sizes = [1, 8, 128], strides = [1, 1, 1]} : vector<8x8x128xf32> to vector<1x8x128xf32>
    %2433 = vector.shape_cast %2432 : vector<1x8x128xf32> to vector<8x128xf32>
    %2434 = vector.broadcast %2431 : vector<1x128xf32> to vector<8x128xf32>
    %2435 = arith.mulf %2434, %2433 : vector<8x128xf32>
    %2436 = arith.addf %2429, %2435 : vector<8x128xf32>
    %2437 = vector.extract_strided_slice %2294 {offsets = [0, 1, 0], sizes = [1, 1, 128], strides = [1, 1, 1]} : vector<8x8x128xf32> to vector<1x1x128xf32>
    %2438 = vector.shape_cast %2437 : vector<1x1x128xf32> to vector<1x128xf32>
    %2439 = vector.broadcast %2438 : vector<1x128xf32> to vector<8x128xf32>
    %2440 = arith.mulf %2439, %2436 : vector<8x128xf32>
    %2441 = arith.addf %2353, %2440 : vector<8x128xf32>
    %2442 = vector.extract_strided_slice %2294 {offsets = [1, 1, 0], sizes = [1, 1, 128], strides = [1, 1, 1]} : vector<8x8x128xf32> to vector<1x1x128xf32>
    %2443 = vector.shape_cast %2442 : vector<1x1x128xf32> to vector<1x128xf32>
    %2444 = vector.broadcast %2443 : vector<1x128xf32> to vector<8x128xf32>
    %2445 = arith.mulf %2444, %2436 : vector<8x128xf32>
    %2446 = arith.addf %2357, %2445 : vector<8x128xf32>
    %2447 = vector.extract_strided_slice %2294 {offsets = [2, 1, 0], sizes = [1, 1, 128], strides = [1, 1, 1]} : vector<8x8x128xf32> to vector<1x1x128xf32>
    %2448 = vector.shape_cast %2447 : vector<1x1x128xf32> to vector<1x128xf32>
    %2449 = vector.broadcast %2448 : vector<1x128xf32> to vector<8x128xf32>
    %2450 = arith.mulf %2449, %2436 : vector<8x128xf32>
    %2451 = arith.addf %2361, %2450 : vector<8x128xf32>
    %2452 = vector.extract_strided_slice %2294 {offsets = [3, 1, 0], sizes = [1, 1, 128], strides = [1, 1, 1]} : vector<8x8x128xf32> to vector<1x1x128xf32>
    %2453 = vector.shape_cast %2452 : vector<1x1x128xf32> to vector<1x128xf32>
    %2454 = vector.broadcast %2453 : vector<1x128xf32> to vector<8x128xf32>
    %2455 = arith.mulf %2454, %2436 : vector<8x128xf32>
    %2456 = arith.addf %2365, %2455 : vector<8x128xf32>
    %2457 = vector.extract_strided_slice %2294 {offsets = [4, 1, 0], sizes = [1, 1, 128], strides = [1, 1, 1]} : vector<8x8x128xf32> to vector<1x1x128xf32>
    %2458 = vector.shape_cast %2457 : vector<1x1x128xf32> to vector<1x128xf32>
    %2459 = vector.broadcast %2458 : vector<1x128xf32> to vector<8x128xf32>
    %2460 = arith.mulf %2459, %2436 : vector<8x128xf32>
    %2461 = arith.addf %2369, %2460 : vector<8x128xf32>
    %2462 = vector.extract_strided_slice %2294 {offsets = [5, 1, 0], sizes = [1, 1, 128], strides = [1, 1, 1]} : vector<8x8x128xf32> to vector<1x1x128xf32>
    %2463 = vector.shape_cast %2462 : vector<1x1x128xf32> to vector<1x128xf32>
    %2464 = vector.broadcast %2463 : vector<1x128xf32> to vector<8x128xf32>
    %2465 = arith.mulf %2464, %2436 : vector<8x128xf32>
    %2466 = arith.addf %2373, %2465 : vector<8x128xf32>
    %2467 = vector.extract_strided_slice %2294 {offsets = [6, 1, 0], sizes = [1, 1, 128], strides = [1, 1, 1]} : vector<8x8x128xf32> to vector<1x1x128xf32>
    %2468 = vector.shape_cast %2467 : vector<1x1x128xf32> to vector<1x128xf32>
    %2469 = vector.broadcast %2468 : vector<1x128xf32> to vector<8x128xf32>
    %2470 = arith.mulf %2469, %2436 : vector<8x128xf32>
    %2471 = arith.addf %2377, %2470 : vector<8x128xf32>
    %2472 = vector.extract_strided_slice %2294 {offsets = [7, 1, 0], sizes = [1, 1, 128], strides = [1, 1, 1]} : vector<8x8x128xf32> to vector<1x1x128xf32>
    %2473 = vector.shape_cast %2472 : vector<1x1x128xf32> to vector<1x128xf32>
    %2474 = vector.broadcast %2473 : vector<1x128xf32> to vector<8x128xf32>
    %2475 = arith.mulf %2474, %2436 : vector<8x128xf32>
    %2476 = arith.addf %2381, %2475 : vector<8x128xf32>
    %2477 = vector.extract_strided_slice %2290 {offsets = [2, 0, 0], sizes = [1, 1, 128], strides = [1, 1, 1]} : vector<8x8x128xf32> to vector<1x1x128xf32>
    %2478 = vector.shape_cast %2477 : vector<1x1x128xf32> to vector<1x128xf32>
    %2479 = vector.extract_strided_slice %2292 {offsets = [0, 0, 0], sizes = [1, 8, 128], strides = [1, 1, 1]} : vector<8x8x128xf32> to vector<1x8x128xf32>
    %2480 = vector.shape_cast %2479 : vector<1x8x128xf32> to vector<8x128xf32>
    %2481 = vector.broadcast %2478 : vector<1x128xf32> to vector<8x128xf32>
    %2482 = arith.mulf %2481, %2480 : vector<8x128xf32>
    %2483 = vector.extract_strided_slice %2290 {offsets = [2, 1, 0], sizes = [1, 1, 128], strides = [1, 1, 1]} : vector<8x8x128xf32> to vector<1x1x128xf32>
    %2484 = vector.shape_cast %2483 : vector<1x1x128xf32> to vector<1x128xf32>
    %2485 = vector.extract_strided_slice %2292 {offsets = [1, 0, 0], sizes = [1, 8, 128], strides = [1, 1, 1]} : vector<8x8x128xf32> to vector<1x8x128xf32>
    %2486 = vector.shape_cast %2485 : vector<1x8x128xf32> to vector<8x128xf32>
    %2487 = vector.broadcast %2484 : vector<1x128xf32> to vector<8x128xf32>
    %2488 = arith.mulf %2487, %2486 : vector<8x128xf32>
    %2489 = arith.addf %2482, %2488 : vector<8x128xf32>
    %2490 = vector.extract_strided_slice %2290 {offsets = [2, 2, 0], sizes = [1, 1, 128], strides = [1, 1, 1]} : vector<8x8x128xf32> to vector<1x1x128xf32>
    %2491 = vector.shape_cast %2490 : vector<1x1x128xf32> to vector<1x128xf32>
    %2492 = vector.extract_strided_slice %2292 {offsets = [2, 0, 0], sizes = [1, 8, 128], strides = [1, 1, 1]} : vector<8x8x128xf32> to vector<1x8x128xf32>
    %2493 = vector.shape_cast %2492 : vector<1x8x128xf32> to vector<8x128xf32>
    %2494 = vector.broadcast %2491 : vector<1x128xf32> to vector<8x128xf32>
    %2495 = arith.mulf %2494, %2493 : vector<8x128xf32>
    %2496 = arith.addf %2489, %2495 : vector<8x128xf32>
    %2497 = vector.extract_strided_slice %2290 {offsets = [2, 3, 0], sizes = [1, 1, 128], strides = [1, 1, 1]} : vector<8x8x128xf32> to vector<1x1x128xf32>
    %2498 = vector.shape_cast %2497 : vector<1x1x128xf32> to vector<1x128xf32>
    %2499 = vector.extract_strided_slice %2292 {offsets = [3, 0, 0], sizes = [1, 8, 128], strides = [1, 1, 1]} : vector<8x8x128xf32> to vector<1x8x128xf32>
    %2500 = vector.shape_cast %2499 : vector<1x8x128xf32> to vector<8x128xf32>
    %2501 = vector.broadcast %2498 : vector<1x128xf32> to vector<8x128xf32>
    %2502 = arith.mulf %2501, %2500 : vector<8x128xf32>
    %2503 = arith.addf %2496, %2502 : vector<8x128xf32>
    %2504 = vector.extract_strided_slice %2290 {offsets = [2, 4, 0], sizes = [1, 1, 128], strides = [1, 1, 1]} : vector<8x8x128xf32> to vector<1x1x128xf32>
    %2505 = vector.shape_cast %2504 : vector<1x1x128xf32> to vector<1x128xf32>
    %2506 = vector.extract_strided_slice %2292 {offsets = [4, 0, 0], sizes = [1, 8, 128], strides = [1, 1, 1]} : vector<8x8x128xf32> to vector<1x8x128xf32>
    %2507 = vector.shape_cast %2506 : vector<1x8x128xf32> to vector<8x128xf32>
    %2508 = vector.broadcast %2505 : vector<1x128xf32> to vector<8x128xf32>
    %2509 = arith.mulf %2508, %2507 : vector<8x128xf32>
    %2510 = arith.addf %2503, %2509 : vector<8x128xf32>
    %2511 = vector.extract_strided_slice %2290 {offsets = [2, 5, 0], sizes = [1, 1, 128], strides = [1, 1, 1]} : vector<8x8x128xf32> to vector<1x1x128xf32>
    %2512 = vector.shape_cast %2511 : vector<1x1x128xf32> to vector<1x128xf32>
    %2513 = vector.extract_strided_slice %2292 {offsets = [5, 0, 0], sizes = [1, 8, 128], strides = [1, 1, 1]} : vector<8x8x128xf32> to vector<1x8x128xf32>
    %2514 = vector.shape_cast %2513 : vector<1x8x128xf32> to vector<8x128xf32>
    %2515 = vector.broadcast %2512 : vector<1x128xf32> to vector<8x128xf32>
    %2516 = arith.mulf %2515, %2514 : vector<8x128xf32>
    %2517 = arith.addf %2510, %2516 : vector<8x128xf32>
    %2518 = vector.extract_strided_slice %2290 {offsets = [2, 6, 0], sizes = [1, 1, 128], strides = [1, 1, 1]} : vector<8x8x128xf32> to vector<1x1x128xf32>
    %2519 = vector.shape_cast %2518 : vector<1x1x128xf32> to vector<1x128xf32>
    %2520 = vector.extract_strided_slice %2292 {offsets = [6, 0, 0], sizes = [1, 8, 128], strides = [1, 1, 1]} : vector<8x8x128xf32> to vector<1x8x128xf32>
    %2521 = vector.shape_cast %2520 : vector<1x8x128xf32> to vector<8x128xf32>
    %2522 = vector.broadcast %2519 : vector<1x128xf32> to vector<8x128xf32>
    %2523 = arith.mulf %2522, %2521 : vector<8x128xf32>
    %2524 = arith.addf %2517, %2523 : vector<8x128xf32>
    %2525 = vector.extract_strided_slice %2290 {offsets = [2, 7, 0], sizes = [1, 1, 128], strides = [1, 1, 1]} : vector<8x8x128xf32> to vector<1x1x128xf32>
    %2526 = vector.shape_cast %2525 : vector<1x1x128xf32> to vector<1x128xf32>
    %2527 = vector.extract_strided_slice %2292 {offsets = [7, 0, 0], sizes = [1, 8, 128], strides = [1, 1, 1]} : vector<8x8x128xf32> to vector<1x8x128xf32>
    %2528 = vector.shape_cast %2527 : vector<1x8x128xf32> to vector<8x128xf32>
    %2529 = vector.broadcast %2526 : vector<1x128xf32> to vector<8x128xf32>
    %2530 = arith.mulf %2529, %2528 : vector<8x128xf32>
    %2531 = arith.addf %2524, %2530 : vector<8x128xf32>
    %2532 = vector.extract_strided_slice %2294 {offsets = [0, 2, 0], sizes = [1, 1, 128], strides = [1, 1, 1]} : vector<8x8x128xf32> to vector<1x1x128xf32>
    %2533 = vector.shape_cast %2532 : vector<1x1x128xf32> to vector<1x128xf32>
    %2534 = vector.broadcast %2533 : vector<1x128xf32> to vector<8x128xf32>
    %2535 = arith.mulf %2534, %2531 : vector<8x128xf32>
    %2536 = arith.addf %2441, %2535 : vector<8x128xf32>
    %2537 = vector.extract_strided_slice %2294 {offsets = [1, 2, 0], sizes = [1, 1, 128], strides = [1, 1, 1]} : vector<8x8x128xf32> to vector<1x1x128xf32>
    %2538 = vector.shape_cast %2537 : vector<1x1x128xf32> to vector<1x128xf32>
    %2539 = vector.broadcast %2538 : vector<1x128xf32> to vector<8x128xf32>
    %2540 = arith.mulf %2539, %2531 : vector<8x128xf32>
    %2541 = arith.addf %2446, %2540 : vector<8x128xf32>
    %2542 = vector.extract_strided_slice %2294 {offsets = [2, 2, 0], sizes = [1, 1, 128], strides = [1, 1, 1]} : vector<8x8x128xf32> to vector<1x1x128xf32>
    %2543 = vector.shape_cast %2542 : vector<1x1x128xf32> to vector<1x128xf32>
    %2544 = vector.broadcast %2543 : vector<1x128xf32> to vector<8x128xf32>
    %2545 = arith.mulf %2544, %2531 : vector<8x128xf32>
    %2546 = arith.addf %2451, %2545 : vector<8x128xf32>
    %2547 = vector.extract_strided_slice %2294 {offsets = [3, 2, 0], sizes = [1, 1, 128], strides = [1, 1, 1]} : vector<8x8x128xf32> to vector<1x1x128xf32>
    %2548 = vector.shape_cast %2547 : vector<1x1x128xf32> to vector<1x128xf32>
    %2549 = vector.broadcast %2548 : vector<1x128xf32> to vector<8x128xf32>
    %2550 = arith.mulf %2549, %2531 : vector<8x128xf32>
    %2551 = arith.addf %2456, %2550 : vector<8x128xf32>
    %2552 = vector.extract_strided_slice %2294 {offsets = [4, 2, 0], sizes = [1, 1, 128], strides = [1, 1, 1]} : vector<8x8x128xf32> to vector<1x1x128xf32>
    %2553 = vector.shape_cast %2552 : vector<1x1x128xf32> to vector<1x128xf32>
    %2554 = vector.broadcast %2553 : vector<1x128xf32> to vector<8x128xf32>
    %2555 = arith.mulf %2554, %2531 : vector<8x128xf32>
    %2556 = arith.addf %2461, %2555 : vector<8x128xf32>
    %2557 = vector.extract_strided_slice %2294 {offsets = [5, 2, 0], sizes = [1, 1, 128], strides = [1, 1, 1]} : vector<8x8x128xf32> to vector<1x1x128xf32>
    %2558 = vector.shape_cast %2557 : vector<1x1x128xf32> to vector<1x128xf32>
    %2559 = vector.broadcast %2558 : vector<1x128xf32> to vector<8x128xf32>
    %2560 = arith.mulf %2559, %2531 : vector<8x128xf32>
    %2561 = arith.addf %2466, %2560 : vector<8x128xf32>
    %2562 = vector.extract_strided_slice %2294 {offsets = [6, 2, 0], sizes = [1, 1, 128], strides = [1, 1, 1]} : vector<8x8x128xf32> to vector<1x1x128xf32>
    %2563 = vector.shape_cast %2562 : vector<1x1x128xf32> to vector<1x128xf32>
    %2564 = vector.broadcast %2563 : vector<1x128xf32> to vector<8x128xf32>
    %2565 = arith.mulf %2564, %2531 : vector<8x128xf32>
    %2566 = arith.addf %2471, %2565 : vector<8x128xf32>
    %2567 = vector.extract_strided_slice %2294 {offsets = [7, 2, 0], sizes = [1, 1, 128], strides = [1, 1, 1]} : vector<8x8x128xf32> to vector<1x1x128xf32>
    %2568 = vector.shape_cast %2567 : vector<1x1x128xf32> to vector<1x128xf32>
    %2569 = vector.broadcast %2568 : vector<1x128xf32> to vector<8x128xf32>
    %2570 = arith.mulf %2569, %2531 : vector<8x128xf32>
    %2571 = arith.addf %2476, %2570 : vector<8x128xf32>
    %2572 = vector.extract_strided_slice %2290 {offsets = [3, 0, 0], sizes = [1, 1, 128], strides = [1, 1, 1]} : vector<8x8x128xf32> to vector<1x1x128xf32>
    %2573 = vector.shape_cast %2572 : vector<1x1x128xf32> to vector<1x128xf32>
    %2574 = vector.extract_strided_slice %2292 {offsets = [0, 0, 0], sizes = [1, 8, 128], strides = [1, 1, 1]} : vector<8x8x128xf32> to vector<1x8x128xf32>
    %2575 = vector.shape_cast %2574 : vector<1x8x128xf32> to vector<8x128xf32>
    %2576 = vector.broadcast %2573 : vector<1x128xf32> to vector<8x128xf32>
    %2577 = arith.mulf %2576, %2575 : vector<8x128xf32>
    %2578 = vector.extract_strided_slice %2290 {offsets = [3, 1, 0], sizes = [1, 1, 128], strides = [1, 1, 1]} : vector<8x8x128xf32> to vector<1x1x128xf32>
    %2579 = vector.shape_cast %2578 : vector<1x1x128xf32> to vector<1x128xf32>
    %2580 = vector.extract_strided_slice %2292 {offsets = [1, 0, 0], sizes = [1, 8, 128], strides = [1, 1, 1]} : vector<8x8x128xf32> to vector<1x8x128xf32>
    %2581 = vector.shape_cast %2580 : vector<1x8x128xf32> to vector<8x128xf32>
    %2582 = vector.broadcast %2579 : vector<1x128xf32> to vector<8x128xf32>
    %2583 = arith.mulf %2582, %2581 : vector<8x128xf32>
    %2584 = arith.addf %2577, %2583 : vector<8x128xf32>
    %2585 = vector.extract_strided_slice %2290 {offsets = [3, 2, 0], sizes = [1, 1, 128], strides = [1, 1, 1]} : vector<8x8x128xf32> to vector<1x1x128xf32>
    %2586 = vector.shape_cast %2585 : vector<1x1x128xf32> to vector<1x128xf32>
    %2587 = vector.extract_strided_slice %2292 {offsets = [2, 0, 0], sizes = [1, 8, 128], strides = [1, 1, 1]} : vector<8x8x128xf32> to vector<1x8x128xf32>
    %2588 = vector.shape_cast %2587 : vector<1x8x128xf32> to vector<8x128xf32>
    %2589 = vector.broadcast %2586 : vector<1x128xf32> to vector<8x128xf32>
    %2590 = arith.mulf %2589, %2588 : vector<8x128xf32>
    %2591 = arith.addf %2584, %2590 : vector<8x128xf32>
    %2592 = vector.extract_strided_slice %2290 {offsets = [3, 3, 0], sizes = [1, 1, 128], strides = [1, 1, 1]} : vector<8x8x128xf32> to vector<1x1x128xf32>
    %2593 = vector.shape_cast %2592 : vector<1x1x128xf32> to vector<1x128xf32>
    %2594 = vector.extract_strided_slice %2292 {offsets = [3, 0, 0], sizes = [1, 8, 128], strides = [1, 1, 1]} : vector<8x8x128xf32> to vector<1x8x128xf32>
    %2595 = vector.shape_cast %2594 : vector<1x8x128xf32> to vector<8x128xf32>
    %2596 = vector.broadcast %2593 : vector<1x128xf32> to vector<8x128xf32>
    %2597 = arith.mulf %2596, %2595 : vector<8x128xf32>
    %2598 = arith.addf %2591, %2597 : vector<8x128xf32>
    %2599 = vector.extract_strided_slice %2290 {offsets = [3, 4, 0], sizes = [1, 1, 128], strides = [1, 1, 1]} : vector<8x8x128xf32> to vector<1x1x128xf32>
    %2600 = vector.shape_cast %2599 : vector<1x1x128xf32> to vector<1x128xf32>
    %2601 = vector.extract_strided_slice %2292 {offsets = [4, 0, 0], sizes = [1, 8, 128], strides = [1, 1, 1]} : vector<8x8x128xf32> to vector<1x8x128xf32>
    %2602 = vector.shape_cast %2601 : vector<1x8x128xf32> to vector<8x128xf32>
    %2603 = vector.broadcast %2600 : vector<1x128xf32> to vector<8x128xf32>
    %2604 = arith.mulf %2603, %2602 : vector<8x128xf32>
    %2605 = arith.addf %2598, %2604 : vector<8x128xf32>
    %2606 = vector.extract_strided_slice %2290 {offsets = [3, 5, 0], sizes = [1, 1, 128], strides = [1, 1, 1]} : vector<8x8x128xf32> to vector<1x1x128xf32>
    %2607 = vector.shape_cast %2606 : vector<1x1x128xf32> to vector<1x128xf32>
    %2608 = vector.extract_strided_slice %2292 {offsets = [5, 0, 0], sizes = [1, 8, 128], strides = [1, 1, 1]} : vector<8x8x128xf32> to vector<1x8x128xf32>
    %2609 = vector.shape_cast %2608 : vector<1x8x128xf32> to vector<8x128xf32>
    %2610 = vector.broadcast %2607 : vector<1x128xf32> to vector<8x128xf32>
    %2611 = arith.mulf %2610, %2609 : vector<8x128xf32>
    %2612 = arith.addf %2605, %2611 : vector<8x128xf32>
    %2613 = vector.extract_strided_slice %2290 {offsets = [3, 6, 0], sizes = [1, 1, 128], strides = [1, 1, 1]} : vector<8x8x128xf32> to vector<1x1x128xf32>
    %2614 = vector.shape_cast %2613 : vector<1x1x128xf32> to vector<1x128xf32>
    %2615 = vector.extract_strided_slice %2292 {offsets = [6, 0, 0], sizes = [1, 8, 128], strides = [1, 1, 1]} : vector<8x8x128xf32> to vector<1x8x128xf32>
    %2616 = vector.shape_cast %2615 : vector<1x8x128xf32> to vector<8x128xf32>
    %2617 = vector.broadcast %2614 : vector<1x128xf32> to vector<8x128xf32>
    %2618 = arith.mulf %2617, %2616 : vector<8x128xf32>
    %2619 = arith.addf %2612, %2618 : vector<8x128xf32>
    %2620 = vector.extract_strided_slice %2290 {offsets = [3, 7, 0], sizes = [1, 1, 128], strides = [1, 1, 1]} : vector<8x8x128xf32> to vector<1x1x128xf32>
    %2621 = vector.shape_cast %2620 : vector<1x1x128xf32> to vector<1x128xf32>
    %2622 = vector.extract_strided_slice %2292 {offsets = [7, 0, 0], sizes = [1, 8, 128], strides = [1, 1, 1]} : vector<8x8x128xf32> to vector<1x8x128xf32>
    %2623 = vector.shape_cast %2622 : vector<1x8x128xf32> to vector<8x128xf32>
    %2624 = vector.broadcast %2621 : vector<1x128xf32> to vector<8x128xf32>
    %2625 = arith.mulf %2624, %2623 : vector<8x128xf32>
    %2626 = arith.addf %2619, %2625 : vector<8x128xf32>
    %2627 = vector.extract_strided_slice %2294 {offsets = [0, 3, 0], sizes = [1, 1, 128], strides = [1, 1, 1]} : vector<8x8x128xf32> to vector<1x1x128xf32>
    %2628 = vector.shape_cast %2627 : vector<1x1x128xf32> to vector<1x128xf32>
    %2629 = vector.broadcast %2628 : vector<1x128xf32> to vector<8x128xf32>
    %2630 = arith.mulf %2629, %2626 : vector<8x128xf32>
    %2631 = arith.addf %2536, %2630 : vector<8x128xf32>
    %2632 = vector.extract_strided_slice %2294 {offsets = [1, 3, 0], sizes = [1, 1, 128], strides = [1, 1, 1]} : vector<8x8x128xf32> to vector<1x1x128xf32>
    %2633 = vector.shape_cast %2632 : vector<1x1x128xf32> to vector<1x128xf32>
    %2634 = vector.broadcast %2633 : vector<1x128xf32> to vector<8x128xf32>
    %2635 = arith.mulf %2634, %2626 : vector<8x128xf32>
    %2636 = arith.addf %2541, %2635 : vector<8x128xf32>
    %2637 = vector.extract_strided_slice %2294 {offsets = [2, 3, 0], sizes = [1, 1, 128], strides = [1, 1, 1]} : vector<8x8x128xf32> to vector<1x1x128xf32>
    %2638 = vector.shape_cast %2637 : vector<1x1x128xf32> to vector<1x128xf32>
    %2639 = vector.broadcast %2638 : vector<1x128xf32> to vector<8x128xf32>
    %2640 = arith.mulf %2639, %2626 : vector<8x128xf32>
    %2641 = arith.addf %2546, %2640 : vector<8x128xf32>
    %2642 = vector.extract_strided_slice %2294 {offsets = [3, 3, 0], sizes = [1, 1, 128], strides = [1, 1, 1]} : vector<8x8x128xf32> to vector<1x1x128xf32>
    %2643 = vector.shape_cast %2642 : vector<1x1x128xf32> to vector<1x128xf32>
    %2644 = vector.broadcast %2643 : vector<1x128xf32> to vector<8x128xf32>
    %2645 = arith.mulf %2644, %2626 : vector<8x128xf32>
    %2646 = arith.addf %2551, %2645 : vector<8x128xf32>
    %2647 = vector.extract_strided_slice %2294 {offsets = [4, 3, 0], sizes = [1, 1, 128], strides = [1, 1, 1]} : vector<8x8x128xf32> to vector<1x1x128xf32>
    %2648 = vector.shape_cast %2647 : vector<1x1x128xf32> to vector<1x128xf32>
    %2649 = vector.broadcast %2648 : vector<1x128xf32> to vector<8x128xf32>
    %2650 = arith.mulf %2649, %2626 : vector<8x128xf32>
    %2651 = arith.addf %2556, %2650 : vector<8x128xf32>
    %2652 = vector.extract_strided_slice %2294 {offsets = [5, 3, 0], sizes = [1, 1, 128], strides = [1, 1, 1]} : vector<8x8x128xf32> to vector<1x1x128xf32>
    %2653 = vector.shape_cast %2652 : vector<1x1x128xf32> to vector<1x128xf32>
    %2654 = vector.broadcast %2653 : vector<1x128xf32> to vector<8x128xf32>
    %2655 = arith.mulf %2654, %2626 : vector<8x128xf32>
    %2656 = arith.addf %2561, %2655 : vector<8x128xf32>
    %2657 = vector.extract_strided_slice %2294 {offsets = [6, 3, 0], sizes = [1, 1, 128], strides = [1, 1, 1]} : vector<8x8x128xf32> to vector<1x1x128xf32>
    %2658 = vector.shape_cast %2657 : vector<1x1x128xf32> to vector<1x128xf32>
    %2659 = vector.broadcast %2658 : vector<1x128xf32> to vector<8x128xf32>
    %2660 = arith.mulf %2659, %2626 : vector<8x128xf32>
    %2661 = arith.addf %2566, %2660 : vector<8x128xf32>
    %2662 = vector.extract_strided_slice %2294 {offsets = [7, 3, 0], sizes = [1, 1, 128], strides = [1, 1, 1]} : vector<8x8x128xf32> to vector<1x1x128xf32>
    %2663 = vector.shape_cast %2662 : vector<1x1x128xf32> to vector<1x128xf32>
    %2664 = vector.broadcast %2663 : vector<1x128xf32> to vector<8x128xf32>
    %2665 = arith.mulf %2664, %2626 : vector<8x128xf32>
    %2666 = arith.addf %2571, %2665 : vector<8x128xf32>
    %2667 = vector.extract_strided_slice %2290 {offsets = [4, 0, 0], sizes = [1, 1, 128], strides = [1, 1, 1]} : vector<8x8x128xf32> to vector<1x1x128xf32>
    %2668 = vector.shape_cast %2667 : vector<1x1x128xf32> to vector<1x128xf32>
    %2669 = vector.extract_strided_slice %2292 {offsets = [0, 0, 0], sizes = [1, 8, 128], strides = [1, 1, 1]} : vector<8x8x128xf32> to vector<1x8x128xf32>
    %2670 = vector.shape_cast %2669 : vector<1x8x128xf32> to vector<8x128xf32>
    %2671 = vector.broadcast %2668 : vector<1x128xf32> to vector<8x128xf32>
    %2672 = arith.mulf %2671, %2670 : vector<8x128xf32>
    %2673 = vector.extract_strided_slice %2290 {offsets = [4, 1, 0], sizes = [1, 1, 128], strides = [1, 1, 1]} : vector<8x8x128xf32> to vector<1x1x128xf32>
    %2674 = vector.shape_cast %2673 : vector<1x1x128xf32> to vector<1x128xf32>
    %2675 = vector.extract_strided_slice %2292 {offsets = [1, 0, 0], sizes = [1, 8, 128], strides = [1, 1, 1]} : vector<8x8x128xf32> to vector<1x8x128xf32>
    %2676 = vector.shape_cast %2675 : vector<1x8x128xf32> to vector<8x128xf32>
    %2677 = vector.broadcast %2674 : vector<1x128xf32> to vector<8x128xf32>
    %2678 = arith.mulf %2677, %2676 : vector<8x128xf32>
    %2679 = arith.addf %2672, %2678 : vector<8x128xf32>
    %2680 = vector.extract_strided_slice %2290 {offsets = [4, 2, 0], sizes = [1, 1, 128], strides = [1, 1, 1]} : vector<8x8x128xf32> to vector<1x1x128xf32>
    %2681 = vector.shape_cast %2680 : vector<1x1x128xf32> to vector<1x128xf32>
    %2682 = vector.extract_strided_slice %2292 {offsets = [2, 0, 0], sizes = [1, 8, 128], strides = [1, 1, 1]} : vector<8x8x128xf32> to vector<1x8x128xf32>
    %2683 = vector.shape_cast %2682 : vector<1x8x128xf32> to vector<8x128xf32>
    %2684 = vector.broadcast %2681 : vector<1x128xf32> to vector<8x128xf32>
    %2685 = arith.mulf %2684, %2683 : vector<8x128xf32>
    %2686 = arith.addf %2679, %2685 : vector<8x128xf32>
    %2687 = vector.extract_strided_slice %2290 {offsets = [4, 3, 0], sizes = [1, 1, 128], strides = [1, 1, 1]} : vector<8x8x128xf32> to vector<1x1x128xf32>
    %2688 = vector.shape_cast %2687 : vector<1x1x128xf32> to vector<1x128xf32>
    %2689 = vector.extract_strided_slice %2292 {offsets = [3, 0, 0], sizes = [1, 8, 128], strides = [1, 1, 1]} : vector<8x8x128xf32> to vector<1x8x128xf32>
    %2690 = vector.shape_cast %2689 : vector<1x8x128xf32> to vector<8x128xf32>
    %2691 = vector.broadcast %2688 : vector<1x128xf32> to vector<8x128xf32>
    %2692 = arith.mulf %2691, %2690 : vector<8x128xf32>
    %2693 = arith.addf %2686, %2692 : vector<8x128xf32>
    %2694 = vector.extract_strided_slice %2290 {offsets = [4, 4, 0], sizes = [1, 1, 128], strides = [1, 1, 1]} : vector<8x8x128xf32> to vector<1x1x128xf32>
    %2695 = vector.shape_cast %2694 : vector<1x1x128xf32> to vector<1x128xf32>
    %2696 = vector.extract_strided_slice %2292 {offsets = [4, 0, 0], sizes = [1, 8, 128], strides = [1, 1, 1]} : vector<8x8x128xf32> to vector<1x8x128xf32>
    %2697 = vector.shape_cast %2696 : vector<1x8x128xf32> to vector<8x128xf32>
    %2698 = vector.broadcast %2695 : vector<1x128xf32> to vector<8x128xf32>
    %2699 = arith.mulf %2698, %2697 : vector<8x128xf32>
    %2700 = arith.addf %2693, %2699 : vector<8x128xf32>
    %2701 = vector.extract_strided_slice %2290 {offsets = [4, 5, 0], sizes = [1, 1, 128], strides = [1, 1, 1]} : vector<8x8x128xf32> to vector<1x1x128xf32>
    %2702 = vector.shape_cast %2701 : vector<1x1x128xf32> to vector<1x128xf32>
    %2703 = vector.extract_strided_slice %2292 {offsets = [5, 0, 0], sizes = [1, 8, 128], strides = [1, 1, 1]} : vector<8x8x128xf32> to vector<1x8x128xf32>
    %2704 = vector.shape_cast %2703 : vector<1x8x128xf32> to vector<8x128xf32>
    %2705 = vector.broadcast %2702 : vector<1x128xf32> to vector<8x128xf32>
    %2706 = arith.mulf %2705, %2704 : vector<8x128xf32>
    %2707 = arith.addf %2700, %2706 : vector<8x128xf32>
    %2708 = vector.extract_strided_slice %2290 {offsets = [4, 6, 0], sizes = [1, 1, 128], strides = [1, 1, 1]} : vector<8x8x128xf32> to vector<1x1x128xf32>
    %2709 = vector.shape_cast %2708 : vector<1x1x128xf32> to vector<1x128xf32>
    %2710 = vector.extract_strided_slice %2292 {offsets = [6, 0, 0], sizes = [1, 8, 128], strides = [1, 1, 1]} : vector<8x8x128xf32> to vector<1x8x128xf32>
    %2711 = vector.shape_cast %2710 : vector<1x8x128xf32> to vector<8x128xf32>
    %2712 = vector.broadcast %2709 : vector<1x128xf32> to vector<8x128xf32>
    %2713 = arith.mulf %2712, %2711 : vector<8x128xf32>
    %2714 = arith.addf %2707, %2713 : vector<8x128xf32>
    %2715 = vector.extract_strided_slice %2290 {offsets = [4, 7, 0], sizes = [1, 1, 128], strides = [1, 1, 1]} : vector<8x8x128xf32> to vector<1x1x128xf32>
    %2716 = vector.shape_cast %2715 : vector<1x1x128xf32> to vector<1x128xf32>
    %2717 = vector.extract_strided_slice %2292 {offsets = [7, 0, 0], sizes = [1, 8, 128], strides = [1, 1, 1]} : vector<8x8x128xf32> to vector<1x8x128xf32>
    %2718 = vector.shape_cast %2717 : vector<1x8x128xf32> to vector<8x128xf32>
    %2719 = vector.broadcast %2716 : vector<1x128xf32> to vector<8x128xf32>
    %2720 = arith.mulf %2719, %2718 : vector<8x128xf32>
    %2721 = arith.addf %2714, %2720 : vector<8x128xf32>
    %2722 = vector.extract_strided_slice %2294 {offsets = [0, 4, 0], sizes = [1, 1, 128], strides = [1, 1, 1]} : vector<8x8x128xf32> to vector<1x1x128xf32>
    %2723 = vector.shape_cast %2722 : vector<1x1x128xf32> to vector<1x128xf32>
    %2724 = vector.broadcast %2723 : vector<1x128xf32> to vector<8x128xf32>
    %2725 = arith.mulf %2724, %2721 : vector<8x128xf32>
    %2726 = arith.addf %2631, %2725 : vector<8x128xf32>
    %2727 = vector.extract_strided_slice %2294 {offsets = [1, 4, 0], sizes = [1, 1, 128], strides = [1, 1, 1]} : vector<8x8x128xf32> to vector<1x1x128xf32>
    %2728 = vector.shape_cast %2727 : vector<1x1x128xf32> to vector<1x128xf32>
    %2729 = vector.broadcast %2728 : vector<1x128xf32> to vector<8x128xf32>
    %2730 = arith.mulf %2729, %2721 : vector<8x128xf32>
    %2731 = arith.addf %2636, %2730 : vector<8x128xf32>
    %2732 = vector.extract_strided_slice %2294 {offsets = [2, 4, 0], sizes = [1, 1, 128], strides = [1, 1, 1]} : vector<8x8x128xf32> to vector<1x1x128xf32>
    %2733 = vector.shape_cast %2732 : vector<1x1x128xf32> to vector<1x128xf32>
    %2734 = vector.broadcast %2733 : vector<1x128xf32> to vector<8x128xf32>
    %2735 = arith.mulf %2734, %2721 : vector<8x128xf32>
    %2736 = arith.addf %2641, %2735 : vector<8x128xf32>
    %2737 = vector.extract_strided_slice %2294 {offsets = [3, 4, 0], sizes = [1, 1, 128], strides = [1, 1, 1]} : vector<8x8x128xf32> to vector<1x1x128xf32>
    %2738 = vector.shape_cast %2737 : vector<1x1x128xf32> to vector<1x128xf32>
    %2739 = vector.broadcast %2738 : vector<1x128xf32> to vector<8x128xf32>
    %2740 = arith.mulf %2739, %2721 : vector<8x128xf32>
    %2741 = arith.addf %2646, %2740 : vector<8x128xf32>
    %2742 = vector.extract_strided_slice %2294 {offsets = [4, 4, 0], sizes = [1, 1, 128], strides = [1, 1, 1]} : vector<8x8x128xf32> to vector<1x1x128xf32>
    %2743 = vector.shape_cast %2742 : vector<1x1x128xf32> to vector<1x128xf32>
    %2744 = vector.broadcast %2743 : vector<1x128xf32> to vector<8x128xf32>
    %2745 = arith.mulf %2744, %2721 : vector<8x128xf32>
    %2746 = arith.addf %2651, %2745 : vector<8x128xf32>
    %2747 = vector.extract_strided_slice %2294 {offsets = [5, 4, 0], sizes = [1, 1, 128], strides = [1, 1, 1]} : vector<8x8x128xf32> to vector<1x1x128xf32>
    %2748 = vector.shape_cast %2747 : vector<1x1x128xf32> to vector<1x128xf32>
    %2749 = vector.broadcast %2748 : vector<1x128xf32> to vector<8x128xf32>
    %2750 = arith.mulf %2749, %2721 : vector<8x128xf32>
    %2751 = arith.addf %2656, %2750 : vector<8x128xf32>
    %2752 = vector.extract_strided_slice %2294 {offsets = [6, 4, 0], sizes = [1, 1, 128], strides = [1, 1, 1]} : vector<8x8x128xf32> to vector<1x1x128xf32>
    %2753 = vector.shape_cast %2752 : vector<1x1x128xf32> to vector<1x128xf32>
    %2754 = vector.broadcast %2753 : vector<1x128xf32> to vector<8x128xf32>
    %2755 = arith.mulf %2754, %2721 : vector<8x128xf32>
    %2756 = arith.addf %2661, %2755 : vector<8x128xf32>
    %2757 = vector.extract_strided_slice %2294 {offsets = [7, 4, 0], sizes = [1, 1, 128], strides = [1, 1, 1]} : vector<8x8x128xf32> to vector<1x1x128xf32>
    %2758 = vector.shape_cast %2757 : vector<1x1x128xf32> to vector<1x128xf32>
    %2759 = vector.broadcast %2758 : vector<1x128xf32> to vector<8x128xf32>
    %2760 = arith.mulf %2759, %2721 : vector<8x128xf32>
    %2761 = arith.addf %2666, %2760 : vector<8x128xf32>
    %2762 = vector.extract_strided_slice %2290 {offsets = [5, 0, 0], sizes = [1, 1, 128], strides = [1, 1, 1]} : vector<8x8x128xf32> to vector<1x1x128xf32>
    %2763 = vector.shape_cast %2762 : vector<1x1x128xf32> to vector<1x128xf32>
    %2764 = vector.extract_strided_slice %2292 {offsets = [0, 0, 0], sizes = [1, 8, 128], strides = [1, 1, 1]} : vector<8x8x128xf32> to vector<1x8x128xf32>
    %2765 = vector.shape_cast %2764 : vector<1x8x128xf32> to vector<8x128xf32>
    %2766 = vector.broadcast %2763 : vector<1x128xf32> to vector<8x128xf32>
    %2767 = arith.mulf %2766, %2765 : vector<8x128xf32>
    %2768 = vector.extract_strided_slice %2290 {offsets = [5, 1, 0], sizes = [1, 1, 128], strides = [1, 1, 1]} : vector<8x8x128xf32> to vector<1x1x128xf32>
    %2769 = vector.shape_cast %2768 : vector<1x1x128xf32> to vector<1x128xf32>
    %2770 = vector.extract_strided_slice %2292 {offsets = [1, 0, 0], sizes = [1, 8, 128], strides = [1, 1, 1]} : vector<8x8x128xf32> to vector<1x8x128xf32>
    %2771 = vector.shape_cast %2770 : vector<1x8x128xf32> to vector<8x128xf32>
    %2772 = vector.broadcast %2769 : vector<1x128xf32> to vector<8x128xf32>
    %2773 = arith.mulf %2772, %2771 : vector<8x128xf32>
    %2774 = arith.addf %2767, %2773 : vector<8x128xf32>
    %2775 = vector.extract_strided_slice %2290 {offsets = [5, 2, 0], sizes = [1, 1, 128], strides = [1, 1, 1]} : vector<8x8x128xf32> to vector<1x1x128xf32>
    %2776 = vector.shape_cast %2775 : vector<1x1x128xf32> to vector<1x128xf32>
    %2777 = vector.extract_strided_slice %2292 {offsets = [2, 0, 0], sizes = [1, 8, 128], strides = [1, 1, 1]} : vector<8x8x128xf32> to vector<1x8x128xf32>
    %2778 = vector.shape_cast %2777 : vector<1x8x128xf32> to vector<8x128xf32>
    %2779 = vector.broadcast %2776 : vector<1x128xf32> to vector<8x128xf32>
    %2780 = arith.mulf %2779, %2778 : vector<8x128xf32>
    %2781 = arith.addf %2774, %2780 : vector<8x128xf32>
    %2782 = vector.extract_strided_slice %2290 {offsets = [5, 3, 0], sizes = [1, 1, 128], strides = [1, 1, 1]} : vector<8x8x128xf32> to vector<1x1x128xf32>
    %2783 = vector.shape_cast %2782 : vector<1x1x128xf32> to vector<1x128xf32>
    %2784 = vector.extract_strided_slice %2292 {offsets = [3, 0, 0], sizes = [1, 8, 128], strides = [1, 1, 1]} : vector<8x8x128xf32> to vector<1x8x128xf32>
    %2785 = vector.shape_cast %2784 : vector<1x8x128xf32> to vector<8x128xf32>
    %2786 = vector.broadcast %2783 : vector<1x128xf32> to vector<8x128xf32>
    %2787 = arith.mulf %2786, %2785 : vector<8x128xf32>
    %2788 = arith.addf %2781, %2787 : vector<8x128xf32>
    %2789 = vector.extract_strided_slice %2290 {offsets = [5, 4, 0], sizes = [1, 1, 128], strides = [1, 1, 1]} : vector<8x8x128xf32> to vector<1x1x128xf32>
    %2790 = vector.shape_cast %2789 : vector<1x1x128xf32> to vector<1x128xf32>
    %2791 = vector.extract_strided_slice %2292 {offsets = [4, 0, 0], sizes = [1, 8, 128], strides = [1, 1, 1]} : vector<8x8x128xf32> to vector<1x8x128xf32>
    %2792 = vector.shape_cast %2791 : vector<1x8x128xf32> to vector<8x128xf32>
    %2793 = vector.broadcast %2790 : vector<1x128xf32> to vector<8x128xf32>
    %2794 = arith.mulf %2793, %2792 : vector<8x128xf32>
    %2795 = arith.addf %2788, %2794 : vector<8x128xf32>
    %2796 = vector.extract_strided_slice %2290 {offsets = [5, 5, 0], sizes = [1, 1, 128], strides = [1, 1, 1]} : vector<8x8x128xf32> to vector<1x1x128xf32>
    %2797 = vector.shape_cast %2796 : vector<1x1x128xf32> to vector<1x128xf32>
    %2798 = vector.extract_strided_slice %2292 {offsets = [5, 0, 0], sizes = [1, 8, 128], strides = [1, 1, 1]} : vector<8x8x128xf32> to vector<1x8x128xf32>
    %2799 = vector.shape_cast %2798 : vector<1x8x128xf32> to vector<8x128xf32>
    %2800 = vector.broadcast %2797 : vector<1x128xf32> to vector<8x128xf32>
    %2801 = arith.mulf %2800, %2799 : vector<8x128xf32>
    %2802 = arith.addf %2795, %2801 : vector<8x128xf32>
    %2803 = vector.extract_strided_slice %2290 {offsets = [5, 6, 0], sizes = [1, 1, 128], strides = [1, 1, 1]} : vector<8x8x128xf32> to vector<1x1x128xf32>
    %2804 = vector.shape_cast %2803 : vector<1x1x128xf32> to vector<1x128xf32>
    %2805 = vector.extract_strided_slice %2292 {offsets = [6, 0, 0], sizes = [1, 8, 128], strides = [1, 1, 1]} : vector<8x8x128xf32> to vector<1x8x128xf32>
    %2806 = vector.shape_cast %2805 : vector<1x8x128xf32> to vector<8x128xf32>
    %2807 = vector.broadcast %2804 : vector<1x128xf32> to vector<8x128xf32>
    %2808 = arith.mulf %2807, %2806 : vector<8x128xf32>
    %2809 = arith.addf %2802, %2808 : vector<8x128xf32>
    %2810 = vector.extract_strided_slice %2290 {offsets = [5, 7, 0], sizes = [1, 1, 128], strides = [1, 1, 1]} : vector<8x8x128xf32> to vector<1x1x128xf32>
    %2811 = vector.shape_cast %2810 : vector<1x1x128xf32> to vector<1x128xf32>
    %2812 = vector.extract_strided_slice %2292 {offsets = [7, 0, 0], sizes = [1, 8, 128], strides = [1, 1, 1]} : vector<8x8x128xf32> to vector<1x8x128xf32>
    %2813 = vector.shape_cast %2812 : vector<1x8x128xf32> to vector<8x128xf32>
    %2814 = vector.broadcast %2811 : vector<1x128xf32> to vector<8x128xf32>
    %2815 = arith.mulf %2814, %2813 : vector<8x128xf32>
    %2816 = arith.addf %2809, %2815 : vector<8x128xf32>
    %2817 = vector.extract_strided_slice %2294 {offsets = [0, 5, 0], sizes = [1, 1, 128], strides = [1, 1, 1]} : vector<8x8x128xf32> to vector<1x1x128xf32>
    %2818 = vector.shape_cast %2817 : vector<1x1x128xf32> to vector<1x128xf32>
    %2819 = vector.broadcast %2818 : vector<1x128xf32> to vector<8x128xf32>
    %2820 = arith.mulf %2819, %2816 : vector<8x128xf32>
    %2821 = arith.addf %2726, %2820 : vector<8x128xf32>
    %2822 = vector.extract_strided_slice %2294 {offsets = [1, 5, 0], sizes = [1, 1, 128], strides = [1, 1, 1]} : vector<8x8x128xf32> to vector<1x1x128xf32>
    %2823 = vector.shape_cast %2822 : vector<1x1x128xf32> to vector<1x128xf32>
    %2824 = vector.broadcast %2823 : vector<1x128xf32> to vector<8x128xf32>
    %2825 = arith.mulf %2824, %2816 : vector<8x128xf32>
    %2826 = arith.addf %2731, %2825 : vector<8x128xf32>
    %2827 = vector.extract_strided_slice %2294 {offsets = [2, 5, 0], sizes = [1, 1, 128], strides = [1, 1, 1]} : vector<8x8x128xf32> to vector<1x1x128xf32>
    %2828 = vector.shape_cast %2827 : vector<1x1x128xf32> to vector<1x128xf32>
    %2829 = vector.broadcast %2828 : vector<1x128xf32> to vector<8x128xf32>
    %2830 = arith.mulf %2829, %2816 : vector<8x128xf32>
    %2831 = arith.addf %2736, %2830 : vector<8x128xf32>
    %2832 = vector.extract_strided_slice %2294 {offsets = [3, 5, 0], sizes = [1, 1, 128], strides = [1, 1, 1]} : vector<8x8x128xf32> to vector<1x1x128xf32>
    %2833 = vector.shape_cast %2832 : vector<1x1x128xf32> to vector<1x128xf32>
    %2834 = vector.broadcast %2833 : vector<1x128xf32> to vector<8x128xf32>
    %2835 = arith.mulf %2834, %2816 : vector<8x128xf32>
    %2836 = arith.addf %2741, %2835 : vector<8x128xf32>
    %2837 = vector.extract_strided_slice %2294 {offsets = [4, 5, 0], sizes = [1, 1, 128], strides = [1, 1, 1]} : vector<8x8x128xf32> to vector<1x1x128xf32>
    %2838 = vector.shape_cast %2837 : vector<1x1x128xf32> to vector<1x128xf32>
    %2839 = vector.broadcast %2838 : vector<1x128xf32> to vector<8x128xf32>
    %2840 = arith.mulf %2839, %2816 : vector<8x128xf32>
    %2841 = arith.addf %2746, %2840 : vector<8x128xf32>
    %2842 = vector.extract_strided_slice %2294 {offsets = [5, 5, 0], sizes = [1, 1, 128], strides = [1, 1, 1]} : vector<8x8x128xf32> to vector<1x1x128xf32>
    %2843 = vector.shape_cast %2842 : vector<1x1x128xf32> to vector<1x128xf32>
    %2844 = vector.broadcast %2843 : vector<1x128xf32> to vector<8x128xf32>
    %2845 = arith.mulf %2844, %2816 : vector<8x128xf32>
    %2846 = arith.addf %2751, %2845 : vector<8x128xf32>
    %2847 = vector.extract_strided_slice %2294 {offsets = [6, 5, 0], sizes = [1, 1, 128], strides = [1, 1, 1]} : vector<8x8x128xf32> to vector<1x1x128xf32>
    %2848 = vector.shape_cast %2847 : vector<1x1x128xf32> to vector<1x128xf32>
    %2849 = vector.broadcast %2848 : vector<1x128xf32> to vector<8x128xf32>
    %2850 = arith.mulf %2849, %2816 : vector<8x128xf32>
    %2851 = arith.addf %2756, %2850 : vector<8x128xf32>
    %2852 = vector.extract_strided_slice %2294 {offsets = [7, 5, 0], sizes = [1, 1, 128], strides = [1, 1, 1]} : vector<8x8x128xf32> to vector<1x1x128xf32>
    %2853 = vector.shape_cast %2852 : vector<1x1x128xf32> to vector<1x128xf32>
    %2854 = vector.broadcast %2853 : vector<1x128xf32> to vector<8x128xf32>
    %2855 = arith.mulf %2854, %2816 : vector<8x128xf32>
    %2856 = arith.addf %2761, %2855 : vector<8x128xf32>
    %2857 = vector.extract_strided_slice %2290 {offsets = [6, 0, 0], sizes = [1, 1, 128], strides = [1, 1, 1]} : vector<8x8x128xf32> to vector<1x1x128xf32>
    %2858 = vector.shape_cast %2857 : vector<1x1x128xf32> to vector<1x128xf32>
    %2859 = vector.extract_strided_slice %2292 {offsets = [0, 0, 0], sizes = [1, 8, 128], strides = [1, 1, 1]} : vector<8x8x128xf32> to vector<1x8x128xf32>
    %2860 = vector.shape_cast %2859 : vector<1x8x128xf32> to vector<8x128xf32>
    %2861 = vector.broadcast %2858 : vector<1x128xf32> to vector<8x128xf32>
    %2862 = arith.mulf %2861, %2860 : vector<8x128xf32>
    %2863 = vector.extract_strided_slice %2290 {offsets = [6, 1, 0], sizes = [1, 1, 128], strides = [1, 1, 1]} : vector<8x8x128xf32> to vector<1x1x128xf32>
    %2864 = vector.shape_cast %2863 : vector<1x1x128xf32> to vector<1x128xf32>
    %2865 = vector.extract_strided_slice %2292 {offsets = [1, 0, 0], sizes = [1, 8, 128], strides = [1, 1, 1]} : vector<8x8x128xf32> to vector<1x8x128xf32>
    %2866 = vector.shape_cast %2865 : vector<1x8x128xf32> to vector<8x128xf32>
    %2867 = vector.broadcast %2864 : vector<1x128xf32> to vector<8x128xf32>
    %2868 = arith.mulf %2867, %2866 : vector<8x128xf32>
    %2869 = arith.addf %2862, %2868 : vector<8x128xf32>
    %2870 = vector.extract_strided_slice %2290 {offsets = [6, 2, 0], sizes = [1, 1, 128], strides = [1, 1, 1]} : vector<8x8x128xf32> to vector<1x1x128xf32>
    %2871 = vector.shape_cast %2870 : vector<1x1x128xf32> to vector<1x128xf32>
    %2872 = vector.extract_strided_slice %2292 {offsets = [2, 0, 0], sizes = [1, 8, 128], strides = [1, 1, 1]} : vector<8x8x128xf32> to vector<1x8x128xf32>
    %2873 = vector.shape_cast %2872 : vector<1x8x128xf32> to vector<8x128xf32>
    %2874 = vector.broadcast %2871 : vector<1x128xf32> to vector<8x128xf32>
    %2875 = arith.mulf %2874, %2873 : vector<8x128xf32>
    %2876 = arith.addf %2869, %2875 : vector<8x128xf32>
    %2877 = vector.extract_strided_slice %2290 {offsets = [6, 3, 0], sizes = [1, 1, 128], strides = [1, 1, 1]} : vector<8x8x128xf32> to vector<1x1x128xf32>
    %2878 = vector.shape_cast %2877 : vector<1x1x128xf32> to vector<1x128xf32>
    %2879 = vector.extract_strided_slice %2292 {offsets = [3, 0, 0], sizes = [1, 8, 128], strides = [1, 1, 1]} : vector<8x8x128xf32> to vector<1x8x128xf32>
    %2880 = vector.shape_cast %2879 : vector<1x8x128xf32> to vector<8x128xf32>
    %2881 = vector.broadcast %2878 : vector<1x128xf32> to vector<8x128xf32>
    %2882 = arith.mulf %2881, %2880 : vector<8x128xf32>
    %2883 = arith.addf %2876, %2882 : vector<8x128xf32>
    %2884 = vector.extract_strided_slice %2290 {offsets = [6, 4, 0], sizes = [1, 1, 128], strides = [1, 1, 1]} : vector<8x8x128xf32> to vector<1x1x128xf32>
    %2885 = vector.shape_cast %2884 : vector<1x1x128xf32> to vector<1x128xf32>
    %2886 = vector.extract_strided_slice %2292 {offsets = [4, 0, 0], sizes = [1, 8, 128], strides = [1, 1, 1]} : vector<8x8x128xf32> to vector<1x8x128xf32>
    %2887 = vector.shape_cast %2886 : vector<1x8x128xf32> to vector<8x128xf32>
    %2888 = vector.broadcast %2885 : vector<1x128xf32> to vector<8x128xf32>
    %2889 = arith.mulf %2888, %2887 : vector<8x128xf32>
    %2890 = arith.addf %2883, %2889 : vector<8x128xf32>
    %2891 = vector.extract_strided_slice %2290 {offsets = [6, 5, 0], sizes = [1, 1, 128], strides = [1, 1, 1]} : vector<8x8x128xf32> to vector<1x1x128xf32>
    %2892 = vector.shape_cast %2891 : vector<1x1x128xf32> to vector<1x128xf32>
    %2893 = vector.extract_strided_slice %2292 {offsets = [5, 0, 0], sizes = [1, 8, 128], strides = [1, 1, 1]} : vector<8x8x128xf32> to vector<1x8x128xf32>
    %2894 = vector.shape_cast %2893 : vector<1x8x128xf32> to vector<8x128xf32>
    %2895 = vector.broadcast %2892 : vector<1x128xf32> to vector<8x128xf32>
    %2896 = arith.mulf %2895, %2894 : vector<8x128xf32>
    %2897 = arith.addf %2890, %2896 : vector<8x128xf32>
    %2898 = vector.extract_strided_slice %2290 {offsets = [6, 6, 0], sizes = [1, 1, 128], strides = [1, 1, 1]} : vector<8x8x128xf32> to vector<1x1x128xf32>
    %2899 = vector.shape_cast %2898 : vector<1x1x128xf32> to vector<1x128xf32>
    %2900 = vector.extract_strided_slice %2292 {offsets = [6, 0, 0], sizes = [1, 8, 128], strides = [1, 1, 1]} : vector<8x8x128xf32> to vector<1x8x128xf32>
    %2901 = vector.shape_cast %2900 : vector<1x8x128xf32> to vector<8x128xf32>
    %2902 = vector.broadcast %2899 : vector<1x128xf32> to vector<8x128xf32>
    %2903 = arith.mulf %2902, %2901 : vector<8x128xf32>
    %2904 = arith.addf %2897, %2903 : vector<8x128xf32>
    %2905 = vector.extract_strided_slice %2290 {offsets = [6, 7, 0], sizes = [1, 1, 128], strides = [1, 1, 1]} : vector<8x8x128xf32> to vector<1x1x128xf32>
    %2906 = vector.shape_cast %2905 : vector<1x1x128xf32> to vector<1x128xf32>
    %2907 = vector.extract_strided_slice %2292 {offsets = [7, 0, 0], sizes = [1, 8, 128], strides = [1, 1, 1]} : vector<8x8x128xf32> to vector<1x8x128xf32>
    %2908 = vector.shape_cast %2907 : vector<1x8x128xf32> to vector<8x128xf32>
    %2909 = vector.broadcast %2906 : vector<1x128xf32> to vector<8x128xf32>
    %2910 = arith.mulf %2909, %2908 : vector<8x128xf32>
    %2911 = arith.addf %2904, %2910 : vector<8x128xf32>
    %2912 = vector.extract_strided_slice %2294 {offsets = [0, 6, 0], sizes = [1, 1, 128], strides = [1, 1, 1]} : vector<8x8x128xf32> to vector<1x1x128xf32>
    %2913 = vector.shape_cast %2912 : vector<1x1x128xf32> to vector<1x128xf32>
    %2914 = vector.broadcast %2913 : vector<1x128xf32> to vector<8x128xf32>
    %2915 = arith.mulf %2914, %2911 : vector<8x128xf32>
    %2916 = arith.addf %2821, %2915 : vector<8x128xf32>
    %2917 = vector.extract_strided_slice %2294 {offsets = [1, 6, 0], sizes = [1, 1, 128], strides = [1, 1, 1]} : vector<8x8x128xf32> to vector<1x1x128xf32>
    %2918 = vector.shape_cast %2917 : vector<1x1x128xf32> to vector<1x128xf32>
    %2919 = vector.broadcast %2918 : vector<1x128xf32> to vector<8x128xf32>
    %2920 = arith.mulf %2919, %2911 : vector<8x128xf32>
    %2921 = arith.addf %2826, %2920 : vector<8x128xf32>
    %2922 = vector.extract_strided_slice %2294 {offsets = [2, 6, 0], sizes = [1, 1, 128], strides = [1, 1, 1]} : vector<8x8x128xf32> to vector<1x1x128xf32>
    %2923 = vector.shape_cast %2922 : vector<1x1x128xf32> to vector<1x128xf32>
    %2924 = vector.broadcast %2923 : vector<1x128xf32> to vector<8x128xf32>
    %2925 = arith.mulf %2924, %2911 : vector<8x128xf32>
    %2926 = arith.addf %2831, %2925 : vector<8x128xf32>
    %2927 = vector.extract_strided_slice %2294 {offsets = [3, 6, 0], sizes = [1, 1, 128], strides = [1, 1, 1]} : vector<8x8x128xf32> to vector<1x1x128xf32>
    %2928 = vector.shape_cast %2927 : vector<1x1x128xf32> to vector<1x128xf32>
    %2929 = vector.broadcast %2928 : vector<1x128xf32> to vector<8x128xf32>
    %2930 = arith.mulf %2929, %2911 : vector<8x128xf32>
    %2931 = arith.addf %2836, %2930 : vector<8x128xf32>
    %2932 = vector.extract_strided_slice %2294 {offsets = [4, 6, 0], sizes = [1, 1, 128], strides = [1, 1, 1]} : vector<8x8x128xf32> to vector<1x1x128xf32>
    %2933 = vector.shape_cast %2932 : vector<1x1x128xf32> to vector<1x128xf32>
    %2934 = vector.broadcast %2933 : vector<1x128xf32> to vector<8x128xf32>
    %2935 = arith.mulf %2934, %2911 : vector<8x128xf32>
    %2936 = arith.addf %2841, %2935 : vector<8x128xf32>
    %2937 = vector.extract_strided_slice %2294 {offsets = [5, 6, 0], sizes = [1, 1, 128], strides = [1, 1, 1]} : vector<8x8x128xf32> to vector<1x1x128xf32>
    %2938 = vector.shape_cast %2937 : vector<1x1x128xf32> to vector<1x128xf32>
    %2939 = vector.broadcast %2938 : vector<1x128xf32> to vector<8x128xf32>
    %2940 = arith.mulf %2939, %2911 : vector<8x128xf32>
    %2941 = arith.addf %2846, %2940 : vector<8x128xf32>
    %2942 = vector.extract_strided_slice %2294 {offsets = [6, 6, 0], sizes = [1, 1, 128], strides = [1, 1, 1]} : vector<8x8x128xf32> to vector<1x1x128xf32>
    %2943 = vector.shape_cast %2942 : vector<1x1x128xf32> to vector<1x128xf32>
    %2944 = vector.broadcast %2943 : vector<1x128xf32> to vector<8x128xf32>
    %2945 = arith.mulf %2944, %2911 : vector<8x128xf32>
    %2946 = arith.addf %2851, %2945 : vector<8x128xf32>
    %2947 = vector.extract_strided_slice %2294 {offsets = [7, 6, 0], sizes = [1, 1, 128], strides = [1, 1, 1]} : vector<8x8x128xf32> to vector<1x1x128xf32>
    %2948 = vector.shape_cast %2947 : vector<1x1x128xf32> to vector<1x128xf32>
    %2949 = vector.broadcast %2948 : vector<1x128xf32> to vector<8x128xf32>
    %2950 = arith.mulf %2949, %2911 : vector<8x128xf32>
    %2951 = arith.addf %2856, %2950 : vector<8x128xf32>
    %2952 = vector.extract_strided_slice %2290 {offsets = [7, 0, 0], sizes = [1, 1, 128], strides = [1, 1, 1]} : vector<8x8x128xf32> to vector<1x1x128xf32>
    %2953 = vector.shape_cast %2952 : vector<1x1x128xf32> to vector<1x128xf32>
    %2954 = vector.extract_strided_slice %2292 {offsets = [0, 0, 0], sizes = [1, 8, 128], strides = [1, 1, 1]} : vector<8x8x128xf32> to vector<1x8x128xf32>
    %2955 = vector.shape_cast %2954 : vector<1x8x128xf32> to vector<8x128xf32>
    %2956 = vector.broadcast %2953 : vector<1x128xf32> to vector<8x128xf32>
    %2957 = arith.mulf %2956, %2955 : vector<8x128xf32>
    %2958 = vector.extract_strided_slice %2290 {offsets = [7, 1, 0], sizes = [1, 1, 128], strides = [1, 1, 1]} : vector<8x8x128xf32> to vector<1x1x128xf32>
    %2959 = vector.shape_cast %2958 : vector<1x1x128xf32> to vector<1x128xf32>
    %2960 = vector.extract_strided_slice %2292 {offsets = [1, 0, 0], sizes = [1, 8, 128], strides = [1, 1, 1]} : vector<8x8x128xf32> to vector<1x8x128xf32>
    %2961 = vector.shape_cast %2960 : vector<1x8x128xf32> to vector<8x128xf32>
    %2962 = vector.broadcast %2959 : vector<1x128xf32> to vector<8x128xf32>
    %2963 = arith.mulf %2962, %2961 : vector<8x128xf32>
    %2964 = arith.addf %2957, %2963 : vector<8x128xf32>
    %2965 = vector.extract_strided_slice %2290 {offsets = [7, 2, 0], sizes = [1, 1, 128], strides = [1, 1, 1]} : vector<8x8x128xf32> to vector<1x1x128xf32>
    %2966 = vector.shape_cast %2965 : vector<1x1x128xf32> to vector<1x128xf32>
    %2967 = vector.extract_strided_slice %2292 {offsets = [2, 0, 0], sizes = [1, 8, 128], strides = [1, 1, 1]} : vector<8x8x128xf32> to vector<1x8x128xf32>
    %2968 = vector.shape_cast %2967 : vector<1x8x128xf32> to vector<8x128xf32>
    %2969 = vector.broadcast %2966 : vector<1x128xf32> to vector<8x128xf32>
    %2970 = arith.mulf %2969, %2968 : vector<8x128xf32>
    %2971 = arith.addf %2964, %2970 : vector<8x128xf32>
    %2972 = vector.extract_strided_slice %2290 {offsets = [7, 3, 0], sizes = [1, 1, 128], strides = [1, 1, 1]} : vector<8x8x128xf32> to vector<1x1x128xf32>
    %2973 = vector.shape_cast %2972 : vector<1x1x128xf32> to vector<1x128xf32>
    %2974 = vector.extract_strided_slice %2292 {offsets = [3, 0, 0], sizes = [1, 8, 128], strides = [1, 1, 1]} : vector<8x8x128xf32> to vector<1x8x128xf32>
    %2975 = vector.shape_cast %2974 : vector<1x8x128xf32> to vector<8x128xf32>
    %2976 = vector.broadcast %2973 : vector<1x128xf32> to vector<8x128xf32>
    %2977 = arith.mulf %2976, %2975 : vector<8x128xf32>
    %2978 = arith.addf %2971, %2977 : vector<8x128xf32>
    %2979 = vector.extract_strided_slice %2290 {offsets = [7, 4, 0], sizes = [1, 1, 128], strides = [1, 1, 1]} : vector<8x8x128xf32> to vector<1x1x128xf32>
    %2980 = vector.shape_cast %2979 : vector<1x1x128xf32> to vector<1x128xf32>
    %2981 = vector.extract_strided_slice %2292 {offsets = [4, 0, 0], sizes = [1, 8, 128], strides = [1, 1, 1]} : vector<8x8x128xf32> to vector<1x8x128xf32>
    %2982 = vector.shape_cast %2981 : vector<1x8x128xf32> to vector<8x128xf32>
    %2983 = vector.broadcast %2980 : vector<1x128xf32> to vector<8x128xf32>
    %2984 = arith.mulf %2983, %2982 : vector<8x128xf32>
    %2985 = arith.addf %2978, %2984 : vector<8x128xf32>
    %2986 = vector.extract_strided_slice %2290 {offsets = [7, 5, 0], sizes = [1, 1, 128], strides = [1, 1, 1]} : vector<8x8x128xf32> to vector<1x1x128xf32>
    %2987 = vector.shape_cast %2986 : vector<1x1x128xf32> to vector<1x128xf32>
    %2988 = vector.extract_strided_slice %2292 {offsets = [5, 0, 0], sizes = [1, 8, 128], strides = [1, 1, 1]} : vector<8x8x128xf32> to vector<1x8x128xf32>
    %2989 = vector.shape_cast %2988 : vector<1x8x128xf32> to vector<8x128xf32>
    %2990 = vector.broadcast %2987 : vector<1x128xf32> to vector<8x128xf32>
    %2991 = arith.mulf %2990, %2989 : vector<8x128xf32>
    %2992 = arith.addf %2985, %2991 : vector<8x128xf32>
    %2993 = vector.extract_strided_slice %2290 {offsets = [7, 6, 0], sizes = [1, 1, 128], strides = [1, 1, 1]} : vector<8x8x128xf32> to vector<1x1x128xf32>
    %2994 = vector.shape_cast %2993 : vector<1x1x128xf32> to vector<1x128xf32>
    %2995 = vector.extract_strided_slice %2292 {offsets = [6, 0, 0], sizes = [1, 8, 128], strides = [1, 1, 1]} : vector<8x8x128xf32> to vector<1x8x128xf32>
    %2996 = vector.shape_cast %2995 : vector<1x8x128xf32> to vector<8x128xf32>
    %2997 = vector.broadcast %2994 : vector<1x128xf32> to vector<8x128xf32>
    %2998 = arith.mulf %2997, %2996 : vector<8x128xf32>
    %2999 = arith.addf %2992, %2998 : vector<8x128xf32>
    %3000 = vector.extract_strided_slice %2290 {offsets = [7, 7, 0], sizes = [1, 1, 128], strides = [1, 1, 1]} : vector<8x8x128xf32> to vector<1x1x128xf32>
    %3001 = vector.shape_cast %3000 : vector<1x1x128xf32> to vector<1x128xf32>
    %3002 = vector.extract_strided_slice %2292 {offsets = [7, 0, 0], sizes = [1, 8, 128], strides = [1, 1, 1]} : vector<8x8x128xf32> to vector<1x8x128xf32>
    %3003 = vector.shape_cast %3002 : vector<1x8x128xf32> to vector<8x128xf32>
    %3004 = vector.broadcast %3001 : vector<1x128xf32> to vector<8x128xf32>
    %3005 = arith.mulf %3004, %3003 : vector<8x128xf32>
    %3006 = arith.addf %2999, %3005 : vector<8x128xf32>
    %3007 = vector.extract_strided_slice %2294 {offsets = [0, 7, 0], sizes = [1, 1, 128], strides = [1, 1, 1]} : vector<8x8x128xf32> to vector<1x1x128xf32>
    %3008 = vector.shape_cast %3007 : vector<1x1x128xf32> to vector<1x128xf32>
    %3009 = vector.broadcast %3008 : vector<1x128xf32> to vector<8x128xf32>
    %3010 = arith.mulf %3009, %3006 : vector<8x128xf32>
    %3011 = arith.addf %2916, %3010 : vector<8x128xf32>
    %3012 = vector.extract_strided_slice %2294 {offsets = [1, 7, 0], sizes = [1, 1, 128], strides = [1, 1, 1]} : vector<8x8x128xf32> to vector<1x1x128xf32>
    %3013 = vector.shape_cast %3012 : vector<1x1x128xf32> to vector<1x128xf32>
    %3014 = vector.broadcast %3013 : vector<1x128xf32> to vector<8x128xf32>
    %3015 = arith.mulf %3014, %3006 : vector<8x128xf32>
    %3016 = arith.addf %2921, %3015 : vector<8x128xf32>
    %3017 = vector.extract_strided_slice %2294 {offsets = [2, 7, 0], sizes = [1, 1, 128], strides = [1, 1, 1]} : vector<8x8x128xf32> to vector<1x1x128xf32>
    %3018 = vector.shape_cast %3017 : vector<1x1x128xf32> to vector<1x128xf32>
    %3019 = vector.broadcast %3018 : vector<1x128xf32> to vector<8x128xf32>
    %3020 = arith.mulf %3019, %3006 : vector<8x128xf32>
    %3021 = arith.addf %2926, %3020 : vector<8x128xf32>
    %3022 = vector.extract_strided_slice %2294 {offsets = [3, 7, 0], sizes = [1, 1, 128], strides = [1, 1, 1]} : vector<8x8x128xf32> to vector<1x1x128xf32>
    %3023 = vector.shape_cast %3022 : vector<1x1x128xf32> to vector<1x128xf32>
    %3024 = vector.broadcast %3023 : vector<1x128xf32> to vector<8x128xf32>
    %3025 = arith.mulf %3024, %3006 : vector<8x128xf32>
    %3026 = arith.addf %2931, %3025 : vector<8x128xf32>
    %3027 = vector.extract_strided_slice %2294 {offsets = [4, 7, 0], sizes = [1, 1, 128], strides = [1, 1, 1]} : vector<8x8x128xf32> to vector<1x1x128xf32>
    %3028 = vector.shape_cast %3027 : vector<1x1x128xf32> to vector<1x128xf32>
    %3029 = vector.broadcast %3028 : vector<1x128xf32> to vector<8x128xf32>
    %3030 = arith.mulf %3029, %3006 : vector<8x128xf32>
    %3031 = arith.addf %2936, %3030 : vector<8x128xf32>
    %3032 = vector.extract_strided_slice %2294 {offsets = [5, 7, 0], sizes = [1, 1, 128], strides = [1, 1, 1]} : vector<8x8x128xf32> to vector<1x1x128xf32>
    %3033 = vector.shape_cast %3032 : vector<1x1x128xf32> to vector<1x128xf32>
    %3034 = vector.broadcast %3033 : vector<1x128xf32> to vector<8x128xf32>
    %3035 = arith.mulf %3034, %3006 : vector<8x128xf32>
    %3036 = arith.addf %2941, %3035 : vector<8x128xf32>
    %3037 = vector.extract_strided_slice %2294 {offsets = [6, 7, 0], sizes = [1, 1, 128], strides = [1, 1, 1]} : vector<8x8x128xf32> to vector<1x1x128xf32>
    %3038 = vector.shape_cast %3037 : vector<1x1x128xf32> to vector<1x128xf32>
    %3039 = vector.broadcast %3038 : vector<1x128xf32> to vector<8x128xf32>
    %3040 = arith.mulf %3039, %3006 : vector<8x128xf32>
    %3041 = arith.addf %2946, %3040 : vector<8x128xf32>
    %3042 = vector.extract_strided_slice %2294 {offsets = [7, 7, 0], sizes = [1, 1, 128], strides = [1, 1, 1]} : vector<8x8x128xf32> to vector<1x1x128xf32>
    %3043 = vector.shape_cast %3042 : vector<1x1x128xf32> to vector<1x128xf32>
    %3044 = vector.broadcast %3043 : vector<1x128xf32> to vector<8x128xf32>
    %3045 = arith.mulf %3044, %3006 : vector<8x128xf32>
    %3046 = arith.addf %2951, %3045 : vector<8x128xf32>
    %3047 = tpu.concatenate %731, %736, %741, %746, %751, %756, %761, %766, %1491, %1496, %1501, %1506, %1511, %1516, %1521, %1526 in 0 : vector<8x128xf32>, vector<8x128xf32>, vector<8x128xf32>, vector<8x128xf32>, vector<8x128xf32>, vector<8x128xf32>, vector<8x128xf32>, vector<8x128xf32>, vector<8x128xf32>, vector<8x128xf32>, vector<8x128xf32>, vector<8x128xf32>, vector<8x128xf32>, vector<8x128xf32>, vector<8x128xf32>, vector<8x128xf32> -> vector<128x128xf32>
    %3048 = tpu.concatenate %2251, %2256, %2261, %2266, %2271, %2276, %2281, %2286, %3011, %3016, %3021, %3026, %3031, %3036, %3041, %3046 in 0 : vector<8x128xf32>, vector<8x128xf32>, vector<8x128xf32>, vector<8x128xf32>, vector<8x128xf32>, vector<8x128xf32>, vector<8x128xf32>, vector<8x128xf32>, vector<8x128xf32>, vector<8x128xf32>, vector<8x128xf32>, vector<8x128xf32>, vector<8x128xf32>, vector<8x128xf32>, vector<8x128xf32>, vector<8x128xf32> -> vector<128x128xf32>
    %3049 = tpu.concatenate %3047, %3048 in 0 : vector<128x128xf32>, vector<128x128xf32> -> vector<256x128xf32>
    %3050 = tpu.transpose %3049, [1, 0] : vector<256x128xf32> -> vector<128x256xf32>
    %c0_15 = arith.constant 0 : index
    %c0_16 = arith.constant 0 : index
    %c0_17 = arith.constant 0 : index
    %3051 = vector.load %arg5[%c0_15, %c0_16, %c0_17] : memref<1x128x256xf32, #tpu.memory_space<vmem>>, vector<1x128x256xf32>
    %3052 = vector.shape_cast %3051 : vector<1x128x256xf32> to vector<128x256xf32>
    %3053 = vector.shape_cast %3050 : vector<128x256xf32> to vector<1x128x256xf32>
    tpu.vector_store %arg5[%c0_15, %c0_16, %c0_17], %3053 {strides = array<i32>} : memref<1x128x256xf32, #tpu.memory_space<vmem>>, vector<1x128x256xf32>,
    return
  }
  func.func @transform_0(%arg0: i32) -> (i32, i32, i32) {
    %c0_i32 = arith.constant 0 : i32
    %c0_i32_0 = arith.constant 0 : i32
    %c0_i32_1 = arith.constant 0 : i32
    return %arg0, %c0_i32, %c0_i32_0 : i32, i32, i32
  }
  func.func @transform_1(%arg0: i32) -> (i32, i32, i32) {
    %c0_i32 = arith.constant 0 : i32
    %c0_i32_0 = arith.constant 0 : i32
    %c0_i32_1 = arith.constant 0 : i32
    return %arg0, %c0_i32, %c0_i32_0 : i32, i32, i32
  }
  func.func @transform_2(%arg0: i32) -> (i32, i32) {
    %c0_i32 = arith.constant 0 : i32
    %c0_i32_0 = arith.constant 0 : i32
    %c0_i32_1 = arith.constant 0 : i32
    return %c0_i32, %c0_i32_0 : i32, i32
  }
  func.func @transform_3(%arg0: i32) -> (i32, i32) {
    %c0_i32 = arith.constant 0 : i32
    %c0_i32_0 = arith.constant 0 : i32
    %c0_i32_1 = arith.constant 0 : i32
    return %c0_i32, %c0_i32_0 : i32, i32
  }
  func.func @transform_4(%arg0: i32) -> (i32, i32, i32) {
    %c0_i32 = arith.constant 0 : i32
    %c0_i32_0 = arith.constant 0 : i32
    %c0_i32_1 = arith.constant 0 : i32
    return %arg0, %c0_i32, %c0_i32_0 : i32, i32, i32
  }
}

</mosaic_0001>

<bundles_post_ra>
// kernel: tpu_custom_call.1
= control target key start
LH: loop header
LB: loop body
LE: loop exit
PB: predicated region body
PF: predicated region fallthrough
CT: control target
= control target key end

     0   :  { %v2879_v3 = vmov 0   ;;  %s4913_s0 = inlined_call_operand.vmem [shape: bf16[1,32,128], index: 0, kind: input, shape index: {}]   ;;  %s4914_s1 = inlined_call_operand.vmem [shape: bf16[1,256,128], index: 1, kind: input, shape index: {}]   ;;  %s4915_s2 = inlined_call_operand.vmem [shape: bf16[512,32], index: 2, kind: input, shape index: {}]   ;;  %s4916_s3 = inlined_call_operand.vmem [shape: f32[512,1], index: 3, kind: input, shape index: {}]   ;;  %s4917_s4 = inlined_call_operand.hbm [shape: f32[1,128,256], index: 4, kind: output, shape index: {}]  }
   0x1   :  { %v91_v0 = vld [vmem:[%s4916_s3 + $0x20] sm:$0xff]  ;;  %v89_v1 = vld [vmem:[%s4916_s3 + $0x10] sm:$0xff]  ;;  %2852 = vset.pattern.permute.xlu2 %v2879_v3  ;;  %2851 = vset.pattern.permute.xlu1 %v2879_v3  ;;  %v2760_v4 = vld [vmem:[%s4913_s0 + $0x8] sm:$0xff] }
   0x2   :  { %v87_v2 = vld [vmem:[%s4916_s3] sm:$0xff]  ;;  %2850 = vset.pattern.permute.xlu0 %v2879_v3  ;;  %173 = vperm.xlu2 %2852, %v91_v0   ;;  %v92_v6 = vld [vmem:[%s4916_s3 + $0x28] sm:$0xff]  ;;  %v90_v7 = vld [vmem:[%s4916_s3 + $0x18] sm:$0xff] }
   0x3   :  { %163 = vperm.xlu1 %2851, %v89_v1   ;;  %153 = vperm.xlu0 %2850, %v87_v2   ;;  %v2759_v5 = vld [vmem:[%s4913_s0] sm:$0xff]  ;;  %v88_v8 = vld [vmem:[%s4916_s3 + $0x8] sm:$0xff] }
   0x4   :  { %746 = vmatpush.bf16.msra.mxu0 %v2760_v4  ;;  %2840 = vmatpush.bf16.msra.mxu1 %v2760_v4  ;;  %v2727_v9 = vld [vmem:[%s4915_s2] sm:$0xff] }
   0x5   :  { %2841 = vmatpush.bf16.msra.mxu2 %v2760_v4  ;;  %2842 = vmatpush.bf16.msra.mxu3 %v2760_v4  ;;  %v2735_v10 = vld [vmem:[%s4915_s2 + $0x40] sm:$0xff] }
   0x8   :  { %747 = vmatpush.bf16.msra.mxu0 %v2759_v5  ;;  %2843 = vmatpush.bf16.msra.mxu1 %v2759_v5 }
   0x9   :  { %9 = vsyncpa [#allocation3], 0  ;;  %2844 = vmatpush.bf16.msra.mxu2 %v2759_v5  ;;  %2845 = vmatpush.bf16.msra.mxu3 %v2759_v5  ;;  %vm643_vm0 = vcmask 261120   ;;  %v2743_v11 = vld [vmem:[%s4915_s2 + $0x80] sm:$0xff]  ;;  %v94_v14 = vld [vmem:[%s4916_s3 + $0x38] sm:$0xff]  ;;  %s2547_s26 = sshll.u32 %s4917_s4, 4  ;;  %s2548_s26 = int_to_ptr.hbm [resolvable:$true] %s2547_s26 }
   0xa   :  { %v2751_v12 = vld [vmem:[%s4915_s2 + $0xc0] sm:$0xff]  ;;  %178 = vperm.xlu2 %2852, %v92_v6   ;;  %v93_v15 = vld [vmem:[%s4916_s3 + $0x30] sm:$0xff]  ;;  %v98_v16 = vld [vmem:[%s4916_s3 + $0x58] sm:$0xff]  ;;  %s2881_s27 = smov 256   ;;  %s2882_s28 = smov 16  }
   0xb   :  { %168 = vperm.xlu1 %2851, %v90_v7   ;;  %158 = vperm.xlu0 %2850, %v88_v8   ;;  %v95_v13 = vld [vmem:[%s4916_s3 + $0x40] sm:$0xff]  ;;  %v97_v17 = vld [vmem:[%s4916_s3 + $0x50] sm:$0xff]  ;;  %v96_v18 = vld [vmem:[%s4916_s3 + $0x48] sm:$0xff] }
   0xc   :  { %2695 = vmatmul.msk.bf16.vlgmr.msra.gmra.mxu0 %vm643_vm0, %v2727_v9  ;;  %2703 = vmatmul.msk.bf16.vlgmr.msra.gmra.mxu1 %vm643_vm0, %v2735_v10  ;;  %v2728_v19 = vld [vmem:[%s4915_s2 + $0x8] sm:$0xff]  ;;  %v101_v23 = vld [vmem:[%s4916_s3 + $0x70] sm:$0xff]  ;;  %v99_v25 = vld [vmem:[%s4916_s3 + $0x60] sm:$0xff] }
   0xd   :  { %2711 = vmatmul.msk.bf16.vlgmr.msra.gmra.mxu2 %vm643_vm0, %v2743_v11  ;;  %2719 = vmatmul.msk.bf16.vlgmr.msra.gmra.mxu3 %vm643_vm0, %v2751_v12  ;;  %v2736_v20 = vld [vmem:[%s4915_s2 + $0x48] sm:$0xff]  ;;  %v103_v27 = vld [vmem:[%s4916_s3 + $0x80] sm:$0xff]  ;;  %v102_v28 = vld [vmem:[%s4916_s3 + $0x78] sm:$0xff] }
   0xe   :  { %v2744_v21 = vld [vmem:[%s4915_s2 + $0x88] sm:$0xff]  ;;  %v2729_v29 = vld [vmem:[%s4915_s2 + $0x10] sm:$0xff]  ;;  %v107_v33 = vld [vmem:[%s4916_s3 + $0xa0] sm:$0xff] }
   0xf   :  { %v2752_v22 = vld [vmem:[%s4915_s2 + $0xc8] sm:$0xff]  ;;  %v2737_v30 = vld [vmem:[%s4915_s2 + $0x50] sm:$0xff]  ;;  %v106_v34 = vld [vmem:[%s4916_s3 + $0x98] sm:$0xff] }
  0x10   :  { %v100_v24 = vld [vmem:[%s4916_s3 + $0x68] sm:$0xff]  ;;  %v2745_v31 = vld [vmem:[%s4915_s2 + $0x90] sm:$0xff]  ;;  %v110_v36 = vld [vmem:[%s4916_s3 + $0xb8] sm:$0xff] }
  0x11   :  { %v104_v26 = vld [vmem:[%s4916_s3 + $0x88] sm:$0xff]  ;;  %v2753_v32 = vld [vmem:[%s4915_s2 + $0xd0] sm:$0xff]  ;;  %v2730_v39 = vld [vmem:[%s4915_s2 + $0x18] sm:$0xff] }
  0x12   :  { %193 = vperm.xlu2 %2852, %v95_v13   ;;  %v105_v35 = vld [vmem:[%s4916_s3 + $0x90] sm:$0xff]  ;;  %v108_v38 = vld [vmem:[%s4916_s3 + $0xa8] sm:$0xff]  ;;  %v2738_v40 = vld [vmem:[%s4915_s2 + $0x58] sm:$0xff] }
  0x13   :  { %188 = vperm.xlu1 %2851, %v94_v14   ;;  %183 = vperm.xlu0 %2850, %v93_v15   ;;  %v109_v37 = vld [vmem:[%s4916_s3 + $0xb0] sm:$0xff]  ;;  %v2746_v41 = vld [vmem:[%s4915_s2 + $0x98] sm:$0xff]  ;;  %v112_v44 = vld [vmem:[%s4916_s3 + $0xc8] sm:$0xff] }
  0x14   :  { %v2754_v42 = vld [vmem:[%s4915_s2 + $0xd8] sm:$0xff]  ;;  %v113_v43 = vld [vmem:[%s4916_s3 + $0xd0] sm:$0xff]  ;;  %v111_v45 = vld [vmem:[%s4916_s3 + $0xc0] sm:$0xff] }
  0x15   :  { %v116_v46 = vld [vmem:[%s4916_s3 + $0xe8] sm:$0xff]  ;;  %v115_v47 = vld [vmem:[%s4916_s3 + $0xe0] sm:$0xff]  ;;  %v114_v48 = vld [vmem:[%s4916_s3 + $0xd8] sm:$0xff] }
  0x16   :  { %v2731_v49 = vld [vmem:[%s4915_s2 + $0x20] sm:$0xff]  ;;  %v118_v54 = vld [vmem:[%s4916_s3 + $0xf8] sm:$0xff]  ;;  %v117_v55 = vld [vmem:[%s4916_s3 + $0xf0] sm:$0xff] }
  0x17   :  { %v2739_v50 = vld [vmem:[%s4915_s2 + $0x60] sm:$0xff]  ;;  %v122_v56 = vld [vmem:[%s4916_s3 + $0x118] sm:$0xff]  ;;  %v121_v57 = vld [vmem:[%s4916_s3 + $0x110] sm:$0xff] }
  0x18   :  { %v2747_v51 = vld [vmem:[%s4915_s2 + $0xa0] sm:$0xff]  ;;  %v120_v58 = vld [vmem:[%s4916_s3 + $0x108] sm:$0xff]  ;;  %v125_v0 = vld [vmem:[%s4916_s3 + $0x130] sm:$0xff] }
  0x19   :  { %v2755_v52 = vld [vmem:[%s4915_s2 + $0xe0] sm:$0xff]  ;;  %v2732_v59 = vld [vmem:[%s4915_s2 + $0x28] sm:$0xff]  ;;  %v126_v6 = vld [vmem:[%s4916_s3 + $0x138] sm:$0xff] }
  0x1a   :  { %208 = vperm.xlu2 %2852, %v98_v16   ;;  %v119_v53 = vld [vmem:[%s4916_s3 + $0x100] sm:$0xff]  ;;  %v2740_v60 = vld [vmem:[%s4915_s2 + $0x68] sm:$0xff]  ;;  %v2733_v7 = vld [vmem:[%s4915_s2 + $0x30] sm:$0xff] }
  0x1b   :  { %203 = vperm.xlu1 %2851, %v97_v17   ;;  %198 = vperm.xlu0 %2850, %v96_v18   ;;  %v2748_v61 = vld [vmem:[%s4915_s2 + $0xa8] sm:$0xff]  ;;  %v123_v2 = vld [vmem:[%s4916_s3 + $0x120] sm:$0xff]  ;;  %v2741_v8 = vld [vmem:[%s4915_s2 + $0x70] sm:$0xff] }
  0x1c   :  { %2696 = vmatmul.msk.bf16.gmra.mxu0 %vm643_vm0, %v2728_v19  ;;  %2704 = vmatmul.msk.bf16.gmra.mxu1 %vm643_vm0, %v2736_v20  ;;  %v2756_v62 = vld [vmem:[%s4915_s2 + $0xe8] sm:$0xff]  ;;  %v127_v5 = vld [vmem:[%s4916_s3 + $0x140] sm:$0xff]  ;;  %v2749_v9 = vld [vmem:[%s4915_s2 + $0xb0] sm:$0xff] }
  0x1d   :  { %2712 = vmatmul.msk.bf16.gmra.mxu2 %vm643_vm0, %v2744_v21  ;;  %2720 = vmatmul.msk.bf16.gmra.mxu3 %vm643_vm0, %v2752_v22  ;;  %v124_v1 = vld [vmem:[%s4916_s3 + $0x128] sm:$0xff]  ;;  %v2757_v10 = vld [vmem:[%s4915_s2 + $0xf0] sm:$0xff]  ;;  %v131_v12 = vld [vmem:[%s4916_s3 + $0x160] sm:$0xff] }
  0x1e   :  { %v128_v4 = vld [vmem:[%s4916_s3 + $0x148] sm:$0xff]  ;;  %v130_v13 = vld [vmem:[%s4916_s3 + $0x158] sm:$0xff]  ;;  %v129_v14 = vld [vmem:[%s4916_s3 + $0x150] sm:$0xff] }
  0x1f   :  { %v134_v18 = vld [vmem:[%s4916_s3 + $0x178] sm:$0xff]  ;;  %v133_v19 = vld [vmem:[%s4916_s3 + $0x170] sm:$0xff]  ;;  %v132_v20 = vld [vmem:[%s4916_s3 + $0x168] sm:$0xff] }
  0x20   :  { %v2734_v21 = vld [vmem:[%s4915_s2 + $0x38] sm:$0xff] }
  0x21   :  { %v2742_v22 = vld [vmem:[%s4915_s2 + $0x78] sm:$0xff] }
  0x22   :  { %223 = vperm.xlu2 %2852, %v101_v23   ;;  %v2750_v23 = vld [vmem:[%s4915_s2 + $0xb8] sm:$0xff] }
  0x23   :  { %218 = vperm.xlu1 %2851, %v100_v24   ;;  %213 = vperm.xlu0 %2850, %v99_v25   ;;  %v2762_v24 = vld [vmem:[%s4914_s1] sm:$0xff]   ;;  %v2825_v25 = vld [vmem:[%s4914_s1 + $0x8] sm:$0xff]  }
  0x2a   :  { %238 = vperm.xlu2 %2852, %v104_v26   ;;  %v2758_v26 = vld [vmem:[%s4915_s2 + $0xf8] sm:$0xff] }
  0x2b   :  { %233 = vperm.xlu1 %2851, %v103_v27   ;;  %228 = vperm.xlu0 %2850, %v102_v28   ;;  %v2826_v27 = vld [vmem:[%s4914_s1 + $0x10] sm:$0xff]   ;;  %v2827_v28 = vld [vmem:[%s4914_s1 + $0x18] sm:$0xff]  }
  0x2c   :  { %2697 = vmatmul.msk.bf16.gmra.mxu0 %vm643_vm0, %v2729_v29  ;;  %2705 = vmatmul.msk.bf16.gmra.mxu1 %vm643_vm0, %v2737_v30  ;;  %v3206_v29 = vunpack.c.l.bf16 %v2762_v24  ;;  %v3208_v30 = vunpack.c.h.bf16 %v2762_v24 }
  0x2d   :  { %2713 = vmatmul.msk.bf16.gmra.mxu2 %vm643_vm0, %v2745_v31  ;;  %2721 = vmatmul.msk.bf16.gmra.mxu3 %vm643_vm0, %v2753_v32  ;;  %v3210_v31 = vunpack.c.l.bf16 %v2825_v25  ;;  %v3214_v32 = vunpack.c.h.bf16 %v2825_v25 }
  0x32   :  { %253 = vperm.xlu2 %2852, %v107_v33   ;;  %v3216_v33 = vunpack.c.l.bf16 %v2826_v27 }
  0x33   :  { %248 = vperm.xlu1 %2851, %v106_v34   ;;  %243 = vperm.xlu0 %2850, %v105_v35   ;;  %v3218_v34 = vunpack.c.h.bf16 %v2826_v27  ;;  %v3220_v35 = vunpack.c.l.bf16 %v2827_v28  ;;  %v139_v27 = vld [vmem:[%s4916_s3 + $0x1a0] sm:$0xff] }
  0x3a   :  { %268 = vperm.xlu2 %2852, %v110_v36  }
  0x3b   :  { %263 = vperm.xlu1 %2851, %v109_v37   ;;  %258 = vperm.xlu0 %2850, %v108_v38   ;;  %v3228_v38 = vunpack.c.h.bf16 %v2827_v28  ;;  %v138_v28 = vld [vmem:[%s4916_s3 + $0x198] sm:$0xff] }
  0x3c   :  { %2698 = vmatmul.msk.bf16.gmra.mxu0 %vm643_vm0, %v2730_v39  ;;  %2706 = vmatmul.msk.bf16.gmra.mxu1 %vm643_vm0, %v2738_v40  ;;  %v2832_v39 = vld [vmem:[%s4914_s1 + $0x40] sm:$0xff]   ;;  %v2833_v40 = vld [vmem:[%s4914_s1 + $0x48] sm:$0xff]  }
  0x3d   :  { %2714 = vmatmul.msk.bf16.gmra.mxu2 %vm643_vm0, %v2746_v41  ;;  %2722 = vmatmul.msk.bf16.gmra.mxu3 %vm643_vm0, %v2754_v42  ;;  %4989 = vst [vmem:[#allocation8_spill] sm:$0xff] %v3228_v38  ;;  %v137_v41 = vld [vmem:[%s4916_s3 + $0x190] sm:$0xff]  ;;  %v925_v42 = vperm.slane %v3206_v29, 0 }
  0x42   :  { %283 = vperm.xlu2 %2852, %v113_v43   ;;  %v964_v43 = vperm.slane %v3208_v30, 0 }
  0x43   :  { %278 = vperm.xlu1 %2851, %v112_v44   ;;  %273 = vperm.xlu0 %2850, %v111_v45   ;;  %v1011_v44 = vperm.slane %v3210_v31, 0  ;;  %v2834_v45 = vld [vmem:[%s4914_s1 + $0x50] sm:$0xff]  }
  0x4a   :  { %298 = vperm.xlu2 %2852, %v116_v46   ;;  %v2835_v46 = vld [vmem:[%s4914_s1 + $0x58] sm:$0xff]  }
  0x4b   :  { %293 = vperm.xlu1 %2851, %v115_v47   ;;  %288 = vperm.xlu0 %2850, %v114_v48   ;;  %v136_v48 = vld [vmem:[%s4916_s3 + $0x188] sm:$0xff] }
  0x4c   :  { %2699 = vmatmul.msk.bf16.gmra.mxu0 %vm643_vm0, %v2731_v49  ;;  %2707 = vmatmul.msk.bf16.gmra.mxu1 %vm643_vm0, %v2739_v50  ;;  %v135_v49 = vld [vmem:[%s4916_s3 + $0x180] sm:$0xff]  ;;  %v1058_v50 = vperm.slane %v3214_v32, 0 }
  0x4d   :  { %2715 = vmatmul.msk.bf16.gmra.mxu2 %vm643_vm0, %v2747_v51  ;;  %2723 = vmatmul.msk.bf16.gmra.mxu3 %vm643_vm0, %v2755_v52  ;;  %v1105_v51 = vperm.slane %v3216_v33, 0  ;;  %v1152_v52 = vperm.slane %v3218_v34, 0 }
  0x52   :  { %313 = vperm.xlu2 %2852, %v119_v53   ;;  %v1199_v53 = vperm.slane %v3220_v35, 0 }
  0x53   :  { %308 = vperm.xlu1 %2851, %v118_v54   ;;  %303 = vperm.xlu0 %2850, %v117_v55   ;;  %v1246_v54 = vperm.slane %v3228_v38, 0  ;;  %v3261_v55 = vunpack.c.l.bf16 %v2832_v39 }
  0x5a   :  { %328 = vperm.xlu2 %2852, %v122_v56   ;;  %v3263_v56 = vunpack.c.h.bf16 %v2832_v39 }
  0x5b   :  { %323 = vperm.xlu1 %2851, %v121_v57   ;;  %318 = vperm.xlu0 %2850, %v120_v58   ;;  %v3265_v57 = vunpack.c.l.bf16 %v2833_v40  ;;  %v3267_v58 = vunpack.c.h.bf16 %v2833_v40 }
  0x5c   :  { %2700 = vmatmul.msk.bf16.gmra.mxu0 %vm643_vm0, %v2732_v59  ;;  %2708 = vmatmul.msk.bf16.gmra.mxu1 %vm643_vm0, %v2740_v60  ;;  %v3116_v63 = vpop.permute.xlu2 %173  ;;  %4991 = vst [vmem:[#allocation10_spill] sm:$0xff] %v3263_v56  ;;  %v3269_v59 = vunpack.c.l.bf16 %v2834_v45  ;;  %v3271_v60 = vunpack.c.h.bf16 %v2834_v45 }
  0x5d   :  { %2716 = vmatmul.msk.bf16.gmra.mxu2 %vm643_vm0, %v2748_v61  ;;  %2724 = vmatmul.msk.bf16.gmra.mxu3 %vm643_vm0, %v2756_v62  ;;  %4992 = vst [vmem:[#allocation11_spill] sm:$0xff] %v3265_v57  ;;  %v3273_v61 = vunpack.c.l.bf16 %v2835_v46  ;;  %v927_v62 = vperm.slane %v3206_v29, 1 }
  0x5e   :  { %4993 = vst [vmem:[#allocation12_spill] sm:$0xff] %v3267_v58 }
  0x5f   :  { %4994 = vst [vmem:[#allocation13_spill] sm:$0xff] %v3269_v59 }
  0x60   :  { %4995 = vst [vmem:[#allocation14_spill] sm:$0xff] %v3271_v60 }
  0x62   :  { %343 = vperm.xlu2 %2852, %v125_v0   ;;  %v966_v0 = vperm.slane %v3208_v30, 1 }
  0x63   :  { %338 = vperm.xlu1 %2851, %v124_v1   ;;  %333 = vperm.xlu0 %2850, %v123_v2   ;;  %v1013_v1 = vperm.slane %v3210_v31, 1  ;;  %v3278_v2 = vunpack.c.h.bf16 %v2835_v46 }
  0x64   :  { %v3129_v3 = vpop.permute.xlu2 %178 }
  0x65   :  { %4986 = vst [vmem:[#allocation5_spill] sm:$0xff] %v3129_v3 }
  0x6a   :  { %358 = vperm.xlu2 %2852, %v128_v4   ;;  %v1060_v4 = vperm.slane %v3214_v32, 1 }
  0x6b   :  { %353 = vperm.xlu1 %2851, %v127_v5   ;;  %348 = vperm.xlu0 %2850, %v126_v6   ;;  %v1107_v5 = vperm.slane %v3216_v33, 1  ;;  %v1154_v6 = vperm.slane %v3218_v34, 1 }
  0x6c   :  { %2701 = vmatmul.msk.bf16.gmra.mxu0 %vm643_vm0, %v2733_v7  ;;  %2709 = vmatmul.msk.bf16.gmra.mxu1 %vm643_vm0, %v2741_v8  ;;  %v3154_v11 = vpop.permute.xlu2 %193  ;;  %v1201_v7 = vperm.slane %v3220_v35, 1 }
  0x6d   :  { %4987 = vst [vmem:[#allocation6_spill] sm:$0xff] %v3154_v11  ;;  %2717 = vmatmul.msk.bf16.gmra.mxu2 %vm643_vm0, %v2749_v9  ;;  %2725 = vmatmul.msk.bf16.gmra.mxu3 %vm643_vm0, %v2757_v10  ;;  %v1248_v10 = vperm.slane %v3228_v38, 1 }
  0x72   :  { %373 = vperm.xlu2 %2852, %v131_v12   ;;  %v1695_v12 = vperm.slane %v3261_v55, 1 }
  0x73   :  { %368 = vperm.xlu1 %2851, %v130_v13   ;;  %363 = vperm.xlu0 %2850, %v129_v14   ;;  %v1734_v13 = vperm.slane %v3263_v56, 1  ;;  %v1781_v14 = vperm.slane %v3265_v57, 1 }
  0x74   :  { %v3171_v17 = vpop.permute.xlu2 %208 }
  0x75   :  { %v3167_v15 = vpop.permute.xlu1 %163  ;;  %v3169_v16 = vpop.permute.xlu0 %153  ;;  %4988 = vst [vmem:[#allocation7_spill] sm:$0xff] %v3171_v17 }
  0x7a   :  { %388 = vperm.xlu2 %2852, %v134_v18  }
  0x7b   :  { %383 = vperm.xlu1 %2851, %v133_v19   ;;  %378 = vperm.xlu0 %2850, %v132_v20  }
  0x7c   :  { %2702 = vmatmul.msk.bf16.gmra.mxu0 %vm643_vm0, %v2734_v21  ;;  %2710 = vmatmul.msk.bf16.gmra.mxu1 %vm643_vm0, %v2742_v22  ;;  %v3248_v47 = vpop.permute.xlu2 %223  ;;  %v140_v22 = vld [vmem:[%s4916_s3 + $0x1a8] sm:$0xff] }
  0x7d   :  { %2718 = vmatmul.msk.bf16.gmra.mxu2 %vm643_vm0, %v2750_v23  ;;  %2726 = vmatmul.msk.bf16.gmra.mxu3 %vm643_vm0, %v2758_v26  ;;  %v3224_v36 = vpop.permute.xlu1 %168  ;;  %v3226_v37 = vpop.permute.xlu0 %158  ;;  %4990 = vst [vmem:[#allocation9_spill] sm:$0xff] %v3248_v47 }
  0x82   :  { %403 = vperm.xlu2 %2852, %v137_v41  }
  0x83   :  { %398 = vperm.xlu1 %2851, %v136_v48   ;;  %393 = vperm.xlu0 %2850, %v135_v49  }
  0x84   :  { %v239_v23 = vpop.permute.xlu2 %238 }
  0x85   :  { %v3284_v8 = vpop.permute.xlu1 %188  ;;  %v3286_v9 = vpop.permute.xlu0 %183 }
  0x86   :  { %4996 = vst [vmem:[#allocation15_spill] sm:$0xff] %v3284_v8 }
  0x87   :  { %4997 = vst [vmem:[#allocation16_spill] sm:$0xff] %v3286_v9 }
  0x89   :  { %v749_v46 = vpop.f32.mrf.mxu0  ;;  %v3313_v48 = vpop.f32.mrf.mxu1 }
  0x8a   :  { %v750_v39 = vadd.f32 %v749_v46, %v3169_v16  ;;  %418 = vperm.xlu2 %2852, %v140_v22  }
  0x8b   :  { %413 = vperm.xlu1 %2851, %v139_v27   ;;  %408 = vperm.xlu0 %2850, %v138_v28  }
  0x8c   :  { %v926_v21 = vmul.f32 %v925_v42, %v750_v39  ;;  %v965_v22 = vmul.f32 %v964_v43, %v750_v39  ;;  %v1012_v49 = vmul.f32 %v1011_v44, %v750_v39  ;;  %v1059_v26 = vmul.f32 %v1058_v50, %v750_v39  ;;  %v143_v42 = vld [vmem:[%s4916_s3 + $0x1c0] sm:$0xff]  ;;  %v142_v44 = vld [vmem:[%s4916_s3 + $0x1b8] sm:$0xff]  ;;  %v141_v50 = vld [vmem:[%s4916_s3 + $0x1b0] sm:$0xff]  ;;  %v3379_v18 = vpop.permute.xlu2 %253 }
  0x8d   :  { %v3331_v41 = vpop.permute.xlu1 %203  ;;  %v3333_v27 = vpop.permute.xlu0 %198  ;;  %v1106_v25 = vmul.f32 %v1105_v51, %v750_v39  ;;  %v1153_v24 = vmul.f32 %v1152_v52, %v750_v39  ;;  %v1200_v43 = vmul.f32 %v1199_v53, %v750_v39  ;;  %v1247_v16 = vmul.f32 %v1246_v54, %v750_v39  ;;  %v145_v53 = vld [vmem:[%s4916_s3 + $0x1d0] sm:$0xff] }
  0x8e   :  { %4998 = vst [vmem:[#allocation17_spill] sm:$0xff] %v3331_v41 }
  0x8f   :  { %4999 = vst [vmem:[#allocation18_spill] sm:$0xff] %v3333_v27 }
  0x91   :  { %v751_v46 = vpop.f32.mrf.mxu0  ;;  %v791_v28 = vpop.f32.mrf.mxu1 }
  0x92   :  { %v752_v40 = vadd.f32 %v751_v46, %v3226_v37  ;;  %433 = vperm.xlu2 %2852, %v143_v42   ;;  %v792_v52 = vadd.f32 %v791_v28, %v239_v23 }
  0x93   :  { %428 = vperm.xlu1 %2851, %v142_v44   ;;  %423 = vperm.xlu0 %2850, %v141_v50  }
  0x94   :  { %v928_v37 = vmul.f32 %v927_v62, %v752_v40  ;;  %v967_v46 = vmul.f32 %v966_v0, %v752_v40  ;;  %v1014_v42 = vmul.f32 %v1013_v1, %v752_v40  ;;  %v1061_v23 = vmul.f32 %v1060_v4, %v752_v40 }
  0x95   :  { %v1108_v28 = vmul.f32 %v1107_v5, %v752_v40  ;;  %v1155_v44 = vmul.f32 %v1154_v6, %v752_v40  ;;  %v1202_v50 = vmul.f32 %v1201_v7, %v752_v40  ;;  %v1249_v62 = vmul.f32 %v1248_v10, %v752_v40  ;;  %v3397_v54 = vpop.permute.xlu1 %218  ;;  %v3399_v0 = vpop.permute.xlu0 %213  ;;  %v146_v7 = vld [vmem:[%s4916_s3 + $0x1d8] sm:$0xff] }
  0x96   :  { %5000 = vst [vmem:[#allocation19_spill] sm:$0xff] %v3397_v54  ;;  %v929_v45 = vadd.f32 %v928_v37, %v926_v21  ;;  %v968_v6 = vadd.f32 %v967_v46, %v965_v22  ;;  %v1015_v51 = vadd.f32 %v1014_v42, %v1012_v49  ;;  %v1062_v19 = vadd.f32 %v1061_v23, %v1059_v26  ;;  %v144_v21 = vld [vmem:[%s4916_s3 + $0x1c8] sm:$0xff]  ;;  %v3416_v22 = vpop.f32.mrf.mxu2 }
  0x97   :  { %5001 = vst [vmem:[#allocation20_spill] sm:$0xff] %v3399_v0  ;;  %v1109_v20 = vadd.f32 %v1108_v28, %v1106_v25  ;;  %v1156_v1 = vadd.f32 %v1155_v44, %v1153_v24  ;;  %v1203_v37 = vadd.f32 %v1202_v50, %v1200_v43  ;;  %v1250_v46 = vadd.f32 %v1249_v62, %v1247_v16  ;;  %v3460_v0 = vpop.permute.xlu2 %268 }
  0x98   :  { %5002 = vst [vmem:[#allocation21_spill] sm:$0xff] %v3416_v22  ;;  %v1696_v10 = vmul.f32 %v1695_v12, %v792_v52  ;;  %v1735_v26 = vmul.f32 %v1734_v13, %v792_v52  ;;  %v1782_v24 = vmul.f32 %v1781_v14, %v792_v52  ;;  %v5003_v49 = vperm.slane %v3267_v58, 1 }
  0x99   :  { %v754_v25 = vpop.f32.mrf.mxu0  ;;  %v5004_v23 = vperm.slane %v3269_v59, 1  ;;  %v5005_v16 = vperm.slane %v3271_v60, 1  ;;  %v5006_v12 = vperm.slane %v3273_v61, 1  ;;  %v5007_v13 = vperm.slane %v3278_v2, 1  ;;  %5017 = vst [vmem:[#allocation23_spill] sm:$0xff] %v3460_v0 }
  0x9a   :  { %v1829_v42 = vmul.f32 %v5003_v49, %v792_v52  ;;  %v755_v44 = vadd.f32 %v754_v25, %v3167_v15  ;;  %448 = vperm.xlu2 %2852, %v146_v7   ;;  %v5008_v49 = vperm.slane %v3206_v29, 2  ;;  %v5010_v7 = vperm.slane %v3210_v31, 2 }
  0x9b   :  { %v1876_v28 = vmul.f32 %v5004_v23, %v792_v52  ;;  %v1923_v43 = vmul.f32 %v5005_v16, %v792_v52  ;;  %v1970_v50 = vmul.f32 %v5006_v12, %v792_v52  ;;  %v2017_v62 = vmul.f32 %v5007_v13, %v792_v52  ;;  %443 = vperm.xlu1 %2851, %v145_v53   ;;  %v3444_v12 = vpop.f32.mrf.mxu1 }
  0x9c   :  { %438 = vperm.xlu0 %2850, %v144_v21   ;;  %v931_v40 = vmul.f32 %v5008_v49, %v755_v44  ;;  %v5009_v23 = vperm.slane %v3208_v30, 2  ;;  %v1017_v25 = vmul.f32 %v5010_v7, %v755_v44  ;;  %v5011_v16 = vperm.slane %v3214_v32, 2 }
  0x9d   :  { %v5012_v52 = vperm.slane %v3216_v33, 2  ;;  %v5013_v21 = vperm.slane %v3218_v34, 2  ;;  %v5014_v14 = vperm.slane %v3220_v35, 2  ;;  %v5015_v4 = vperm.slane %v3228_v38, 2  ;;  %v234_v39 = vpop.permute.xlu1 %233  ;;  %v3454_v47 = vpop.permute.xlu0 %228 }
  0x9e   :  { %v970_v15 = vmul.f32 %v5009_v23, %v755_v44  ;;  %v1064_v5 = vmul.f32 %v5011_v16, %v755_v44  ;;  %5016 = vst [vmem:[#allocation22_spill] sm:$0xff] %v3454_v47  ;;  %v1018_v47 = vadd.f32 %v1017_v25, %v1015_v51  ;;  %v790_v54 = vadd.f32 %v3313_v48, %v234_v39 }
  0x9f   :  { %v1111_v53 = vmul.f32 %v5012_v52, %v755_v44  ;;  %v1158_v13 = vmul.f32 %v5013_v21, %v755_v44  ;;  %v1205_v49 = vmul.f32 %v5014_v14, %v755_v44  ;;  %v1252_v23 = vmul.f32 %v5015_v4, %v755_v44  ;;  %v149_v14 = vld [vmem:[%s4916_s3 + $0x1f0] sm:$0xff]  ;;  %v148_v52 = vld [vmem:[%s4916_s3 + $0x1e8] sm:$0xff] }
  0xa0   :  { %v932_v21 = vadd.f32 %v931_v40, %v929_v45  ;;  %v971_v17 = vadd.f32 %v970_v15, %v968_v6  ;;  %v1065_v7 = vadd.f32 %v1064_v5, %v1062_v19  ;;  %v147_v15 = vld [vmem:[%s4916_s3 + $0x1e0] sm:$0xff]  ;;  %v5019_v48 = vperm.slane %v3263_v56, 0 }
  0xa1   :  { %v3467_v41 = vadd.f32 %v1111_v53, %v1109_v20  ;;  %v3473_v45 = vadd.f32 %v1158_v13, %v1156_v1  ;;  %v3475_v6 = vadd.f32 %v1205_v49, %v1203_v37  ;;  %v3477_v40 = vadd.f32 %v1252_v23, %v1250_v46  ;;  %v3491_v46 = vpop.f32.mrf.mxu2  ;;  %v756_v4 = vpop.f32.mrf.mxu0 }
  0xa2   :  { %v5018_v20 = vperm.slane %v3261_v55, 0  ;;  %v1733_v39 = vmul.f32 %v5019_v48, %v790_v54  ;;  %v5020_v5 = vperm.slane %v3265_v57, 0  ;;  %v5021_v37 = vperm.slane %v3267_v58, 0  ;;  %463 = vperm.xlu2 %2852, %v149_v14   ;;  %5022 = vst [vmem:[#allocation24_spill] sm:$0xff] %v3491_v46 }
  0xa3   :  { %v5023_v53 = vperm.slane %v3269_v59, 0  ;;  %v5024_v49 = vperm.slane %v3271_v60, 0  ;;  %v5026_v48 = vperm.slane %v3278_v2, 0  ;;  %458 = vperm.xlu1 %2851, %v148_v52   ;;  %v796_v8 = vpop.f32.mrf.mxu1 }
  0xa4   :  { %v1694_v51 = vmul.f32 %v5018_v20, %v790_v54  ;;  %v1780_v1 = vmul.f32 %v5020_v5, %v790_v54  ;;  %v1827_v25 = vmul.f32 %v5021_v37, %v790_v54  ;;  %v5025_v20 = vperm.slane %v3273_v61, 0  ;;  %453 = vperm.xlu0 %2850, %v147_v15  }
  0xa5   :  { %v1874_v13 = vmul.f32 %v5023_v53, %v790_v54  ;;  %v1921_v23 = vmul.f32 %v5024_v49, %v790_v54  ;;  %v2015_v44 = vmul.f32 %v5026_v48, %v790_v54  ;;  %v1736_v16 = vadd.f32 %v1735_v26, %v1733_v39  ;;  %v249_v0 = vpop.permute.xlu1 %248  ;;  %v244_v9 = vpop.permute.xlu0 %243 }
  0xa6   :  { %v1968_v19 = vmul.f32 %v5025_v20, %v790_v54  ;;  %v1697_v5 = vadd.f32 %v1696_v10, %v1694_v51  ;;  %v1783_v37 = vadd.f32 %v1782_v24, %v1780_v1  ;;  %v1830_v14 = vadd.f32 %v1829_v42, %v1827_v25 }
  0xa7   :  { %v1877_v46 = vadd.f32 %v1876_v28, %v1874_v13  ;;  %v1924_v27 = vadd.f32 %v1923_v43, %v1921_v23  ;;  %v2018_v53 = vadd.f32 %v2017_v62, %v2015_v44  ;;  %v757_v49 = vadd.f32 %v756_v4, %v3224_v36 }
  0xa8   :  { %v1971_v11 = vadd.f32 %v1970_v50, %v1968_v19  ;;  %v3505_v10 = vadd.f32 %v796_v8, %v249_v0  ;;  %v5027_v28 = vperm.slane %v3206_v29, 3  ;;  %v5028_v36 = vperm.slane %v3208_v30, 3  ;;  %v3518_v8 = vpop.permute.xlu2 %283  ;;  %v150_v19 = vld [vmem:[%s4916_s3 + $0x1f8] sm:$0xff] }
  0xa9   :  { %v5029_v62 = vperm.slane %v3210_v31, 3  ;;  %v5030_v44 = vperm.slane %v3214_v32, 3  ;;  %5031 = vst [vmem:[#allocation25_spill] sm:$0xff] %v3518_v8  ;;  %v795_v0 = vadd.f32 %v3444_v12, %v244_v9  ;;  %v5032_v25 = vperm.slane %v3216_v33, 3 }
  0xaa   :  { %v934_v43 = vmul.f32 %v5027_v28, %v757_v49  ;;  %v973_v50 = vmul.f32 %v5028_v36, %v757_v49  ;;  %v5033_v23 = vperm.slane %v3218_v34, 3  ;;  %v5035_v51 = vperm.slane %v3228_v38, 3 }
  0xab   :  { %v1020_v4 = vmul.f32 %v5029_v62, %v757_v49  ;;  %v1067_v15 = vmul.f32 %v5030_v44, %v757_v49  ;;  %v1114_v13 = vmul.f32 %v5032_v25, %v757_v49  ;;  %v5034_v62 = vperm.slane %v3220_v35, 3 }
  0xac   :  { %v1161_v48 = vmul.f32 %v5033_v23, %v757_v49  ;;  %v935_v12 = vadd.f32 %v934_v43, %v932_v21  ;;  %v974_v36 = vadd.f32 %v973_v50, %v971_v17  ;;  %v1255_v39 = vmul.f32 %v5035_v51, %v757_v49  ;;  %468 = vperm.xlu0 %2850, %v150_v19   ;;  %v3547_v17 = vpop.f32.mrf.mxu2 }
  0xad   :  { %v1208_v44 = vmul.f32 %v5034_v62, %v757_v49  ;;  %v3537_v42 = vadd.f32 %v1020_v4, %v1018_v47  ;;  %v3539_v1 = vadd.f32 %v1067_v15, %v1065_v7  ;;  %v5038_v25 = vperm.slane %v3261_v55, 3  ;;  %5040 = vst [vmem:[#allocation28_spill] sm:$0xff] %v3547_v17  ;;  %v759_v17 = vpop.f32.mrf.mxu0 }
  0xae   :  { %v5039_v28 = vperm.slane %v3263_v56, 3  ;;  %v5041_v21 = vperm.slane %v3265_v57, 3  ;;  %v5042_v47 = vperm.slane %v3267_v58, 3  ;;  %v5043_v49 = vperm.slane %v3269_v59, 3 }
  0xaf   :  { %5036 = vst [vmem:[#allocation26_spill] sm:$0xff] %v3537_v42  ;;  %v1702_v23 = vmul.f32 %v5038_v25, %v3505_v10  ;;  %v5044_v4 = vperm.slane %v3271_v60, 3  ;;  %v5045_v19 = vperm.slane %v3261_v55, 2  ;;  %v5047_v25 = vperm.slane %v3265_v57, 2 }
  0xb0   :  { %5037 = vst [vmem:[#allocation27_spill] sm:$0xff] %v3539_v1  ;;  %v1741_v9 = vmul.f32 %v5039_v28, %v3505_v10  ;;  %v1788_v43 = vmul.f32 %v5041_v21, %v3505_v10  ;;  %v1835_v7 = vmul.f32 %v5042_v47, %v3505_v10  ;;  %v1882_v50 = vmul.f32 %v5043_v49, %v3505_v10  ;;  %v799_v1 = vpop.f32.mrf.mxu1 }
  0xb1   :  { %v1929_v15 = vmul.f32 %v5044_v4, %v3505_v10  ;;  %v1699_v51 = vmul.f32 %v5045_v19, %v795_v0  ;;  %v5046_v28 = vperm.slane %v3263_v56, 2  ;;  %v1785_v21 = vmul.f32 %v5047_v25, %v795_v0 }
  0xb2   :  { %v5048_v24 = vperm.slane %v3267_v58, 2  ;;  %v5049_v26 = vperm.slane %v3269_v59, 2  ;;  %v5050_v49 = vperm.slane %v3271_v60, 2  ;;  %v5051_v4 = vperm.slane %v3273_v61, 2 }
  0xb3   :  { %v1738_v62 = vmul.f32 %v5046_v28, %v795_v0  ;;  %v5052_v19 = vperm.slane %v3278_v2, 2  ;;  %v1700_v28 = vadd.f32 %v1699_v51, %v1697_v5  ;;  %v1786_v3 = vadd.f32 %v1785_v21, %v1783_v37  ;;  %v5070_v21 = vld [vmem:[#allocation12_spill] sm:$0xff] }
  0xb4   :  { %v1832_v47 = vmul.f32 %v5048_v24, %v795_v0  ;;  %v1879_v52 = vmul.f32 %v5049_v26, %v795_v0  ;;  %v1926_v54 = vmul.f32 %v5050_v49, %v795_v0  ;;  %v1973_v20 = vmul.f32 %v5051_v4, %v795_v0  ;;  %v3579_v4 = vpop.permute.xlu2 %298 }
  0xb5   :  { %v2020_v8 = vmul.f32 %v5052_v19, %v795_v0  ;;  %v1739_v22 = vadd.f32 %v1738_v62, %v1736_v16  ;;  %v1115_v26 = vadd.f32 %v1114_v13, %v3467_v41  ;;  %v760_v49 = vadd.f32 %v759_v17, %v3116_v63  ;;  %5053 = vst [vmem:[#allocation29_spill] sm:$0xff] %v3579_v4 }
  0xb6   :  { %v1833_v25 = vadd.f32 %v1832_v47, %v1830_v14  ;;  %v1880_v42 = vadd.f32 %v1879_v52, %v1877_v46  ;;  %v1927_v24 = vadd.f32 %v1926_v54, %v1924_v27  ;;  %v1974_v58 = vadd.f32 %v1973_v20, %v1971_v11 }
  0xb7   :  { %v2021_v59 = vadd.f32 %v2020_v8, %v2018_v53  ;;  %v1703_v60 = vadd.f32 %v1702_v23, %v1700_v28  ;;  %v1742_v57 = vadd.f32 %v1741_v9, %v1739_v22  ;;  %v1789_v56 = vadd.f32 %v1788_v43, %v1786_v3  ;;  %v5066_v43 = vld [vmem:[#allocation10_spill] sm:$0xff] }
  0xb8   :  { %v1836_v0 = vadd.f32 %v1835_v7, %v1833_v25  ;;  %v1883_v19 = vadd.f32 %v1882_v50, %v1880_v42  ;;  %v1930_v5 = vadd.f32 %v1929_v15, %v1927_v24  ;;  %v1162_v16 = vadd.f32 %v1161_v48, %v3473_v45  ;;  %v5068_v15 = vld [vmem:[#allocation11_spill] sm:$0xff]  ;;  %v5074_v24 = vld [vmem:[#allocation14_spill] sm:$0xff] }
  0xb9   :  { %v5054_v37 = vperm.slane %v3206_v29, 4  ;;  %v5055_v11 = vperm.slane %v3208_v30, 4  ;;  %v800_v41 = vadd.f32 %v799_v1, %v3379_v18  ;;  %v1209_v63 = vadd.f32 %v1208_v44, %v3475_v6 }
  0xba   :  { %v1256_v22 = vadd.f32 %v1255_v39, %v3477_v40  ;;  %v5056_v3 = vperm.slane %v3273_v61, 3  ;;  %v5057_v53 = vperm.slane %v3278_v2, 3  ;;  %v5058_v20 = vperm.slane %v3210_v31, 4  ;;  %v3603_v39 = vpop.f32.mrf.mxu2 }
  0xbb   :  { %v937_v46 = vmul.f32 %v5054_v37, %v760_v49  ;;  %v976_v27 = vmul.f32 %v5055_v11, %v760_v49  ;;  %v5059_v52 = vperm.slane %v3214_v32, 4  ;;  %v5060_v18 = vperm.slane %v3216_v33, 4  ;;  %5062 = vst [vmem:[#allocation30_spill] sm:$0xff] %v3603_v39  ;;  %v5080_v39 = vld [vmem:[#allocation5_spill] sm:$0xff] }
  0xbc   :  { %v1976_v14 = vmul.f32 %v5056_v3, %v3505_v10  ;;  %v2023_v45 = vmul.f32 %v5057_v53, %v3505_v10  ;;  %v1023_v54 = vmul.f32 %v5058_v20, %v760_v49  ;;  %v5061_v6 = vperm.slane %v3218_v34, 4  ;;  %v761_v3 = vpop.f32.mrf.mxu0 }
  0xbd   :  { %v1070_v42 = vmul.f32 %v5059_v52, %v760_v49  ;;  %v1117_v8 = vmul.f32 %v5060_v18, %v760_v49  ;;  %v938_v1 = vadd.f32 %v937_v46, %v935_v12  ;;  %v977_v13 = vadd.f32 %v976_v27, %v974_v36  ;;  %v5072_v12 = vld [vmem:[#allocation13_spill] sm:$0xff] }
  0xbe   :  { %v1164_v40 = vmul.f32 %v5061_v6, %v760_v49  ;;  %v5063_v48 = vperm.slane %v3220_v35, 4  ;;  %v5064_v10 = vperm.slane %v3228_v38, 4  ;;  %v5065_v23 = vperm.slane %v3261_v55, 4  ;;  %v801_v6 = vpop.f32.mrf.mxu1 }
  0xbf   :  { %v5067_v7 = vperm.slane %v5066_v43, 4  ;;  %v5069_v51 = vperm.slane %v5068_v15, 4  ;;  %v5071_v47 = vperm.slane %v5070_v21, 4  ;;  %v5073_v36 = vperm.slane %v5072_v12, 4 }
  0xc0   :  { %v1211_v9 = vmul.f32 %v5063_v48, %v760_v49  ;;  %v1258_v44 = vmul.f32 %v5064_v10, %v760_v49  ;;  %v1705_v17 = vmul.f32 %v5065_v23, %v800_v41  ;;  %v5075_v37 = vperm.slane %v5074_v24, 4 }
  0xc1   :  { %v1744_v50 = vmul.f32 %v5067_v7, %v800_v41  ;;  %v1791_v62 = vmul.f32 %v5069_v51, %v800_v41  ;;  %v1838_v28 = vmul.f32 %v5071_v47, %v800_v41  ;;  %v1885_v25 = vmul.f32 %v5073_v36, %v800_v41  ;;  %v5077_v51 = vld [vmem:[#allocation26_spill] sm:$0xff]  ;;  %v5078_v36 = vld [vmem:[#allocation27_spill] sm:$0xff] }
  0xc2   :  { %v1932_v46 = vmul.f32 %v5075_v37, %v800_v41  ;;  %v1977_v11 = vadd.f32 %v1976_v14, %v1974_v58  ;;  %v5076_v49 = vperm.slane %v3273_v61, 4  ;;  %v1706_v53 = vadd.f32 %v1705_v17, %v1703_v60  ;;  %v259_v14 = vpop.permute.xlu0 %258  ;;  %v314_v60 = vpop.permute.xlu2 %313 }
  0xc3   :  { %v1745_v20 = vadd.f32 %v1744_v50, %v1742_v57  ;;  %v1792_v52 = vadd.f32 %v1791_v62, %v1789_v56  ;;  %v1839_v18 = vadd.f32 %v1838_v28, %v1836_v0  ;;  %v1886_v48 = vadd.f32 %v1885_v25, %v1883_v19  ;;  %v5084_v62 = vld [vmem:[#allocation21_spill] sm:$0xff] }
  0xc4   :  { %v1979_v27 = vmul.f32 %v5076_v49, %v800_v41  ;;  %v1933_v10 = vadd.f32 %v1932_v46, %v1930_v5  ;;  %v2024_v7 = vadd.f32 %v2023_v45, %v2021_v59  ;;  %v1024_v47 = vadd.f32 %v1023_v54, %v5077_v51 }
  0xc5   :  { %v1071_v4 = vadd.f32 %v1070_v42, %v5078_v36  ;;  %v5079_v37 = vperm.slane %v3278_v2, 4  ;;  %v762_v49 = vadd.f32 %v761_v3, %v5080_v39  ;;  %v1118_v38 = vadd.f32 %v1117_v8, %v1115_v26  ;;  %v3645_v3 = vpop.f32.mrf.mxu2 }
  0xc6   :  { %v1980_v23 = vadd.f32 %v1979_v27, %v1977_v11  ;;  %v802_v57 = vadd.f32 %v801_v6, %v259_v14  ;;  %v1746_v56 = vperm.slane %v5066_v43, 5  ;;  %v1793_v0 = vperm.slane %v5068_v15, 5  ;;  %5088 = vst [vmem:[#allocation11_spill] sm:$0xff] %v3645_v3 }
  0xc7   :  { %v2026_v58 = vmul.f32 %v5079_v37, %v800_v41  ;;  %v5081_v59 = vperm.slane %v3206_v29, 5  ;;  %v5082_v45 = vperm.slane %v3208_v30, 5  ;;  %v5083_v42 = vperm.slane %v3210_v31, 5 }
  0xc8   :  { %v1165_v17 = vadd.f32 %v1164_v40, %v1162_v16  ;;  %v1212_v50 = vadd.f32 %v1211_v9, %v1209_v63  ;;  %v1840_v26 = vperm.slane %v5070_v21, 5  ;;  %v1887_v8 = vperm.slane %v5072_v12, 5 }
  0xc9   :  { %v2027_v19 = vadd.f32 %v2026_v58, %v2024_v7  ;;  %v940_v5 = vmul.f32 %v5081_v59, %v762_v49  ;;  %v979_v54 = vmul.f32 %v5082_v45, %v762_v49  ;;  %v1026_v41 = vmul.f32 %v5083_v42, %v762_v49  ;;  %v264_v42 = vpop.permute.xlu1 %263 }
  0xca   :  { %v1259_v39 = vadd.f32 %v1258_v44, %v1256_v22  ;;  %v3639_v28 = vadd.f32 %v5084_v62, %v314_v60  ;;  %v5086_v25 = vperm.slane %v3214_v32, 5  ;;  %v5087_v11 = vperm.slane %v3216_v33, 5 }
  0xcb   :  { %v941_v6 = vadd.f32 %v940_v5, %v938_v1  ;;  %v980_v7 = vadd.f32 %v979_v54, %v977_v13  ;;  %v5089_v16 = vperm.slane %v3218_v34, 5  ;;  %v5090_v40 = vperm.slane %v3220_v35, 5  ;;  %v764_v1 = vpop.f32.mrf.mxu0 }
  0xcc   :  { %5085 = vst [vmem:[#allocation10_spill] sm:$0xff] %v3639_v28  ;;  %v1073_v46 = vmul.f32 %v5086_v25, %v762_v49  ;;  %v1120_v27 = vmul.f32 %v5087_v11, %v762_v49  ;;  %v1027_v22 = vadd.f32 %v1026_v41, %v1024_v47  ;;  %v5091_v44 = vperm.slane %v3261_v55, 5  ;;  %v5092_v11 = vld [vmem:[#allocation8_spill] sm:$0xff] }
  0xcd   :  { %v1167_v63 = vmul.f32 %v5089_v16, %v762_v49  ;;  %v1214_v9 = vmul.f32 %v5090_v40, %v762_v49  ;;  %v1747_v36 = vmul.f32 %v1746_v56, %v802_v57  ;;  %v1794_v37 = vmul.f32 %v1793_v0, %v802_v57 }
  0xce   :  { %v1708_v51 = vmul.f32 %v5091_v44, %v802_v57  ;;  %v1841_v58 = vmul.f32 %v1840_v26, %v802_v57  ;;  %v1888_v14 = vmul.f32 %v1887_v8, %v802_v57  ;;  %v1934_v60 = vperm.slane %v5074_v24, 5  ;;  %v5094_v8 = vld [vmem:[#allocation16_spill] sm:$0xff] }
  0xcf   :  { %v1981_v59 = vperm.slane %v3273_v61, 5  ;;  %v1748_v5 = vadd.f32 %v1747_v36, %v1745_v20  ;;  %v1795_v45 = vadd.f32 %v1794_v37, %v1792_v52  ;;  %v2028_v54 = vperm.slane %v3278_v2, 5 }
  0xd0   :  { %v1709_v13 = vadd.f32 %v1708_v51, %v1706_v53  ;;  %v1842_v62 = vadd.f32 %v1841_v58, %v1839_v18  ;;  %v1889_v47 = vadd.f32 %v1888_v14, %v1886_v48  ;;  %v1935_v41 = vmul.f32 %v1934_v60, %v802_v57  ;;  %v329_v51 = vpop.permute.xlu2 %328  ;;  %v804_v14 = vpop.f32.mrf.mxu1 }
  0xd1   :  { %v1982_v25 = vmul.f32 %v1981_v59, %v802_v57  ;;  %v5093_v56 = vperm.slane %v5092_v11, 5  ;;  %v2029_v26 = vmul.f32 %v2028_v54, %v802_v57  ;;  %v765_v16 = vadd.f32 %v764_v1, %v5094_v8  ;;  %v3665_v60 = vpop.f32.mrf.mxu3  ;;  %v5096_v54 = vld [vmem:[#allocation30_spill] sm:$0xff] }
  0xd2   :  { %v942_v40 = vperm.slane %v3206_v29, 6  ;;  %v1936_v44 = vadd.f32 %v1935_v41, %v1933_v10  ;;  %v981_v53 = vperm.slane %v3208_v30, 6  ;;  %v1028_v20 = vperm.slane %v3210_v31, 6  ;;  %5095 = vst [vmem:[#allocation12_spill] sm:$0xff] %v3665_v60 }
  0xd3   :  { %v1261_v0 = vmul.f32 %v5093_v56, %v762_v49  ;;  %v1983_v28 = vadd.f32 %v1982_v25, %v1980_v23  ;;  %v2030_v52 = vadd.f32 %v2029_v26, %v2027_v19  ;;  %v1075_v48 = vperm.slane %v3214_v32, 6  ;;  %v3671_v25 = vpop.f32.mrf.mxu2 }
  0xd4   :  { %v943_v18 = vmul.f32 %v942_v40, %v765_v16  ;;  %v1122_v36 = vperm.slane %v3216_v33, 6  ;;  %v1074_v37 = vadd.f32 %v1073_v46, %v1071_v4  ;;  %v982_v49 = vmul.f32 %v981_v53, %v765_v16  ;;  %5098 = vst [vmem:[#allocation14_spill] sm:$0xff] %v3671_v25 }
  0xd5   :  { %v1029_v57 = vmul.f32 %v1028_v20, %v765_v16  ;;  %v1169_v58 = vperm.slane %v3218_v34, 6  ;;  %v1121_v10 = vadd.f32 %v1120_v27, %v1118_v38  ;;  %v1168_v23 = vadd.f32 %v1167_v63, %v1165_v17  ;;  %v3685_v20 = vpop.permute.xlu0 %273 }
  0xd6   :  { %v1215_v59 = vadd.f32 %v1214_v9, %v1212_v50  ;;  %v1216_v1 = vperm.slane %v3220_v35, 6  ;;  %v1262_v19 = vadd.f32 %v1261_v0, %v1259_v39  ;;  %v3669_v41 = vadd.f32 %v5096_v54, %v329_v51  ;;  %v3681_v9 = vpop.permute.xlu1 %278 }
  0xd7   :  { %v944_v56 = vadd.f32 %v943_v18, %v941_v6  ;;  %v1076_v4 = vmul.f32 %v1075_v48, %v765_v16  ;;  %v983_v46 = vadd.f32 %v982_v49, %v980_v7  ;;  %v1123_v26 = vmul.f32 %v1122_v36, %v765_v16  ;;  %5099 = vst [vmem:[#allocation26_spill] sm:$0xff] %v3681_v9  ;;  %v766_v49 = vpop.f32.mrf.mxu0 }
  0xd8   :  { %5097 = vst [vmem:[#allocation13_spill] sm:$0xff] %v3669_v41  ;;  %v1263_v8 = vperm.slane %v5092_v11, 6  ;;  %v805_v40 = vadd.f32 %v804_v14, %v264_v42  ;;  %v3674_v53 = vadd.f32 %v1029_v57, %v1027_v22  ;;  %v1170_v38 = vmul.f32 %v1169_v58, %v765_v16 }
  0xd9   :  { %v1710_v17 = vperm.slane %v3261_v55, 6  ;;  %v1749_v50 = vperm.slane %v5066_v43, 6  ;;  %v1217_v39 = vmul.f32 %v1216_v1, %v765_v16  ;;  %v1796_v27 = vperm.slane %v5068_v15, 6 }
  0xda   :  { %v1843_v63 = vperm.slane %v5070_v21, 6  ;;  %v1890_v6 = vperm.slane %v5072_v12, 6  ;;  %v1937_v42 = vperm.slane %v5074_v24, 6  ;;  %v1984_v22 = vperm.slane %v3273_v61, 6 }
  0xdb   :  { %v1711_v7 = vmul.f32 %v1710_v17, %v805_v40  ;;  %v1750_v0 = vmul.f32 %v1749_v50, %v805_v40  ;;  %v1797_v51 = vmul.f32 %v1796_v27, %v805_v40  ;;  %v2031_v36 = vperm.slane %v3278_v2, 6  ;;  %v5100_v27 = vld [vmem:[#allocation15_spill] sm:$0xff] }
  0xdc   :  { %v1844_v18 = vmul.f32 %v1843_v63, %v805_v40  ;;  %v1891_v48 = vmul.f32 %v1890_v6, %v805_v40  ;;  %v1938_v14 = vmul.f32 %v1937_v42, %v805_v40  ;;  %v1985_v1 = vmul.f32 %v1984_v22, %v805_v40  ;;  %v3695_v6 = vpop.f32.mrf.mxu3 }
  0xdd   :  { %v1712_v57 = vadd.f32 %v1711_v7, %v1709_v13  ;;  %v1751_v58 = vadd.f32 %v1750_v0, %v1748_v5  ;;  %v3688_v54 = vadd.f32 %v1797_v51, %v1795_v45  ;;  %v2032_v60 = vmul.f32 %v2031_v36, %v805_v40  ;;  %5101 = vst [vmem:[#allocation27_spill] sm:$0xff] %v3695_v6  ;;  %v344_v7 = vpop.permute.xlu2 %343 }
  0xde   :  { %v3690_v17 = vadd.f32 %v1844_v18, %v1842_v62  ;;  %v3692_v50 = vadd.f32 %v1891_v48, %v1889_v47  ;;  %v1264_v41 = vmul.f32 %v1263_v8, %v765_v16  ;;  %v1939_v3 = vadd.f32 %v1938_v14, %v1936_v44  ;;  %v844_v62 = vpop.f32.mrf.mxu2  ;;  %v3713_v48 = vpop.permute.xlu0 %288 }
  0xdf   :  { %v1986_v25 = vadd.f32 %v1985_v1, %v1983_v28  ;;  %v767_v63 = vadd.f32 %v766_v49, %v5100_v27  ;;  %v2033_v9 = vadd.f32 %v2032_v60, %v2030_v52  ;;  %v945_v13 = vperm.slane %v3206_v29, 7  ;;  %5105 = vst [vmem:[#allocation16_spill] sm:$0xff] %v3713_v48 }
  0xe0   :  { %v984_v5 = vperm.slane %v3208_v30, 7  ;;  %v1031_v45 = vperm.slane %v3210_v31, 7  ;;  %v1078_v47 = vperm.slane %v3214_v32, 7  ;;  %v1125_v40 = vperm.slane %v3216_v33, 7  ;;  %v806_v31 = vpop.f32.mrf.mxu1 }
  0xe1   :  { %v1172_v16 = vperm.slane %v3218_v34, 7  ;;  %v1219_v28 = vperm.slane %v3220_v35, 7  ;;  %v1077_v44 = vadd.f32 %v1076_v4, %v1074_v37  ;;  %v946_v8 = vmul.f32 %v945_v13, %v767_v63  ;;  %v3711_v4 = vpop.permute.xlu1 %293 }
  0xe2   :  { %v985_v0 = vmul.f32 %v984_v5, %v767_v63  ;;  %v1266_v52 = vperm.slane %v5092_v11, 7  ;;  %v1124_v29 = vadd.f32 %v1123_v26, %v1121_v10  ;;  %v1171_v60 = vadd.f32 %v1170_v38, %v1168_v23  ;;  %5104 = vst [vmem:[#allocation8_spill] sm:$0xff] %v3711_v4  ;;  %v5106_v10 = vld [vmem:[#allocation23_spill] sm:$0xff]  ;;  %v5135_v4 = vld [vmem:[#allocation28_spill] sm:$0xff] }
  0xe3   :  { %v1218_v30 = vadd.f32 %v1217_v39, %v1215_v59  ;;  %v1265_v42 = vadd.f32 %v1264_v41, %v1262_v19  ;;  %v3705_v22 = vadd.f32 %v844_v62, %v344_v7  ;;  %v1032_v51 = vmul.f32 %v1031_v45, %v767_v63  ;;  %v2831_v7 = vld [vmem:[%s4914_s1 + $0x38] sm:$0xff]  }
  0xe4   :  { %v1079_v32 = vmul.f32 %v1078_v47, %v767_v63  ;;  %v1126_v18 = vmul.f32 %v1125_v40, %v767_v63  ;;  %v3707_v33 = vadd.f32 %v946_v8, %v944_v56  ;;  %v3709_v34 = vadd.f32 %v985_v0, %v983_v46  ;;  %v3737_v13 = vpop.f32.mrf.mxu3  ;;  %v5116_v40 = vld [vmem:[#allocation6_spill] sm:$0xff] }
  0xe5   :  { %5102 = vst [vmem:[#allocation5_spill] sm:$0xff] %v3705_v22  ;;  %v1173_v35 = vmul.f32 %v1172_v16, %v767_v63  ;;  %v1220_v37 = vmul.f32 %v1219_v28, %v767_v63  ;;  %v1267_v11 = vmul.f32 %v1266_v52, %v767_v63  ;;  %v807_v23 = vadd.f32 %v806_v31, %v5106_v10  ;;  %v769_v63 = vpop.f32.mrf.mxu0 }
  0xe6   :  { %5103 = vst [vmem:[#allocation21_spill] sm:$0xff] %v3709_v34  ;;  %v1713_v59 = vperm.slane %v3261_v55, 7  ;;  %v1752_v19 = vperm.slane %v5066_v43, 7  ;;  %v1799_v41 = vperm.slane %v5068_v15, 7  ;;  %v1846_v56 = vperm.slane %v5070_v21, 7  ;;  %v2828_v43 = vld [vmem:[%s4914_s1 + $0x20] sm:$0xff]  }
  0xe7   :  { %v1893_v46 = vperm.slane %v5072_v12, 7  ;;  %v1940_v26 = vperm.slane %v5074_v24, 7  ;;  %v1987_v36 = vperm.slane %v3273_v61, 7  ;;  %v2034_v49 = vperm.slane %v3278_v2, 7  ;;  %v2829_v61 = vld [vmem:[%s4914_s1 + $0x28] sm:$0xff]   ;;  %v2830_v2 = vld [vmem:[%s4914_s1 + $0x30] sm:$0xff]  }
  0xe8   :  { %v1714_v38 = vmul.f32 %v1713_v59, %v807_v23  ;;  %v1753_v39 = vmul.f32 %v1752_v19, %v807_v23  ;;  %v1800_v14 = vmul.f32 %v1799_v41, %v807_v23  ;;  %v1847_v1 = vmul.f32 %v1846_v56, %v807_v23  ;;  %5109 = vst [vmem:[#allocation23_spill] sm:$0xff] %v3737_v13  ;;  %v809_v59 = vpop.f32.mrf.mxu1 }
  0xe9   :  { %v1894_v27 = vmul.f32 %v1893_v46, %v807_v23  ;;  %v1941_v55 = vmul.f32 %v1940_v26, %v807_v23  ;;  %v1988_v12 = vmul.f32 %v1987_v36, %v807_v23  ;;  %v2035_v24 = vmul.f32 %v2034_v49, %v807_v23  ;;  %v3789_v46 = vpop.permute.xlu1 %308  ;;  %v3791_v26 = vpop.permute.xlu0 %303 }
  0xea   :  { %v3727_v15 = vadd.f32 %v1714_v38, %v1712_v57  ;;  %v3729_v21 = vadd.f32 %v1753_v39, %v1751_v58  ;;  %v3740_v5 = vadd.f32 %v1800_v14, %v3688_v54  ;;  %v3743_v57 = vadd.f32 %v1847_v1, %v3690_v17  ;;  %5130 = vst [vmem:[#allocation49_spill] sm:$0xff] %v3789_v46  ;;  %v3812_v39 = vpop.f32.mrf.mxu2 }
  0xeb   :  { %v3746_v58 = vadd.f32 %v1894_v27, %v3692_v50  ;;  %v3748_v45 = vadd.f32 %v1941_v55, %v1939_v3  ;;  %v3753_v62 = vadd.f32 %v1988_v12, %v1986_v25  ;;  %v3755_v47 = vadd.f32 %v2035_v24, %v2033_v9  ;;  %5131 = vst [vmem:[#allocation50_spill] sm:$0xff] %v3791_v26 }
  0xec   :  { %5107 = vst [vmem:[#allocation30_spill] sm:$0xff] %v3727_v15  ;;  %v770_v16 = vadd.f32 %v769_v63, %v5116_v40  ;;  %v3758_v54 = vunpack.c.l.bf16 %v2828_v43  ;;  %v3760_v28 = vunpack.c.h.bf16 %v2828_v43  ;;  %v3762_v17 = vunpack.c.l.bf16 %v2829_v61  ;;  %v3830_v12 = vpop.f32.mrf.mxu3 }
  0xed   :  { %5108 = vst [vmem:[#allocation15_spill] sm:$0xff] %v3729_v21  ;;  %v3764_v50 = vunpack.c.h.bf16 %v2829_v61  ;;  %v3766_v3 = vunpack.c.l.bf16 %v2830_v2  ;;  %v3768_v8 = vunpack.c.h.bf16 %v2830_v2  ;;  %v3770_v0 = vunpack.c.l.bf16 %v2831_v7 }
  0xee   :  { %5110 = vst [vmem:[#allocation31_spill] sm:$0xff] %v3740_v5  ;;  %v3772_v25 = vunpack.c.h.bf16 %v2831_v7  ;;  %v1309_v9 = vperm.slane %v3758_v54, 0  ;;  %v3776_v52 = vadd.f32 %v1032_v51, %v3674_v53  ;;  %v3778_v31 = vadd.f32 %v1079_v32, %v1077_v44  ;;  %v2836_v44 = vld [vmem:[%s4914_s1 + $0x60] sm:$0xff]   ;;  %v2838_v32 = vld [vmem:[%s4914_s1 + $0x70] sm:$0xff]  }
  0xef   :  { %5111 = vst [vmem:[#allocation32_spill] sm:$0xff] %v3743_v57  ;;  %v3780_v10 = vadd.f32 %v1126_v18, %v1124_v29  ;;  %v1348_v23 = vperm.slane %v3760_v28, 0  ;;  %v3783_v19 = vadd.f32 %v1173_v35, %v1171_v60  ;;  %v3785_v41 = vadd.f32 %v1220_v37, %v1218_v30  ;;  %v2837_v29 = vld [vmem:[%s4914_s1 + $0x68] sm:$0xff]   ;;  %v2839_v18 = vld [vmem:[%s4914_s1 + $0x78] sm:$0xff]   ;;  %s2880_s1 = smov [#allocation2]  }
  0xf0   :  { %5112 = vst [vmem:[#allocation33_spill] sm:$0xff] %v3746_v58  ;;  %v3787_v56 = vadd.f32 %v1267_v11, %v1265_v42  ;;  %v1395_v53 = vperm.slane %v3762_v17, 0  ;;  %v1310_v60 = vmul.f32 %v1309_v9, %v770_v16  ;;  %v1442_v30 = vperm.slane %v3764_v50, 0  ;;  %v5134_v58 = vld [vmem:[#allocation18_spill] sm:$0xff]  ;;  %v811_v26 = vpop.f32.mrf.mxu1  ;;  %s2545_s24 = sshll.u32 %s2880_s1, 4  ;;  %s2546_s24 = int_to_ptr.vmem [resolvable:$true] %s2545_s24 }
  0xf1   :  { %5113 = vst [vmem:[#allocation34_spill] sm:$0xff] %v3748_v45  ;;  %v1489_v42 = vperm.slane %v3766_v3, 0  ;;  %v1536_v51 = vperm.slane %v3768_v8, 0  ;;  %v1349_v35 = vmul.f32 %v1348_v23, %v770_v16  ;;  %v1583_v37 = vperm.slane %v3770_v0, 0  ;;  %v3852_v45 = vpop.permute.xlu2 %358 }
  0xf2   :  { %5114 = vst [vmem:[#allocation35_spill] sm:$0xff] %v3753_v62  ;;  %v1630_v11 = vperm.slane %v3772_v25, 0  ;;  %v810_v38 = vadd.f32 %v809_v59, %v3685_v20  ;;  %v3814_v36 = vunpack.c.l.bf16 %v2836_v44  ;;  %v3816_v49 = vunpack.c.h.bf16 %v2836_v44  ;;  %v771_v59 = vpop.f32.mrf.mxu0 }
  0xf3   :  { %5115 = vst [vmem:[#allocation36_spill] sm:$0xff] %v3755_v47  ;;  %v3818_v14 = vunpack.c.l.bf16 %v2837_v29  ;;  %v3820_v1 = vunpack.c.h.bf16 %v2837_v29  ;;  %v3822_v27 = vunpack.c.l.bf16 %v2838_v32  ;;  %v3824_v55 = vunpack.c.h.bf16 %v2838_v32 }
  0xf4   :  { %5117 = vst [vmem:[#allocation6_spill] sm:$0xff] %v3758_v54  ;;  %v3826_v63 = vunpack.c.l.bf16 %v2839_v18  ;;  %v3828_v43 = vunpack.c.h.bf16 %v2839_v18  ;;  %v2077_v20 = vperm.slane %v3814_v36, 0  ;;  %v2116_v24 = vperm.slane %v3816_v49, 0 }
  0xf5   :  { %5118 = vst [vmem:[#allocation37_spill] sm:$0xff] %v3760_v28  ;;  %v2163_v61 = vperm.slane %v3818_v14, 0  ;;  %v2210_v2 = vperm.slane %v3820_v1, 0  ;;  %v3836_v7 = vmul.f32 %v1395_v53, %v770_v16  ;;  %v3838_v40 = vmul.f32 %v1442_v30, %v770_v16 }
  0xf6   :  { %5119 = vst [vmem:[#allocation38_spill] sm:$0xff] %v3762_v17  ;;  %v3840_v9 = vmul.f32 %v1489_v42, %v770_v16  ;;  %v3842_v23 = vmul.f32 %v1536_v51, %v770_v16  ;;  %v3844_v44 = vmul.f32 %v1583_v37, %v770_v16  ;;  %v3846_v29 = vmul.f32 %v1630_v11, %v770_v16  ;;  %v324_v16 = vpop.permute.xlu1 %323  ;;  %v319_v11 = vpop.permute.xlu0 %318 }
  0xf7   :  { %5120 = vst [vmem:[#allocation39_spill] sm:$0xff] %v3764_v50  ;;  %v2257_v32 = vperm.slane %v3822_v27, 0  ;;  %v2304_v18 = vperm.slane %v3824_v55, 0  ;;  %v2078_v47 = vmul.f32 %v2077_v20, %v810_v38  ;;  %v2117_v62 = vmul.f32 %v2116_v24, %v810_v38 }
  0xf8   :  { %5121 = vst [vmem:[#allocation40_spill] sm:$0xff] %v3766_v3  ;;  %v2351_v53 = vperm.slane %v3826_v63, 0  ;;  %v2398_v30 = vperm.slane %v3828_v43, 0  ;;  %v2164_v42 = vmul.f32 %v2163_v61, %v810_v38  ;;  %v2211_v51 = vmul.f32 %v2210_v2, %v810_v38 }
  0xf9   :  { %5122 = vst [vmem:[#allocation41_spill] sm:$0xff] %v3768_v8  ;;  %v772_v57 = vadd.f32 %v771_v59, %v5134_v58  ;;  %v1311_v37 = vperm.slane %v3758_v54, 1  ;;  %v1350_v22 = vperm.slane %v3760_v28, 1  ;;  %v1397_v5 = vperm.slane %v3762_v17, 1 }
  0xfa   :  { %5123 = vst [vmem:[#allocation42_spill] sm:$0xff] %v3770_v0  ;;  %v1444_v20 = vperm.slane %v3764_v50, 1  ;;  %v1491_v24 = vperm.slane %v3766_v3, 1  ;;  %v1538_v15 = vperm.slane %v3768_v8, 1  ;;  %v1585_v61 = vperm.slane %v3770_v0, 1 }
  0xfb   :  { %5124 = vst [vmem:[#allocation43_spill] sm:$0xff] %v3776_v52  ;;  %v1312_v21 = vmul.f32 %v1311_v37, %v772_v57  ;;  %v1632_v2 = vperm.slane %v3772_v25, 1  ;;  %v2258_v58 = vmul.f32 %v2257_v32, %v810_v38  ;;  %v2305_v59 = vmul.f32 %v2304_v18, %v810_v38  ;;  %v3873_v32 = vpop.f32.mrf.mxu3 }
  0xfc   :  { %5125 = vst [vmem:[#allocation44_spill] sm:$0xff] %v3778_v31  ;;  %v2352_v46 = vmul.f32 %v2351_v53, %v810_v38  ;;  %v2399_v6 = vmul.f32 %v2398_v30, %v810_v38  ;;  %v3864_v48 = vadd.f32 %v5135_v4, %v324_v16  ;;  %v1398_v37 = vmul.f32 %v1397_v5, %v772_v57  ;;  %v5141_v38 = vld [vmem:[#allocation26_spill] sm:$0xff] }
  0xfd   :  { %5126 = vst [vmem:[#allocation45_spill] sm:$0xff] %v3780_v10  ;;  %v1492_v10 = vmul.f32 %v1491_v24, %v772_v57  ;;  %v1539_v31 = vmul.f32 %v1538_v15, %v772_v57  ;;  %v1633_v53 = vmul.f32 %v1632_v2, %v772_v57  ;;  %v812_v30 = vadd.f32 %v811_v26, %v5141_v38  ;;  %v774_v38 = vpop.f32.mrf.mxu0 }
  0xfe   :  { %5127 = vst [vmem:[#allocation46_spill] sm:$0xff] %v3783_v19  ;;  %v1445_v19 = vmul.f32 %v1444_v20, %v772_v57  ;;  %v2079_v4 = vperm.slane %v3814_v36, 1  ;;  %v2165_v16 = vperm.slane %v3818_v14, 1  ;;  %v2212_v5 = vperm.slane %v3820_v1, 1 }
  0xff   :  { %5128 = vst [vmem:[#allocation47_spill] sm:$0xff] %v3785_v41  ;;  %v3871_v41 = vadd.f32 %v1312_v21, %v1310_v60  ;;  %v2259_v21 = vperm.slane %v3822_v27, 1  ;;  %v2306_v60 = vperm.slane %v3824_v55, 1  ;;  %v2353_v15 = vperm.slane %v3826_v63, 1 }
 0x100   :  { %5129 = vst [vmem:[#allocation48_spill] sm:$0xff] %v3787_v56  ;;  %v3869_v56 = vpop.f32.mrf.mxu2  ;;  %v2213_v26 = vmul.f32 %v2212_v5, %v812_v30  ;;  %v1446_v5 = vadd.f32 %v1445_v19, %v3838_v40  ;;  %v1588_v19 = vperm.slane %v3770_v0, 2 }
 0x101   :  { %5132 = vst [vmem:[#allocation51_spill] sm:$0xff] %v3812_v39  ;;  %v5137_v39 = vld [vmem:[#allocation24_spill] sm:$0xff]  ;;  %v2260_v20 = vmul.f32 %v2259_v21, %v812_v30  ;;  %v2307_v24 = vmul.f32 %v2306_v60, %v812_v30  ;;  %v5143_v21 = vld [vmem:[#allocation17_spill] sm:$0xff]  ;;  %v334_v60 = vpop.permute.xlu0 %333 }
 0x102   :  { %5133 = vst [vmem:[#allocation52_spill] sm:$0xff] %v3830_v12  ;;  %v1351_v12 = vmul.f32 %v1350_v22, %v772_v57  ;;  %v3867_v13 = vadd.f32 %v5137_v39, %v319_v11  ;;  %v1586_v22 = vmul.f32 %v1585_v61, %v772_v57  ;;  %v2118_v39 = vperm.slane %v3816_v49, 1 }
 0x103   :  { %5136 = vst [vmem:[#allocation18_spill] sm:$0xff] %v3864_v48  ;;  %v2166_v11 = vmul.f32 %v2165_v16, %v812_v30  ;;  %v2354_v61 = vmul.f32 %v2353_v15, %v812_v30  ;;  %v3892_v52 = vadd.f32 %v2213_v26, %v2211_v51  ;;  %v3894_v34 = vadd.f32 %v2260_v20, %v2258_v58  ;;  %v3914_v40 = vpop.f32.mrf.mxu3  ;;  %v5147_v20 = vld [vmem:[#allocation11_spill] sm:$0xff] }
 0x104   :  { %5138 = vst [vmem:[#allocation28_spill] sm:$0xff] %v3867_v13  ;;  %v1352_v18 = vadd.f32 %v1351_v12, %v1349_v35  ;;  %v2400_v35 = vperm.slane %v3828_v43, 1  ;;  %v2080_v12 = vmul.f32 %v2079_v4, %v812_v30  ;;  %v2119_v57 = vmul.f32 %v2118_v39, %v812_v30 }
 0x105   :  { %5139 = vst [vmem:[#allocation24_spill] sm:$0xff] %v3869_v56  ;;  %v3890_v56 = vadd.f32 %v2166_v11, %v2164_v42  ;;  %v3896_v4 = vadd.f32 %v2307_v24, %v2305_v59  ;;  %v3898_v39 = vadd.f32 %v2354_v61, %v2352_v46  ;;  %v775_v42 = vadd.f32 %v774_v38, %v5143_v21  ;;  %v5145_v11 = vld [vmem:[#allocation14_spill] sm:$0xff] }
 0x106   :  { %5140 = vst [vmem:[#allocation53_spill] sm:$0xff] %v3873_v32  ;;  %v2401_v2 = vmul.f32 %v2400_v35, %v812_v30  ;;  %v3884_v32 = vpop.permute.xlu2 %373  ;;  %v3886_v48 = vadd.f32 %v2080_v12, %v2078_v47  ;;  %v3888_v13 = vadd.f32 %v2119_v57, %v2117_v62  ;;  %v1399_v30 = vadd.f32 %v1398_v37, %v3836_v7  ;;  %v339_v62 = vpop.permute.xlu1 %338 }
 0x107   :  { %5142 = vst [vmem:[#allocation26_spill] sm:$0xff] %v3884_v32  ;;  %v1493_v47 = vadd.f32 %v1492_v10, %v3840_v9  ;;  %v1314_v58 = vperm.slane %v3758_v54, 2  ;;  %v1353_v59 = vperm.slane %v3760_v28, 2  ;;  %v1400_v46 = vperm.slane %v3762_v17, 2 }
 0x108   :  { %v3900_v16 = vadd.f32 %v2401_v2, %v2399_v6  ;;  %v851_v51 = vpop.f32.mrf.mxu2  ;;  %v1447_v6 = vperm.slane %v3764_v50, 2  ;;  %v1494_v15 = vperm.slane %v3766_v3, 2  ;;  %v1541_v7 = vperm.slane %v3768_v8, 2  ;;  %5144 = vst [vmem:[#allocation17_spill] sm:$0xff] %v3914_v40  ;;  %v814_v2 = vpop.f32.mrf.mxu1 }
 0x109   :  { %v1635_v10 = vperm.slane %v3772_v25, 2  ;;  %v1540_v9 = vadd.f32 %v1539_v31, %v3842_v23  ;;  %v1587_v37 = vadd.f32 %v1586_v22, %v3844_v44  ;;  %v1315_v35 = vmul.f32 %v1314_v58, %v775_v42 }
 0x10a   :  { %v1354_v12 = vmul.f32 %v1353_v59, %v775_v42  ;;  %v1634_v57 = vadd.f32 %v1633_v53, %v3846_v29  ;;  %v3920_v26 = vadd.f32 %v5145_v11, %v339_v62  ;;  %v3923_v24 = vadd.f32 %v5147_v20, %v334_v60  ;;  %v5150_v53 = vld [vmem:[#allocation25_spill] sm:$0xff] }
 0x10b   :  { %v3926_v61 = vadd.f32 %v851_v51, %v3852_v45  ;;  %v1401_v38 = vmul.f32 %v1400_v46, %v775_v42  ;;  %v1448_v21 = vmul.f32 %v1447_v6, %v775_v42  ;;  %v1495_v32 = vmul.f32 %v1494_v15, %v775_v42 }
 0x10c   :  { %5146 = vst [vmem:[#allocation14_spill] sm:$0xff] %v3920_v26  ;;  %v1542_v31 = vmul.f32 %v1541_v7, %v775_v42  ;;  %v3929_v23 = vadd.f32 %v1315_v35, %v3871_v41  ;;  %v3931_v44 = vadd.f32 %v1354_v12, %v1352_v18  ;;  %v1589_v29 = vmul.f32 %v1588_v19, %v775_v42 }
 0x10d   :  { %5148 = vst [vmem:[#allocation11_spill] sm:$0xff] %v3923_v24  ;;  %v1636_v22 = vmul.f32 %v1635_v10, %v775_v42  ;;  %v815_v62 = vadd.f32 %v814_v2, %v5150_v53  ;;  %v2082_v60 = vperm.slane %v3814_v36, 2  ;;  %v2121_v58 = vperm.slane %v3816_v49, 2  ;;  %v5162_v24 = vld [vmem:[#allocation48_spill] sm:$0xff] }
 0x10e   :  { %5149 = vst [vmem:[#allocation54_spill] sm:$0xff] %v3926_v61  ;;  %v2168_v45 = vperm.slane %v3818_v14, 2  ;;  %v3937_v51 = vpop.permute.xlu2 %388  ;;  %v2215_v59 = vperm.slane %v3820_v1, 2  ;;  %v2262_v46 = vperm.slane %v3822_v27, 2  ;;  %v2309_v41 = vperm.slane %v3824_v55, 2 }
 0x10f   :  { %5151 = vst [vmem:[#allocation25_spill] sm:$0xff] %v3937_v51  ;;  %v2356_v18 = vperm.slane %v3826_v63, 2  ;;  %v2083_v6 = vmul.f32 %v2082_v60, %v815_v62  ;;  %v2122_v42 = vmul.f32 %v2121_v58, %v815_v62  ;;  %v2403_v7 = vperm.slane %v3828_v43, 2 }
 0x110   :  { %v2169_v15 = vmul.f32 %v2168_v45, %v815_v62  ;;  %v2216_v19 = vmul.f32 %v2215_v59, %v815_v62  ;;  %v2263_v10 = vmul.f32 %v2262_v46, %v815_v62  ;;  %v2310_v35 = vmul.f32 %v2309_v41, %v815_v62  ;;  %v3959_v45 = vpop.f32.mrf.mxu3  ;;  %v5157_v41 = vld [vmem:[#allocation44_spill] sm:$0xff] }
 0x111   :  { %v2357_v12 = vmul.f32 %v2356_v18, %v815_v62  ;;  %v3944_v11 = vadd.f32 %v1401_v38, %v1399_v30  ;;  %v3946_v20 = vadd.f32 %v1448_v21, %v1446_v5  ;;  %v3948_v2 = vadd.f32 %v1495_v32, %v1493_v47  ;;  %5152 = vst [vmem:[#allocation55_spill] sm:$0xff] %v3959_v45  ;;  %v5153_v32 = vld [vmem:[#allocation10_spill] sm:$0xff]  ;;  %v5161_v45 = vld [vmem:[#allocation47_spill] sm:$0xff] }
 0x112   :  { %v3950_v53 = vadd.f32 %v1542_v31, %v1540_v9  ;;  %v3952_v61 = vadd.f32 %v1589_v29, %v1587_v37  ;;  %v3954_v51 = vadd.f32 %v1636_v22, %v1634_v57  ;;  %v3957_v60 = vadd.f32 %v2083_v6, %v3886_v48  ;;  %v776_v29 = vpop.f32.mrf.mxu0 }
 0x113   :  { %v2404_v58 = vmul.f32 %v2403_v7, %v815_v62  ;;  %v3962_v59 = vadd.f32 %v2122_v42, %v3888_v13  ;;  %v3965_v30 = vadd.f32 %v2169_v15, %v3890_v56  ;;  %v948_v5 = vperm.slane %v5153_v32, 0  ;;  %v5154_v56 = vld [vmem:[#allocation21_spill] sm:$0xff]  ;;  %v5156_v62 = vld [vmem:[#allocation43_spill] sm:$0xff] }
 0x114   :  { %v987_v47 = vperm.slane %v5153_v32, 1  ;;  %v3970_v9 = vadd.f32 %v2216_v19, %v3892_v52  ;;  %v3973_v37 = vadd.f32 %v2263_v10, %v3894_v34  ;;  %v3976_v48 = vadd.f32 %v2310_v35, %v3896_v4  ;;  %v5158_v42 = vld [vmem:[#allocation45_spill] sm:$0xff]  ;;  %v5159_v19 = vld [vmem:[#allocation7_spill] sm:$0xff] }
 0x115   :  { %v3979_v57 = vadd.f32 %v2357_v12, %v3898_v39  ;;  %v949_v13 = vmul.f32 %v948_v5, %v3707_v33  ;;  %v1034_v21 = vperm.slane %v5153_v32, 2  ;;  %v1081_v31 = vperm.slane %v5153_v32, 3  ;;  %v349_v5 = vpop.permute.xlu0 %348 }
 0x116   :  { %v988_v38 = vmul.f32 %v987_v47, %v5154_v56  ;;  %v3986_v52 = vadd.f32 %v2404_v58, %v3900_v16  ;;  %v1128_v34 = vperm.slane %v5153_v32, 4  ;;  %v1175_v4 = vperm.slane %v5153_v32, 5  ;;  %v404_v7 = vpop.permute.xlu2 %403  ;;  %v354_v58 = vpop.permute.xlu1 %353 }
 0x117   :  { %v1222_v22 = vperm.slane %v5153_v32, 6  ;;  %v1035_v46 = vmul.f32 %v1034_v21, %v5156_v62  ;;  %v1082_v18 = vmul.f32 %v1081_v31, %v5157_v41  ;;  %v1269_v6 = vperm.slane %v5153_v32, 7  ;;  %v5160_v21 = vld [vmem:[#allocation46_spill] sm:$0xff] }
 0x118   :  { %5155 = vst [vmem:[#allocation10_spill] sm:$0xff] %v3986_v52  ;;  %v989_v39 = vadd.f32 %v988_v38, %v949_v13  ;;  %v1129_v15 = vmul.f32 %v1128_v34, %v5158_v42  ;;  %v777_v10 = vadd.f32 %v776_v29, %v5159_v19  ;;  %v1317_v16 = vperm.slane %v3758_v54, 3  ;;  %v816_v52 = vpop.f32.mrf.mxu1 }
 0x119   :  { %v1356_v35 = vperm.slane %v3760_v28, 3  ;;  %v1403_v47 = vperm.slane %v3762_v17, 3  ;;  %v1450_v13 = vperm.slane %v3764_v50, 3  ;;  %v1497_v38 = vperm.slane %v3766_v3, 3  ;;  %v5165_v17 = vld [vmem:[#allocation24_spill] sm:$0xff]  ;;  %v5167_v3 = vld [vmem:[#allocation51_spill] sm:$0xff] }
 0x11a   :  { %v1036_v12 = vadd.f32 %v1035_v46, %v989_v39  ;;  %v1176_v32 = vmul.f32 %v1175_v4, %v5160_v21  ;;  %v1318_v31 = vmul.f32 %v1317_v16, %v777_v10  ;;  %v1544_v34 = vperm.slane %v3768_v8, 3  ;;  %v5163_v46 = vld [vmem:[#allocation23_spill] sm:$0xff]  ;;  %v4015_v8 = vpop.f32.mrf.mxu3 }
 0x11b   :  { %v1591_v29 = vperm.slane %v3770_v0, 3  ;;  %v1223_v26 = vmul.f32 %v1222_v22, %v5161_v45  ;;  %v1270_v39 = vmul.f32 %v1269_v6, %v5162_v24  ;;  %v4007_v40 = vadd.f32 %v5163_v46, %v404_v7  ;;  %5169 = vst [vmem:[#allocation7_spill] sm:$0xff] %v4015_v8 }
 0x11c   :  { %v1083_v19 = vadd.f32 %v1082_v18, %v1036_v12  ;;  %v4010_v50 = vadd.f32 %v5165_v17, %v354_v58  ;;  %v4013_v28 = vadd.f32 %v5167_v3, %v349_v5  ;;  %v1357_v4 = vmul.f32 %v1356_v35, %v777_v10 }
 0x11d   :  { %5164 = vst [vmem:[#allocation21_spill] sm:$0xff] %v4007_v40  ;;  %v1404_v16 = vmul.f32 %v1403_v47, %v777_v10  ;;  %v4018_v18 = vadd.f32 %v1318_v31, %v3929_v23  ;;  %v1451_v22 = vmul.f32 %v1450_v13, %v777_v10  ;;  %v1498_v6 = vmul.f32 %v1497_v38, %v777_v10  ;;  %v5170_v40 = vld [vmem:[#allocation16_spill] sm:$0xff]  ;;  %v854_v31 = vpop.f32.mrf.mxu2 }
 0x11e   :  { %5166 = vst [vmem:[#allocation43_spill] sm:$0xff] %v4010_v50  ;;  %v1130_v0 = vadd.f32 %v1129_v15, %v1083_v19  ;;  %v1545_v12 = vmul.f32 %v1544_v34, %v777_v10  ;;  %v1592_v7 = vmul.f32 %v1591_v29, %v777_v10  ;;  %v1638_v46 = vperm.slane %v3772_v25, 3 }
 0x11f   :  { %5168 = vst [vmem:[#allocation44_spill] sm:$0xff] %v4013_v28  ;;  %v817_v17 = vadd.f32 %v816_v52, %v5170_v40  ;;  %v2085_v3 = vperm.slane %v3814_v36, 3  ;;  %v2124_v35 = vperm.slane %v3816_v49, 3  ;;  %v2171_v5 = vperm.slane %v3818_v14, 3  ;;  %v5180_v8 = vld [vmem:[#allocation10_spill] sm:$0xff] }
 0x120   :  { %v1177_v58 = vadd.f32 %v1176_v32, %v1130_v0  ;;  %v1639_v47 = vmul.f32 %v1638_v46, %v777_v10  ;;  %v2218_v15 = vperm.slane %v3820_v1, 3  ;;  %v2265_v23 = vperm.slane %v3822_v27, 3 }
 0x121   :  { %v2312_v13 = vperm.slane %v3824_v55, 3  ;;  %v4029_v34 = vadd.f32 %v1357_v4, %v3931_v44  ;;  %v4032_v0 = vadd.f32 %v1404_v16, %v3944_v11  ;;  %v4035_v40 = vadd.f32 %v1451_v22, %v3946_v20 }
 0x122   :  { %v1224_v38 = vadd.f32 %v1223_v26, %v1177_v58  ;;  %v4038_v52 = vadd.f32 %v1498_v6, %v3948_v2  ;;  %v4041_v10 = vadd.f32 %v1545_v12, %v3950_v53  ;;  %v4044_v32 = vadd.f32 %v1592_v7, %v3952_v61  ;;  %v5171_v53 = vld [vmem:[#allocation28_spill] sm:$0xff]  ;;  %v4057_v58 = vpop.f32.mrf.mxu3 }
 0x123   :  { %v2086_v26 = vmul.f32 %v2085_v3, %v817_v17  ;;  %v4047_v44 = vadd.f32 %v1639_v47, %v3954_v51  ;;  %v2125_v19 = vmul.f32 %v2124_v35, %v817_v17  ;;  %v2172_v11 = vmul.f32 %v2171_v5, %v817_v17  ;;  %5172 = vst [vmem:[#allocation48_spill] sm:$0xff] %v4057_v58  ;;  %v5181_v58 = vld [vmem:[#allocation17_spill] sm:$0xff] }
 0x124   :  { %v1271_v29 = vadd.f32 %v1270_v39, %v1224_v38  ;;  %v2219_v4 = vmul.f32 %v2218_v15, %v817_v17  ;;  %v2266_v16 = vmul.f32 %v2265_v23, %v817_v17  ;;  %v2313_v20 = vmul.f32 %v2312_v13, %v817_v17  ;;  %v779_v15 = vpop.f32.mrf.mxu0 }
 0x125   :  { %v2359_v22 = vperm.slane %v3826_v63, 3  ;;  %v2406_v2 = vperm.slane %v3828_v43, 3  ;;  %v950_v6 = vperm.slane %v5171_v53, 0  ;;  %v990_v61 = vperm.slane %v5171_v53, 1 }
 0x126   :  { %2445 = vxpose.xlu1.b32.start [1/16] %v1271_v29, 128  ;;  %v1037_v12 = vperm.slane %v5171_v53, 2  ;;  %v1084_v51 = vperm.slane %v5171_v53, 3  ;;  %v1131_v7 = vperm.slane %v5171_v53, 4  ;;  %v1178_v46 = vperm.slane %v5171_v53, 5 }
 0x127   :  { %v2360_v39 = vmul.f32 %v2359_v22, %v817_v17  ;;  %v4060_v3 = vadd.f32 %v2086_v26, %v3957_v60  ;;  %v4063_v35 = vadd.f32 %v2125_v19, %v3962_v59  ;;  %v951_v5 = vmul.f32 %v950_v6, %v3707_v33 }
 0x128   :  { %v991_v47 = vmul.f32 %v990_v61, %v5154_v56  ;;  %v4068_v23 = vadd.f32 %v2172_v11, %v3965_v30  ;;  %v4071_v13 = vadd.f32 %v2219_v4, %v3970_v9  ;;  %v4074_v38 = vadd.f32 %v2266_v16, %v3973_v37  ;;  %v419_v11 = vpop.permute.xlu2 %418  ;;  %v369_v4 = vpop.permute.xlu1 %368  ;;  %v5173_v37 = vld [vmem:[#allocation20_spill] sm:$0xff]  ;;  %v5174_v61 = vld [vmem:[#allocation37_spill] sm:$0xff] }
 0x129   :  { %v4077_v60 = vadd.f32 %v2313_v20, %v3976_v48  ;;  %v4080_v59 = vadd.f32 %v2360_v39, %v3979_v57  ;;  %v2407_v26 = vmul.f32 %v2406_v2, %v817_v17  ;;  %v1038_v19 = vmul.f32 %v1037_v12, %v5156_v62  ;;  %v364_v20 = vpop.permute.xlu0 %363  ;;  %v856_v17 = vpop.f32.mrf.mxu2  ;;  %v5175_v39 = vld [vmem:[#allocation38_spill] sm:$0xff] }
 0x12a   :  { %v992_v29 = vadd.f32 %v991_v47, %v951_v5  ;;  %v1085_v22 = vmul.f32 %v1084_v51, %v5157_v41  ;;  %v1132_v30 = vmul.f32 %v1131_v7, %v5158_v42  ;;  %v1179_v9 = vmul.f32 %v1178_v46, %v5160_v21  ;;  %v5176_v7 = vld [vmem:[#allocation39_spill] sm:$0xff]  ;;  %v5177_v46 = vld [vmem:[#allocation40_spill] sm:$0xff] }
 0x12b   :  { %v780_v16 = vadd.f32 %v779_v15, %v5173_v37  ;;  %v1225_v48 = vperm.slane %v5171_v53, 6  ;;  %v1272_v57 = vperm.slane %v5171_v53, 7  ;;  %v1320_v2 = vperm.slane %v3758_v54, 4  ;;  %v5178_v15 = vld [vmem:[#allocation41_spill] sm:$0xff] }
 0x12c   :  { %v1039_v6 = vadd.f32 %v1038_v19, %v992_v29  ;;  %v1359_v12 = vperm.slane %v5174_v61, 4  ;;  %v1406_v51 = vperm.slane %v5175_v39, 4  ;;  %v1453_v5 = vperm.slane %v5176_v7, 4  ;;  %v5179_v19 = vld [vmem:[#allocation42_spill] sm:$0xff] }
 0x12d   :  { %v1500_v47 = vperm.slane %v5177_v46, 4  ;;  %v1321_v28 = vmul.f32 %v1320_v2, %v780_v16  ;;  %v1547_v29 = vperm.slane %v5178_v15, 4  ;;  %v1594_v37 = vperm.slane %v5179_v19, 4  ;;  %v819_v2 = vpop.f32.mrf.mxu1  ;;  %v4111_v46 = vpop.f32.mrf.mxu3 }
 0x12e   :  { %v1086_v50 = vadd.f32 %v1085_v22, %v1039_v6  ;;  %v4097_v53 = vadd.f32 %v2407_v26, %v5180_v8  ;;  %v4100_v21 = vadd.f32 %v5181_v58, %v419_v11  ;;  %v4102_v42 = vadd.f32 %v854_v31, %v364_v20  ;;  %5185 = vst [vmem:[#allocation16_spill] sm:$0xff] %v4111_v46 }
 0x12f   :  { %v4104_v61 = vadd.f32 %v856_v17, %v369_v4  ;;  %v1226_v7 = vmul.f32 %v1225_v48, %v5161_v45  ;;  %v1273_v22 = vmul.f32 %v1272_v57, %v5162_v24  ;;  %v1360_v6 = vmul.f32 %v1359_v12, %v780_v16 }
 0x130   :  { %5182 = vst [vmem:[#allocation23_spill] sm:$0xff] %v4100_v21  ;;  %v1133_v39 = vadd.f32 %v1132_v30, %v1086_v50  ;;  %v4109_v15 = vadd.f32 %v1321_v28, %v4018_v18  ;;  %v1407_v19 = vmul.f32 %v1406_v51, %v780_v16  ;;  %v1454_v8 = vmul.f32 %v1453_v5, %v780_v16  ;;  %v5186_v50 = vld [vmem:[#allocation8_spill] sm:$0xff] }
 0x131   :  { %5183 = vst [vmem:[#allocation24_spill] sm:$0xff] %v4102_v42  ;;  %v1501_v26 = vmul.f32 %v1500_v47, %v780_v16  ;;  %v1548_v31 = vmul.f32 %v1547_v29, %v780_v16  ;;  %v1595_v11 = vmul.f32 %v1594_v37, %v780_v16  ;;  %v1641_v4 = vperm.slane %v3772_v25, 4  ;;  %v5198_v42 = vld [vmem:[#allocation48_spill] sm:$0xff] }
 0x132   :  { %5184 = vst [vmem:[#allocation51_spill] sm:$0xff] %v4104_v61  ;;  %v1180_v58 = vadd.f32 %v1179_v9, %v1133_v39  ;;  %v820_v30 = vadd.f32 %v819_v2, %v5186_v50  ;;  %v2088_v48 = vperm.slane %v3814_v36, 4  ;;  %v2127_v57 = vperm.slane %v3816_v49, 4  ;;  %v5197_v61 = vld [vmem:[#allocation46_spill] sm:$0xff] }
 0x133   :  { %v2174_v20 = vperm.slane %v3818_v14, 4  ;;  %v4119_v18 = vadd.f32 %v1360_v6, %v4029_v34  ;;  %v2221_v17 = vperm.slane %v3820_v1, 4  ;;  %v2268_v9 = vperm.slane %v3822_v27, 4 }
 0x134   :  { %v1227_v28 = vadd.f32 %v1226_v7, %v1180_v58  ;;  %v4124_v12 = vadd.f32 %v1407_v19, %v4032_v0  ;;  %v4127_v39 = vadd.f32 %v1454_v8, %v4035_v40  ;;  %v1642_v51 = vmul.f32 %v1641_v4, %v780_v16  ;;  %v5187_v8 = vld [vmem:[#allocation18_spill] sm:$0xff] }
 0x135   :  { %v2315_v5 = vperm.slane %v3824_v55, 4  ;;  %v4131_v29 = vadd.f32 %v1501_v26, %v4038_v52  ;;  %v2089_v7 = vmul.f32 %v2088_v48, %v820_v30  ;;  %v2128_v34 = vmul.f32 %v2127_v57, %v820_v30 }
 0x136   :  { %v1274_v47 = vadd.f32 %v1273_v22, %v1227_v28  ;;  %v4134_v37 = vadd.f32 %v1548_v31, %v4041_v10  ;;  %v4137_v6 = vadd.f32 %v1595_v11, %v4044_v32  ;;  %v2175_v0 = vmul.f32 %v2174_v20, %v820_v30  ;;  %v781_v20 = vpop.f32.mrf.mxu0  ;;  %v4159_v28 = vpop.f32.mrf.mxu3 }
 0x137   :  { %v2222_v19 = vmul.f32 %v2221_v17, %v820_v30  ;;  %v2269_v40 = vmul.f32 %v2268_v9, %v820_v30  ;;  %v2316_v2 = vmul.f32 %v2315_v5, %v820_v30  ;;  %v2362_v16 = vperm.slane %v3826_v63, 4  ;;  %5188 = vst [vmem:[#allocation28_spill] sm:$0xff] %v4159_v28 }
 0x138   :  { %2446 = vxpose.xlu1.b32.cont [2/16] %v1274_v47, 128  ;;  %v2409_v22 = vperm.slane %v3828_v43, 4  ;;  %v4142_v52 = vadd.f32 %v1642_v51, %v4047_v44  ;;  %v952_v26 = vperm.slane %v5187_v8, 0  ;;  %v993_v10 = vperm.slane %v5187_v8, 1 }
 0x139   :  { %v1040_v58 = vperm.slane %v5187_v8, 2  ;;  %v4148_v32 = vadd.f32 %v2089_v7, %v4060_v3  ;;  %v4151_v31 = vadd.f32 %v2128_v34, %v4063_v35  ;;  %v2363_v11 = vmul.f32 %v2362_v16, %v820_v30 }
 0x13a   :  { %v2410_v4 = vmul.f32 %v2409_v22, %v820_v30  ;;  %v4154_v50 = vadd.f32 %v2175_v0, %v4068_v23  ;;  %v953_v44 = vmul.f32 %v952_v26, %v3707_v33  ;;  %v994_v48 = vmul.f32 %v993_v10, %v5154_v56  ;;  %v5191_v26 = vld [vmem:[#allocation38_spill] sm:$0xff] }
 0x13b   :  { %v1087_v57 = vperm.slane %v5187_v8, 3  ;;  %v4162_v3 = vadd.f32 %v2222_v19, %v4071_v13  ;;  %v4165_v35 = vadd.f32 %v2269_v40, %v4074_v38  ;;  %v4168_v30 = vadd.f32 %v2316_v2, %v4077_v60  ;;  %v5189_v38 = vld [vmem:[#allocation19_spill] sm:$0xff]  ;;  %v434_v19 = vpop.permute.xlu2 %433  ;;  %v859_v40 = vpop.f32.mrf.mxu2  ;;  %v5190_v2 = vld [vmem:[#allocation37_spill] sm:$0xff] }
 0x13c   :  { %v1134_v23 = vperm.slane %v5187_v8, 4  ;;  %v4172_v17 = vadd.f32 %v2363_v11, %v4080_v59  ;;  %v995_v9 = vadd.f32 %v994_v48, %v953_v44  ;;  %v1041_v51 = vmul.f32 %v1040_v58, %v5156_v62  ;;  %v5193_v11 = vld [vmem:[#allocation40_spill] sm:$0xff]  ;;  %v5194_v48 = vld [vmem:[#allocation45_spill] sm:$0xff] }
 0x13d   :  { %v1181_v5 = vperm.slane %v5187_v8, 5  ;;  %v4177_v47 = vadd.f32 %v2410_v4, %v4097_v53  ;;  %v1228_v13 = vperm.slane %v5187_v8, 6  ;;  %v782_v7 = vadd.f32 %v781_v20, %v5189_v38  ;;  %v5192_v53 = vld [vmem:[#allocation39_spill] sm:$0xff]  ;;  %v5195_v38 = vld [vmem:[#allocation41_spill] sm:$0xff] }
 0x13e   :  { %v1323_v60 = vperm.slane %v3758_v54, 5  ;;  %v1042_v34 = vadd.f32 %v1041_v51, %v995_v9  ;;  %v1088_v0 = vmul.f32 %v1087_v57, %v5157_v41  ;;  %v1275_v59 = vperm.slane %v5187_v8, 7  ;;  %v5196_v51 = vld [vmem:[#allocation42_spill] sm:$0xff] }
 0x13f   :  { %v1362_v16 = vperm.slane %v5190_v2, 5  ;;  %v1409_v10 = vperm.slane %v5191_v26, 5  ;;  %v1456_v58 = vperm.slane %v5192_v53, 5  ;;  %v1503_v4 = vperm.slane %v5193_v11, 5  ;;  %v821_v53 = vpop.f32.mrf.mxu1 }
 0x140   :  { %v1324_v22 = vmul.f32 %v1323_v60, %v782_v7  ;;  %v1089_v44 = vadd.f32 %v1088_v0, %v1042_v34  ;;  %v1135_v20 = vmul.f32 %v1134_v23, %v5194_v48  ;;  %v1550_v9 = vperm.slane %v5195_v38, 5  ;;  %v5200_v60 = vld [vmem:[#allocation26_spill] sm:$0xff] }
 0x141   :  { %v1597_v57 = vperm.slane %v5196_v51, 5  ;;  %v1182_v8 = vmul.f32 %v1181_v5, %v5197_v61  ;;  %v1229_v21 = vmul.f32 %v1228_v13, %v5161_v45  ;;  %v4194_v46 = vadd.f32 %v5198_v42, %v434_v19  ;;  %v5202_v19 = vld [vmem:[#allocation29_spill] sm:$0xff] }
 0x142   :  { %v4197_v28 = vadd.f32 %v859_v40, %v5200_v60  ;;  %v1136_v26 = vadd.f32 %v1135_v20, %v1089_v44  ;;  %v1276_v34 = vmul.f32 %v1275_v59, %v5162_v24  ;;  %v4201_v23 = vadd.f32 %v1324_v22, %v4109_v15  ;;  %v4205_v40 = vpop.f32.mrf.mxu3  ;;  %v4210_v22 = vpop.permute.xlu1 %383 }
 0x143   :  { %5199 = vst [vmem:[#allocation20_spill] sm:$0xff] %v4194_v46  ;;  %v1363_v0 = vmul.f32 %v1362_v16, %v782_v7  ;;  %v1410_v38 = vmul.f32 %v1409_v10, %v782_v7  ;;  %v1457_v51 = vmul.f32 %v1456_v58, %v782_v7  ;;  %v1504_v11 = vmul.f32 %v1503_v4, %v782_v7  ;;  %v4215_v4 = vpop.permute.xlu0 %378 }
 0x144   :  { %5201 = vst [vmem:[#allocation10_spill] sm:$0xff] %v4197_v28  ;;  %v1644_v5 = vperm.slane %v3772_v25, 5  ;;  %v1183_v13 = vadd.f32 %v1182_v8, %v1136_v26  ;;  %v1551_v45 = vmul.f32 %v1550_v9, %v782_v7  ;;  %v1598_v42 = vmul.f32 %v1597_v57, %v782_v7 }
 0x145   :  { %v822_v46 = vadd.f32 %v821_v53, %v5202_v19  ;;  %v2091_v44 = vperm.slane %v3814_v36, 5  ;;  %v2130_v59 = vperm.slane %v3816_v49, 5  ;;  %v2177_v15 = vperm.slane %v3818_v14, 5  ;;  %5203 = vst [vmem:[#allocation17_spill] sm:$0xff] %v4210_v22 }
 0x146   :  { %v1645_v60 = vmul.f32 %v1644_v5, %v782_v7  ;;  %v1230_v16 = vadd.f32 %v1229_v21, %v1183_v13  ;;  %v2224_v10 = vperm.slane %v3820_v1, 5  ;;  %v2271_v26 = vperm.slane %v3822_v27, 5 }
 0x147   :  { %v2318_v58 = vperm.slane %v3824_v55, 5  ;;  %v4218_v53 = vadd.f32 %v1363_v0, %v4119_v18  ;;  %v4221_v7 = vadd.f32 %v1410_v38, %v4124_v12  ;;  %v4224_v20 = vadd.f32 %v1457_v51, %v4127_v39 }
 0x148   :  { %v2092_v21 = vmul.f32 %v2091_v44, %v822_v46  ;;  %v1277_v9 = vadd.f32 %v1276_v34, %v1230_v16  ;;  %v2131_v57 = vmul.f32 %v2130_v59, %v822_v46  ;;  %v2178_v8 = vmul.f32 %v2177_v15, %v822_v46  ;;  %v784_v15 = vpop.f32.mrf.mxu0 }
 0x149   :  { %v2225_v5 = vmul.f32 %v2224_v10, %v822_v46  ;;  %v4227_v13 = vadd.f32 %v1504_v11, %v4131_v29  ;;  %v4230_v19 = vadd.f32 %v1551_v45, %v4134_v37  ;;  %v2272_v28 = vmul.f32 %v2271_v26, %v822_v46  ;;  %v5204_v11 = vld [vmem:[#allocation13_spill] sm:$0xff] }
 0x14a   :  { %v2365_v18 = vperm.slane %v3826_v63, 5  ;;  %2447 = vxpose.xlu1.b32.cont [3/16] %v1277_v9, 128  ;;  %v4234_v12 = vadd.f32 %v1598_v42, %v4137_v6  ;;  %v4237_v39 = vadd.f32 %v1645_v60, %v4142_v52  ;;  %v2319_v38 = vmul.f32 %v2318_v58, %v822_v46  ;;  %v449_v9 = vpop.permute.xlu2 %448 }
 0x14b   :  { %v2412_v51 = vperm.slane %v3828_v43, 5  ;;  %v4241_v34 = vadd.f32 %v2092_v21, %v4148_v32  ;;  %v954_v45 = vperm.slane %v5204_v11, 0  ;;  %v996_v37 = vperm.slane %v5204_v11, 1 }
 0x14c   :  { %v2366_v29 = vmul.f32 %v2365_v18, %v822_v46  ;;  %v4246_v0 = vadd.f32 %v2131_v57, %v4151_v31  ;;  %v4249_v6 = vadd.f32 %v2178_v8, %v4154_v50  ;;  %v4252_v52 = vadd.f32 %v2225_v5, %v4162_v3  ;;  %v399_v57 = vpop.permute.xlu1 %398  ;;  %v5206_v8 = vld [vmem:[#allocation9_spill] sm:$0xff] }
 0x14d   :  { %v2413_v42 = vmul.f32 %v2412_v51, %v822_v46  ;;  %v4255_v60 = vadd.f32 %v2272_v28, %v4165_v35  ;;  %v955_v32 = vmul.f32 %v954_v45, %v3707_v33  ;;  %v997_v44 = vmul.f32 %v996_v37, %v5154_v56  ;;  %v4266_v46 = vpop.f32.mrf.mxu3  ;;  %v861_v51 = vpop.f32.mrf.mxu2  ;;  %v5207_v37 = vld [vmem:[#allocation38_spill] sm:$0xff] }
 0x14e   :  { %v1043_v59 = vperm.slane %v5204_v11, 2  ;;  %v4261_v31 = vadd.f32 %v2319_v38, %v4168_v30  ;;  %v1090_v50 = vperm.slane %v5204_v11, 3  ;;  %v1137_v16 = vperm.slane %v5204_v11, 4  ;;  %5205 = vst [vmem:[#allocation8_spill] sm:$0xff] %v4266_v46  ;;  %v5213_v46 = vld [vmem:[#allocation27_spill] sm:$0xff] }
 0x14f   :  { %v1184_v3 = vperm.slane %v5204_v11, 5  ;;  %v4269_v28 = vadd.f32 %v2366_v29, %v4172_v17  ;;  %v4272_v35 = vadd.f32 %v2413_v42, %v4177_v47  ;;  %v998_v10 = vadd.f32 %v997_v44, %v955_v32  ;;  %v394_v47 = vpop.permute.xlu0 %393  ;;  %v5208_v32 = vld [vmem:[#allocation39_spill] sm:$0xff] }
 0x150   :  { %v1044_v26 = vmul.f32 %v1043_v59, %v5156_v62  ;;  %v1091_v30 = vmul.f32 %v1090_v50, %v5157_v41  ;;  %v1138_v58 = vmul.f32 %v1137_v16, %v5194_v48  ;;  %v785_v5 = vadd.f32 %v784_v15, %v5206_v8  ;;  %v5209_v59 = vld [vmem:[#allocation40_spill] sm:$0xff]  ;;  %v5210_v15 = vld [vmem:[#allocation41_spill] sm:$0xff] }
 0x151   :  { %v1185_v21 = vmul.f32 %v1184_v3, %v5197_v61  ;;  %v1231_v17 = vperm.slane %v5204_v11, 6  ;;  %v1278_v38 = vperm.slane %v5204_v11, 7  ;;  %v1326_v29 = vperm.slane %v3758_v54, 6  ;;  %v5215_v54 = vld [vmem:[#allocation12_spill] sm:$0xff] }
 0x152   :  { %v1045_v18 = vadd.f32 %v1044_v26, %v998_v10  ;;  %v1365_v45 = vperm.slane %v5190_v2, 6  ;;  %v1412_v42 = vperm.slane %v5207_v37, 6  ;;  %v1459_v44 = vperm.slane %v5208_v32, 6  ;;  %v5211_v26 = vld [vmem:[#allocation42_spill] sm:$0xff] }
 0x153   :  { %v1506_v50 = vperm.slane %v5209_v59, 6  ;;  %v1327_v3 = vmul.f32 %v1326_v29, %v785_v5  ;;  %v1553_v10 = vperm.slane %v5210_v15, 6  ;;  %v1600_v8 = vperm.slane %v5211_v26, 6  ;;  %v5218_v59 = vld [vmem:[#allocation47_spill] sm:$0xff]  ;;  %v824_v15 = vpop.f32.mrf.mxu1 }
 0x154   :  { %v1092_v16 = vadd.f32 %v1091_v30, %v1045_v18  ;;  %v4289_v11 = vadd.f32 %v4205_v40, %v449_v9  ;;  %v4292_v22 = vadd.f32 %v5213_v46, %v399_v57  ;;  %v4295_v2 = vadd.f32 %v5215_v54, %v394_v47 }
 0x155   :  { %v4298_v37 = vadd.f32 %v861_v51, %v4215_v4  ;;  %v1232_v30 = vmul.f32 %v1231_v17, %v5218_v59  ;;  %v1279_v18 = vmul.f32 %v1278_v38, %v5162_v24  ;;  %v1366_v29 = vmul.f32 %v1365_v45, %v785_v5  ;;  %v5219_v4 = vld [vmem:[#allocation50_spill] sm:$0xff] }
 0x156   :  { %5212 = vst [vmem:[#allocation18_spill] sm:$0xff] %v4289_v11  ;;  %v1139_v32 = vadd.f32 %v1138_v58, %v1092_v16  ;;  %v4303_v26 = vadd.f32 %v1327_v3, %v4201_v23  ;;  %v1413_v40 = vmul.f32 %v1412_v42, %v785_v5  ;;  %v1460_v9 = vmul.f32 %v1459_v44, %v785_v5 }
 0x157   :  { %5214 = vst [vmem:[#allocation19_spill] sm:$0xff] %v4292_v22  ;;  %v1507_v46 = vmul.f32 %v1506_v50, %v785_v5  ;;  %v1554_v11 = vmul.f32 %v1553_v10, %v785_v5  ;;  %v1601_v54 = vmul.f32 %v1600_v8, %v785_v5  ;;  %v1647_v47 = vperm.slane %v3772_v25, 6  ;;  %v5231_v22 = vld [vmem:[#allocation53_spill] sm:$0xff] }
 0x158   :  { %5216 = vst [vmem:[#allocation45_spill] sm:$0xff] %v4295_v2  ;;  %v1186_v57 = vadd.f32 %v1185_v21, %v1139_v32  ;;  %v825_v51 = vadd.f32 %v824_v15, %v5219_v4  ;;  %v2094_v58 = vperm.slane %v3814_v36, 6  ;;  %v2133_v17 = vperm.slane %v3816_v49, 6  ;;  %v4322_v15 = vpop.f32.mrf.mxu3 }
 0x159   :  { %5217 = vst [vmem:[#allocation48_spill] sm:$0xff] %v4298_v37  ;;  %v2180_v38 = vperm.slane %v3818_v14, 6  ;;  %v1648_v16 = vmul.f32 %v1647_v47, %v785_v5  ;;  %v2227_v23 = vperm.slane %v3820_v1, 6  ;;  %v2274_v42 = vperm.slane %v3822_v27, 6 }
 0x15a   :  { %v1233_v45 = vadd.f32 %v1232_v30, %v1186_v57  ;;  %v4313_v21 = vadd.f32 %v1366_v29, %v4218_v53  ;;  %v4316_v32 = vadd.f32 %v1413_v40, %v4221_v7  ;;  %v4319_v44 = vadd.f32 %v1460_v9, %v4224_v20  ;;  %5220 = vst [vmem:[#allocation26_spill] sm:$0xff] %v4322_v15 }
 0x15b   :  { %v2321_v50 = vperm.slane %v3824_v55, 6  ;;  %v4325_v5 = vadd.f32 %v1507_v46, %v4227_v13  ;;  %v4328_v10 = vadd.f32 %v1554_v11, %v4230_v19  ;;  %v4331_v53 = vadd.f32 %v1601_v54, %v4234_v12  ;;  %v5221_v46 = vld [vmem:[#allocation11_spill] sm:$0xff] }
 0x15c   :  { %v1280_v3 = vadd.f32 %v1279_v18, %v1233_v45  ;;  %v4334_v7 = vadd.f32 %v1648_v16, %v4237_v39  ;;  %v2095_v8 = vmul.f32 %v2094_v58, %v825_v51  ;;  %v2134_v20 = vmul.f32 %v2133_v17, %v825_v51 }
 0x15d   :  { %v2181_v30 = vmul.f32 %v2180_v38, %v825_v51  ;;  %v2228_v29 = vmul.f32 %v2227_v23, %v825_v51  ;;  %v2275_v18 = vmul.f32 %v2274_v42, %v825_v51  ;;  %v2368_v40 = vperm.slane %v3826_v63, 6 }
 0x15e   :  { %2448 = vxpose.xlu1.b32.cont [4/16] %v1280_v3, 128  ;;  %v2415_v13 = vperm.slane %v3828_v43, 6  ;;  %v2322_v9 = vmul.f32 %v2321_v50, %v825_v51  ;;  %v956_v19 = vperm.slane %v5221_v46, 0  ;;  %v999_v11 = vperm.slane %v5221_v46, 1 }
 0x15f   :  { %v1046_v12 = vperm.slane %v5221_v46, 2  ;;  %v2369_v57 = vmul.f32 %v2368_v40, %v825_v51  ;;  %v1093_v54 = vperm.slane %v5221_v46, 3  ;;  %v1140_v47 = vperm.slane %v5221_v46, 4  ;;  %v5223_v40 = vld [vmem:[#allocation22_spill] sm:$0xff] }
 0x160   :  { %v2416_v39 = vmul.f32 %v2415_v13, %v825_v51  ;;  %v4344_v4 = vadd.f32 %v2095_v8, %v4241_v34  ;;  %v957_v58 = vmul.f32 %v956_v19, %v3707_v33  ;;  %v1000_v17 = vmul.f32 %v999_v11, %v5154_v56  ;;  %v786_v34 = vpop.f32.mrf.mxu0  ;;  %v904_v19 = vpop.f32.mrf.mxu3 }
 0x161   :  { %v1187_v38 = vperm.slane %v5221_v46, 5  ;;  %v4350_v45 = vadd.f32 %v2134_v20, %v4246_v0  ;;  %v4353_v16 = vadd.f32 %v2181_v30, %v4249_v6  ;;  %v4356_v51 = vadd.f32 %v2228_v29, %v4252_v52  ;;  %v414_v20 = vpop.permute.xlu1 %413 }
 0x162   :  { %v4359_v23 = vadd.f32 %v2275_v18, %v4255_v60  ;;  %v4362_v42 = vadd.f32 %v2322_v9, %v4261_v31  ;;  %v4365_v50 = vadd.f32 %v2369_v57, %v4269_v28  ;;  %v1001_v3 = vadd.f32 %v1000_v17, %v957_v58  ;;  %v409_v28 = vpop.permute.xlu0 %408  ;;  %v864_v18 = vpop.f32.mrf.mxu2 }
 0x163   :  { %v1047_v0 = vmul.f32 %v1046_v12, %v5156_v62  ;;  %v4369_v8 = vadd.f32 %v2416_v39, %v4272_v35  ;;  %v1094_v6 = vmul.f32 %v1093_v54, %v5157_v41  ;;  %v1141_v52 = vmul.f32 %v1140_v47, %v5194_v48  ;;  %v464_v9 = vpop.permute.xlu2 %463  ;;  %v5224_v35 = vld [vmem:[#allocation6_spill] sm:$0xff]  ;;  %v5225_v12 = vld [vmem:[#allocation37_spill] sm:$0xff]  ;;  %v5227_v47 = vld [vmem:[#allocation39_spill] sm:$0xff] }
 0x164   :  { %v1188_v60 = vmul.f32 %v1187_v38, %v5197_v61  ;;  %v1234_v31 = vperm.slane %v5221_v46, 6  ;;  %v1281_v29 = vperm.slane %v5221_v46, 7  ;;  %v787_v13 = vadd.f32 %v786_v34, %v5223_v40  ;;  %v5226_v39 = vld [vmem:[#allocation38_spill] sm:$0xff]  ;;  %v5228_v38 = vld [vmem:[#allocation40_spill] sm:$0xff] }
 0x165   :  { %5222 = vst [vmem:[#allocation29_spill] sm:$0xff] %v4369_v8  ;;  %v1048_v30 = vadd.f32 %v1047_v0, %v1001_v3  ;;  %v1329_v11 = vperm.slane %v5224_v35, 7  ;;  %v1368_v57 = vperm.slane %v5225_v12, 7  ;;  %v1415_v54 = vperm.slane %v5226_v39, 7  ;;  %v5229_v0 = vld [vmem:[#allocation41_spill] sm:$0xff]  ;;  %v5230_v46 = vld [vmem:[#allocation42_spill] sm:$0xff] }
 0x166   :  { %v1462_v58 = vperm.slane %v5227_v47, 7  ;;  %v1509_v3 = vperm.slane %v5228_v38, 7  ;;  %v1556_v37 = vperm.slane %v5229_v0, 7  ;;  %v1603_v15 = vperm.slane %v5230_v46, 7  ;;  %v5232_v34 = vld [vmem:[#allocation52_spill] sm:$0xff]  ;;  %v5233_v35 = vld [vmem:[#allocation17_spill] sm:$0xff]  ;;  %v826_v38 = vpop.f32.mrf.mxu1 }
 0x167   :  { %v1095_v17 = vadd.f32 %v1094_v6, %v1048_v30  ;;  %v4385_v61 = vadd.f32 %v5231_v22, %v414_v20  ;;  %v4388_v40 = vadd.f32 %v5232_v34, %v409_v28  ;;  %v4391_v2 = vadd.f32 %v864_v18, %v5233_v35 }
 0x168   :  { %v1330_v12 = vmul.f32 %v1329_v11, %v787_v13  ;;  %v1235_v47 = vmul.f32 %v1234_v31, %v5218_v59  ;;  %v1282_v6 = vmul.f32 %v1281_v29, %v5162_v24  ;;  %v4395_v30 = vadd.f32 %v904_v19, %v464_v9 }
 0x169   :  { %v1142_v39 = vadd.f32 %v1141_v52, %v1095_v17  ;;  %v1369_v0 = vmul.f32 %v1368_v57, %v787_v13  ;;  %v1416_v46 = vmul.f32 %v1415_v54, %v787_v13  ;;  %v1463_v8 = vmul.f32 %v1462_v58, %v787_v13  ;;  %v5235_v52 = vld [vmem:[#allocation49_spill] sm:$0xff] }
 0x16a   :  { %5234 = vst [vmem:[#allocation13_spill] sm:$0xff] %v4395_v30  ;;  %v1510_v22 = vmul.f32 %v1509_v3, %v787_v13  ;;  %v4398_v28 = vadd.f32 %v1330_v12, %v4303_v26  ;;  %v1557_v34 = vmul.f32 %v1556_v37, %v787_v13  ;;  %v1604_v18 = vmul.f32 %v1603_v15, %v787_v13  ;;  %v5236_v3 = vld [vmem:[#allocation14_spill] sm:$0xff] }
 0x16b   :  { %v1189_v20 = vadd.f32 %v1188_v60, %v1142_v39  ;;  %v1650_v11 = vperm.slane %v3772_v25, 7  ;;  %v827_v17 = vadd.f32 %v826_v38, %v5235_v52  ;;  %v2097_v31 = vperm.slane %v3814_v36, 7 }
 0x16c   :  { %v2136_v29 = vperm.slane %v3816_v49, 7  ;;  %v2183_v19 = vperm.slane %v3818_v14, 7  ;;  %v2230_v57 = vperm.slane %v3820_v1, 7  ;;  %v2277_v60 = vperm.slane %v3822_v27, 7 }
 0x16d   :  { %v1236_v9 = vadd.f32 %v1235_v47, %v1189_v20  ;;  %v4408_v26 = vadd.f32 %v1369_v0, %v4313_v21  ;;  %v4411_v37 = vadd.f32 %v1416_v46, %v4316_v32  ;;  %v1651_v25 = vmul.f32 %v1650_v11, %v787_v13  ;;  %v429_v11 = vpop.permute.xlu1 %428 }
 0x16e   :  { %v2324_v15 = vperm.slane %v3824_v55, 7  ;;  %v4415_v36 = vadd.f32 %v1463_v8, %v4319_v44  ;;  %v4418_v49 = vadd.f32 %v1510_v22, %v4325_v5  ;;  %v4421_v14 = vadd.f32 %v1557_v34, %v4328_v10 }
 0x16f   :  { %v1283_v54 = vadd.f32 %v1282_v6, %v1236_v9  ;;  %v4424_v1 = vadd.f32 %v1604_v18, %v4331_v53  ;;  %v2098_v27 = vmul.f32 %v2097_v31, %v827_v17  ;;  %v2137_v21 = vmul.f32 %v2136_v29, %v827_v17  ;;  %v424_v29 = vpop.permute.xlu0 %423  ;;  %v5238_v9 = vld [vmem:[#allocation45_spill] sm:$0xff] }
 0x170   :  { %v2184_v32 = vmul.f32 %v2183_v19, %v827_v17  ;;  %v4427_v13 = vadd.f32 %v1651_v25, %v4334_v7  ;;  %v2231_v55 = vmul.f32 %v2230_v57, %v827_v17  ;;  %v2278_v58 = vmul.f32 %v2277_v60, %v827_v17  ;;  %v5239_v60 = vld [vmem:[#allocation46_spill] sm:$0xff] }
 0x171   :  { %2449 = vxpose.xlu1.b32.cont [5/16] %v1283_v54, 128  ;;  %v2371_v44 = vperm.slane %v3826_v63, 7  ;;  %v2325_v8 = vmul.f32 %v2324_v15, %v827_v17  ;;  %v2418_v5 = vperm.slane %v3828_v43, 7  ;;  %v958_v10 = vperm.slane %v5236_v3, 0  ;;  %v5240_v15 = vld [vmem:[#allocation7_spill] sm:$0xff] }
 0x172   :  { %v1002_v35 = vperm.slane %v5236_v3, 1  ;;  %v1049_v12 = vperm.slane %v5236_v3, 2  ;;  %v1096_v39 = vperm.slane %v5236_v3, 3  ;;  %v1143_v47 = vperm.slane %v5236_v3, 4 }
 0x173   :  { %v2372_v53 = vmul.f32 %v2371_v44, %v827_v17  ;;  %v4437_v7 = vadd.f32 %v2098_v27, %v4344_v4  ;;  %v2419_v6 = vmul.f32 %v2418_v5, %v827_v17  ;;  %v959_v63 = vmul.f32 %v958_v10, %v3707_v33  ;;  %v5237_v17 = vld [vmem:[#allocation29_spill] sm:$0xff]  ;;  %v5243_v10 = vld [vmem:[#allocation55_spill] sm:$0xff] }
 0x174   :  { %v1003_v38 = vmul.f32 %v1002_v35, %v5154_v56  ;;  %v4442_v43 = vadd.f32 %v2137_v21, %v4350_v45  ;;  %v4445_v0 = vadd.f32 %v2184_v32, %v4353_v16  ;;  %v4448_v46 = vadd.f32 %v2231_v55, %v4356_v51  ;;  %v5241_v32 = vld [vmem:[#allocation30_spill] sm:$0xff] }
 0x175   :  { %v1190_v22 = vperm.slane %v5236_v3, 5  ;;  %v4452_v20 = vadd.f32 %v2278_v58, %v4359_v23  ;;  %v4455_v4 = vadd.f32 %v2325_v8, %v4362_v42  ;;  %v1050_v18 = vmul.f32 %v1049_v12, %v5156_v62  ;;  %v866_v42 = vpop.f32.mrf.mxu2  ;;  %v5242_v58 = vld [vmem:[#allocation15_spill] sm:$0xff]  ;;  %v444_v30 = vpop.permute.xlu1 %443 }
 0x176   :  { %v1004_v34 = vadd.f32 %v1003_v38, %v959_v63  ;;  %v4459_v45 = vadd.f32 %v2372_v53, %v4365_v50  ;;  %v1097_v16 = vmul.f32 %v1096_v39, %v5157_v41  ;;  %v1144_v51 = vmul.f32 %v1143_v47, %v5194_v48  ;;  %v5244_v53 = vld [vmem:[#allocation25_spill] sm:$0xff] }
 0x177   :  { %v1237_v52 = vperm.slane %v5236_v3, 6  ;;  %v4465_v31 = vadd.f32 %v2419_v6, %v5237_v17  ;;  %v1716_v19 = vperm.slane %v5238_v9, 0  ;;  %v1755_v57 = vperm.slane %v5238_v9, 1  ;;  %v5246_v6 = vld [vmem:[#allocation31_spill] sm:$0xff] }
 0x178   :  { %v1051_v23 = vadd.f32 %v1050_v18, %v1004_v34  ;;  %v1191_v25 = vmul.f32 %v1190_v22, %v5239_v60  ;;  %v1284_v50 = vperm.slane %v5236_v3, 7  ;;  %v4472_v54 = vadd.f32 %v5240_v15, %v429_v11  ;;  %v5247_v18 = vld [vmem:[#allocation5_spill] sm:$0xff] }
 0x179   :  { %v1802_v27 = vperm.slane %v5238_v9, 2  ;;  %v1717_v55 = vmul.f32 %v1716_v19, %v5241_v32  ;;  %v1756_v44 = vmul.f32 %v1755_v57, %v5242_v58  ;;  %v1849_v8 = vperm.slane %v5238_v9, 3 }
 0x17a   :  { %v1098_v21 = vadd.f32 %v1097_v16, %v1051_v23  ;;  %v1238_v5 = vmul.f32 %v1237_v52, %v5218_v59  ;;  %v4480_v35 = vadd.f32 %v5243_v10, %v424_v29  ;;  %v4483_v12 = vadd.f32 %v866_v42, %v5244_v53  ;;  %v5248_v23 = vld [vmem:[#allocation32_spill] sm:$0xff] }
 0x17b   :  { %v1896_v3 = vperm.slane %v5238_v9, 4  ;;  %v1757_v47 = vadd.f32 %v1756_v44, %v1717_v55  ;;  %v1803_v63 = vmul.f32 %v1802_v27, %v5246_v6  ;;  %v1943_v38 = vperm.slane %v5238_v9, 5  ;;  %v5250_v55 = vld [vmem:[#allocation34_spill] sm:$0xff] }
 0x17c   :  { %5245 = vst [vmem:[#allocation9_spill] sm:$0xff] %v4483_v12  ;;  %v1145_v39 = vadd.f32 %v1144_v51, %v1098_v21  ;;  %v1285_v22 = vmul.f32 %v1284_v50, %v5162_v24  ;;  %v1990_v34 = vperm.slane %v5238_v9, 6  ;;  %v960_v11 = vperm.slane %v5247_v18, 0  ;;  %v5249_v51 = vld [vmem:[#allocation33_spill] sm:$0xff] }
 0x17d   :  { %v1005_v16 = vperm.slane %v5247_v18, 1  ;;  %v1804_v17 = vadd.f32 %v1803_v63, %v1757_v47  ;;  %v1850_v29 = vmul.f32 %v1849_v8, %v5248_v23  ;;  %v2037_v42 = vperm.slane %v5238_v9, 7  ;;  %v5252_v63 = vld [vmem:[#allocation36_spill] sm:$0xff] }
 0x17e   :  { %v1192_v52 = vadd.f32 %v1191_v25, %v1145_v39  ;;  %v1897_v19 = vmul.f32 %v1896_v3, %v5249_v51  ;;  %v961_v57 = vmul.f32 %v960_v11, %v3707_v33  ;;  %v1052_v50 = vperm.slane %v5247_v18, 2  ;;  %v5251_v25 = vld [vmem:[#allocation35_spill] sm:$0xff] }
 0x17f   :  { %v1006_v15 = vmul.f32 %v1005_v16, %v5154_v56  ;;  %v1851_v21 = vadd.f32 %v1850_v29, %v1804_v17  ;;  %v1944_v44 = vmul.f32 %v1943_v38, %v5250_v55  ;;  %v1099_v10 = vperm.slane %v5247_v18, 3  ;;  %v5253_v29 = vld [vmem:[#allocation19_spill] sm:$0xff] }
 0x180   :  { %v1239_v27 = vadd.f32 %v1238_v5, %v1192_v52  ;;  %v1991_v53 = vmul.f32 %v1990_v34, %v5251_v25  ;;  %v1053_v8 = vmul.f32 %v1052_v50, %v5156_v62  ;;  %v1146_v9 = vperm.slane %v5247_v18, 4 }
 0x181   :  { %v1007_v39 = vadd.f32 %v1006_v15, %v961_v57  ;;  %v1898_v47 = vadd.f32 %v1897_v19, %v1851_v21  ;;  %v2038_v11 = vmul.f32 %v2037_v42, %v5252_v63  ;;  %v1100_v16 = vmul.f32 %v1099_v10, %v5157_v41 }
 0x182   :  { %v1286_v3 = vadd.f32 %v1285_v22, %v1239_v27  ;;  %v1147_v52 = vmul.f32 %v1146_v9, %v5194_v48  ;;  %v1193_v38 = vperm.slane %v5247_v18, 5  ;;  %v1240_v17 = vperm.slane %v5247_v18, 6  ;;  %v5254_v27 = vld [vmem:[#allocation28_spill] sm:$0xff] }
 0x183   :  { %v1054_v5 = vadd.f32 %v1053_v8, %v1007_v39  ;;  %v1945_v34 = vadd.f32 %v1944_v44, %v1898_v47  ;;  %v1718_v57 = vperm.slane %v5253_v29, 0  ;;  %v1758_v15 = vperm.slane %v5253_v29, 1 }
 0x184   :  { %2450 = vxpose.xlu1.b32.cont [6/16] %v1286_v3, 128  ;;  %v1805_v22 = vperm.slane %v5253_v29, 2  ;;  %v1194_v42 = vmul.f32 %v1193_v38, %v5239_v60  ;;  %v1287_v50 = vperm.slane %v5247_v18, 7  ;;  %v4514_v21 = vadd.f32 %v5254_v27, %v444_v30 }
 0x185   :  { %v1101_v19 = vadd.f32 %v1100_v16, %v1054_v5  ;;  %v1992_v10 = vadd.f32 %v1991_v53, %v1945_v34  ;;  %v1719_v39 = vmul.f32 %v1718_v57, %v5241_v32  ;;  %v1759_v8 = vmul.f32 %v1758_v15, %v5242_v58  ;;  %v439_v34 = vpop.permute.xlu0 %438  ;;  %v5256_v57 = vld [vmem:[#allocation44_spill] sm:$0xff] }
 0x186   :  { %5255 = vst [vmem:[#allocation27_spill] sm:$0xff] %v4514_v21  ;;  %v1852_v44 = vperm.slane %v5253_v29, 3  ;;  %v1241_v3 = vmul.f32 %v1240_v17, %v5218_v59  ;;  %v1288_v47 = vmul.f32 %v1287_v50, %v5162_v24  ;;  %v1899_v16 = vperm.slane %v5253_v29, 4 }
 0x187   :  { %v1148_v9 = vadd.f32 %v1147_v52, %v1101_v19  ;;  %v2039_v5 = vadd.f32 %v2038_v11, %v1992_v10  ;;  %v1760_v38 = vadd.f32 %v1759_v8, %v1719_v39  ;;  %v1806_v18 = vmul.f32 %v1805_v22, %v5246_v6  ;;  %v5257_v8 = vld [vmem:[#allocation16_spill] sm:$0xff] }
 0x188   :  { %v1946_v30 = vperm.slane %v5253_v29, 5  ;;  %v962_v27 = vperm.slane %v5256_v57, 0  ;;  %v1008_v15 = vperm.slane %v5256_v57, 1  ;;  %v1055_v52 = vperm.slane %v5256_v57, 2 }
 0x189   :  { %v1195_v53 = vadd.f32 %v1194_v42, %v1148_v9  ;;  %2477 = vxpose.xlu2.b32.start [1/16] %v2039_v5, 128  ;;  %v1807_v17 = vadd.f32 %v1806_v18, %v1760_v38  ;;  %v1853_v19 = vmul.f32 %v1852_v44, %v5248_v23  ;;  %v1993_v50 = vperm.slane %v5253_v29, 6 }
 0x18a   :  { %v2040_v11 = vperm.slane %v5253_v29, 7  ;;  %v963_v22 = vmul.f32 %v962_v27, %v3707_v33  ;;  %v1009_v42 = vmul.f32 %v1008_v15, %v5154_v56  ;;  %v1102_v39 = vperm.slane %v5256_v57, 3  ;;  %v459_v15 = vpop.permute.xlu1 %458 }
 0x18b   :  { %v1242_v10 = vadd.f32 %v1241_v3, %v1195_v53  ;;  %v4534_v9 = vadd.f32 %v5257_v8, %v439_v34  ;;  %v1854_v21 = vadd.f32 %v1853_v19, %v1807_v17  ;;  %v1900_v5 = vmul.f32 %v1899_v16, %v5249_v51 }
 0x18c   :  { %v1056_v38 = vmul.f32 %v1055_v52, %v5156_v62  ;;  %v1010_v18 = vadd.f32 %v1009_v42, %v963_v22  ;;  %v1149_v12 = vperm.slane %v5256_v57, 4  ;;  %v1196_v29 = vperm.slane %v5256_v57, 5  ;;  %v5258_v52 = vld [vmem:[#allocation21_spill] sm:$0xff] }
 0x18d   :  { %v1289_v44 = vadd.f32 %v1288_v47, %v1242_v10  ;;  %v1901_v3 = vadd.f32 %v1900_v5, %v1854_v21  ;;  %v1947_v33 = vmul.f32 %v1946_v30, %v5250_v55  ;;  %v1994_v56 = vmul.f32 %v1993_v50, %v5251_v25  ;;  %v5259_v5 = vld [vmem:[#allocation26_spill] sm:$0xff] }
 0x18e   :  { %v2041_v53 = vmul.f32 %v2040_v11, %v5252_v63  ;;  %v1057_v34 = vadd.f32 %v1056_v38, %v1010_v18  ;;  %v1103_v27 = vmul.f32 %v1102_v39, %v5157_v41  ;;  %v1243_v16 = vperm.slane %v5256_v57, 6 }
 0x18f   :  { %2451 = vxpose.xlu1.b32.cont [7/16] %v1289_v44, 128  ;;  %v1290_v62 = vperm.slane %v5256_v57, 7  ;;  %v1948_v47 = vadd.f32 %v1947_v33, %v1901_v3  ;;  %v1720_v17 = vperm.slane %v5258_v52, 0  ;;  %v1761_v21 = vperm.slane %v5258_v52, 1  ;;  %v5260_v33 = vld [vmem:[#allocation43_spill] sm:$0xff] }
 0x190   :  { %v1808_v30 = vperm.slane %v5258_v52, 2  ;;  %v1104_v19 = vadd.f32 %v1103_v27, %v1057_v34  ;;  %v1150_v50 = vmul.f32 %v1149_v12, %v5194_v48  ;;  %v1197_v11 = vmul.f32 %v1196_v29, %v5239_v60 }
 0x191   :  { %v1855_v10 = vperm.slane %v5258_v52, 3  ;;  %v1995_v41 = vadd.f32 %v1994_v56, %v1948_v47  ;;  %v1721_v22 = vmul.f32 %v1720_v17, %v5241_v32  ;;  %v1762_v57 = vmul.f32 %v1761_v21, %v5242_v58 }
 0x192   :  { %v1902_v42 = vperm.slane %v5258_v52, 4  ;;  %v1151_v39 = vadd.f32 %v1150_v50, %v1104_v19  ;;  %v1244_v8 = vmul.f32 %v1243_v16, %v5218_v59  ;;  %v4557_v38 = vadd.f32 %v5259_v5, %v459_v15 }
 0x193   :  { %v1949_v44 = vperm.slane %v5258_v52, 5  ;;  %v2042_v48 = vadd.f32 %v2041_v53, %v1995_v41  ;;  %v1763_v12 = vadd.f32 %v1762_v57, %v1721_v22  ;;  %v1809_v60 = vmul.f32 %v1808_v30, %v5246_v6 }
 0x194   :  { %v1996_v18 = vperm.slane %v5258_v52, 6  ;;  %v1198_v29 = vadd.f32 %v1197_v11, %v1151_v39  ;;  %v2043_v3 = vperm.slane %v5258_v52, 7  ;;  %v1332_v56 = vperm.slane %v5260_v33, 0 }
 0x195   :  { %v1371_v34 = vperm.slane %v5260_v33, 1  ;;  %2478 = vxpose.xlu2.b32.cont [2/16] %v2042_v48, 128  ;;  %v1291_v59 = vmul.f32 %v1290_v62, %v5162_v24  ;;  %v1810_v27 = vadd.f32 %v1809_v60, %v1763_v12  ;;  %v1856_v16 = vmul.f32 %v1855_v10, %v5248_v23 }
 0x196   :  { %v1903_v53 = vmul.f32 %v1902_v42, %v5249_v51  ;;  %v1245_v47 = vadd.f32 %v1244_v8, %v1198_v29  ;;  %v1333_v15 = vmul.f32 %v1332_v56, %v4398_v28  ;;  %v1418_v21 = vperm.slane %v5260_v33, 2 }
 0x197   :  { %v1372_v17 = vmul.f32 %v1371_v34, %v4408_v26  ;;  %v1857_v52 = vadd.f32 %v1856_v16, %v1810_v27  ;;  %v1950_v30 = vmul.f32 %v1949_v44, %v5250_v55  ;;  %v1997_v19 = vmul.f32 %v1996_v18, %v5251_v25 }
 0x198   :  { %v1465_v50 = vperm.slane %v5260_v33, 3  ;;  %v1292_v24 = vadd.f32 %v1291_v59, %v1245_v47  ;;  %v2044_v62 = vmul.f32 %v2043_v3, %v5252_v63  ;;  %v1419_v10 = vmul.f32 %v1418_v21, %v4411_v37 }
 0x199   :  { %v1373_v11 = vadd.f32 %v1372_v17, %v1333_v15  ;;  %v1904_v41 = vadd.f32 %v1903_v53, %v1857_v52  ;;  %v1512_v57 = vperm.slane %v5260_v33, 4  ;;  %v1559_v42 = vperm.slane %v5260_v33, 5 }
 0x19a   :  { %v1466_v22 = vmul.f32 %v1465_v50, %v4415_v36  ;;  %2452 = vxpose.xlu1.b32.cont [8/16] %v1292_v24, 128  ;;  %v1606_v8 = vperm.slane %v5260_v33, 6  ;;  %v1653_v5 = vperm.slane %v5260_v33, 7  ;;  %v1722_v44 = vperm.slane %v4388_v40, 0  ;;  %v5261_v50 = vld [vmem:[#allocation54_spill] sm:$0xff] }
 0x19b   :  { %v1420_v39 = vadd.f32 %v1419_v10, %v1373_v11  ;;  %v1951_v48 = vadd.f32 %v1950_v30, %v1904_v41  ;;  %v1513_v12 = vmul.f32 %v1512_v57, %v4418_v49  ;;  %v1764_v60 = vperm.slane %v4388_v40, 1 }
 0x19c   :  { %v1811_v18 = vperm.slane %v4388_v40, 2  ;;  %v1560_v3 = vmul.f32 %v1559_v42, %v4421_v14  ;;  %v1723_v56 = vmul.f32 %v1722_v44, %v5241_v32  ;;  %v1858_v34 = vperm.slane %v4388_v40, 3 }
 0x19d   :  { %v1467_v29 = vadd.f32 %v1466_v22, %v1420_v39  ;;  %v1998_v59 = vadd.f32 %v1997_v19, %v1951_v48  ;;  %v1607_v27 = vmul.f32 %v1606_v8, %v4424_v1  ;;  %v1765_v33 = vmul.f32 %v1764_v60, %v5242_v58 }
 0x19e   :  { %v1905_v16 = vperm.slane %v4388_v40, 4  ;;  %v1812_v47 = vmul.f32 %v1811_v18, %v5246_v6  ;;  %v1952_v15 = vperm.slane %v4388_v40, 5  ;;  %v1999_v17 = vperm.slane %v4388_v40, 6 }
 0x19f   :  { %v1514_v53 = vadd.f32 %v1513_v12, %v1467_v29  ;;  %v2045_v21 = vadd.f32 %v2044_v62, %v1998_v59  ;;  %v1766_v52 = vadd.f32 %v1765_v33, %v1723_v56  ;;  %v2046_v30 = vperm.slane %v4388_v40, 7 }
 0x1a0   :  { %v1334_v24 = vperm.slane %v5261_v50, 0  ;;  %v1654_v11 = vmul.f32 %v1653_v5, %v4427_v13  ;;  %v1859_v10 = vmul.f32 %v1858_v34, %v5248_v23  ;;  %v1374_v41 = vperm.slane %v5261_v50, 1 }
 0x1a1   :  { %v1561_v19 = vadd.f32 %v1560_v3, %v1514_v53  ;;  %2479 = vxpose.xlu2.b32.cont [3/16] %v2045_v21, 128  ;;  %v1813_v22 = vadd.f32 %v1812_v47, %v1766_v52  ;;  %v1906_v57 = vmul.f32 %v1905_v16, %v5249_v51  ;;  %v1421_v62 = vperm.slane %v5261_v50, 2 }
 0x1a2   :  { %v1335_v42 = vmul.f32 %v1334_v24, %v4398_v28  ;;  %v1953_v40 = vmul.f32 %v1952_v15, %v5250_v55  ;;  %v1375_v8 = vmul.f32 %v1374_v41, %v4408_v26  ;;  %v1468_v44 = vperm.slane %v5261_v50, 3 }
 0x1a3   :  { %v1608_v39 = vadd.f32 %v1607_v27, %v1561_v19  ;;  %v1860_v5 = vadd.f32 %v1859_v10, %v1813_v22  ;;  %v2000_v48 = vmul.f32 %v1999_v17, %v5251_v25  ;;  %v2047_v12 = vmul.f32 %v2046_v30, %v5252_v63 }
 0x1a4   :  { %v1422_v60 = vmul.f32 %v1421_v62, %v4411_v37  ;;  %v1376_v29 = vadd.f32 %v1375_v8, %v1335_v42  ;;  %v1469_v3 = vmul.f32 %v1468_v44, %v4415_v36  ;;  %v1515_v56 = vperm.slane %v5261_v50, 4 }
 0x1a5   :  { %v1655_v18 = vadd.f32 %v1654_v11, %v1608_v39  ;;  %v1907_v34 = vadd.f32 %v1906_v57, %v1860_v5  ;;  %v1562_v59 = vperm.slane %v5261_v50, 5  ;;  %v1609_v27 = vperm.slane %v5261_v50, 6  ;;  %v5262_v5 = vld [vmem:[#allocation24_spill] sm:$0xff] }
 0x1a6   :  { %v1724_v33 = vperm.slane %v4385_v61, 0  ;;  %v1423_v16 = vadd.f32 %v1422_v60, %v1376_v29  ;;  %v1516_v53 = vmul.f32 %v1515_v56, %v4418_v49  ;;  %v1767_v47 = vperm.slane %v4385_v61, 1 }
 0x1a7   :  { %2453 = vxpose.xlu1.b32.cont [9/16] %v1655_v18, 128  ;;  %v1814_v15 = vperm.slane %v4385_v61, 2  ;;  %v1954_v17 = vadd.f32 %v1953_v40, %v1907_v34  ;;  %v1563_v21 = vmul.f32 %v1562_v59, %v4421_v14  ;;  %v1656_v52 = vperm.slane %v5261_v50, 7 }
 0x1a8   :  { %v1725_v30 = vmul.f32 %v1724_v33, %v5241_v32  ;;  %v1470_v24 = vadd.f32 %v1469_v3, %v1423_v16  ;;  %v1768_v19 = vmul.f32 %v1767_v47, %v5242_v58  ;;  %v1861_v11 = vperm.slane %v4385_v61, 3 }
 0x1a9   :  { %v1908_v10 = vperm.slane %v4385_v61, 4  ;;  %v2001_v41 = vadd.f32 %v2000_v48, %v1954_v17  ;;  %v1610_v22 = vmul.f32 %v1609_v27, %v4424_v1  ;;  %v1657_v57 = vmul.f32 %v1656_v52, %v4427_v13 }
 0x1aa   :  { %v1955_v42 = vperm.slane %v4385_v61, 5  ;;  %v1517_v62 = vadd.f32 %v1516_v53, %v1470_v24  ;;  %v1769_v39 = vadd.f32 %v1768_v19, %v1725_v30  ;;  %v1815_v50 = vmul.f32 %v1814_v15, %v5246_v6 }
 0x1ab   :  { %v2002_v40 = vperm.slane %v4385_v61, 6  ;;  %v2048_v8 = vadd.f32 %v2047_v12, %v2001_v41  ;;  %v2049_v44 = vperm.slane %v4385_v61, 7  ;;  %v1336_v60 = vperm.slane %v5262_v5, 0  ;;  %v5263_v41 = vld [vmem:[#allocation23_spill] sm:$0xff] }
 0x1ac   :  { %v1377_v18 = vperm.slane %v5262_v5, 1  ;;  %v1564_v48 = vadd.f32 %v1563_v21, %v1517_v62  ;;  %v1816_v29 = vadd.f32 %v1815_v50, %v1769_v39  ;;  %v1862_v3 = vmul.f32 %v1861_v11, %v5248_v23 }
 0x1ad   :  { %v1909_v56 = vmul.f32 %v1908_v10, %v5249_v51  ;;  %2480 = vxpose.xlu2.b32.cont [4/16] %v2048_v8, 128  ;;  %v1956_v34 = vmul.f32 %v1955_v42, %v5250_v55  ;;  %v1337_v59 = vmul.f32 %v1336_v60, %v4398_v28  ;;  %v1424_v12 = vperm.slane %v5262_v5, 2 }
 0x1ae   :  { %v1378_v27 = vmul.f32 %v1377_v18, %v4408_v26  ;;  %v1611_v61 = vadd.f32 %v1610_v22, %v1564_v48  ;;  %v1863_v33 = vadd.f32 %v1862_v3, %v1816_v29  ;;  %v2003_v16 = vmul.f32 %v2002_v40, %v5251_v25 }
 0x1af   :  { %v1471_v53 = vperm.slane %v5262_v5, 3  ;;  %v2050_v47 = vmul.f32 %v2049_v44, %v5252_v63  ;;  %v1425_v17 = vmul.f32 %v1424_v12, %v4411_v37  ;;  %v1518_v21 = vperm.slane %v5262_v5, 4 }
 0x1b0   :  { %v1379_v15 = vadd.f32 %v1378_v27, %v1337_v59  ;;  %v1658_v52 = vadd.f32 %v1657_v57, %v1611_v61  ;;  %v1910_v30 = vadd.f32 %v1909_v56, %v1863_v33  ;;  %v1565_v19 = vperm.slane %v5262_v5, 5 }
 0x1b1   :  { %v1472_v24 = vmul.f32 %v1471_v53, %v4415_v36  ;;  %v1519_v10 = vmul.f32 %v1518_v21, %v4418_v49  ;;  %v1726_v22 = vperm.slane %v5263_v41, 0  ;;  %v1770_v42 = vperm.slane %v5263_v41, 1  ;;  %v5264_v53 = vld [vmem:[#allocation51_spill] sm:$0xff] }
 0x1b2   :  { %v1426_v11 = vadd.f32 %v1425_v17, %v1379_v15  ;;  %2454 = vxpose.xlu1.b32.cont [10/16] %v1658_v52, 128  ;;  %v1957_v62 = vadd.f32 %v1956_v34, %v1910_v30  ;;  %v1566_v39 = vmul.f32 %v1565_v19, %v4421_v14  ;;  %v1612_v50 = vperm.slane %v5262_v5, 6 }
 0x1b3   :  { %v1817_v57 = vperm.slane %v5263_v41, 2  ;;  %v1727_v8 = vmul.f32 %v1726_v22, %v5241_v32  ;;  %v1771_v44 = vmul.f32 %v1770_v42, %v5242_v58  ;;  %v1864_v60 = vperm.slane %v5263_v41, 3 }
 0x1b4   :  { %v1473_v40 = vadd.f32 %v1472_v24, %v1426_v11  ;;  %v2004_v18 = vadd.f32 %v2003_v16, %v1957_v62  ;;  %v1659_v48 = vperm.slane %v5262_v5, 7  ;;  %v1911_v29 = vperm.slane %v5263_v41, 4 }
 0x1b5   :  { %v1958_v3 = vperm.slane %v5263_v41, 5  ;;  %v1613_v34 = vmul.f32 %v1612_v50, %v4424_v1  ;;  %v1772_v59 = vadd.f32 %v1771_v44, %v1727_v8  ;;  %v1818_v27 = vmul.f32 %v1817_v57, %v5246_v6 }
 0x1b6   :  { %v1520_v56 = vadd.f32 %v1519_v10, %v1473_v40  ;;  %v2051_v12 = vadd.f32 %v2050_v47, %v2004_v18  ;;  %v2005_v61 = vperm.slane %v5263_v41, 6  ;;  %v2052_v33 = vperm.slane %v5263_v41, 7 }
 0x1b7   :  { %v1338_v15 = vperm.slane %v5264_v53, 0  ;;  %v1819_v17 = vadd.f32 %v1818_v27, %v1772_v59  ;;  %v1865_v5 = vmul.f32 %v1864_v60, %v5248_v23  ;;  %v1380_v21 = vperm.slane %v5264_v53, 1 }
 0x1b8   :  { %v1567_v16 = vadd.f32 %v1566_v39, %v1520_v56  ;;  %2481 = vxpose.xlu2.b32.cont [5/16] %v2051_v12, 128  ;;  %v1660_v52 = vmul.f32 %v1659_v48, %v4427_v13  ;;  %v1912_v30 = vmul.f32 %v1911_v29, %v5249_v51  ;;  %v1959_v24 = vmul.f32 %v1958_v3, %v5250_v55 }
 0x1b9   :  { %v1339_v47 = vmul.f32 %v1338_v15, %v4398_v28  ;;  %v1866_v11 = vadd.f32 %v1865_v5, %v1819_v17  ;;  %v1381_v10 = vmul.f32 %v1380_v21, %v4408_v26  ;;  %v1427_v41 = vperm.slane %v5264_v53, 2 }
 0x1ba   :  { %v1614_v19 = vadd.f32 %v1613_v34, %v1567_v16  ;;  %v2006_v22 = vmul.f32 %v2005_v61, %v5251_v25  ;;  %v2053_v42 = vmul.f32 %v2052_v33, %v5252_v63  ;;  %v1474_v62 = vperm.slane %v5264_v53, 3 }
 0x1bb   :  { %v1521_v39 = vperm.slane %v5264_v53, 4  ;;  %v1913_v57 = vadd.f32 %v1912_v30, %v1866_v11  ;;  %v1382_v40 = vadd.f32 %v1381_v10, %v1339_v47  ;;  %v1428_v8 = vmul.f32 %v1427_v41, %v4411_v37 }
 0x1bc   :  { %v1661_v50 = vadd.f32 %v1660_v52, %v1614_v19  ;;  %v1475_v44 = vmul.f32 %v1474_v62, %v4415_v36  ;;  %v1568_v60 = vperm.slane %v5264_v53, 5  ;;  %v1615_v18 = vperm.slane %v5264_v53, 6 }
 0x1bd   :  { %v1728_v48 = vperm.slane %v4480_v35, 0  ;;  %v1960_v29 = vadd.f32 %v1959_v24, %v1913_v57  ;;  %v1429_v3 = vadd.f32 %v1428_v8, %v1382_v40  ;;  %v1773_v56 = vperm.slane %v4480_v35, 1 }
 0x1be   :  { %2455 = vxpose.xlu1.b32.cont [11/16] %v1661_v50, 128  ;;  %v1820_v34 = vperm.slane %v4480_v35, 2  ;;  %v1522_v59 = vmul.f32 %v1521_v39, %v4418_v49  ;;  %v1569_v27 = vmul.f32 %v1568_v60, %v4421_v14  ;;  %v1867_v61 = vperm.slane %v4480_v35, 3 }
 0x1bf   :  { %v1729_v12 = vmul.f32 %v1728_v48, %v5241_v32  ;;  %v2007_v33 = vadd.f32 %v2006_v22, %v1960_v29  ;;  %v1476_v15 = vadd.f32 %v1475_v44, %v1429_v3  ;;  %v1774_v16 = vmul.f32 %v1773_v56, %v5242_v58  ;;  %v5265_v22 = vld [vmem:[#allocation10_spill] sm:$0xff] }
 0x1c0   :  { %v1914_v17 = vperm.slane %v4480_v35, 4  ;;  %v1616_v5 = vmul.f32 %v1615_v18, %v4424_v1  ;;  %v1662_v21 = vperm.slane %v5264_v53, 7  ;;  %v1821_v52 = vmul.f32 %v1820_v34, %v5246_v6 }
 0x1c1   :  { %v1961_v30 = vperm.slane %v4480_v35, 5  ;;  %v2054_v24 = vadd.f32 %v2053_v42, %v2007_v33  ;;  %v1523_v47 = vadd.f32 %v1522_v59, %v1476_v15  ;;  %v1775_v19 = vadd.f32 %v1774_v16, %v1729_v12 }
 0x1c2   :  { %v2008_v11 = vperm.slane %v4480_v35, 6  ;;  %v1663_v10 = vmul.f32 %v1662_v21, %v4427_v13  ;;  %v2055_v41 = vperm.slane %v4480_v35, 7  ;;  %v1340_v62 = vperm.slane %v5265_v22, 0 }
 0x1c3   :  { %v1383_v39 = vperm.slane %v5265_v22, 1  ;;  %2482 = vxpose.xlu2.b32.cont [6/16] %v2054_v24, 128  ;;  %v1570_v50 = vadd.f32 %v1569_v27, %v1523_v47  ;;  %v1822_v53 = vadd.f32 %v1821_v52, %v1775_v19  ;;  %v1868_v57 = vmul.f32 %v1867_v61, %v5248_v23 }
 0x1c4   :  { %v1915_v40 = vmul.f32 %v1914_v17, %v5249_v51  ;;  %v1962_v42 = vmul.f32 %v1961_v30, %v5250_v55  ;;  %v1341_v8 = vmul.f32 %v1340_v62, %v4398_v28  ;;  %v1430_v60 = vperm.slane %v5265_v22, 2 }
 0x1c5   :  { %v1384_v44 = vmul.f32 %v1383_v39, %v4408_v26  ;;  %v1617_v35 = vadd.f32 %v1616_v5, %v1570_v50  ;;  %v1869_v18 = vadd.f32 %v1868_v57, %v1822_v53  ;;  %v2009_v48 = vmul.f32 %v2008_v11, %v5251_v25 }
 0x1c6   :  { %v1477_v29 = vperm.slane %v5265_v22, 3  ;;  %v2056_v3 = vmul.f32 %v2055_v41, %v5252_v63  ;;  %v1431_v34 = vmul.f32 %v1430_v60, %v4411_v37  ;;  %v1524_v59 = vperm.slane %v5265_v22, 4 }
 0x1c7   :  { %v1385_v56 = vadd.f32 %v1384_v44, %v1341_v8  ;;  %v1664_v27 = vadd.f32 %v1663_v10, %v1617_v35  ;;  %v1916_v12 = vadd.f32 %v1915_v40, %v1869_v18  ;;  %v1571_v33 = vperm.slane %v5265_v22, 5  ;;  %v5266_v44 = vld [vmem:[#allocation48_spill] sm:$0xff] }
 0x1c8   :  { %v1478_v61 = vmul.f32 %v1477_v29, %v4415_v36  ;;  %v1525_v16 = vmul.f32 %v1524_v59, %v4418_v49  ;;  %v1730_v17 = vperm.slane %v4472_v54, 0  ;;  %v1776_v5 = vperm.slane %v4472_v54, 1 }
 0x1c9   :  { %v1432_v15 = vadd.f32 %v1431_v34, %v1385_v56  ;;  %2456 = vxpose.xlu1.b32.cont [12/16] %v1664_v27, 128  ;;  %v1963_v21 = vadd.f32 %v1962_v42, %v1916_v12  ;;  %v1572_v52 = vmul.f32 %v1571_v33, %v4421_v14  ;;  %v1618_v30 = vperm.slane %v5265_v22, 6 }
 0x1ca   :  { %v1823_v24 = vperm.slane %v4472_v54, 2  ;;  %v1731_v19 = vmul.f32 %v1730_v17, %v5241_v32  ;;  %v1777_v11 = vmul.f32 %v1776_v5, %v5242_v58  ;;  %v1870_v10 = vperm.slane %v4472_v54, 3 }
 0x1cb   :  { %v1479_v47 = vadd.f32 %v1478_v61, %v1432_v15  ;;  %v2010_v41 = vadd.f32 %v2009_v48, %v1963_v21  ;;  %v1665_v62 = vperm.slane %v5265_v22, 7  ;;  %v1917_v39 = vperm.slane %v4472_v54, 4 }
 0x1cc   :  { %v1964_v50 = vperm.slane %v4472_v54, 5  ;;  %v1619_v57 = vmul.f32 %v1618_v30, %v4424_v1  ;;  %v1778_v40 = vadd.f32 %v1777_v11, %v1731_v19  ;;  %v1824_v42 = vmul.f32 %v1823_v24, %v5246_v6 }
 0x1cd   :  { %v1526_v53 = vadd.f32 %v1525_v16, %v1479_v47  ;;  %v2057_v8 = vadd.f32 %v2056_v3, %v2010_v41  ;;  %v2011_v32 = vperm.slane %v4472_v54, 6  ;;  %v2058_v58 = vperm.slane %v4472_v54, 7 }
 0x1ce   :  { %v1342_v60 = vperm.slane %v5266_v44, 0  ;;  %v1825_v18 = vadd.f32 %v1824_v42, %v1778_v40  ;;  %v1871_v22 = vmul.f32 %v1870_v10, %v5248_v23  ;;  %v1386_v48 = vperm.slane %v5266_v44, 1 }
 0x1cf   :  { %v1573_v35 = vadd.f32 %v1572_v52, %v1526_v53  ;;  %2483 = vxpose.xlu2.b32.cont [7/16] %v2057_v8, 128  ;;  %v1666_v29 = vmul.f32 %v1665_v62, %v4427_v13  ;;  %v1918_v56 = vmul.f32 %v1917_v39, %v5249_v51  ;;  %v1965_v6 = vmul.f32 %v1964_v50, %v5250_v55  ;;  %v5267_v52 = vld [vmem:[#allocation20_spill] sm:$0xff] }
 0x1d0   :  { %v1343_v3 = vmul.f32 %v1342_v60, %v4398_v28  ;;  %v1872_v59 = vadd.f32 %v1871_v22, %v1825_v18  ;;  %v1387_v54 = vmul.f32 %v1386_v48, %v4408_v26  ;;  %v1433_v27 = vperm.slane %v5266_v44, 2 }
 0x1d1   :  { %v1620_v34 = vadd.f32 %v1619_v57, %v1573_v35  ;;  %v2012_v12 = vmul.f32 %v2011_v32, %v5251_v25  ;;  %v2059_v23 = vmul.f32 %v2058_v58, %v5252_v63  ;;  %v1480_v61 = vperm.slane %v5266_v44, 3 }
 0x1d2   :  { %v1527_v33 = vperm.slane %v5266_v44, 4  ;;  %v1919_v51 = vadd.f32 %v1918_v56, %v1872_v59  ;;  %v1388_v16 = vadd.f32 %v1387_v54, %v1343_v3  ;;  %v1434_v55 = vmul.f32 %v1433_v27, %v4411_v37 }
 0x1d3   :  { %v1667_v15 = vadd.f32 %v1666_v29, %v1620_v34  ;;  %v1481_v17 = vmul.f32 %v1480_v61, %v4415_v36  ;;  %v1574_v5 = vperm.slane %v5266_v44, 5  ;;  %v1621_v21 = vperm.slane %v5266_v44, 6 }
 0x1d4   :  { %v2100_v30 = vperm.slane %v5267_v52, 0  ;;  %v1966_v25 = vadd.f32 %v1965_v6, %v1919_v51  ;;  %v1435_v63 = vadd.f32 %v1434_v55, %v1388_v16  ;;  %v1528_v24 = vmul.f32 %v1527_v33, %v4418_v49 }
 0x1d5   :  { %2457 = vxpose.xlu1.b32.cont [13/16] %v1667_v15, 128  ;;  %v2139_v47 = vperm.slane %v5267_v52, 1  ;;  %v1575_v19 = vmul.f32 %v1574_v5, %v4421_v14  ;;  %v1668_v11 = vperm.slane %v5266_v44, 7  ;;  %v2186_v41 = vperm.slane %v5267_v52, 2 }
 0x1d6   :  { %v2101_v10 = vmul.f32 %v2100_v30, %v4437_v7  ;;  %v2013_v62 = vadd.f32 %v2012_v12, %v1966_v25  ;;  %v1482_v39 = vadd.f32 %v1481_v17, %v1435_v63  ;;  %v2233_v53 = vperm.slane %v5267_v52, 3 }
 0x1d7   :  { %v2140_v50 = vmul.f32 %v2139_v47, %v4442_v43  ;;  %v1622_v57 = vmul.f32 %v1621_v21, %v4424_v1  ;;  %v1669_v40 = vmul.f32 %v1668_v11, %v4427_v13  ;;  %v2187_v42 = vmul.f32 %v2186_v41, %v4445_v0 }
 0x1d8   :  { %v2280_v8 = vperm.slane %v5267_v52, 4  ;;  %v2060_v32 = vadd.f32 %v2059_v23, %v2013_v62  ;;  %v1529_v58 = vadd.f32 %v1528_v24, %v1482_v39  ;;  %v2234_v60 = vmul.f32 %v2233_v53, %v4448_v46 }
 0x1d9   :  { %v2141_v44 = vadd.f32 %v2140_v50, %v2101_v10  ;;  %v2327_v18 = vperm.slane %v5267_v52, 5  ;;  %v1344_v22 = vperm.slane %v4391_v2, 0  ;;  %v1389_v48 = vperm.slane %v4391_v2, 1 }
 0x1da   :  { %v2281_v35 = vmul.f32 %v2280_v8, %v4452_v20  ;;  %2484 = vxpose.xlu2.b32.cont [8/16] %v2060_v32, 128  ;;  %v1576_v29 = vadd.f32 %v1575_v19, %v1529_v58  ;;  %v2374_v6 = vperm.slane %v5267_v52, 6  ;;  %v2421_v3 = vperm.slane %v5267_v52, 7 }
 0x1db   :  { %v2188_v56 = vadd.f32 %v2187_v42, %v2141_v44  ;;  %v2328_v34 = vmul.f32 %v2327_v18, %v4455_v4  ;;  %v1345_v59 = vmul.f32 %v1344_v22, %v4398_v28  ;;  %v1390_v54 = vmul.f32 %v1389_v48, %v4408_v26  ;;  %v5268_v18 = vld [vmem:[#allocation9_spill] sm:$0xff]  ;;  %v454_v48 = vpop.permute.xlu0 %453 }
 0x1dc   :  { %v1436_v27 = vperm.slane %v4391_v2, 2  ;;  %v1623_v12 = vadd.f32 %v1622_v57, %v1576_v29  ;;  %v2375_v61 = vmul.f32 %v2374_v6, %v4459_v45  ;;  %v1483_v33 = vperm.slane %v4391_v2, 3 }
 0x1dd   :  { %v2235_v23 = vadd.f32 %v2234_v60, %v2188_v56  ;;  %v2422_v15 = vmul.f32 %v2421_v3, %v4465_v31  ;;  %v1391_v51 = vadd.f32 %v1390_v54, %v1345_v59  ;;  %v1530_v55 = vperm.slane %v4391_v2, 4 }
 0x1de   :  { %v1437_v16 = vmul.f32 %v1436_v27, %v4411_v37  ;;  %v1670_v17 = vadd.f32 %v1669_v40, %v1623_v12  ;;  %v1484_v21 = vmul.f32 %v1483_v33, %v4415_v36  ;;  %v1577_v52 = vperm.slane %v4391_v2, 5 }
 0x1df   :  { %v2282_v5 = vadd.f32 %v2281_v35, %v2235_v23  ;;  %v1531_v25 = vmul.f32 %v1530_v55, %v4418_v49  ;;  %v2102_v63 = vperm.slane %v4534_v9, 0  ;;  %v2142_v24 = vperm.slane %v4534_v9, 1 }
 0x1e0   :  { %v1438_v30 = vadd.f32 %v1437_v16, %v1391_v51  ;;  %2458 = vxpose.xlu1.b32.cont [14/16] %v1670_v17, 128  ;;  %v1624_v19 = vperm.slane %v4391_v2, 6  ;;  %v1671_v11 = vperm.slane %v4391_v2, 7  ;;  %v2189_v10 = vperm.slane %v4534_v9, 2 }
 0x1e1   :  { %v2329_v47 = vadd.f32 %v2328_v34, %v2282_v5  ;;  %v2103_v62 = vmul.f32 %v2102_v63, %v4437_v7  ;;  %v2143_v39 = vmul.f32 %v2142_v24, %v4442_v43  ;;  %v2236_v50 = vperm.slane %v4534_v9, 3 }
 0x1e2   :  { %v1485_v41 = vadd.f32 %v1484_v21, %v1438_v30  ;;  %v1578_v57 = vmul.f32 %v1577_v52, %v4421_v14  ;;  %v1625_v40 = vmul.f32 %v1624_v19, %v4424_v1  ;;  %v1672_v42 = vmul.f32 %v1671_v11, %v4427_v13 }
 0x1e3   :  { %v2376_v53 = vadd.f32 %v2375_v61, %v2329_v47  ;;  %v2144_v32 = vadd.f32 %v2143_v39, %v2103_v62  ;;  %v2190_v2 = vmul.f32 %v2189_v10, %v4445_v0  ;;  %v2283_v58 = vperm.slane %v4534_v9, 4 }
 0x1e4   :  { %v1532_v8 = vadd.f32 %v1531_v25, %v1485_v41  ;;  %v2330_v60 = vperm.slane %v4534_v9, 5  ;;  %v2377_v35 = vperm.slane %v4534_v9, 6  ;;  %v1346_v22 = vperm.slane %v5268_v18, 0  ;;  %v5270_v25 = vld [vmem:[#allocation27_spill] sm:$0xff] }
 0x1e5   :  { %v2423_v44 = vadd.f32 %v2422_v15, %v2376_v53  ;;  %v2191_v56 = vadd.f32 %v2190_v2, %v2144_v32  ;;  %v2237_v6 = vmul.f32 %v2236_v50, %v4448_v46  ;;  %v1392_v3 = vperm.slane %v5268_v18, 1  ;;  %v5269_v15 = vld [vmem:[#allocation8_spill] sm:$0xff] }
 0x1e6   :  { %v1579_v29 = vadd.f32 %v1578_v57, %v1532_v8  ;;  %v2424_v34 = vperm.slane %v4534_v9, 7  ;;  %v1347_v59 = vmul.f32 %v1346_v22, %v4398_v28  ;;  %v1439_v54 = vperm.slane %v5268_v18, 2 }
 0x1e7   :  { %2485 = vxpose.xlu2.b32.cont [9/16] %v2423_v44, 128  ;;  %v1486_v27 = vperm.slane %v5268_v18, 3  ;;  %v2238_v23 = vadd.f32 %v2237_v6, %v2191_v56  ;;  %v2284_v61 = vmul.f32 %v2283_v58, %v4452_v20  ;;  %v1393_v33 = vmul.f32 %v1392_v3, %v4408_v26 }
 0x1e8   :  { %v1626_v12 = vadd.f32 %v1625_v40, %v1579_v29  ;;  %v4797_v51 = vadd.f32 %v5269_v15, %v454_v48  ;;  %v2331_v16 = vmul.f32 %v2330_v60, %v4455_v4  ;;  %v2378_v55 = vmul.f32 %v2377_v35, %v4459_v45  ;;  %v5271_v35 = vld [vmem:[#allocation18_spill] sm:$0xff] }
 0x1e9   :  { %v1533_v9 = vperm.slane %v5268_v18, 4  ;;  %v2285_v17 = vadd.f32 %v2284_v61, %v2238_v23  ;;  %v1394_v5 = vadd.f32 %v1393_v33, %v1347_v59  ;;  %v1440_v21 = vmul.f32 %v1439_v54, %v4411_v37 }
 0x1ea   :  { %v1673_v28 = vadd.f32 %v1672_v42, %v1626_v12  ;;  %v2425_v52 = vmul.f32 %v2424_v34, %v4465_v31  ;;  %v1487_v30 = vmul.f32 %v1486_v27, %v4415_v36  ;;  %v1580_v26 = vperm.slane %v5268_v18, 5 }
 0x1eb   :  { %v2104_v63 = vperm.slane %v5270_v25, 0  ;;  %v2332_v24 = vadd.f32 %v2331_v16, %v2285_v17  ;;  %v1441_v47 = vadd.f32 %v1440_v21, %v1394_v5  ;;  %v2145_v19 = vperm.slane %v5270_v25, 1 }
 0x1ec   :  { %2459 = vxpose.xlu1.b32.cont [15/16] %v1673_v28, 128  ;;  %v2192_v11 = vperm.slane %v5270_v25, 2  ;;  %v1534_v10 = vmul.f32 %v1533_v9, %v4418_v49  ;;  %v1627_v41 = vperm.slane %v5268_v18, 6  ;;  %v1674_v37 = vperm.slane %v5268_v18, 7 }
 0x1ed   :  { %v2105_v62 = vmul.f32 %v2104_v63, %v4437_v7  ;;  %v2379_v36 = vadd.f32 %v2378_v55, %v2332_v24  ;;  %v1488_v39 = vadd.f32 %v1487_v30, %v1441_v47  ;;  %v2146_v50 = vmul.f32 %v2145_v19, %v4442_v43 }
 0x1ee   :  { %v2239_v53 = vperm.slane %v5270_v25, 3  ;;  %v1581_v57 = vmul.f32 %v1580_v26, %v4421_v14  ;;  %v2193_v40 = vmul.f32 %v2192_v11, %v4445_v0  ;;  %v2286_v42 = vperm.slane %v5270_v25, 4 }
 0x1ef   :  { %v2333_v49 = vperm.slane %v5270_v25, 5  ;;  %v2426_v8 = vadd.f32 %v2425_v52, %v2379_v36  ;;  %v1535_v32 = vadd.f32 %v1534_v10, %v1488_v39  ;;  %v2147_v2 = vadd.f32 %v2146_v50, %v2105_v62 }
 0x1f0   :  { %v2380_v58 = vperm.slane %v5270_v25, 6  ;;  %v1628_v44 = vmul.f32 %v1627_v41, %v4424_v1  ;;  %v2427_v60 = vperm.slane %v5270_v25, 7  ;;  %v2106_v18 = vperm.slane %v5271_v35, 0 }
 0x1f1   :  { %v2148_v22 = vperm.slane %v5271_v35, 1  ;;  %2486 = vxpose.xlu2.b32.cont [10/16] %v2426_v8, 128  ;;  %v1582_v14 = vadd.f32 %v1581_v57, %v1535_v32  ;;  %v1675_v48 = vmul.f32 %v1674_v37, %v4427_v13  ;;  %v2194_v29 = vadd.f32 %v2193_v40, %v2147_v2 }
 0x1f2   :  { %v2240_v56 = vmul.f32 %v2239_v53, %v4448_v46  ;;  %v2287_v6 = vmul.f32 %v2286_v42, %v4452_v20  ;;  %v2107_v3 = vmul.f32 %v2106_v18, %v4437_v7  ;;  %v2195_v1 = vperm.slane %v5271_v35, 2  ;;  %v469_v18 = vpop.permute.xlu0 %468 }
 0x1f3   :  { %v2149_v34 = vmul.f32 %v2148_v22, %v4442_v43  ;;  %v1629_v59 = vadd.f32 %v1628_v44, %v1582_v14  ;;  %v2334_v27 = vmul.f32 %v2333_v49, %v4455_v4  ;;  %v2381_v12 = vmul.f32 %v2380_v58, %v4459_v45  ;;  %v906_v22 = vpop.f32.mrf.mxu3 }
 0x1f4   :  { %v2241_v54 = vadd.f32 %v2240_v56, %v2194_v29  ;;  %v2428_v23 = vmul.f32 %v2427_v60, %v4465_v31  ;;  %v2196_v61 = vmul.f32 %v2195_v1, %v4445_v0  ;;  %v2242_v33 = vperm.slane %v5271_v35, 3 }
 0x1f5   :  { %v2150_v13 = vadd.f32 %v2149_v34, %v2107_v3  ;;  %v1676_v15 = vadd.f32 %v1675_v48, %v1629_v59  ;;  %v2289_v55 = vperm.slane %v5271_v35, 4  ;;  %v2336_v9 = vperm.slane %v5271_v35, 5 }
 0x1f6   :  { %v2288_v16 = vadd.f32 %v2287_v6, %v2241_v54  ;;  %v2243_v17 = vmul.f32 %v2242_v33, %v4448_v46  ;;  %v2108_v5 = vperm.slane %v4797_v51, 0  ;;  %v2151_v21 = vperm.slane %v4797_v51, 1 }
 0x1f7   :  { %v2197_v28 = vadd.f32 %v2196_v61, %v2150_v13  ;;  %2460 = vxpose.xlu1.b32.end [16/16] %v1676_v15, 128  ;;  %v2290_v30 = vmul.f32 %v2289_v55, %v4452_v20  ;;  %v2383_v26 = vperm.slane %v5271_v35, 6  ;;  %v2198_v25 = vperm.slane %v4797_v51, 2  ;;  %v5272_v61 = vld [vmem:[#allocation13_spill] sm:$0xff] }
 0x1f8   :  { %v2335_v52 = vadd.f32 %v2334_v27, %v2288_v16  ;;  %v2109_v24 = vmul.f32 %v2108_v5, %v4437_v7  ;;  %v2152_v47 = vmul.f32 %v2151_v21, %v4442_v43  ;;  %v2245_v19 = vperm.slane %v4797_v51, 3 }
 0x1f9   :  { %v2244_v63 = vadd.f32 %v2243_v17, %v2197_v28  ;;  %v2337_v10 = vmul.f32 %v2336_v9, %v4455_v4  ;;  %v2430_v41 = vperm.slane %v5271_v35, 7  ;;  %v2292_v37 = vperm.slane %v4797_v51, 4 }
 0x1fa   :  { %v2382_v11 = vadd.f32 %v2381_v12, %v2335_v52  ;;  %v2384_v36 = vmul.f32 %v2383_v26, %v4459_v45  ;;  %v2153_v39 = vadd.f32 %v2152_v47, %v2109_v24  ;;  %v2199_v50 = vmul.f32 %v2198_v25, %v4445_v0 }
 0x1fb   :  { %v2291_v62 = vadd.f32 %v2290_v30, %v2244_v63  ;;  %v2431_v57 = vmul.f32 %v2430_v41, %v4465_v31  ;;  %v2339_v40 = vperm.slane %v4797_v51, 5  ;;  %v2110_v42 = vperm.slane %v4557_v38, 0 }
 0x1fc   :  { %v2429_v53 = vadd.f32 %v2428_v23, %v2382_v11  ;;  %v2200_v8 = vadd.f32 %v2199_v50, %v2153_v39  ;;  %v2246_v32 = vmul.f32 %v2245_v19, %v4448_v46  ;;  %v2154_v2 = vperm.slane %v4557_v38, 1 }
 0x1fd   :  { %v2338_v49 = vadd.f32 %v2337_v10, %v2291_v62  ;;  %v2293_v58 = vmul.f32 %v2292_v37, %v4452_v20  ;;  %v2386_v44 = vperm.slane %v4797_v51, 6  ;;  %v2111_v60 = vmul.f32 %v2110_v42, %v4437_v7 }
 0x1fe   :  { %2487 = vxpose.xlu2.b32.cont [11/16] %v2429_v53, 128  ;;  %v2201_v35 = vperm.slane %v4557_v38, 2  ;;  %v2247_v48 = vadd.f32 %v2246_v32, %v2200_v8  ;;  %v2155_v29 = vmul.f32 %v2154_v2, %v4442_v43  ;;  %v2248_v56 = vperm.slane %v4557_v38, 3 }
 0x1ff   :  { %v2385_v14 = vadd.f32 %v2384_v36, %v2338_v49  ;;  %v2340_v6 = vmul.f32 %v2339_v40, %v4455_v4  ;;  %v2433_v3 = vperm.slane %v4797_v51, 7  ;;  %v2295_v34 = vperm.slane %v4557_v38, 4 }
 0x200   :  { %v2294_v59 = vadd.f32 %v2293_v58, %v2247_v48  ;;  %v2156_v54 = vadd.f32 %v2155_v29, %v2111_v60  ;;  %v2202_v27 = vmul.f32 %v2201_v35, %v4445_v0  ;;  %v4866_v12 = vadd.f32 %v906_v22, %v469_v18 }
 0x201   :  { %v2432_v1 = vadd.f32 %v2431_v57, %v2385_v14  ;;  %v2387_v23 = vmul.f32 %v2386_v44, %v4459_v45  ;;  %v2342_v13 = vperm.slane %v4557_v38, 5  ;;  %v2112_v33 = vperm.slane %v5272_v61, 0 }
 0x202   :  { %v2341_v15 = vadd.f32 %v2340_v6, %v2294_v59  ;;  %v2203_v16 = vadd.f32 %v2202_v27, %v2156_v54  ;;  %v2249_v55 = vmul.f32 %v2248_v56, %v4448_v46  ;;  %v2157_v51 = vperm.slane %v5272_v61, 1 }
 0x203   :  { %v2434_v9 = vmul.f32 %v2433_v3, %v4465_v31  ;;  %v2296_v28 = vmul.f32 %v2295_v34, %v4452_v20  ;;  %v2389_v17 = vperm.slane %v4557_v38, 6  ;;  %v2113_v5 = vmul.f32 %v2112_v33, %v4437_v7 }
 0x204   :  { %v2388_v21 = vadd.f32 %v2387_v23, %v2341_v15  ;;  %v2250_v52 = vadd.f32 %v2249_v55, %v2203_v16  ;;  %v2158_v30 = vmul.f32 %v2157_v51, %v4442_v43  ;;  %v2204_v26 = vperm.slane %v5272_v61, 2 }
 0x205   :  { %v2343_v25 = vmul.f32 %v2342_v13, %v4455_v4  ;;  %v2436_v63 = vperm.slane %v4557_v38, 7  ;;  %v2251_v24 = vperm.slane %v5272_v61, 3  ;;  %v2390_v41 = vmul.f32 %v2389_v17, %v4459_v45 }
 0x206   :  { %2488 = vxpose.xlu2.b32.cont [12/16] %v2432_v1, 128  ;;  %v2435_v47 = vadd.f32 %v2434_v9, %v2388_v21  ;;  %v2297_v19 = vadd.f32 %v2296_v28, %v2250_v52  ;;  %v2159_v11 = vadd.f32 %v2158_v30, %v2113_v5  ;;  %v2205_v10 = vmul.f32 %v2204_v26, %v4445_v0 }
 0x207   :  { %v2298_v37 = vperm.slane %v5272_v61, 4  ;;  %v2114_v62 = vperm.slane %v4866_v12, 0  ;;  %v2160_v36 = vperm.slane %v4866_v12, 1  ;;  %v2252_v53 = vmul.f32 %v2251_v24, %v4448_v46 }
 0x208   :  { %v2344_v39 = vadd.f32 %v2343_v25, %v2297_v19  ;;  %v2206_v50 = vadd.f32 %v2205_v10, %v2159_v11  ;;  %v2207_v38 = vperm.slane %v4866_v12, 2  ;;  %v2437_v57 = vmul.f32 %v2436_v63, %v4465_v31 }
 0x209   :  { %v2115_v40 = vmul.f32 %v2114_v62, %v4437_v7  ;;  %v2161_v42 = vmul.f32 %v2160_v36, %v4442_v43  ;;  %v2254_v49 = vperm.slane %v4866_v12, 3  ;;  %v2299_v2 = vmul.f32 %v2298_v37, %v4452_v20 }
 0x20a   :  { %v2391_v8 = vadd.f32 %v2390_v41, %v2344_v39  ;;  %v2253_v32 = vadd.f32 %v2252_v53, %v2206_v50  ;;  %v2345_v58 = vperm.slane %v5272_v61, 5  ;;  %v2208_v60 = vmul.f32 %v2207_v38, %v4445_v0 }
 0x20b   :  { %v2162_v44 = vadd.f32 %v2161_v42, %v2115_v40  ;;  %v2301_v35 = vperm.slane %v4866_v12, 4  ;;  %v2392_v7 = vperm.slane %v5272_v61, 6  ;;  %v2255_v48 = vmul.f32 %v2254_v49, %v4448_v46 }
 0x20c   :  { %v2438_v18 = vadd.f32 %v2437_v57, %v2391_v8  ;;  %v2300_v22 = vadd.f32 %v2299_v2, %v2253_v32  ;;  %v2346_v14 = vmul.f32 %v2345_v58, %v4455_v4  ;;  %v2348_v29 = vperm.slane %v4866_v12, 5 }
 0x20d   :  { %v2209_v43 = vadd.f32 %v2208_v60, %v2162_v44  ;;  %v2393_v6 = vmul.f32 %v2392_v7, %v4459_v45  ;;  %v2439_v3 = vperm.slane %v5272_v61, 7  ;;  %v2302_v34 = vmul.f32 %v2301_v35, %v4452_v20 }
 0x20e   :  { %2489 = vxpose.xlu2.b32.cont [13/16] %v2435_v47, 128  ;;  %v2347_v56 = vadd.f32 %v2346_v14, %v2300_v22  ;;  %v2395_v1 = vperm.slane %v4866_v12, 6  ;;  %v2349_v23 = vmul.f32 %v2348_v29, %v4455_v4  ;;  %v2442_v46 = vperm.slane %v4866_v12, 7 }
 0x20f   :  { %v2256_v0 = vadd.f32 %v2255_v48, %v2209_v43  ;;  %v2440_v54 = vmul.f32 %v2439_v3, %v4465_v31 }
 0x210   :  { %v2394_v59 = vadd.f32 %v2393_v6, %v2347_v56  ;;  %v2396_v15 = vmul.f32 %v2395_v1, %v4459_v45  ;;  %v2443_v61 = vmul.f32 %v2442_v46, %v4465_v31 }
 0x211   :  { %v2303_v27 = vadd.f32 %v2302_v34, %v2256_v0 }
 0x212   :  { %v2441_v13 = vadd.f32 %v2440_v54, %v2394_v59 }
 0x213   :  { %v2350_v33 = vadd.f32 %v2349_v23, %v2303_v27 }
 0x215   :  { %v2397_v16 = vadd.f32 %v2396_v15, %v2350_v33 }
 0x216   :  { %2490 = vxpose.xlu2.b32.cont [14/16] %v2438_v18, 128 }
 0x217   :  { %v2444_v55 = vadd.f32 %v2443_v61, %v2397_v16 }
 0x21e   :  { %2491 = vxpose.xlu2.b32.cont [15/16] %v2441_v13, 128 }
 0x223   :  { %v2461_v20 = vpop.trf.xlu1 }
 0x224   :  { %2509 = vst [vmem:[#allocation2] sm:$0xff] %v2461_v20 }
 0x226   :  { %2492 = vxpose.xlu2.b32.end [16/16] %v2444_v55, 128 }
 0x22b   :  { %v2462_v51 = vpop.trf.xlu1 }
 0x22c   :  { %2511 = vst [vmem:[#allocation2 + $0x10] sm:$0xff] %v2462_v51 }
 0x233   :  { %v2463_v9 = vpop.trf.xlu1 }
 0x234   :  { %2513 = vst [vmem:[#allocation2 + $0x20] sm:$0xff] %v2463_v9 }
 0x23b   :  { %v2464_v4 = vpop.trf.xlu1 }
 0x23c   :  { %2515 = vst [vmem:[#allocation2 + $0x30] sm:$0xff] %v2464_v4 }
 0x243   :  { %v2465_v28 = vpop.trf.xlu1 }
 0x244   :  { %2517 = vst [vmem:[#allocation2 + $0x40] sm:$0xff] %v2465_v28 }
 0x247   :  { %v2493_v12 = vpop.trf.xlu2 }
 0x248   :  { %2510 = vst [vmem:[#allocation2 + $0x8] sm:$0xff] %v2493_v12 }
 0x24b   :  { %v2466_v17 = vpop.trf.xlu1 }
 0x24c   :  { %2519 = vst [vmem:[#allocation2 + $0x50] sm:$0xff] %v2466_v17 }
 0x24f   :  { %v2494_v45 = vpop.trf.xlu2 }
 0x250   :  { %2512 = vst [vmem:[#allocation2 + $0x18] sm:$0xff] %v2494_v45 }
 0x253   :  { %v2467_v5 = vpop.trf.xlu1 }
 0x254   :  { %2521 = vst [vmem:[#allocation2 + $0x60] sm:$0xff] %v2467_v5 }
 0x257   :  { %v2495_v31 = vpop.trf.xlu2 }
 0x258   :  { %2514 = vst [vmem:[#allocation2 + $0x28] sm:$0xff] %v2495_v31 }
 0x25b   :  { %v2468_v52 = vpop.trf.xlu1 }
 0x25c   :  { %2523 = vst [vmem:[#allocation2 + $0x70] sm:$0xff] %v2468_v52 }
 0x25f   :  { %v2496_v21 = vpop.trf.xlu2 }
 0x260   :  { %2516 = vst [vmem:[#allocation2 + $0x38] sm:$0xff] %v2496_v21 }
 0x263   :  { %v2469_v26 = vpop.trf.xlu1 }
 0x264   :  { %2525 = vst [vmem:[#allocation2 + $0x80] sm:$0xff] %v2469_v26 }
 0x267   :  { %v2497_v30 = vpop.trf.xlu2 }
 0x268   :  { %2518 = vst [vmem:[#allocation2 + $0x48] sm:$0xff] %v2497_v30 }
 0x26b   :  { %v2470_v63 = vpop.trf.xlu1 }
 0x26c   :  { %2527 = vst [vmem:[#allocation2 + $0x90] sm:$0xff] %v2470_v63 }
 0x26f   :  { %v2498_v25 = vpop.trf.xlu2 }
 0x270   :  { %2520 = vst [vmem:[#allocation2 + $0x58] sm:$0xff] %v2498_v25 }
 0x273   :  { %v2471_v47 = vpop.trf.xlu1 }
 0x274   :  { %2529 = vst [vmem:[#allocation2 + $0xa0] sm:$0xff] %v2471_v47 }
 0x277   :  { %v2499_v24 = vpop.trf.xlu2 }
 0x278   :  { %2522 = vst [vmem:[#allocation2 + $0x68] sm:$0xff] %v2499_v24 }
 0x27b   :  { %v2472_v11 = vpop.trf.xlu1 }
 0x27c   :  { %2531 = vst [vmem:[#allocation2 + $0xb0] sm:$0xff] %v2472_v11 }
 0x27f   :  { %v2500_v19 = vpop.trf.xlu2 }
 0x280   :  { %2524 = vst [vmem:[#allocation2 + $0x78] sm:$0xff] %v2500_v19 }
 0x283   :  { %v2473_v41 = vpop.trf.xlu1 }
 0x284   :  { %2533 = vst [vmem:[#allocation2 + $0xc0] sm:$0xff] %v2473_v41 }
 0x287   :  { %v2501_v10 = vpop.trf.xlu2 }
 0x288   :  { %2526 = vst [vmem:[#allocation2 + $0x88] sm:$0xff] %v2501_v10 }
 0x28b   :  { %v2474_v62 = vpop.trf.xlu1 }
 0x28c   :  { %2535 = vst [vmem:[#allocation2 + $0xd0] sm:$0xff] %v2474_v62 }
 0x28f   :  { %v2502_v37 = vpop.trf.xlu2 }
 0x290   :  { %2528 = vst [vmem:[#allocation2 + $0x98] sm:$0xff] %v2502_v37 }
 0x293   :  { %v2475_v39 = vpop.trf.xlu1 }
 0x294   :  { %2537 = vst [vmem:[#allocation2 + $0xe0] sm:$0xff] %v2475_v39 }
 0x297   :  { %v2503_v36 = vpop.trf.xlu2 }
 0x298   :  { %2530 = vst [vmem:[#allocation2 + $0xa8] sm:$0xff] %v2503_v36 }
 0x29b   :  { %v2476_v53 = vpop.trf.xlu1 }
 0x29c   :  { %2539 = vst [vmem:[#allocation2 + $0xf0] sm:$0xff] %v2476_v53 }
 0x29f   :  { %v2504_v50 = vpop.trf.xlu2 }
 0x2a0   :  { %2532 = vst [vmem:[#allocation2 + $0xb8] sm:$0xff] %v2504_v50 }
 0x2a7   :  { %v2505_v38 = vpop.trf.xlu2 }
 0x2a8   :  { %2534 = vst [vmem:[#allocation2 + $0xc8] sm:$0xff] %v2505_v38 }
 0x2af   :  { %v2506_v57 = vpop.trf.xlu2 }
 0x2b0   :  { %2536 = vst [vmem:[#allocation2 + $0xd8] sm:$0xff] %v2506_v57 }
 0x2b7   :  { %v2507_v40 = vpop.trf.xlu2 }
 0x2b8   :  { %2538 = vst [vmem:[#allocation2 + $0xe8] sm:$0xff] %v2507_v40 }
 0x2bf   :  { %v2508_v42 = vpop.trf.xlu2 }
 0x2c0   :  { %2540 = vst [vmem:[#allocation2 + $0xf8] sm:$0xff] %v2508_v42 }
 0x2c1   :  { %2553 = dma.vmem_to_hbm [thread:$0]  %s2546_s24, 4096, %s2548_s26, [#allocation3], %s2881_s27, %s2881_s27, %s2882_s28  }
 0x2c2   :  { %2877 = dma.done.wait [#allocation3], 4096  }
 0x2c3   :  { %2878 = vsyncadd [#allocation3], 4294963200 }
 0x2c4   :  { %2558 = vsyncpa [#allocation3], 1 }

</bundles_post_ra>
